<compile_context>
chip_gen: v7x
topology: tpu7x:2x2x1
jax: 0.10.0
libtpu: 0.0.40
codegen_flags: <defaults>
</compile_context>

<pallas_src>
import functools
import math

import jax
import jax.numpy as jnp
from jax import lax
from jax.experimental import pallas as pl
from jax.experimental.pallas import tpu as pltpu

PAD = 2   # halo serving both the (zero-padded-to-5x5) 3x3 and the 5x5 taps
K5 = 5    # fused tap window


def _zero_border(ref, pad):
    """Zero the `pad`-wide spatial halo of an (Hp, Wp, C) VMEM scratch ref."""
    Hp, Wp, C = ref.shape
    ref[0:pad, :, :] = jnp.zeros((pad, Wp, C), ref.dtype)
    ref[Hp - pad:Hp, :, :] = jnp.zeros((pad, Wp, C), ref.dtype)
    ref[pad:Hp - pad, 0:pad, :] = jnp.zeros((Hp - 2 * pad, pad, C), ref.dtype)
    ref[pad:Hp - pad, Wp - pad:Wp, :] = jnp.zeros((Hp - 2 * pad, pad, C), ref.dtype)


def _msrb_kernel(x_hwc_ref, x_chw_ref,
                 w_l1_ref, b_l1_ref, w_l2_ref, b_l2_ref, w1_ref, b1_ref,
                 o_ref,
                 xpad_ref, x1pad_ref, col1_ref, col2_ref,
                 *, H, W, C, mxu_dtype):
    """One batch element of the full MSRB block, entirely in VMEM."""
    HW = H * W
    f32 = jnp.float32

    # Refresh the zero halo every grid step (see header note on "parallel").
    _zero_border(xpad_ref, PAD)
    _zero_border(x1pad_ref, PAD)

    xpad_ref[PAD:PAD + H, PAD:PAD + W, :] = x_hwc_ref[0].astype(xpad_ref.dtype)

    def fused_level(src_ref, col_ref, w_ref, b_ref):
        """One MSRB level: fused [3x3|5x5] conv via 25-tap im2col + ONE matmul."""
        cin = src_ref.shape[-1]
        # Build (H, W, 25*cin) im2col scratch; each write is an un-reshaped
        # (H, W, cin) window copy (no relayout; dst offsets are static).
        for i in range(K5):
            for j in range(K5):
                c0 = (i * K5 + j) * cin
                col_ref[:, :, c0:c0 + cin] = (
                    src_ref[i:i + H, j:j + W, :].astype(col_ref.dtype))
        # Single contiguous reshape (W is a sublane multiple), then one big-K
        # MXU matmul with f32 accumulation and fused bias+ReLU (f32 epilogue).
        patches = col_ref[...].reshape(HW, K5 * K5 * cin)       # bf16/f32
        y = jnp.dot(patches, w_ref[...], preferred_element_type=f32)
        return jnp.maximum(y + b_ref[...], 0.0)                  # (HW, 2C) f32

    # ---- level 1: fused 3x3/5x5 on x; output columns are [s1 | p1] ---------
    y1 = fused_level(xpad_ref, col1_ref, w_l1_ref, b_l1_ref)     # (HW, 2C)
    # x1 = cat([s1, p1], C): single interior store of the padded level-2 buf.
    x1pad_ref[PAD:PAD + H, PAD:PAD + W, :] = (
        y1.reshape(H, W, 2 * C).astype(x1pad_ref.dtype))

    # ---- level 2: fused 3x3/5x5 on x1; output columns are [s2 | p2] --------
    y2 = fused_level(x1pad_ref, col2_ref, w_l2_ref, b_l2_ref)    # (HW, 2C)

    # ---- 1x1 conv over cat([s2, p2]) + residual, channel-major so the only
    # HBM store is a lane-dense (C, HW) slab (flattened NCHW).  dot_general
    # contracts both channel axes directly -> no materialized transpose. ----
    res = lax.dot_general(w1_ref[...], y2.astype(mxu_dtype),
                          dimension_numbers=(((1,), (1,)), ((), ())),
                          preferred_element_type=f32)            # (C, HW)
    res = res + b1_ref[...] + x_chw_ref[0].astype(f32)
    o_ref[...] = res.astype(o_ref.dtype)[None]                   # (1, C, HW)


@functools.partial(jax.jit, static_argnames=("mxu_dtype",))
def msrb_forward(x_nchw, params, *, mxu_dtype=jnp.bfloat16):
    """MSRB.forward.  x: (N, n_feats, H, W) NCHW -> (N, n_feats, H, W)."""
    N, C, H, W = x_nchw.shape
    HW = H * W
    Hp, Wp = H + 2 * PAD, W + 2 * PAD
    out_dtype = x_nchw.dtype
    f32 = jnp.float32

    # One-off layout prep on input only (intermediates never leave VMEM).
    x_nhwc = jnp.transpose(x_nchw, (0, 2, 3, 1))       # conv path
    x_flat = x_nchw.reshape(N, C, HW)                  # residual / output path

    def pad3to5(w):                                    # exact: adds zero taps
        return jnp.pad(w, ((0, 0), (0, 0), (1, 1), (1, 1)))

    def prep_w(w_oihw):                                # OIHW -> (k*k*Cin, Cout)
        co, ci, kh, kw = w_oihw.shape
        return jnp.transpose(w_oihw, (2, 3, 1, 0)).reshape(kh * kw * ci, co)

    w3a, b3a = params["conv3x3_1"]
    w5a, b5a = params["conv5x5_1"]
    w3b, b3b = params["conv3x3_2"]
    w5b, b5b = params["conv5x5_2"]
    w1, b1 = params["conv1x1"]

    # Fused per-level weights: [3x3 (zero-padded to 5x5) | 5x5] along Cout.
    w_l1 = jnp.concatenate([prep_w(pad3to5(w3a)), prep_w(w5a)], axis=1)  # (25C, 2C)
    w_l2 = jnp.concatenate([prep_w(pad3to5(w3b)), prep_w(w5b)], axis=1)  # (50C, 2C)
    b_l1 = jnp.concatenate([b3a, b5a]).reshape(1, 2 * C).astype(f32)
    b_l2 = jnp.concatenate([b3b, b5b]).reshape(1, 2 * C).astype(f32)
    w_l1 = w_l1.astype(mxu_dtype)
    w_l2 = w_l2.astype(mxu_dtype)
    w1m = w1[:, :, 0, 0].astype(mxu_dtype)             # (C, 2C)
    b1v = b1.reshape(C, 1).astype(f32)

    kernel = functools.partial(_msrb_kernel, H=H, W=W, C=C, mxu_dtype=mxu_dtype)
    full2d = lambda a: pl.BlockSpec(a.shape, lambda n: (0, 0))

    out = pl.pallas_call(
        kernel,
        out_shape=jax.ShapeDtypeStruct((N, C, HW), out_dtype),
        grid_spec=pltpu.PrefetchScalarGridSpec(
            num_scalar_prefetch=0,
            grid=(N,),
            in_specs=[
                pl.BlockSpec((1, H, W, C), lambda n: (n, 0, 0, 0)),   # x NHWC
                pl.BlockSpec((1, C, HW), lambda n: (n, 0, 0)),        # x NCHW-flat
                full2d(w_l1), full2d(b_l1),
                full2d(w_l2), full2d(b_l2),
                full2d(w1m), full2d(b1v),
            ],
            out_specs=pl.BlockSpec((1, C, HW), lambda n: (n, 0, 0)),
            scratch_shapes=[
                pltpu.VMEM((Hp, Wp, C), f32),              # padded x (halo=2)
                pltpu.VMEM((Hp, Wp, 2 * C), f32),          # padded cat([s1,p1])
                pltpu.VMEM((H, W, 25 * C), mxu_dtype),     # level-1 im2col
                pltpu.VMEM((H, W, 25 * 2 * C), mxu_dtype), # level-2 im2col
            ],
        ),
        compiler_params=pltpu.CompilerParams(
            dimension_semantics=("parallel",),
            vmem_limit_bytes=32 * 1024 * 1024,
        ),
    )(x_nhwc, x_flat, w_l1, b_l1, w_l2, b_l2, w1m, b1v)

    return out.reshape(N, C, H, W)


def _init_conv(key, cin, cout, k, dtype=jnp.float32):
    """PyTorch nn.Conv2d default init: U(-1/sqrt(fan_in), 1/sqrt(fan_in))."""
    kw, kb = jax.random.split(key)
    fan_in = cin * k * k
    bound = 1.0 / math.sqrt(fan_in)
    w = jax.random.uniform(kw, (cout, cin, k, k), dtype, minval=-bound, maxval=bound)
    b = jax.random.uniform(kb, (cout,), dtype, minval=-bound, maxval=bound)
    return w, b


def make_msrb_params(key, n_feats, dtype=jnp.float32):
    ks = jax.random.split(key, 5)
    C = n_feats
    return {
        "conv3x3_1": _init_conv(ks[0], C, C, 3, dtype),
        "conv5x5_1": _init_conv(ks[1], C, C, 5, dtype),
        "conv3x3_2": _init_conv(ks[2], 2 * C, C, 3, dtype),
        "conv5x5_2": _init_conv(ks[3], 2 * C, C, 5, dtype),
        "conv1x1":   _init_conv(ks[4], 2 * C, C, 1, dtype),
    }


def _msrb_reference(x, params):
    """Pure-JAX reference of the PyTorch MSRB.forward."""
    def conv(h, wb, k):
        w, b = wb
        out = lax.conv_general_dilated(
            h, w, window_strides=(1, 1), padding=[(k // 2, k // 2)] * 2,
            dimension_numbers=("NCHW", "OIHW", "NCHW"))
        return out + b[None, :, None, None]
    relu = lambda t: jnp.maximum(t, 0.0)
    s1 = relu(conv(x, params["conv3x3_1"], 3))
    p1 = relu(conv(x, params["conv5x5_1"], 5))
    x1 = jnp.concatenate([s1, p1], axis=1)
    s2 = relu(conv(x1, params["conv3x3_2"], 3))
    p2 = relu(conv(x1, params["conv5x5_2"], 5))
    res = conv(jnp.concatenate([s2, p2], axis=1), params["conv1x1"], 1)
    return res + x


if __name__ == "__main__":
    n_feats = 32
    N, H, W = 2, 16, 16

    key = jax.random.PRNGKey(0)
    kx, kp = jax.random.split(key)
    x = jax.random.normal(kx, (N, n_feats, H, W), jnp.float32)
    params = make_msrb_params(kp, n_feats)

    out = msrb_forward(x, params)        # bf16 MXU operands, f32 accumulation
    jax.block_until_ready(out)
    assert out.shape == (N, n_feats, H, W), out.shape

    # Sanity check vs a pure-JAX reference.  bf16 MXU operands (accumulation
    # and epilogue stay f32) change results slightly vs the f32 reference, so
    # use the documented loose tolerance; layout/indexing bugs would blow
    # well past it.
    ref = _msrb_reference(x, params)
    err = float(jnp.max(jnp.abs(out - ref)))
    assert err < 5e-2, f"max abs error vs reference: {err}"
    print("KERNEL_OK")
</pallas_src>

<mosaic_0001>
module attributes {stable_mosaic.version = 11 : i64} {
  func.func @_msrb_kernel(%arg0: i32, %arg1: memref<1x16x16x32xf32, #tpu.memory_space<vmem>>, %arg2: memref<1x32x256xf32, #tpu.memory_space<vmem>>, %arg3: memref<800x64xbf16, #tpu.memory_space<vmem>>, %arg4: memref<1x64xf32, #tpu.memory_space<vmem>>, %arg5: memref<1600x64xbf16, #tpu.memory_space<vmem>>, %arg6: memref<1x64xf32, #tpu.memory_space<vmem>>, %arg7: memref<32x64xbf16, #tpu.memory_space<vmem>>, %arg8: memref<32x1xf32, #tpu.memory_space<vmem>>, %arg9: memref<1x32x256xf32, #tpu.memory_space<vmem>>, %arg10: memref<20x20x32xf32, #tpu.memory_space<vmem>>, %arg11: memref<20x20x64xf32, #tpu.memory_space<vmem>>, %arg12: memref<16x16x800xbf16, #tpu.memory_space<vmem>>, %arg13: memref<16x16x1600xbf16, #tpu.memory_space<vmem>>) attributes {dimension_semantics = [#tpu.dimension_semantics<parallel>], iteration_bounds = array<i64: 2>, scalar_prefetch = 0 : i64, scratch_operands = 4 : i64, tpu.core_type = #tpu.core_type<tc>, window_params = [{transform_indices = @transform_0, window_bounds = array<i64: 1, 16, 16, 32>}, {transform_indices = @transform_1, window_bounds = array<i64: 1, 32, 256>}, {pipeline_mode = #tpu.pipeline_mode<synchronous>, transform_indices = @transform_2, window_bounds = array<i64: 800, 64>}, {pipeline_mode = #tpu.pipeline_mode<synchronous>, transform_indices = @transform_3, window_bounds = array<i64: 1, 64>}, {pipeline_mode = #tpu.pipeline_mode<synchronous>, transform_indices = @transform_4, window_bounds = array<i64: 1600, 64>}, {pipeline_mode = #tpu.pipeline_mode<synchronous>, transform_indices = @transform_5, window_bounds = array<i64: 1, 64>}, {pipeline_mode = #tpu.pipeline_mode<synchronous>, transform_indices = @transform_6, window_bounds = array<i64: 32, 64>}, {pipeline_mode = #tpu.pipeline_mode<synchronous>, transform_indices = @transform_7, window_bounds = array<i64: 32, 1>}, {transform_indices = @transform_8, window_bounds = array<i64: 1, 32, 256>}]} {
    %cst = arith.constant 0.000000e+00 : f32
    %0 = vector.broadcast %cst : f32 to vector<2x20x32xf32>
    %c0 = arith.constant 0 : index
    %c0_0 = arith.constant 0 : index
    %c0_1 = arith.constant 0 : index
    %1 = vector.load %arg10[%c0, %c0_0, %c0_1] : memref<20x20x32xf32, #tpu.memory_space<vmem>>, vector<2x20x32xf32>
    tpu.vector_store %arg10[%c0, %c0_0, %c0_1], %0 {strides = array<i32>} : memref<20x20x32xf32, #tpu.memory_space<vmem>>, vector<2x20x32xf32>,
    %cst_2 = arith.constant 0.000000e+00 : f32
    %2 = vector.broadcast %cst_2 : f32 to vector<2x20x32xf32>
    %c18 = arith.constant 18 : index
    %c0_3 = arith.constant 0 : index
    %c0_4 = arith.constant 0 : index
    %3 = vector.load %arg10[%c18, %c0_3, %c0_4] : memref<20x20x32xf32, #tpu.memory_space<vmem>>, vector<2x20x32xf32>
    tpu.vector_store %arg10[%c18, %c0_3, %c0_4], %2 {strides = array<i32>} : memref<20x20x32xf32, #tpu.memory_space<vmem>>, vector<2x20x32xf32>,
    %cst_5 = arith.constant 0.000000e+00 : f32
    %4 = vector.broadcast %cst_5 : f32 to vector<16x2x32xf32>
    %c2 = arith.constant 2 : index
    %c0_6 = arith.constant 0 : index
    %c0_7 = arith.constant 0 : index
    %5 = vector.load %arg10[%c2, %c0_6, %c0_7] : memref<20x20x32xf32, #tpu.memory_space<vmem>>, vector<16x2x32xf32>
    tpu.vector_store %arg10[%c2, %c0_6, %c0_7], %4 {strides = array<i32>} : memref<20x20x32xf32, #tpu.memory_space<vmem>>, vector<16x2x32xf32>,
    %cst_8 = arith.constant 0.000000e+00 : f32
    %6 = vector.broadcast %cst_8 : f32 to vector<16x2x32xf32>
    %c2_9 = arith.constant 2 : index
    %c18_10 = arith.constant 18 : index
    %c0_11 = arith.constant 0 : index
    %7 = vector.load %arg10[%c2_9, %c18_10, %c0_11] : memref<20x20x32xf32, #tpu.memory_space<vmem>>, vector<16x2x32xf32>
    tpu.vector_store %arg10[%c2_9, %c18_10, %c0_11], %6 {strides = array<i32>} : memref<20x20x32xf32, #tpu.memory_space<vmem>>, vector<16x2x32xf32>,
    %cst_12 = arith.constant 0.000000e+00 : f32
    %8 = vector.broadcast %cst_12 : f32 to vector<2x20x64xf32>
    %c0_13 = arith.constant 0 : index
    %c0_14 = arith.constant 0 : index
    %c0_15 = arith.constant 0 : index
    %9 = vector.load %arg11[%c0_13, %c0_14, %c0_15] : memref<20x20x64xf32, #tpu.memory_space<vmem>>, vector<2x20x64xf32>
    tpu.vector_store %arg11[%c0_13, %c0_14, %c0_15], %8 {strides = array<i32>} : memref<20x20x64xf32, #tpu.memory_space<vmem>>, vector<2x20x64xf32>,
    %cst_16 = arith.constant 0.000000e+00 : f32
    %10 = vector.broadcast %cst_16 : f32 to vector<2x20x64xf32>
    %c18_17 = arith.constant 18 : index
    %c0_18 = arith.constant 0 : index
    %c0_19 = arith.constant 0 : index
    %11 = vector.load %arg11[%c18_17, %c0_18, %c0_19] : memref<20x20x64xf32, #tpu.memory_space<vmem>>, vector<2x20x64xf32>
    tpu.vector_store %arg11[%c18_17, %c0_18, %c0_19], %10 {strides = array<i32>} : memref<20x20x64xf32, #tpu.memory_space<vmem>>, vector<2x20x64xf32>,
    %cst_20 = arith.constant 0.000000e+00 : f32
    %12 = vector.broadcast %cst_20 : f32 to vector<16x2x64xf32>
    %c2_21 = arith.constant 2 : index
    %c0_22 = arith.constant 0 : index
    %c0_23 = arith.constant 0 : index
    %13 = vector.load %arg11[%c2_21, %c0_22, %c0_23] : memref<20x20x64xf32, #tpu.memory_space<vmem>>, vector<16x2x64xf32>
    tpu.vector_store %arg11[%c2_21, %c0_22, %c0_23], %12 {strides = array<i32>} : memref<20x20x64xf32, #tpu.memory_space<vmem>>, vector<16x2x64xf32>,
    %cst_24 = arith.constant 0.000000e+00 : f32
    %14 = vector.broadcast %cst_24 : f32 to vector<16x2x64xf32>
    %c2_25 = arith.constant 2 : index
    %c18_26 = arith.constant 18 : index
    %c0_27 = arith.constant 0 : index
    %15 = vector.load %arg11[%c2_25, %c18_26, %c0_27] : memref<20x20x64xf32, #tpu.memory_space<vmem>>, vector<16x2x64xf32>
    tpu.vector_store %arg11[%c2_25, %c18_26, %c0_27], %14 {strides = array<i32>} : memref<20x20x64xf32, #tpu.memory_space<vmem>>, vector<16x2x64xf32>,
    %c0_28 = arith.constant 0 : index
    %c0_29 = arith.constant 0 : index
    %c0_30 = arith.constant 0 : index
    %c0_31 = arith.constant 0 : index
    %16 = vector.load %arg1[%c0_28, %c0_29, %c0_30, %c0_31] : memref<1x16x16x32xf32, #tpu.memory_space<vmem>>, vector<1x16x16x32xf32>
    %17 = vector.shape_cast %16 : vector<1x16x16x32xf32> to vector<16x16x32xf32>
    %c2_32 = arith.constant 2 : index
    %c2_33 = arith.constant 2 : index
    %c0_34 = arith.constant 0 : index
    %18 = vector.load %arg10[%c2_32, %c2_33, %c0_34] : memref<20x20x32xf32, #tpu.memory_space<vmem>>, vector<16x16x32xf32>
    tpu.vector_store %arg10[%c2_32, %c2_33, %c0_34], %17 {strides = array<i32>} : memref<20x20x32xf32, #tpu.memory_space<vmem>>, vector<16x16x32xf32>,
    %c0_35 = arith.constant 0 : index
    %c0_36 = arith.constant 0 : index
    %c0_37 = arith.constant 0 : index
    %19 = vector.load %arg10[%c0_35, %c0_36, %c0_37] : memref<20x20x32xf32, #tpu.memory_space<vmem>>, vector<16x16x32xf32>
    %20 = arith.truncf %19 : vector<16x16x32xf32> to vector<16x16x32xbf16>
    %c0_38 = arith.constant 0 : index
    %c0_39 = arith.constant 0 : index
    %c0_40 = arith.constant 0 : index
    %21 = vector.load %arg12[%c0_38, %c0_39, %c0_40] : memref<16x16x800xbf16, #tpu.memory_space<vmem>>, vector<16x16x32xbf16>
    tpu.vector_store %arg12[%c0_38, %c0_39, %c0_40], %20 {strides = array<i32>} : memref<16x16x800xbf16, #tpu.memory_space<vmem>>, vector<16x16x32xbf16>,
    %c0_41 = arith.constant 0 : index
    %c1 = arith.constant 1 : index
    %c0_42 = arith.constant 0 : index
    %22 = vector.load %arg10[%c0_41, %c1, %c0_42] : memref<20x20x32xf32, #tpu.memory_space<vmem>>, vector<16x16x32xf32>
    %23 = arith.truncf %22 : vector<16x16x32xf32> to vector<16x16x32xbf16>
    %c0_43 = arith.constant 0 : index
    %c0_44 = arith.constant 0 : index
    %c32 = arith.constant 32 : index
    %24 = vector.load %arg12[%c0_43, %c0_44, %c32] : memref<16x16x800xbf16, #tpu.memory_space<vmem>>, vector<16x16x32xbf16>
    tpu.vector_store %arg12[%c0_43, %c0_44, %c32], %23 {strides = array<i32>} : memref<16x16x800xbf16, #tpu.memory_space<vmem>>, vector<16x16x32xbf16>,
    %c0_45 = arith.constant 0 : index
    %c2_46 = arith.constant 2 : index
    %c0_47 = arith.constant 0 : index
    %25 = vector.load %arg10[%c0_45, %c2_46, %c0_47] : memref<20x20x32xf32, #tpu.memory_space<vmem>>, vector<16x16x32xf32>
    %26 = arith.truncf %25 : vector<16x16x32xf32> to vector<16x16x32xbf16>
    %c0_48 = arith.constant 0 : index
    %c0_49 = arith.constant 0 : index
    %c64 = arith.constant 64 : index
    %27 = vector.load %arg12[%c0_48, %c0_49, %c64] : memref<16x16x800xbf16, #tpu.memory_space<vmem>>, vector<16x16x32xbf16>
    tpu.vector_store %arg12[%c0_48, %c0_49, %c64], %26 {strides = array<i32>} : memref<16x16x800xbf16, #tpu.memory_space<vmem>>, vector<16x16x32xbf16>,
    %c0_50 = arith.constant 0 : index
    %c3 = arith.constant 3 : index
    %c0_51 = arith.constant 0 : index
    %28 = vector.load %arg10[%c0_50, %c3, %c0_51] : memref<20x20x32xf32, #tpu.memory_space<vmem>>, vector<16x16x32xf32>
    %29 = arith.truncf %28 : vector<16x16x32xf32> to vector<16x16x32xbf16>
    %c0_52 = arith.constant 0 : index
    %c0_53 = arith.constant 0 : index
    %c96 = arith.constant 96 : index
    %30 = vector.load %arg12[%c0_52, %c0_53, %c96] : memref<16x16x800xbf16, #tpu.memory_space<vmem>>, vector<16x16x32xbf16>
    tpu.vector_store %arg12[%c0_52, %c0_53, %c96], %29 {strides = array<i32>} : memref<16x16x800xbf16, #tpu.memory_space<vmem>>, vector<16x16x32xbf16>,
    %c0_54 = arith.constant 0 : index
    %c4 = arith.constant 4 : index
    %c0_55 = arith.constant 0 : index
    %31 = vector.load %arg10[%c0_54, %c4, %c0_55] : memref<20x20x32xf32, #tpu.memory_space<vmem>>, vector<16x16x32xf32>
    %32 = arith.truncf %31 : vector<16x16x32xf32> to vector<16x16x32xbf16>
    %c0_56 = arith.constant 0 : index
    %c0_57 = arith.constant 0 : index
    %c128 = arith.constant 128 : index
    %33 = vector.load %arg12[%c0_56, %c0_57, %c128] : memref<16x16x800xbf16, #tpu.memory_space<vmem>>, vector<16x16x32xbf16>
    tpu.vector_store %arg12[%c0_56, %c0_57, %c128], %32 {strides = array<i32>} : memref<16x16x800xbf16, #tpu.memory_space<vmem>>, vector<16x16x32xbf16>,
    %c1_58 = arith.constant 1 : index
    %c0_59 = arith.constant 0 : index
    %c0_60 = arith.constant 0 : index
    %34 = vector.load %arg10[%c1_58, %c0_59, %c0_60] : memref<20x20x32xf32, #tpu.memory_space<vmem>>, vector<16x16x32xf32>
    %35 = arith.truncf %34 : vector<16x16x32xf32> to vector<16x16x32xbf16>
    %c0_61 = arith.constant 0 : index
    %c0_62 = arith.constant 0 : index
    %c160 = arith.constant 160 : index
    %36 = vector.load %arg12[%c0_61, %c0_62, %c160] : memref<16x16x800xbf16, #tpu.memory_space<vmem>>, vector<16x16x32xbf16>
    tpu.vector_store %arg12[%c0_61, %c0_62, %c160], %35 {strides = array<i32>} : memref<16x16x800xbf16, #tpu.memory_space<vmem>>, vector<16x16x32xbf16>,
    %c1_63 = arith.constant 1 : index
    %c1_64 = arith.constant 1 : index
    %c0_65 = arith.constant 0 : index
    %37 = vector.load %arg10[%c1_63, %c1_64, %c0_65] : memref<20x20x32xf32, #tpu.memory_space<vmem>>, vector<16x16x32xf32>
    %38 = arith.truncf %37 : vector<16x16x32xf32> to vector<16x16x32xbf16>
    %c0_66 = arith.constant 0 : index
    %c0_67 = arith.constant 0 : index
    %c192 = arith.constant 192 : index
    %39 = vector.load %arg12[%c0_66, %c0_67, %c192] : memref<16x16x800xbf16, #tpu.memory_space<vmem>>, vector<16x16x32xbf16>
    tpu.vector_store %arg12[%c0_66, %c0_67, %c192], %38 {strides = array<i32>} : memref<16x16x800xbf16, #tpu.memory_space<vmem>>, vector<16x16x32xbf16>,
    %c1_68 = arith.constant 1 : index
    %c2_69 = arith.constant 2 : index
    %c0_70 = arith.constant 0 : index
    %40 = vector.load %arg10[%c1_68, %c2_69, %c0_70] : memref<20x20x32xf32, #tpu.memory_space<vmem>>, vector<16x16x32xf32>
    %41 = arith.truncf %40 : vector<16x16x32xf32> to vector<16x16x32xbf16>
    %c0_71 = arith.constant 0 : index
    %c0_72 = arith.constant 0 : index
    %c224 = arith.constant 224 : index
    %42 = vector.load %arg12[%c0_71, %c0_72, %c224] : memref<16x16x800xbf16, #tpu.memory_space<vmem>>, vector<16x16x32xbf16>
    tpu.vector_store %arg12[%c0_71, %c0_72, %c224], %41 {strides = array<i32>} : memref<16x16x800xbf16, #tpu.memory_space<vmem>>, vector<16x16x32xbf16>,
    %c1_73 = arith.constant 1 : index
    %c3_74 = arith.constant 3 : index
    %c0_75 = arith.constant 0 : index
    %43 = vector.load %arg10[%c1_73, %c3_74, %c0_75] : memref<20x20x32xf32, #tpu.memory_space<vmem>>, vector<16x16x32xf32>
    %44 = arith.truncf %43 : vector<16x16x32xf32> to vector<16x16x32xbf16>
    %c0_76 = arith.constant 0 : index
    %c0_77 = arith.constant 0 : index
    %c256 = arith.constant 256 : index
    %45 = vector.load %arg12[%c0_76, %c0_77, %c256] : memref<16x16x800xbf16, #tpu.memory_space<vmem>>, vector<16x16x32xbf16>
    tpu.vector_store %arg12[%c0_76, %c0_77, %c256], %44 {strides = array<i32>} : memref<16x16x800xbf16, #tpu.memory_space<vmem>>, vector<16x16x32xbf16>,
    %c1_78 = arith.constant 1 : index
    %c4_79 = arith.constant 4 : index
    %c0_80 = arith.constant 0 : index
    %46 = vector.load %arg10[%c1_78, %c4_79, %c0_80] : memref<20x20x32xf32, #tpu.memory_space<vmem>>, vector<16x16x32xf32>
    %47 = arith.truncf %46 : vector<16x16x32xf32> to vector<16x16x32xbf16>
    %c0_81 = arith.constant 0 : index
    %c0_82 = arith.constant 0 : index
    %c288 = arith.constant 288 : index
    %48 = vector.load %arg12[%c0_81, %c0_82, %c288] : memref<16x16x800xbf16, #tpu.memory_space<vmem>>, vector<16x16x32xbf16>
    tpu.vector_store %arg12[%c0_81, %c0_82, %c288], %47 {strides = array<i32>} : memref<16x16x800xbf16, #tpu.memory_space<vmem>>, vector<16x16x32xbf16>,
    %c2_83 = arith.constant 2 : index
    %c0_84 = arith.constant 0 : index
    %c0_85 = arith.constant 0 : index
    %49 = vector.load %arg10[%c2_83, %c0_84, %c0_85] : memref<20x20x32xf32, #tpu.memory_space<vmem>>, vector<16x16x32xf32>
    %50 = arith.truncf %49 : vector<16x16x32xf32> to vector<16x16x32xbf16>
    %c0_86 = arith.constant 0 : index
    %c0_87 = arith.constant 0 : index
    %c320 = arith.constant 320 : index
    %51 = vector.load %arg12[%c0_86, %c0_87, %c320] : memref<16x16x800xbf16, #tpu.memory_space<vmem>>, vector<16x16x32xbf16>
    tpu.vector_store %arg12[%c0_86, %c0_87, %c320], %50 {strides = array<i32>} : memref<16x16x800xbf16, #tpu.memory_space<vmem>>, vector<16x16x32xbf16>,
    %c2_88 = arith.constant 2 : index
    %c1_89 = arith.constant 1 : index
    %c0_90 = arith.constant 0 : index
    %52 = vector.load %arg10[%c2_88, %c1_89, %c0_90] : memref<20x20x32xf32, #tpu.memory_space<vmem>>, vector<16x16x32xf32>
    %53 = arith.truncf %52 : vector<16x16x32xf32> to vector<16x16x32xbf16>
    %c0_91 = arith.constant 0 : index
    %c0_92 = arith.constant 0 : index
    %c352 = arith.constant 352 : index
    %54 = vector.load %arg12[%c0_91, %c0_92, %c352] : memref<16x16x800xbf16, #tpu.memory_space<vmem>>, vector<16x16x32xbf16>
    tpu.vector_store %arg12[%c0_91, %c0_92, %c352], %53 {strides = array<i32>} : memref<16x16x800xbf16, #tpu.memory_space<vmem>>, vector<16x16x32xbf16>,
    %c2_93 = arith.constant 2 : index
    %c2_94 = arith.constant 2 : index
    %c0_95 = arith.constant 0 : index
    %55 = vector.load %arg10[%c2_93, %c2_94, %c0_95] : memref<20x20x32xf32, #tpu.memory_space<vmem>>, vector<16x16x32xf32>
    %56 = arith.truncf %55 : vector<16x16x32xf32> to vector<16x16x32xbf16>
    %c0_96 = arith.constant 0 : index
    %c0_97 = arith.constant 0 : index
    %c384 = arith.constant 384 : index
    %57 = vector.load %arg12[%c0_96, %c0_97, %c384] : memref<16x16x800xbf16, #tpu.memory_space<vmem>>, vector<16x16x32xbf16>
    tpu.vector_store %arg12[%c0_96, %c0_97, %c384], %56 {strides = array<i32>} : memref<16x16x800xbf16, #tpu.memory_space<vmem>>, vector<16x16x32xbf16>,
    %c2_98 = arith.constant 2 : index
    %c3_99 = arith.constant 3 : index
    %c0_100 = arith.constant 0 : index
    %58 = vector.load %arg10[%c2_98, %c3_99, %c0_100] : memref<20x20x32xf32, #tpu.memory_space<vmem>>, vector<16x16x32xf32>
    %59 = arith.truncf %58 : vector<16x16x32xf32> to vector<16x16x32xbf16>
    %c0_101 = arith.constant 0 : index
    %c0_102 = arith.constant 0 : index
    %c416 = arith.constant 416 : index
    %60 = vector.load %arg12[%c0_101, %c0_102, %c416] : memref<16x16x800xbf16, #tpu.memory_space<vmem>>, vector<16x16x32xbf16>
    tpu.vector_store %arg12[%c0_101, %c0_102, %c416], %59 {strides = array<i32>} : memref<16x16x800xbf16, #tpu.memory_space<vmem>>, vector<16x16x32xbf16>,
    %c2_103 = arith.constant 2 : index
    %c4_104 = arith.constant 4 : index
    %c0_105 = arith.constant 0 : index
    %61 = vector.load %arg10[%c2_103, %c4_104, %c0_105] : memref<20x20x32xf32, #tpu.memory_space<vmem>>, vector<16x16x32xf32>
    %62 = arith.truncf %61 : vector<16x16x32xf32> to vector<16x16x32xbf16>
    %c0_106 = arith.constant 0 : index
    %c0_107 = arith.constant 0 : index
    %c448 = arith.constant 448 : index
    %63 = vector.load %arg12[%c0_106, %c0_107, %c448] : memref<16x16x800xbf16, #tpu.memory_space<vmem>>, vector<16x16x32xbf16>
    tpu.vector_store %arg12[%c0_106, %c0_107, %c448], %62 {strides = array<i32>} : memref<16x16x800xbf16, #tpu.memory_space<vmem>>, vector<16x16x32xbf16>,
    %c3_108 = arith.constant 3 : index
    %c0_109 = arith.constant 0 : index
    %c0_110 = arith.constant 0 : index
    %64 = vector.load %arg10[%c3_108, %c0_109, %c0_110] : memref<20x20x32xf32, #tpu.memory_space<vmem>>, vector<16x16x32xf32>
    %65 = arith.truncf %64 : vector<16x16x32xf32> to vector<16x16x32xbf16>
    %c0_111 = arith.constant 0 : index
    %c0_112 = arith.constant 0 : index
    %c480 = arith.constant 480 : index
    %66 = vector.load %arg12[%c0_111, %c0_112, %c480] : memref<16x16x800xbf16, #tpu.memory_space<vmem>>, vector<16x16x32xbf16>
    tpu.vector_store %arg12[%c0_111, %c0_112, %c480], %65 {strides = array<i32>} : memref<16x16x800xbf16, #tpu.memory_space<vmem>>, vector<16x16x32xbf16>,
    %c3_113 = arith.constant 3 : index
    %c1_114 = arith.constant 1 : index
    %c0_115 = arith.constant 0 : index
    %67 = vector.load %arg10[%c3_113, %c1_114, %c0_115] : memref<20x20x32xf32, #tpu.memory_space<vmem>>, vector<16x16x32xf32>
    %68 = arith.truncf %67 : vector<16x16x32xf32> to vector<16x16x32xbf16>
    %c0_116 = arith.constant 0 : index
    %c0_117 = arith.constant 0 : index
    %c512 = arith.constant 512 : index
    %69 = vector.load %arg12[%c0_116, %c0_117, %c512] : memref<16x16x800xbf16, #tpu.memory_space<vmem>>, vector<16x16x32xbf16>
    tpu.vector_store %arg12[%c0_116, %c0_117, %c512], %68 {strides = array<i32>} : memref<16x16x800xbf16, #tpu.memory_space<vmem>>, vector<16x16x32xbf16>,
    %c3_118 = arith.constant 3 : index
    %c2_119 = arith.constant 2 : index
    %c0_120 = arith.constant 0 : index
    %70 = vector.load %arg10[%c3_118, %c2_119, %c0_120] : memref<20x20x32xf32, #tpu.memory_space<vmem>>, vector<16x16x32xf32>
    %71 = arith.truncf %70 : vector<16x16x32xf32> to vector<16x16x32xbf16>
    %c0_121 = arith.constant 0 : index
    %c0_122 = arith.constant 0 : index
    %c544 = arith.constant 544 : index
    %72 = vector.load %arg12[%c0_121, %c0_122, %c544] : memref<16x16x800xbf16, #tpu.memory_space<vmem>>, vector<16x16x32xbf16>
    tpu.vector_store %arg12[%c0_121, %c0_122, %c544], %71 {strides = array<i32>} : memref<16x16x800xbf16, #tpu.memory_space<vmem>>, vector<16x16x32xbf16>,
    %c3_123 = arith.constant 3 : index
    %c3_124 = arith.constant 3 : index
    %c0_125 = arith.constant 0 : index
    %73 = vector.load %arg10[%c3_123, %c3_124, %c0_125] : memref<20x20x32xf32, #tpu.memory_space<vmem>>, vector<16x16x32xf32>
    %74 = arith.truncf %73 : vector<16x16x32xf32> to vector<16x16x32xbf16>
    %c0_126 = arith.constant 0 : index
    %c0_127 = arith.constant 0 : index
    %c576 = arith.constant 576 : index
    %75 = vector.load %arg12[%c0_126, %c0_127, %c576] : memref<16x16x800xbf16, #tpu.memory_space<vmem>>, vector<16x16x32xbf16>
    tpu.vector_store %arg12[%c0_126, %c0_127, %c576], %74 {strides = array<i32>} : memref<16x16x800xbf16, #tpu.memory_space<vmem>>, vector<16x16x32xbf16>,
    %c3_128 = arith.constant 3 : index
    %c4_129 = arith.constant 4 : index
    %c0_130 = arith.constant 0 : index
    %76 = vector.load %arg10[%c3_128, %c4_129, %c0_130] : memref<20x20x32xf32, #tpu.memory_space<vmem>>, vector<16x16x32xf32>
    %77 = arith.truncf %76 : vector<16x16x32xf32> to vector<16x16x32xbf16>
    %c0_131 = arith.constant 0 : index
    %c0_132 = arith.constant 0 : index
    %c608 = arith.constant 608 : index
    %78 = vector.load %arg12[%c0_131, %c0_132, %c608] : memref<16x16x800xbf16, #tpu.memory_space<vmem>>, vector<16x16x32xbf16>
    tpu.vector_store %arg12[%c0_131, %c0_132, %c608], %77 {strides = array<i32>} : memref<16x16x800xbf16, #tpu.memory_space<vmem>>, vector<16x16x32xbf16>,
    %c4_133 = arith.constant 4 : index
    %c0_134 = arith.constant 0 : index
    %c0_135 = arith.constant 0 : index
    %79 = vector.load %arg10[%c4_133, %c0_134, %c0_135] : memref<20x20x32xf32, #tpu.memory_space<vmem>>, vector<16x16x32xf32>
    %80 = arith.truncf %79 : vector<16x16x32xf32> to vector<16x16x32xbf16>
    %c0_136 = arith.constant 0 : index
    %c0_137 = arith.constant 0 : index
    %c640 = arith.constant 640 : index
    %81 = vector.load %arg12[%c0_136, %c0_137, %c640] : memref<16x16x800xbf16, #tpu.memory_space<vmem>>, vector<16x16x32xbf16>
    tpu.vector_store %arg12[%c0_136, %c0_137, %c640], %80 {strides = array<i32>} : memref<16x16x800xbf16, #tpu.memory_space<vmem>>, vector<16x16x32xbf16>,
    %c4_138 = arith.constant 4 : index
    %c1_139 = arith.constant 1 : index
    %c0_140 = arith.constant 0 : index
    %82 = vector.load %arg10[%c4_138, %c1_139, %c0_140] : memref<20x20x32xf32, #tpu.memory_space<vmem>>, vector<16x16x32xf32>
    %83 = arith.truncf %82 : vector<16x16x32xf32> to vector<16x16x32xbf16>
    %c0_141 = arith.constant 0 : index
    %c0_142 = arith.constant 0 : index
    %c672 = arith.constant 672 : index
    %84 = vector.load %arg12[%c0_141, %c0_142, %c672] : memref<16x16x800xbf16, #tpu.memory_space<vmem>>, vector<16x16x32xbf16>
    tpu.vector_store %arg12[%c0_141, %c0_142, %c672], %83 {strides = array<i32>} : memref<16x16x800xbf16, #tpu.memory_space<vmem>>, vector<16x16x32xbf16>,
    %c4_143 = arith.constant 4 : index
    %c2_144 = arith.constant 2 : index
    %c0_145 = arith.constant 0 : index
    %85 = vector.load %arg10[%c4_143, %c2_144, %c0_145] : memref<20x20x32xf32, #tpu.memory_space<vmem>>, vector<16x16x32xf32>
    %86 = arith.truncf %85 : vector<16x16x32xf32> to vector<16x16x32xbf16>
    %c0_146 = arith.constant 0 : index
    %c0_147 = arith.constant 0 : index
    %c704 = arith.constant 704 : index
    %87 = vector.load %arg12[%c0_146, %c0_147, %c704] : memref<16x16x800xbf16, #tpu.memory_space<vmem>>, vector<16x16x32xbf16>
    tpu.vector_store %arg12[%c0_146, %c0_147, %c704], %86 {strides = array<i32>} : memref<16x16x800xbf16, #tpu.memory_space<vmem>>, vector<16x16x32xbf16>,
    %c4_148 = arith.constant 4 : index
    %c3_149 = arith.constant 3 : index
    %c0_150 = arith.constant 0 : index
    %88 = vector.load %arg10[%c4_148, %c3_149, %c0_150] : memref<20x20x32xf32, #tpu.memory_space<vmem>>, vector<16x16x32xf32>
    %89 = arith.truncf %88 : vector<16x16x32xf32> to vector<16x16x32xbf16>
    %c0_151 = arith.constant 0 : index
    %c0_152 = arith.constant 0 : index
    %c736 = arith.constant 736 : index
    %90 = vector.load %arg12[%c0_151, %c0_152, %c736] : memref<16x16x800xbf16, #tpu.memory_space<vmem>>, vector<16x16x32xbf16>
    tpu.vector_store %arg12[%c0_151, %c0_152, %c736], %89 {strides = array<i32>} : memref<16x16x800xbf16, #tpu.memory_space<vmem>>, vector<16x16x32xbf16>,
    %c4_153 = arith.constant 4 : index
    %c4_154 = arith.constant 4 : index
    %c0_155 = arith.constant 0 : index
    %91 = vector.load %arg10[%c4_153, %c4_154, %c0_155] : memref<20x20x32xf32, #tpu.memory_space<vmem>>, vector<16x16x32xf32>
    %92 = arith.truncf %91 : vector<16x16x32xf32> to vector<16x16x32xbf16>
    %c0_156 = arith.constant 0 : index
    %c0_157 = arith.constant 0 : index
    %c768 = arith.constant 768 : index
    %93 = vector.load %arg12[%c0_156, %c0_157, %c768] : memref<16x16x800xbf16, #tpu.memory_space<vmem>>, vector<16x16x32xbf16>
    tpu.vector_store %arg12[%c0_156, %c0_157, %c768], %92 {strides = array<i32>} : memref<16x16x800xbf16, #tpu.memory_space<vmem>>, vector<16x16x32xbf16>,
    %c0_158 = arith.constant 0 : index
    %c0_159 = arith.constant 0 : index
    %c0_160 = arith.constant 0 : index
    %94 = vector.load %arg12[%c0_158, %c0_159, %c0_160] : memref<16x16x800xbf16, #tpu.memory_space<vmem>>, vector<16x16x800xbf16>
    %95 = vector.shape_cast %94 : vector<16x16x800xbf16> to vector<256x800xbf16>
    %c0_161 = arith.constant 0 : index
    %c0_162 = arith.constant 0 : index
    %96 = vector.load %arg3[%c0_161, %c0_162] : memref<800x64xbf16, #tpu.memory_space<vmem>>, vector<800x64xbf16>
    %cst_163 = arith.constant dense<0.000000e+00> : vector<256x64xf32>
    %97 = tpu.matmul %95, %96, %cst_163 {dimension_numbers = #tpu.dot_dimension_numbers<[1], [0], [0], [1], [0, 0, 1, 1], [], []>} : vector<256x800xbf16>, vector<800x64xbf16>, vector<256x64xf32> -> vector<256x64xf32>
    %c0_164 = arith.constant 0 : index
    %c0_165 = arith.constant 0 : index
    %98 = vector.load %arg4[%c0_164, %c0_165] : memref<1x64xf32, #tpu.memory_space<vmem>>, vector<1x64xf32>
    %99 = vector.broadcast %98 : vector<1x64xf32> to vector<256x64xf32>
    %100 = arith.addf %97, %99 : vector<256x64xf32>
    %cst_166 = arith.constant 0.000000e+00 : f32
    %101 = vector.broadcast %cst_166 : f32 to vector<256x64xf32>
    %102 = arith.maximumf %100, %101 : vector<256x64xf32>
    %103 = vector.shape_cast %102 : vector<256x64xf32> to vector<16x16x64xf32>
    %c2_167 = arith.constant 2 : index
    %c2_168 = arith.constant 2 : index
    %c0_169 = arith.constant 0 : index
    %104 = vector.load %arg11[%c2_167, %c2_168, %c0_169] : memref<20x20x64xf32, #tpu.memory_space<vmem>>, vector<16x16x64xf32>
    tpu.vector_store %arg11[%c2_167, %c2_168, %c0_169], %103 {strides = array<i32>} : memref<20x20x64xf32, #tpu.memory_space<vmem>>, vector<16x16x64xf32>,
    %c0_170 = arith.constant 0 : index
    %c0_171 = arith.constant 0 : index
    %c0_172 = arith.constant 0 : index
    %105 = vector.load %arg11[%c0_170, %c0_171, %c0_172] : memref<20x20x64xf32, #tpu.memory_space<vmem>>, vector<16x16x64xf32>
    %106 = arith.truncf %105 : vector<16x16x64xf32> to vector<16x16x64xbf16>
    %c0_173 = arith.constant 0 : index
    %c0_174 = arith.constant 0 : index
    %c0_175 = arith.constant 0 : index
    %107 = vector.load %arg13[%c0_173, %c0_174, %c0_175] : memref<16x16x1600xbf16, #tpu.memory_space<vmem>>, vector<16x16x64xbf16>
    tpu.vector_store %arg13[%c0_173, %c0_174, %c0_175], %106 {strides = array<i32>} : memref<16x16x1600xbf16, #tpu.memory_space<vmem>>, vector<16x16x64xbf16>,
    %c0_176 = arith.constant 0 : index
    %c1_177 = arith.constant 1 : index
    %c0_178 = arith.constant 0 : index
    %108 = vector.load %arg11[%c0_176, %c1_177, %c0_178] : memref<20x20x64xf32, #tpu.memory_space<vmem>>, vector<16x16x64xf32>
    %109 = arith.truncf %108 : vector<16x16x64xf32> to vector<16x16x64xbf16>
    %c0_179 = arith.constant 0 : index
    %c0_180 = arith.constant 0 : index
    %c64_181 = arith.constant 64 : index
    %110 = vector.load %arg13[%c0_179, %c0_180, %c64_181] : memref<16x16x1600xbf16, #tpu.memory_space<vmem>>, vector<16x16x64xbf16>
    tpu.vector_store %arg13[%c0_179, %c0_180, %c64_181], %109 {strides = array<i32>} : memref<16x16x1600xbf16, #tpu.memory_space<vmem>>, vector<16x16x64xbf16>,
    %c0_182 = arith.constant 0 : index
    %c2_183 = arith.constant 2 : index
    %c0_184 = arith.constant 0 : index
    %111 = vector.load %arg11[%c0_182, %c2_183, %c0_184] : memref<20x20x64xf32, #tpu.memory_space<vmem>>, vector<16x16x64xf32>
    %112 = arith.truncf %111 : vector<16x16x64xf32> to vector<16x16x64xbf16>
    %c0_185 = arith.constant 0 : index
    %c0_186 = arith.constant 0 : index
    %c128_187 = arith.constant 128 : index
    %113 = vector.load %arg13[%c0_185, %c0_186, %c128_187] : memref<16x16x1600xbf16, #tpu.memory_space<vmem>>, vector<16x16x64xbf16>
    tpu.vector_store %arg13[%c0_185, %c0_186, %c128_187], %112 {strides = array<i32>} : memref<16x16x1600xbf16, #tpu.memory_space<vmem>>, vector<16x16x64xbf16>,
    %c0_188 = arith.constant 0 : index
    %c3_189 = arith.constant 3 : index
    %c0_190 = arith.constant 0 : index
    %114 = vector.load %arg11[%c0_188, %c3_189, %c0_190] : memref<20x20x64xf32, #tpu.memory_space<vmem>>, vector<16x16x64xf32>
    %115 = arith.truncf %114 : vector<16x16x64xf32> to vector<16x16x64xbf16>
    %c0_191 = arith.constant 0 : index
    %c0_192 = arith.constant 0 : index
    %c192_193 = arith.constant 192 : index
    %116 = vector.load %arg13[%c0_191, %c0_192, %c192_193] : memref<16x16x1600xbf16, #tpu.memory_space<vmem>>, vector<16x16x64xbf16>
    tpu.vector_store %arg13[%c0_191, %c0_192, %c192_193], %115 {strides = array<i32>} : memref<16x16x1600xbf16, #tpu.memory_space<vmem>>, vector<16x16x64xbf16>,
    %c0_194 = arith.constant 0 : index
    %c4_195 = arith.constant 4 : index
    %c0_196 = arith.constant 0 : index
    %117 = vector.load %arg11[%c0_194, %c4_195, %c0_196] : memref<20x20x64xf32, #tpu.memory_space<vmem>>, vector<16x16x64xf32>
    %118 = arith.truncf %117 : vector<16x16x64xf32> to vector<16x16x64xbf16>
    %c0_197 = arith.constant 0 : index
    %c0_198 = arith.constant 0 : index
    %c256_199 = arith.constant 256 : index
    %119 = vector.load %arg13[%c0_197, %c0_198, %c256_199] : memref<16x16x1600xbf16, #tpu.memory_space<vmem>>, vector<16x16x64xbf16>
    tpu.vector_store %arg13[%c0_197, %c0_198, %c256_199], %118 {strides = array<i32>} : memref<16x16x1600xbf16, #tpu.memory_space<vmem>>, vector<16x16x64xbf16>,
    %c1_200 = arith.constant 1 : index
    %c0_201 = arith.constant 0 : index
    %c0_202 = arith.constant 0 : index
    %120 = vector.load %arg11[%c1_200, %c0_201, %c0_202] : memref<20x20x64xf32, #tpu.memory_space<vmem>>, vector<16x16x64xf32>
    %121 = arith.truncf %120 : vector<16x16x64xf32> to vector<16x16x64xbf16>
    %c0_203 = arith.constant 0 : index
    %c0_204 = arith.constant 0 : index
    %c320_205 = arith.constant 320 : index
    %122 = vector.load %arg13[%c0_203, %c0_204, %c320_205] : memref<16x16x1600xbf16, #tpu.memory_space<vmem>>, vector<16x16x64xbf16>
    tpu.vector_store %arg13[%c0_203, %c0_204, %c320_205], %121 {strides = array<i32>} : memref<16x16x1600xbf16, #tpu.memory_space<vmem>>, vector<16x16x64xbf16>,
    %c1_206 = arith.constant 1 : index
    %c1_207 = arith.constant 1 : index
    %c0_208 = arith.constant 0 : index
    %123 = vector.load %arg11[%c1_206, %c1_207, %c0_208] : memref<20x20x64xf32, #tpu.memory_space<vmem>>, vector<16x16x64xf32>
    %124 = arith.truncf %123 : vector<16x16x64xf32> to vector<16x16x64xbf16>
    %c0_209 = arith.constant 0 : index
    %c0_210 = arith.constant 0 : index
    %c384_211 = arith.constant 384 : index
    %125 = vector.load %arg13[%c0_209, %c0_210, %c384_211] : memref<16x16x1600xbf16, #tpu.memory_space<vmem>>, vector<16x16x64xbf16>
    tpu.vector_store %arg13[%c0_209, %c0_210, %c384_211], %124 {strides = array<i32>} : memref<16x16x1600xbf16, #tpu.memory_space<vmem>>, vector<16x16x64xbf16>,
    %c1_212 = arith.constant 1 : index
    %c2_213 = arith.constant 2 : index
    %c0_214 = arith.constant 0 : index
    %126 = vector.load %arg11[%c1_212, %c2_213, %c0_214] : memref<20x20x64xf32, #tpu.memory_space<vmem>>, vector<16x16x64xf32>
    %127 = arith.truncf %126 : vector<16x16x64xf32> to vector<16x16x64xbf16>
    %c0_215 = arith.constant 0 : index
    %c0_216 = arith.constant 0 : index
    %c448_217 = arith.constant 448 : index
    %128 = vector.load %arg13[%c0_215, %c0_216, %c448_217] : memref<16x16x1600xbf16, #tpu.memory_space<vmem>>, vector<16x16x64xbf16>
    tpu.vector_store %arg13[%c0_215, %c0_216, %c448_217], %127 {strides = array<i32>} : memref<16x16x1600xbf16, #tpu.memory_space<vmem>>, vector<16x16x64xbf16>,
    %c1_218 = arith.constant 1 : index
    %c3_219 = arith.constant 3 : index
    %c0_220 = arith.constant 0 : index
    %129 = vector.load %arg11[%c1_218, %c3_219, %c0_220] : memref<20x20x64xf32, #tpu.memory_space<vmem>>, vector<16x16x64xf32>
    %130 = arith.truncf %129 : vector<16x16x64xf32> to vector<16x16x64xbf16>
    %c0_221 = arith.constant 0 : index
    %c0_222 = arith.constant 0 : index
    %c512_223 = arith.constant 512 : index
    %131 = vector.load %arg13[%c0_221, %c0_222, %c512_223] : memref<16x16x1600xbf16, #tpu.memory_space<vmem>>, vector<16x16x64xbf16>
    tpu.vector_store %arg13[%c0_221, %c0_222, %c512_223], %130 {strides = array<i32>} : memref<16x16x1600xbf16, #tpu.memory_space<vmem>>, vector<16x16x64xbf16>,
    %c1_224 = arith.constant 1 : index
    %c4_225 = arith.constant 4 : index
    %c0_226 = arith.constant 0 : index
    %132 = vector.load %arg11[%c1_224, %c4_225, %c0_226] : memref<20x20x64xf32, #tpu.memory_space<vmem>>, vector<16x16x64xf32>
    %133 = arith.truncf %132 : vector<16x16x64xf32> to vector<16x16x64xbf16>
    %c0_227 = arith.constant 0 : index
    %c0_228 = arith.constant 0 : index
    %c576_229 = arith.constant 576 : index
    %134 = vector.load %arg13[%c0_227, %c0_228, %c576_229] : memref<16x16x1600xbf16, #tpu.memory_space<vmem>>, vector<16x16x64xbf16>
    tpu.vector_store %arg13[%c0_227, %c0_228, %c576_229], %133 {strides = array<i32>} : memref<16x16x1600xbf16, #tpu.memory_space<vmem>>, vector<16x16x64xbf16>,
    %c2_230 = arith.constant 2 : index
    %c0_231 = arith.constant 0 : index
    %c0_232 = arith.constant 0 : index
    %135 = vector.load %arg11[%c2_230, %c0_231, %c0_232] : memref<20x20x64xf32, #tpu.memory_space<vmem>>, vector<16x16x64xf32>
    %136 = arith.truncf %135 : vector<16x16x64xf32> to vector<16x16x64xbf16>
    %c0_233 = arith.constant 0 : index
    %c0_234 = arith.constant 0 : index
    %c640_235 = arith.constant 640 : index
    %137 = vector.load %arg13[%c0_233, %c0_234, %c640_235] : memref<16x16x1600xbf16, #tpu.memory_space<vmem>>, vector<16x16x64xbf16>
    tpu.vector_store %arg13[%c0_233, %c0_234, %c640_235], %136 {strides = array<i32>} : memref<16x16x1600xbf16, #tpu.memory_space<vmem>>, vector<16x16x64xbf16>,
    %c2_236 = arith.constant 2 : index
    %c1_237 = arith.constant 1 : index
    %c0_238 = arith.constant 0 : index
    %138 = vector.load %arg11[%c2_236, %c1_237, %c0_238] : memref<20x20x64xf32, #tpu.memory_space<vmem>>, vector<16x16x64xf32>
    %139 = arith.truncf %138 : vector<16x16x64xf32> to vector<16x16x64xbf16>
    %c0_239 = arith.constant 0 : index
    %c0_240 = arith.constant 0 : index
    %c704_241 = arith.constant 704 : index
    %140 = vector.load %arg13[%c0_239, %c0_240, %c704_241] : memref<16x16x1600xbf16, #tpu.memory_space<vmem>>, vector<16x16x64xbf16>
    tpu.vector_store %arg13[%c0_239, %c0_240, %c704_241], %139 {strides = array<i32>} : memref<16x16x1600xbf16, #tpu.memory_space<vmem>>, vector<16x16x64xbf16>,
    %c2_242 = arith.constant 2 : index
    %c2_243 = arith.constant 2 : index
    %c0_244 = arith.constant 0 : index
    %141 = vector.load %arg11[%c2_242, %c2_243, %c0_244] : memref<20x20x64xf32, #tpu.memory_space<vmem>>, vector<16x16x64xf32>
    %142 = arith.truncf %141 : vector<16x16x64xf32> to vector<16x16x64xbf16>
    %c0_245 = arith.constant 0 : index
    %c0_246 = arith.constant 0 : index
    %c768_247 = arith.constant 768 : index
    %143 = vector.load %arg13[%c0_245, %c0_246, %c768_247] : memref<16x16x1600xbf16, #tpu.memory_space<vmem>>, vector<16x16x64xbf16>
    tpu.vector_store %arg13[%c0_245, %c0_246, %c768_247], %142 {strides = array<i32>} : memref<16x16x1600xbf16, #tpu.memory_space<vmem>>, vector<16x16x64xbf16>,
    %c2_248 = arith.constant 2 : index
    %c3_249 = arith.constant 3 : index
    %c0_250 = arith.constant 0 : index
    %144 = vector.load %arg11[%c2_248, %c3_249, %c0_250] : memref<20x20x64xf32, #tpu.memory_space<vmem>>, vector<16x16x64xf32>
    %145 = arith.truncf %144 : vector<16x16x64xf32> to vector<16x16x64xbf16>
    %c0_251 = arith.constant 0 : index
    %c0_252 = arith.constant 0 : index
    %c832 = arith.constant 832 : index
    %146 = vector.load %arg13[%c0_251, %c0_252, %c832] : memref<16x16x1600xbf16, #tpu.memory_space<vmem>>, vector<16x16x64xbf16>
    tpu.vector_store %arg13[%c0_251, %c0_252, %c832], %145 {strides = array<i32>} : memref<16x16x1600xbf16, #tpu.memory_space<vmem>>, vector<16x16x64xbf16>,
    %c2_253 = arith.constant 2 : index
    %c4_254 = arith.constant 4 : index
    %c0_255 = arith.constant 0 : index
    %147 = vector.load %arg11[%c2_253, %c4_254, %c0_255] : memref<20x20x64xf32, #tpu.memory_space<vmem>>, vector<16x16x64xf32>
    %148 = arith.truncf %147 : vector<16x16x64xf32> to vector<16x16x64xbf16>
    %c0_256 = arith.constant 0 : index
    %c0_257 = arith.constant 0 : index
    %c896 = arith.constant 896 : index
    %149 = vector.load %arg13[%c0_256, %c0_257, %c896] : memref<16x16x1600xbf16, #tpu.memory_space<vmem>>, vector<16x16x64xbf16>
    tpu.vector_store %arg13[%c0_256, %c0_257, %c896], %148 {strides = array<i32>} : memref<16x16x1600xbf16, #tpu.memory_space<vmem>>, vector<16x16x64xbf16>,
    %c3_258 = arith.constant 3 : index
    %c0_259 = arith.constant 0 : index
    %c0_260 = arith.constant 0 : index
    %150 = vector.load %arg11[%c3_258, %c0_259, %c0_260] : memref<20x20x64xf32, #tpu.memory_space<vmem>>, vector<16x16x64xf32>
    %151 = arith.truncf %150 : vector<16x16x64xf32> to vector<16x16x64xbf16>
    %c0_261 = arith.constant 0 : index
    %c0_262 = arith.constant 0 : index
    %c960 = arith.constant 960 : index
    %152 = vector.load %arg13[%c0_261, %c0_262, %c960] : memref<16x16x1600xbf16, #tpu.memory_space<vmem>>, vector<16x16x64xbf16>
    tpu.vector_store %arg13[%c0_261, %c0_262, %c960], %151 {strides = array<i32>} : memref<16x16x1600xbf16, #tpu.memory_space<vmem>>, vector<16x16x64xbf16>,
    %c3_263 = arith.constant 3 : index
    %c1_264 = arith.constant 1 : index
    %c0_265 = arith.constant 0 : index
    %153 = vector.load %arg11[%c3_263, %c1_264, %c0_265] : memref<20x20x64xf32, #tpu.memory_space<vmem>>, vector<16x16x64xf32>
    %154 = arith.truncf %153 : vector<16x16x64xf32> to vector<16x16x64xbf16>
    %c0_266 = arith.constant 0 : index
    %c0_267 = arith.constant 0 : index
    %c1024 = arith.constant 1024 : index
    %155 = vector.load %arg13[%c0_266, %c0_267, %c1024] : memref<16x16x1600xbf16, #tpu.memory_space<vmem>>, vector<16x16x64xbf16>
    tpu.vector_store %arg13[%c0_266, %c0_267, %c1024], %154 {strides = array<i32>} : memref<16x16x1600xbf16, #tpu.memory_space<vmem>>, vector<16x16x64xbf16>,
    %c3_268 = arith.constant 3 : index
    %c2_269 = arith.constant 2 : index
    %c0_270 = arith.constant 0 : index
    %156 = vector.load %arg11[%c3_268, %c2_269, %c0_270] : memref<20x20x64xf32, #tpu.memory_space<vmem>>, vector<16x16x64xf32>
    %157 = arith.truncf %156 : vector<16x16x64xf32> to vector<16x16x64xbf16>
    %c0_271 = arith.constant 0 : index
    %c0_272 = arith.constant 0 : index
    %c1088 = arith.constant 1088 : index
    %158 = vector.load %arg13[%c0_271, %c0_272, %c1088] : memref<16x16x1600xbf16, #tpu.memory_space<vmem>>, vector<16x16x64xbf16>
    tpu.vector_store %arg13[%c0_271, %c0_272, %c1088], %157 {strides = array<i32>} : memref<16x16x1600xbf16, #tpu.memory_space<vmem>>, vector<16x16x64xbf16>,
    %c3_273 = arith.constant 3 : index
    %c3_274 = arith.constant 3 : index
    %c0_275 = arith.constant 0 : index
    %159 = vector.load %arg11[%c3_273, %c3_274, %c0_275] : memref<20x20x64xf32, #tpu.memory_space<vmem>>, vector<16x16x64xf32>
    %160 = arith.truncf %159 : vector<16x16x64xf32> to vector<16x16x64xbf16>
    %c0_276 = arith.constant 0 : index
    %c0_277 = arith.constant 0 : index
    %c1152 = arith.constant 1152 : index
    %161 = vector.load %arg13[%c0_276, %c0_277, %c1152] : memref<16x16x1600xbf16, #tpu.memory_space<vmem>>, vector<16x16x64xbf16>
    tpu.vector_store %arg13[%c0_276, %c0_277, %c1152], %160 {strides = array<i32>} : memref<16x16x1600xbf16, #tpu.memory_space<vmem>>, vector<16x16x64xbf16>,
    %c3_278 = arith.constant 3 : index
    %c4_279 = arith.constant 4 : index
    %c0_280 = arith.constant 0 : index
    %162 = vector.load %arg11[%c3_278, %c4_279, %c0_280] : memref<20x20x64xf32, #tpu.memory_space<vmem>>, vector<16x16x64xf32>
    %163 = arith.truncf %162 : vector<16x16x64xf32> to vector<16x16x64xbf16>
    %c0_281 = arith.constant 0 : index
    %c0_282 = arith.constant 0 : index
    %c1216 = arith.constant 1216 : index
    %164 = vector.load %arg13[%c0_281, %c0_282, %c1216] : memref<16x16x1600xbf16, #tpu.memory_space<vmem>>, vector<16x16x64xbf16>
    tpu.vector_store %arg13[%c0_281, %c0_282, %c1216], %163 {strides = array<i32>} : memref<16x16x1600xbf16, #tpu.memory_space<vmem>>, vector<16x16x64xbf16>,
    %c4_283 = arith.constant 4 : index
    %c0_284 = arith.constant 0 : index
    %c0_285 = arith.constant 0 : index
    %165 = vector.load %arg11[%c4_283, %c0_284, %c0_285] : memref<20x20x64xf32, #tpu.memory_space<vmem>>, vector<16x16x64xf32>
    %166 = arith.truncf %165 : vector<16x16x64xf32> to vector<16x16x64xbf16>
    %c0_286 = arith.constant 0 : index
    %c0_287 = arith.constant 0 : index
    %c1280 = arith.constant 1280 : index
    %167 = vector.load %arg13[%c0_286, %c0_287, %c1280] : memref<16x16x1600xbf16, #tpu.memory_space<vmem>>, vector<16x16x64xbf16>
    tpu.vector_store %arg13[%c0_286, %c0_287, %c1280], %166 {strides = array<i32>} : memref<16x16x1600xbf16, #tpu.memory_space<vmem>>, vector<16x16x64xbf16>,
    %c4_288 = arith.constant 4 : index
    %c1_289 = arith.constant 1 : index
    %c0_290 = arith.constant 0 : index
    %168 = vector.load %arg11[%c4_288, %c1_289, %c0_290] : memref<20x20x64xf32, #tpu.memory_space<vmem>>, vector<16x16x64xf32>
    %169 = arith.truncf %168 : vector<16x16x64xf32> to vector<16x16x64xbf16>
    %c0_291 = arith.constant 0 : index
    %c0_292 = arith.constant 0 : index
    %c1344 = arith.constant 1344 : index
    %170 = vector.load %arg13[%c0_291, %c0_292, %c1344] : memref<16x16x1600xbf16, #tpu.memory_space<vmem>>, vector<16x16x64xbf16>
    tpu.vector_store %arg13[%c0_291, %c0_292, %c1344], %169 {strides = array<i32>} : memref<16x16x1600xbf16, #tpu.memory_space<vmem>>, vector<16x16x64xbf16>,
    %c4_293 = arith.constant 4 : index
    %c2_294 = arith.constant 2 : index
    %c0_295 = arith.constant 0 : index
    %171 = vector.load %arg11[%c4_293, %c2_294, %c0_295] : memref<20x20x64xf32, #tpu.memory_space<vmem>>, vector<16x16x64xf32>
    %172 = arith.truncf %171 : vector<16x16x64xf32> to vector<16x16x64xbf16>
    %c0_296 = arith.constant 0 : index
    %c0_297 = arith.constant 0 : index
    %c1408 = arith.constant 1408 : index
    %173 = vector.load %arg13[%c0_296, %c0_297, %c1408] : memref<16x16x1600xbf16, #tpu.memory_space<vmem>>, vector<16x16x64xbf16>
    tpu.vector_store %arg13[%c0_296, %c0_297, %c1408], %172 {strides = array<i32>} : memref<16x16x1600xbf16, #tpu.memory_space<vmem>>, vector<16x16x64xbf16>,
    %c4_298 = arith.constant 4 : index
    %c3_299 = arith.constant 3 : index
    %c0_300 = arith.constant 0 : index
    %174 = vector.load %arg11[%c4_298, %c3_299, %c0_300] : memref<20x20x64xf32, #tpu.memory_space<vmem>>, vector<16x16x64xf32>
    %175 = arith.truncf %174 : vector<16x16x64xf32> to vector<16x16x64xbf16>
    %c0_301 = arith.constant 0 : index
    %c0_302 = arith.constant 0 : index
    %c1472 = arith.constant 1472 : index
    %176 = vector.load %arg13[%c0_301, %c0_302, %c1472] : memref<16x16x1600xbf16, #tpu.memory_space<vmem>>, vector<16x16x64xbf16>
    tpu.vector_store %arg13[%c0_301, %c0_302, %c1472], %175 {strides = array<i32>} : memref<16x16x1600xbf16, #tpu.memory_space<vmem>>, vector<16x16x64xbf16>,
    %c4_303 = arith.constant 4 : index
    %c4_304 = arith.constant 4 : index
    %c0_305 = arith.constant 0 : index
    %177 = vector.load %arg11[%c4_303, %c4_304, %c0_305] : memref<20x20x64xf32, #tpu.memory_space<vmem>>, vector<16x16x64xf32>
    %178 = arith.truncf %177 : vector<16x16x64xf32> to vector<16x16x64xbf16>
    %c0_306 = arith.constant 0 : index
    %c0_307 = arith.constant 0 : index
    %c1536 = arith.constant 1536 : index
    %179 = vector.load %arg13[%c0_306, %c0_307, %c1536] : memref<16x16x1600xbf16, #tpu.memory_space<vmem>>, vector<16x16x64xbf16>
    tpu.vector_store %arg13[%c0_306, %c0_307, %c1536], %178 {strides = array<i32>} : memref<16x16x1600xbf16, #tpu.memory_space<vmem>>, vector<16x16x64xbf16>,
    %c0_308 = arith.constant 0 : index
    %c0_309 = arith.constant 0 : index
    %c0_310 = arith.constant 0 : index
    %180 = vector.load %arg13[%c0_308, %c0_309, %c0_310] : memref<16x16x1600xbf16, #tpu.memory_space<vmem>>, vector<16x16x1600xbf16>
    %181 = vector.shape_cast %180 : vector<16x16x1600xbf16> to vector<256x1600xbf16>
    %c0_311 = arith.constant 0 : index
    %c0_312 = arith.constant 0 : index
    %182 = vector.load %arg5[%c0_311, %c0_312] : memref<1600x64xbf16, #tpu.memory_space<vmem>>, vector<1600x64xbf16>
    %cst_313 = arith.constant dense<0.000000e+00> : vector<256x64xf32>
    %183 = tpu.matmul %181, %182, %cst_313 {dimension_numbers = #tpu.dot_dimension_numbers<[1], [0], [0], [1], [0, 0, 1, 1], [], []>} : vector<256x1600xbf16>, vector<1600x64xbf16>, vector<256x64xf32> -> vector<256x64xf32>
    %c0_314 = arith.constant 0 : index
    %c0_315 = arith.constant 0 : index
    %184 = vector.load %arg6[%c0_314, %c0_315] : memref<1x64xf32, #tpu.memory_space<vmem>>, vector<1x64xf32>
    %185 = vector.broadcast %184 : vector<1x64xf32> to vector<256x64xf32>
    %186 = arith.addf %183, %185 : vector<256x64xf32>
    %cst_316 = arith.constant 0.000000e+00 : f32
    %187 = vector.broadcast %cst_316 : f32 to vector<256x64xf32>
    %188 = arith.maximumf %186, %187 : vector<256x64xf32>
    %c0_317 = arith.constant 0 : index
    %c0_318 = arith.constant 0 : index
    %189 = vector.load %arg7[%c0_317, %c0_318] : memref<32x64xbf16, #tpu.memory_space<vmem>>, vector<32x64xbf16>
    %190 = arith.truncf %188 : vector<256x64xf32> to vector<256x64xbf16>
    %cst_319 = arith.constant dense<0.000000e+00> : vector<32x256xf32>
    %191 = tpu.matmul %189, %190, %cst_319 {dimension_numbers = #tpu.dot_dimension_numbers<[1], [1], [0], [0], [0, 0, 1, 0], [], []>} : vector<32x64xbf16>, vector<256x64xbf16>, vector<32x256xf32> -> vector<32x256xf32>
    %c0_320 = arith.constant 0 : index
    %c0_321 = arith.constant 0 : index
    %192 = vector.load %arg8[%c0_320, %c0_321] : memref<32x1xf32, #tpu.memory_space<vmem>>, vector<32x1xf32>
    %193 = vector.broadcast %192 : vector<32x1xf32> to vector<32x256xf32>
    %194 = arith.addf %191, %193 : vector<32x256xf32>
    %c0_322 = arith.constant 0 : index
    %c0_323 = arith.constant 0 : index
    %c0_324 = arith.constant 0 : index
    %195 = vector.load %arg2[%c0_322, %c0_323, %c0_324] : memref<1x32x256xf32, #tpu.memory_space<vmem>>, vector<1x32x256xf32>
    %196 = vector.shape_cast %195 : vector<1x32x256xf32> to vector<32x256xf32>
    %197 = arith.addf %194, %196 : vector<32x256xf32>
    %198 = vector.shape_cast %197 : vector<32x256xf32> to vector<1x32x256xf32>
    %c0_325 = arith.constant 0 : index
    %c0_326 = arith.constant 0 : index
    %c0_327 = arith.constant 0 : index
    %199 = vector.load %arg9[%c0_325, %c0_326, %c0_327] : memref<1x32x256xf32, #tpu.memory_space<vmem>>, vector<1x32x256xf32>
    tpu.vector_store %arg9[%c0_325, %c0_326, %c0_327], %198 {strides = array<i32>} : memref<1x32x256xf32, #tpu.memory_space<vmem>>, vector<1x32x256xf32>,
    return
  }
  func.func @transform_0(%arg0: i32) -> (i32, i32, i32, i32) {
    %c0_i32 = arith.constant 0 : i32
    %c0_i32_0 = arith.constant 0 : i32
    %c0_i32_1 = arith.constant 0 : i32
    %c0_i32_2 = arith.constant 0 : i32
    return %arg0, %c0_i32, %c0_i32_0, %c0_i32_1 : i32, i32, i32, i32
  }
  func.func @transform_1(%arg0: i32) -> (i32, i32, i32) {
    %c0_i32 = arith.constant 0 : i32
    %c0_i32_0 = arith.constant 0 : i32
    %c0_i32_1 = arith.constant 0 : i32
    return %arg0, %c0_i32, %c0_i32_0 : i32, i32, i32
  }
  func.func @transform_2(%arg0: i32) -> (i32, i32) {
    %c0_i32 = arith.constant 0 : i32
    %c0_i32_0 = arith.constant 0 : i32
    %c0_i32_1 = arith.constant 0 : i32
    return %c0_i32, %c0_i32_0 : i32, i32
  }
  func.func @transform_3(%arg0: i32) -> (i32, i32) {
    %c0_i32 = arith.constant 0 : i32
    %c0_i32_0 = arith.constant 0 : i32
    %c0_i32_1 = arith.constant 0 : i32
    return %c0_i32, %c0_i32_0 : i32, i32
  }
  func.func @transform_4(%arg0: i32) -> (i32, i32) {
    %c0_i32 = arith.constant 0 : i32
    %c0_i32_0 = arith.constant 0 : i32
    %c0_i32_1 = arith.constant 0 : i32
    return %c0_i32, %c0_i32_0 : i32, i32
  }
  func.func @transform_5(%arg0: i32) -> (i32, i32) {
    %c0_i32 = arith.constant 0 : i32
    %c0_i32_0 = arith.constant 0 : i32
    %c0_i32_1 = arith.constant 0 : i32
    return %c0_i32, %c0_i32_0 : i32, i32
  }
  func.func @transform_6(%arg0: i32) -> (i32, i32) {
    %c0_i32 = arith.constant 0 : i32
    %c0_i32_0 = arith.constant 0 : i32
    %c0_i32_1 = arith.constant 0 : i32
    return %c0_i32, %c0_i32_0 : i32, i32
  }
  func.func @transform_7(%arg0: i32) -> (i32, i32) {
    %c0_i32 = arith.constant 0 : i32
    %c0_i32_0 = arith.constant 0 : i32
    %c0_i32_1 = arith.constant 0 : i32
    return %c0_i32, %c0_i32_0 : i32, i32
  }
  func.func @transform_8(%arg0: i32) -> (i32, i32, i32) {
    %c0_i32 = arith.constant 0 : i32
    %c0_i32_0 = arith.constant 0 : i32
    %c0_i32_1 = arith.constant 0 : i32
    return %arg0, %c0_i32, %c0_i32_0 : i32, i32, i32
  }
}

</mosaic_0001>

<bundles_post_ra>
// kernel: msrb_forward.1
= control target key start
LH: loop header
LB: loop body
LE: loop exit
PB: predicated region body
PF: predicated region fallthrough
CT: control target
= control target key end

     0   :  { %s10967_s27 = smov 0   ;;  %s14800_s0 = inlined_call_operand.vmem [shape: f32[2,16,16,32], index: 0, kind: input, shape index: {}]   ;;  %s14801_s1 = inlined_call_operand.vmem [shape: f32[2,32,256], index: 1, kind: input, shape index: {}]   ;;  %s14802_s2 = inlined_call_operand.vmem [shape: bf16[800,64], index: 2, kind: input, shape index: {}]   ;;  %s14803_s3 = inlined_call_operand.vmem [shape: f32[1,64], index: 3, kind: input, shape index: {}]   ;;  %s14804_s4 = inlined_call_operand.vmem [shape: bf16[1600,64], index: 4, kind: input, shape index: {}]   ;;  %s14805_s5 = inlined_call_operand.vmem [shape: f32[1,64], index: 5, kind: input, shape index: {}]   ;;  %s14806_s6 = inlined_call_operand.vmem [shape: bf16[32,64], index: 6, kind: input, shape index: {}]   ;;  %s14807_s7 = inlined_call_operand.vmem [shape: f32[32,1], index: 7, kind: input, shape index: {}]   ;;  %s14808_s8 = inlined_call_operand.vmem [shape: f32[2,32,256], index: 8, kind: output, shape index: {}]  }
   0x1 LB: > { %s9368_s28 = sadd.s32 4294967295, %s10915_s27   ;;  %p9372_p0 = scmp.ge.s32.totalorder %s10915_s27, 1  ;;  %s10915_s27 = sphi %s10967_s27, %s18_s27  }
   0x2   : > { %p272_p1 = scmp.lt.s32.totalorder %s10915_s27, 3 }
   0x4   : > { %p273_p2 = pnand %p9372_p0, %p272_p1 }
   0x6   : > { %276 = sbr.rel (%p273_p2) target bundleno = 1922 (0x782), region = 52 }
   0xd   : > { %vm327_vm0 = vcmask 261120   ;;  %vm330_vm1 = vcmask 257024   ;;  %vm343_vm2 = vcmask 254976   ;;  %v10917_v0 = vmov 0.0   ;;  %p10997_p3 = scmp.lt.s32.totalorder %s9368_s28, 1  ;;  %v10753_v1 = vld [vmem:[%s14802_s2 + $0xc0] sm:$0xff]  }
   0xe   : > { %332 = vst.msk [vmem:[#allocation2 + $0x18] sm:$0xff] %vm327_vm0, %v10917_v0  ;;  %333 = vst.msk [vmem:[#allocation2 + $0x20] sm:$0xff] %vm327_vm0, %v10917_v0  ;;  %v10754_v2 = vld [vmem:[%s14802_s2 + $0x80] sm:$0xff]   ;;  %9684 = vmatprep.subr.bf16.mxu1 %v10753_v1  ;;  %v10756_v4 = vld [vmem:[%s14802_s2 + $0xc8] sm:$0xff]   ;;  %s10918_s22 = smov 32   ;;  %s10919_s23 = smov 64  }
   0xf   : > { %334 = vst.msk [vmem:[#allocation2 + $0x28] sm:$0xf] %vm330_vm1, %v10917_v0  ;;  %331 = vst.msk [vmem:[#allocation2 + $0x10] sm:$0xf] %vm330_vm1, %v10917_v0  ;;  %s14981_s28 = smov (!%p10997_p3, %s9368_s28), 1  ;;  %v10755_v3 = vld [vmem:[%s14802_s2 + $0x40] sm:$0xff]   ;;  %9685 = vmatpush3.bf16.msra.mxu1 %v10754_v2 }
  0x10   : > { %328 = vst.msk [vmem:[#allocation2] sm:$0xff] %vm327_vm0, %v10917_v0  ;;  %329 = vst.msk [vmem:[#allocation2 + $0x8] sm:$0xff] %vm327_vm0, %v10917_v0  ;;  %s9569_s14 = sshll.u32 %s14981_s28, 8  ;;  %9572 = vmatprep.subr.bf16.mxu0 %v10755_v3  ;;  %v10757_v5 = vld [vmem:[%s14802_s2] sm:$0xff]   ;;  %9686 = vmatprep.subr.bf16.mxu1 %v10756_v4  ;;  %s10920_s24 = smov 96   ;;  %vm665_vm3 = vcmask 523520  }
  0x11   : > { %336 = vst.msk [vmem:[#allocation2 + $0x1b0] sm:$0xff] %vm327_vm0, %v10917_v0  ;;  %337 = vst.msk [vmem:[#allocation2 + $0x1b8] sm:$0xff] %vm327_vm0, %v10917_v0  ;;  %s11087_s19 = scalar_lea.vmem %s14800_s0, %s9569_s14  ;;  %9573 = vmatpush3.bf16.msra.mxu0 %v10757_v5  ;;  %v10758_v5 = vld [vmem:[%s14802_s2 + $0x88] sm:$0xff]   ;;  %vm794_vm4 = vcmask 785920   ;;  %vm923_vm5 = vcmask 1048320   ;;  %vm376_vm6 = vcmask 523264  }
  0x12   : > { %338 = vst.msk [vmem:[#allocation2 + $0x1c0] sm:$0xf] %vm330_vm1, %v10917_v0  ;;  %341 = vst.msk [vmem:[#allocation2 + $0x1d8] sm:$0xf] %vm330_vm1, %v10917_v0  ;;  %v425_v6 = vld [vmem:[%s11087_s19] sm:$0xff]  ;;  %v426_v7 = vld [vmem:[%s11087_s19 + $0x8] sm:$0xff] }
  0x13   : > { %339 = vst.msk [vmem:[#allocation2 + $0x1c8] sm:$0xff] %vm327_vm0, %v10917_v0  ;;  %340 = vst.msk [vmem:[#allocation2 + $0x1d0] sm:$0xff] %vm327_vm0, %v10917_v0  ;;  %v427_v8 = vld [vmem:[%s11087_s19 + $0x10] sm:$0xff]  ;;  %v428_v20 = vld [vmem:[%s11087_s19 + $0x18] sm:$0xff]  ;;  %9687 = vmatpush3.bf16.msra.mxu1 %v10758_v5  ;;  %vm379_vm7 = vcmask 519168   ;;  %vm392_vm8 = vcmask 517120  }
  0x14   : > { %360 = vst.msk [vmem:[#allocation2 + $0x42] sm:$0x3] %vm343_vm2, %v10917_v0  ;;  %344 = vst.msk [vmem:[#allocation2 + $0x30] sm:$0x3] %vm343_vm2, %v10917_v0  ;;  %v429_v24 = vld [vmem:[%s11087_s19 + $0x20] sm:$0xff]  ;;  %v430_v25 = vld [vmem:[%s11087_s19 + $0x28] sm:$0xff] }
  0x15   : > { %345 = vst.msk [vmem:[#allocation2 + $0x48] sm:$0x3] %vm343_vm2, %v10917_v0  ;;  %346 = vst.msk [vmem:[#allocation2 + $0x60] sm:$0x3] %vm343_vm2, %v10917_v0  ;;  %v1453_v9 = vld [vmem:[#allocation2 + $0x1c] sm:$0xff]  ;;  %v431_v28 = vld [vmem:[%s11087_s19 + $0x30] sm:$0xff] }
  0x16   : > { %347 = vst.msk [vmem:[#allocation2 + $0x78] sm:$0x3] %vm343_vm2, %v10917_v0  ;;  %348 = vst.msk [vmem:[#allocation2 + $0x90] sm:$0x3] %vm343_vm2, %v10917_v0  ;;  %v1454_v10 = vld [vmem:[#allocation2 + $0x24] sm:$0xff]  ;;  %v1005_v14 = vld [vmem:[#allocation2 + $0x18] sm:$0xff] }
  0x17   : > { %349 = vst.msk [vmem:[#allocation2 + $0xa8] sm:$0x3] %vm343_vm2, %v10917_v0  ;;  %350 = vst.msk [vmem:[#allocation2 + $0xc0] sm:$0x3] %vm343_vm2, %v10917_v0  ;;  %v553_v11 = vld [vmem:[#allocation2 + $0x1] sm:$0xff]  ;;  %v1485_v12 = vpack.c.bf16 %v1454_v10, %v1453_v9  ;;  %v554_v13 = vld [vmem:[#allocation2 + $0x9] sm:$0xff] }
  0x18   : > { %351 = vst.msk [vmem:[#allocation2 + $0xd8] sm:$0x3] %vm343_vm2, %v10917_v0  ;;  %352 = vst.msk [vmem:[#allocation2 + $0xf0] sm:$0x3] %vm343_vm2, %v10917_v0  ;;  %v1006_v15 = vld [vmem:[#allocation2 + $0x20] sm:$0xff]  ;;  %v585_v16 = vpack.c.bf16 %v554_v13, %v553_v11  ;;  %v683_v18 = vld [vmem:[#allocation2 + $0xa] sm:$0xff] }
  0x19   : > { %353 = vst.msk [vmem:[#allocation2 + $0x108] sm:$0x3] %vm343_vm2, %v10917_v0  ;;  %354 = vst.msk [vmem:[#allocation2 + $0x120] sm:$0x3] %vm343_vm2, %v10917_v0  ;;  %v682_v17 = vld [vmem:[#allocation2 + $0x2] sm:$0xff]  ;;  %1517 = vrot.lane.b32.xlu0 %v1485_v12, %s10918_s22  ;;  %v1037_v19 = vpack.c.bf16 %v1006_v15, %v1005_v14  ;;  %v1133_v22 = vld [vmem:[#allocation2 + $0x19] sm:$0xff] }
  0x1a   : > { %355 = vst.msk [vmem:[#allocation2 + $0x138] sm:$0x3] %vm343_vm2, %v10917_v0  ;;  %356 = vst.msk [vmem:[#allocation2 + $0x150] sm:$0x3] %vm343_vm2, %v10917_v0  ;;  %617 = vrot.lane.b32.xlu1 %v585_v16, %s10918_s22  ;;  %v714_v21 = vpack.c.bf16 %v683_v18, %v682_v17  ;;  %v1134_v23 = vld [vmem:[#allocation2 + $0x21] sm:$0xff]  ;;  %v432_v29 = vld [vmem:[%s11087_s19 + $0x38] sm:$0xff] }
  0x1b   : > { %357 = vst.msk [vmem:[#allocation2 + $0x168] sm:$0x3] %vm343_vm2, %v10917_v0  ;;  %358 = vst.msk [vmem:[#allocation2 + $0x180] sm:$0x3] %vm343_vm2, %v10917_v0  ;;  %v813_v26 = vld [vmem:[#allocation2 + $0x1b] sm:$0xff]  ;;  %v814_v27 = vld [vmem:[#allocation2 + $0x23] sm:$0xff]  ;;  %v11109_v30 = vpack.c.bf16 %v1134_v23, %v1133_v22 }
  0x1c   : > { %359 = vst.msk [vmem:[#allocation2 + $0x198] sm:$0x3] %vm343_vm2, %v10917_v0  ;;  %361 = vst.msk [vmem:[#allocation2 + $0x5a] sm:$0x3] %vm343_vm2, %v10917_v0  ;;  %v11111_v34 = vpack.c.bf16 %v814_v27, %v813_v26  ;;  %v1261_v49 = vld [vmem:[#allocation2 + $0x1a] sm:$0xff]  ;;  %v1262_v51 = vld [vmem:[#allocation2 + $0x22] sm:$0xff] }
  0x1d   : > { %362 = vst.msk [vmem:[#allocation2 + $0x72] sm:$0x3] %vm343_vm2, %v10917_v0  ;;  %363 = vst.msk [vmem:[#allocation2 + $0x8a] sm:$0x3] %vm343_vm2, %v10917_v0  ;;  %1069 = vrot.lane.b32.xlu0 %v1037_v19, %s10918_s22  ;;  %v811_v54 = vld [vmem:[#allocation2 + $0x3] sm:$0xff]  ;;  %v812_v55 = vld [vmem:[#allocation2 + $0xb] sm:$0xff]  ;;  %v11148_v59 = vpack.c.bf16 %v1262_v51, %v1261_v49 }
  0x1e   : > { %364 = vst.msk [vmem:[#allocation2 + $0xa2] sm:$0x3] %vm343_vm2, %v10917_v0  ;;  %365 = vst.msk [vmem:[#allocation2 + $0xba] sm:$0x3] %vm343_vm2, %v10917_v0  ;;  %746 = vrot.lane.b32.xlu1 %v714_v21, %s10919_s23  ;;  %v433_v57 = vld [vmem:[%s11087_s19 + $0x40] sm:$0xff]  ;;  %v434_v58 = vld [vmem:[%s11087_s19 + $0x48] sm:$0xff]  ;;  %v843_v63 = vpack.c.bf16 %v812_v55, %v811_v54 }
  0x1f   : > { %366 = vst.msk [vmem:[#allocation2 + $0xd2] sm:$0x3] %vm343_vm2, %v10917_v0  ;;  %367 = vst.msk [vmem:[#allocation2 + $0xea] sm:$0x3] %vm343_vm2, %v10917_v0  ;;  %v435_v2 = vld [vmem:[%s11087_s19 + $0x50] sm:$0xff]  ;;  %v436_v3 = vld [vmem:[%s11087_s19 + $0x58] sm:$0xff] }
  0x20   : > { %368 = vst.msk [vmem:[#allocation2 + $0x102] sm:$0x3] %vm343_vm2, %v10917_v0  ;;  %369 = vst.msk [vmem:[#allocation2 + $0x11a] sm:$0x3] %vm343_vm2, %v10917_v0  ;;  %v10759_v11 = vld [vmem:[%s14802_s2 + $0x48] sm:$0xff]   ;;  %v10760_v13 = vld [vmem:[%s14802_s2 + $0xd0] sm:$0xff]  }
  0x21   : > { %370 = vst.msk [vmem:[#allocation2 + $0x132] sm:$0x3] %vm343_vm2, %v10917_v0  ;;  %371 = vst.msk [vmem:[#allocation2 + $0x14a] sm:$0x3] %vm343_vm2, %v10917_v0  ;;  %1197 = vrot.lane.b32.xlu0 %v11109_v30, %s10919_s23  ;;  %9574 = vmatprep.subr.bf16.mxu0 %v10759_v11  ;;  %v10761_v17 = vld [vmem:[%s14802_s2 + $0x8] sm:$0xff]   ;;  %v10762_v23 = vld [vmem:[%s14802_s2 + $0x90] sm:$0xff]  }
  0x22   : > { %372 = vst.msk [vmem:[#allocation2 + $0x162] sm:$0x3] %vm343_vm2, %v10917_v0  ;;  %373 = vst.msk [vmem:[#allocation2 + $0x17a] sm:$0x3] %vm343_vm2, %v10917_v0  ;;  %9688 = vmatprep.subr.bf16.mxu1 %v10760_v13  ;;  %9575 = vmatpush3.bf16.msra.mxu0 %v10761_v17  ;;  %v10776_v54 = vld [vmem:[%s14802_s2 + $0xf0] sm:$0xff]   ;;  %v10777_v55 = vld [vmem:[%s14802_s2 + $0x28] sm:$0xff]  }
  0x23   : > { %374 = vst.msk [vmem:[#allocation2 + $0x192] sm:$0x3] %vm343_vm2, %v10917_v0  ;;  %375 = vst.msk [vmem:[#allocation2 + $0x1aa] sm:$0x3] %vm343_vm2, %v10917_v0  ;;  %9689 = vmatpush3.bf16.msra.mxu1 %v10762_v23  ;;  %v942_v11 = vld [vmem:[#allocation2 + $0x1c] sm:$0xff]  ;;  %v943_v13 = vld [vmem:[#allocation2 + $0x24] sm:$0xff] }
  0x24   : > { %457 = vst.msk [vmem:[#allocation2 + $0x32] sm:$0xff] %vm327_vm0, %v425_v6  ;;  %458 = vst.msk [vmem:[#allocation2 + $0x3a] sm:$0xff] %vm327_vm0, %v426_v7  ;;  %v490_v6 = vld [vmem:[#allocation2 + $0x8] sm:$0xff]  ;;  %v489_v7 = vld [vmem:[#allocation2] sm:$0xff]  ;;  %vm4698_vm9 = vcmask 1048064   ;;  %s9570_s30 = sshll.u32 %s14981_s28, 6 }
  0x25   : > { %459 = vst.msk [vmem:[#allocation2 + $0x4a] sm:$0xff] %vm327_vm0, %v427_v8  ;;  %460 = vst.msk [vmem:[#allocation2 + $0x52] sm:$0xff] %vm327_vm0, %v428_v20  ;;  %v521_v10 = vpack.c.bf16 %v490_v6, %v489_v7  ;;  %v492_v17 = vld [vmem:[#allocation2 + $0x20] sm:$0xff]  ;;  %s14781_s28 = scalar_lea.vmem %s14808_s8, %s9570_s30 }
  0x26   : > { %461 = vst.msk [vmem:[#allocation2 + $0x62] sm:$0xff] %vm327_vm0, %v429_v24  ;;  %462 = vst.msk [vmem:[#allocation2 + $0x6a] sm:$0xff] %vm327_vm0, %v430_v25  ;;  %v940_v24 = vld [vmem:[#allocation2 + $0x4] sm:$0xff]  ;;  %v941_v25 = vld [vmem:[#allocation2 + $0xc] sm:$0xff] }
  0x27   : > { %463 = vst.msk [vmem:[#allocation2 + $0x7a] sm:$0xff] %vm327_vm0, %v431_v28  ;;  %464 = vst.msk [vmem:[#allocation2 + $0x82] sm:$0xff] %vm327_vm0, %v432_v29  ;;  %v972_v27 = vpack.c.bf16 %v941_v25, %v940_v24  ;;  %v10763_v28 = vld [vmem:[%s14802_s2 + $0x50] sm:$0xff]  }
  0x28   : > { %1437 = vst.msk [vmem:[#allocation4 + $0x10] sm:$0xff] %vm327_vm0, %v11111_v34  ;;  %465 = vst.msk [vmem:[#allocation2 + $0x92] sm:$0xff] %vm327_vm0, %v433_v57  ;;  %9576 = vmatprep.subr.bf16.mxu0 %v10763_v28  ;;  %v10778_v57 = vld [vmem:[%s14802_s2 + $0xb0] sm:$0xff]  }
  0x29   : > { %466 = vst.msk [vmem:[#allocation2 + $0x9a] sm:$0xff] %vm327_vm0, %v434_v58  ;;  %467 = vst.msk [vmem:[#allocation2 + $0xaa] sm:$0xff] %vm327_vm0, %v435_v2  ;;  %v10782_v2 = vld [vmem:[%s14802_s2 + $0xb8] sm:$0xff]  }
  0x2a   : > { %468 = vst.msk [vmem:[#allocation2 + $0xb2] sm:$0xff] %vm327_vm0, %v436_v3  ;;  %537 = vst.msk [vmem:[#allocation4] sm:$0xff] %vm327_vm0, %v521_v10  ;;  %v10783_v3 = vld [vmem:[%s14802_s2 + $0x78] sm:$0xff]  }
  0x2b   : > { %v2029_v31 = vld [vmem:[#allocation2 + $0x34] sm:$0xff]  ;;  %v2030_v32 = vld [vmem:[#allocation2 + $0x3c] sm:$0xff]  ;;  %988 = vst.msk [vmem:[#allocation4 + $0x8] sm:$0xff] %vm327_vm0, %v972_v27 }
  0x2c   : > { %v1901_v33 = vld [vmem:[#allocation2 + $0x33] sm:$0xff]  ;;  %v11116_v35 = vpack.c.bf16 %v2030_v32, %v2029_v31  ;;  %v1902_v36 = vld [vmem:[#allocation2 + $0x3b] sm:$0xff]  ;;  %v2158_v44 = vld [vmem:[#allocation2 + $0x48] sm:$0xff]  ;;  %377 = vst.msk [vmem:[#allocation3] sm:$0xff] %vm376_vm6, %v10917_v0 }
  0x2d   : > { %v11118_v37 = vpack.c.bf16 %v1902_v36, %v1901_v33  ;;  %v1581_v38 = vld [vmem:[#allocation2 + $0x30] sm:$0xff]  ;;  %v1582_v39 = vld [vmem:[#allocation2 + $0x38] sm:$0xff]  ;;  %v1267_v62 = vld [vmem:[#allocation2 + $0x62] sm:$0xff]  ;;  %378 = vst.msk [vmem:[#allocation3 + $0x8] sm:$0xff] %vm376_vm6, %v10917_v0 }
  0x2e   : > { %v1263_v40 = vld [vmem:[#allocation2 + $0x32] sm:$0xff]  ;;  %v1264_v41 = vld [vmem:[#allocation2 + $0x3a] sm:$0xff]  ;;  %2093 = vrot.lane.b32.xlu1 %v11116_v35, %s10919_s23  ;;  %v11130_v43 = vpack.c.bf16 %v1582_v39, %v1581_v38  ;;  %v1265_v52 = vld [vmem:[#allocation2 + $0x4a] sm:$0xff]  ;;  %381 = vst.msk [vmem:[#allocation3 + $0x18] sm:$0xff] %vm376_vm6, %v10917_v0 }
  0x2f   : > { %v11124_v42 = vpack.c.bf16 %v1264_v41, %v1263_v40  ;;  %1438 = vst.msk [vmem:[#allocation4 + $0x48] sm:$0xff] %vm327_vm0, %v11118_v37  ;;  %v2159_v45 = vld [vmem:[#allocation2 + $0x50] sm:$0xff]  ;;  %v1710_v47 = vld [vmem:[#allocation2 + $0x39] sm:$0xff]  ;;  %1965 = vrot.lane.b32.xlu0 %v11118_v37, %s10918_s22  ;;  %v1270_v15 = vld [vmem:[#allocation2 + $0x82] sm:$0xff] }
  0x30   : > { %v1709_v46 = vld [vmem:[#allocation2 + $0x31] sm:$0xff]  ;;  %v11136_v48 = vpack.c.bf16 %v2159_v45, %v2158_v44  ;;  %v1269_v14 = vld [vmem:[#allocation2 + $0x7a] sm:$0xff]  ;;  %v2161_v20 = vld [vmem:[#allocation2 + $0x68] sm:$0xff]  ;;  %382 = vst.msk [vmem:[#allocation3 + $0x20] sm:$0xff] %vm376_vm6, %v10917_v0 }
  0x31   : > { %1885 = vst.msk [vmem:[#allocation4 + $0x18] sm:$0xff] %vm327_vm0, %v11124_v42  ;;  %v11140_v50 = vpack.c.bf16 %v1710_v47, %v1709_v46  ;;  %v1266_v53 = vld [vmem:[#allocation2 + $0x52] sm:$0xff]  ;;  %v1268_v1 = vld [vmem:[#allocation2 + $0x6a] sm:$0xff]  ;;  %v11179_v16 = vpack.c.bf16 %v1270_v15, %v1269_v14  ;;  %v2160_v19 = vld [vmem:[#allocation2 + $0x60] sm:$0xff]  ;;  %v973_v15 = vpack.c.bf16 %v943_v13, %v942_v11 }
  0x32   : > { %1645 = vrot.lane.b32.xlu1 %v11130_v43, %s10919_s23  ;;  %v11142_v56 = vpack.c.bf16 %v1266_v53, %v1265_v52  ;;  %v1903_v60 = vld [vmem:[#allocation2 + $0x4b] sm:$0xff]  ;;  %v1904_v61 = vld [vmem:[#allocation2 + $0x53] sm:$0xff]  ;;  %v11158_v4 = vpack.c.bf16 %v1268_v1, %v1267_v62  ;;  %v11197_v26 = vpack.c.bf16 %v2161_v20, %v2160_v19  ;;  %v10768_v36 = vld [vmem:[%s14802_s2 + $0xe0] sm:$0xff]   ;;  %385 = vst.msk [vmem:[#allocation3 + $0x1b0] sm:$0xff] %vm376_vm6, %v10917_v0 }
  0x33   : > { %2222 = vrot.lane.b32.xlu0 %v11136_v48, %s10920_s24  ;;  %v2031_v8 = vld [vmem:[#allocation2 + $0x4c] sm:$0xff]  ;;  %v2032_v9 = vld [vmem:[#allocation2 + $0x54] sm:$0xff]  ;;  %v11170_v12 = vpack.c.bf16 %v1904_v61, %v1903_v60  ;;  %1888 = vst.msk [vmem:[#allocation4 + $0xc0] sm:$0xff] %vm327_vm0, %v11179_v16  ;;  %v10770_v39 = vld [vmem:[%s14802_s2 + $0xa0] sm:$0xff]  }
  0x34   : > { %1886 = vst.msk [vmem:[#allocation4 + $0x50] sm:$0xff] %vm327_vm0, %v11142_v56  ;;  %1887 = vst.msk [vmem:[#allocation4 + $0x88] sm:$0xff] %vm327_vm0, %v11158_v4  ;;  %v11186_v18 = vpack.c.bf16 %v2032_v9, %v2031_v8  ;;  %v1711_v21 = vld [vmem:[#allocation2 + $0x49] sm:$0xff]  ;;  %v1712_v22 = vld [vmem:[#allocation2 + $0x51] sm:$0xff] }
  0x35   : > { %v11204_v29 = vpack.c.bf16 %v1712_v22, %v1711_v21  ;;  %v10764_v31 = vld [vmem:[%s14802_s2 + $0xd8] sm:$0xff]   ;;  %v10765_v32 = vld [vmem:[%s14802_s2 + $0x10] sm:$0xff]   ;;  %v10771_v40 = vld [vmem:[%s14802_s2 + $0x60] sm:$0xff]   ;;  %989 = vst.msk [vmem:[#allocation4 + $0x40] sm:$0xff] %vm327_vm0, %v973_v15 }
  0x36   : > { %1773 = vrot.lane.b32.xlu1 %v11140_v50, %s10920_s24  ;;  %9690 = vmatprep.subr.bf16.mxu1 %v10764_v31  ;;  %v10766_v33 = vld [vmem:[%s14802_s2 + $0x98] sm:$0xff]   ;;  %v10772_v41 = vld [vmem:[%s14802_s2 + $0xe8] sm:$0xff]   ;;  %v10779_v60 = vld [vmem:[%s14802_s2 + $0x70] sm:$0xff]   ;;  %386 = vst.msk [vmem:[#allocation3 + $0x1b8] sm:$0xff] %vm376_vm6, %v10917_v0 }
  0x37   : > { %1325 = vrot.lane.b32.xlu0 %v11148_v59, %s10920_s24  ;;  %9577 = vmatpush3.bf16.msra.mxu0 %v10765_v32  ;;  %v10769_v38 = vld [vmem:[%s14802_s2 + $0x18] sm:$0xff]   ;;  %v1905_v44 = vld [vmem:[#allocation2 + $0x63] sm:$0xff]  ;;  %v1906_v46 = vld [vmem:[#allocation2 + $0x6b] sm:$0xff]  ;;  %388 = vst.msk [vmem:[#allocation3 + $0x1c8] sm:$0xff] %vm376_vm6, %v10917_v0 }
  0x38   : > { %9691 = vmatpush3.bf16.msra.mxu1 %v10766_v33  ;;  %v438_v45 = vld [vmem:[%s11087_s19 + $0x68] sm:$0xff]  ;;  %v11261_v53 = vpack.c.bf16 %v1906_v46, %v1905_v44  ;;  %v2162_v58 = vld [vmem:[#allocation2 + $0x78] sm:$0xff]  ;;  %v10781_v1 = vld [vmem:[%s14802_s2 + $0x30] sm:$0xff]   ;;  %389 = vst.msk [vmem:[#allocation3 + $0x1d0] sm:$0xff] %vm376_vm6, %v10917_v0 }
  0x39   : > { %9692 = vmatprep.subr.bf16.mxu1 %v10768_v36  ;;  %470 = vst.msk [vmem:[#allocation2 + $0xca] sm:$0xff] %vm327_vm0, %v438_v45  ;;  %v10774_v47 = vld [vmem:[%s14802_s2 + $0xa8] sm:$0xff]   ;;  %v1271_v6 = vld [vmem:[#allocation2 + $0x92] sm:$0xff]  ;;  %v1272_v7 = vld [vmem:[#allocation2 + $0x9a] sm:$0xff] }
  0x3a   : > { %875 = vrot.lane.b32.xlu1 %v843_v63, %s10920_s24  ;;  %v2033_v49 = vld [vmem:[#allocation2 + $0x64] sm:$0xff]  ;;  %v2034_v51 = vld [vmem:[#allocation2 + $0x6c] sm:$0xff]  ;;  %v10780_v63 = vld [vmem:[%s14802_s2 + $0xf8] sm:$0xff]   ;;  %v11303_v9 = vpack.c.bf16 %v1272_v7, %v1271_v6  ;;  %380 = vst.msk [vmem:[#allocation3 + $0x10] sm:$0xf] %vm379_vm7, %v10917_v0 }
  0x3b   : > { %1967 = vrot.lane.b32.xlu0 %v11170_v12, %s10918_s22  ;;  %v10775_v52 = vld [vmem:[%s14802_s2 + $0x68] sm:$0xff]   ;;  %v10784_v10 = vld [vmem:[%s14802_s2 + $0x38] sm:$0xff]   ;;  %v493_v32 = vld [vmem:[#allocation2 + $0x30] sm:$0xff]  ;;  %383 = vst.msk [vmem:[#allocation3 + $0x28] sm:$0xf] %vm379_vm7, %v10917_v0 }
  0x3c   : > { %9693 = vmatpush3.bf16.msra.mxu1 %v10770_v39  ;;  %v1713_v61 = vld [vmem:[#allocation2 + $0x61] sm:$0xff]  ;;  %v1714_v62 = vld [vmem:[#allocation2 + $0x69] sm:$0xff]  ;;  %v491_v14 = vld [vmem:[#allocation2 + $0x18] sm:$0xff]  ;;  %1889 = vst.msk [vmem:[#allocation4 + $0xf8] sm:$0xff] %vm327_vm0, %v11303_v9 }
  0x3d   : > { %9694 = vmatprep.subr.bf16.mxu1 %v10772_v41  ;;  %v11301_v8 = vpack.c.bf16 %v1714_v62, %v1713_v61  ;;  %v440_v19 = vld [vmem:[%s11087_s19 + $0x78] sm:$0xff]  ;;  %v522_v20 = vpack.c.bf16 %v492_v17, %v491_v14  ;;  %v1393_v21 = vld [vmem:[#allocation2 + $0x4b] sm:$0xff]  ;;  %v441_v36 = vld [vmem:[%s11087_s19 + $0x80] sm:$0xff]  ;;  %387 = vst.msk [vmem:[#allocation3 + $0x1c0] sm:$0xf] %vm379_vm7, %v10917_v0 }
  0x3e   : > { %1519 = vrot.lane.b32.xlu1 %v11116_v35, %s10918_s22  ;;  %v10767_v35 = vld [vmem:[%s14802_s2 + $0x58] sm:$0xff]   ;;  %472 = vst.msk [vmem:[#allocation2 + $0xe2] sm:$0xff] %vm327_vm0, %v440_v19  ;;  %v1273_v23 = vld [vmem:[#allocation2 + $0xaa] sm:$0xff]  ;;  %473 = vst.msk [vmem:[#allocation2 + $0xf2] sm:$0xff] %vm327_vm0, %v441_v36 }
  0x3f   : > { %2095 = vrot.lane.b32.xlu0 %v11186_v18, %s10919_s23  ;;  %9578 = vmatprep.subr.bf16.mxu0 %v10767_v35  ;;  %v1394_v22 = vld [vmem:[#allocation2 + $0x53] sm:$0xff]  ;;  %538 = vst.msk [vmem:[#allocation4 + $0x38] sm:$0xff] %vm327_vm0, %v522_v20  ;;  %v945_v28 = vld [vmem:[#allocation2 + $0x3c] sm:$0xff]  ;;  %v1396_v41 = vld [vmem:[#allocation2 + $0x6b] sm:$0xff] }
  0x40   : > { %9579 = vmatpush3.bf16.msra.mxu0 %v10769_v38  ;;  %9695 = vmatpush3.bf16.msra.mxu1 %v10774_v47  ;;  %v1274_v24 = vld [vmem:[#allocation2 + $0xb2] sm:$0xff]  ;;  %v1423_v25 = vpack.c.bf16 %v1394_v22, %v1393_v21  ;;  %v442_v38 = vld [vmem:[%s11087_s19 + $0x88] sm:$0xff]  ;;  %v1907_v46 = vld [vmem:[#allocation2 + $0x7b] sm:$0xff]  ;;  %390 = vst.msk [vmem:[#allocation3 + $0x1d8] sm:$0xf] %vm379_vm7, %v10917_v0 }
  0x41   : > { %9580 = vmatprep.subr.bf16.mxu0 %v10771_v40  ;;  %9696 = vmatprep.subr.bf16.mxu1 %v10776_v54  ;;  %v11320_v27 = vpack.c.bf16 %v1274_v24, %v1273_v23  ;;  %v944_v31 = vld [vmem:[#allocation2 + $0x34] sm:$0xff]  ;;  %474 = vst.msk [vmem:[#allocation2 + $0xfa] sm:$0xff] %vm327_vm0, %v442_v38  ;;  %v1395_v40 = vld [vmem:[#allocation2 + $0x63] sm:$0xff]  ;;  %v949_v19 = vld [vmem:[#allocation2 + $0x6c] sm:$0xff] }
  0x42   : > { %1647 = vrot.lane.b32.xlu1 %v11136_v48, %s10919_s23  ;;  %v974_v33 = vpack.c.bf16 %v945_v28, %v944_v31  ;;  %v494_v35 = vld [vmem:[#allocation2 + $0x38] sm:$0xff]  ;;  %1439 = vst.msk [vmem:[#allocation4 + $0x80] sm:$0xff] %vm327_vm0, %v1423_v25  ;;  %v443_v45 = vld [vmem:[%s11087_s19 + $0x90] sm:$0xff]  ;;  %v1908_v47 = vld [vmem:[#allocation2 + $0x83] sm:$0xff] }
  0x43   : > { %2224 = vrot.lane.b32.xlu0 %v11197_v26, %s10920_s24  ;;  %v523_v39 = vpack.c.bf16 %v494_v35, %v493_v32  ;;  %1890 = vst.msk [vmem:[#allocation4 + $0x130] sm:$0xff] %vm327_vm0, %v11320_v27  ;;  %475 = vst.msk [vmem:[#allocation2 + $0x10a] sm:$0xff] %vm327_vm0, %v443_v45  ;;  %v1398_v6 = vld [vmem:[#allocation2 + $0x83] sm:$0xff]  ;;  %v1909_v15 = vld [vmem:[#allocation2 + $0x93] sm:$0xff] }
  0x44   : > { %9697 = vmatpush3.bf16.msra.mxu1 %v10778_v57  ;;  %990 = vst.msk [vmem:[#allocation4 + $0x78] sm:$0xff] %vm327_vm0, %v974_v33  ;;  %v2036_v57 = vld [vmem:[#allocation2 + $0x84] sm:$0xff]  ;;  %v2037_v17 = vld [vmem:[#allocation2 + $0x94] sm:$0xff]  ;;  %v2038_v23 = vld [vmem:[#allocation2 + $0x9c] sm:$0xff] }
  0x45   : > { %9698 = vmatprep.subr.bf16.mxu1 %v10780_v63  ;;  %539 = vst.msk [vmem:[#allocation4 + $0x70] sm:$0xff] %vm327_vm0, %v523_v39  ;;  %v1715_v63 = vld [vmem:[#allocation2 + $0x79] sm:$0xff]  ;;  %v446_v14 = vld [vmem:[%s11087_s19 + $0xa8] sm:$0xff]  ;;  %v2167_v25 = vld [vmem:[#allocation2 + $0xb0] sm:$0xff]  ;;  %v2065_v28 = vpack.c.bf16 %v2038_v23, %v2037_v17 }
  0x46   : > { %1775 = vrot.lane.b32.xlu1 %v11204_v29, %s10920_s24  ;;  %v445_v13 = vld [vmem:[%s11087_s19 + $0xa0] sm:$0xff]  ;;  %478 = vst.msk [vmem:[#allocation2 + $0x12a] sm:$0xff] %vm327_vm0, %v446_v14  ;;  %v498_v22 = vld [vmem:[#allocation2 + $0x68] sm:$0xff]  ;;  %v1717_v31 = vld [vmem:[#allocation2 + $0x91] sm:$0xff] }
  0x47   : > { %1071 = vrot.lane.b32.xlu0 %v11130_v43, %s10918_s22  ;;  %v437_v43 = vld [vmem:[%s11087_s19 + $0x60] sm:$0xff]  ;;  %477 = vst.msk [vmem:[#allocation2 + $0x122] sm:$0xff] %vm327_vm0, %v445_v13  ;;  %v1399_v35 = vld [vmem:[#allocation2 + $0x93] sm:$0xff] }
  0x48   : > { %469 = vst.msk [vmem:[#allocation2 + $0xc2] sm:$0xff] %vm327_vm0, %v437_v43  ;;  %9699 = vmatpush3.bf16.msra.mxu1 %v10782_v2  ;;  %v1276_v43 = vld [vmem:[#allocation2 + $0xca] sm:$0xff]  ;;  %v497_v21 = vld [vmem:[#allocation2 + $0x60] sm:$0xff]  ;;  %v1279_v39 = vld [vmem:[#allocation2 + $0xf2] sm:$0xff] }
  0x49   : > { %v525_v24 = vpack.c.bf16 %v498_v22, %v497_v21  ;;  %v1718_v32 = vld [vmem:[#allocation2 + $0x99] sm:$0xff]  ;;  %v450_v22 = vld [vmem:[%s11087_s19 + $0xc8] sm:$0xff]  ;;  %409 = vst.msk [vmem:[#allocation3 + $0x42] sm:$0x3] %vm392_vm8, %v10917_v0  ;;  %393 = vst.msk [vmem:[#allocation3 + $0x30] sm:$0x3] %vm392_vm8, %v10917_v0 }
  0x4a   : > { %619 = vrot.lane.b32.xlu1 %v11109_v30, %s10918_s22  ;;  %v10773_v30 = vld [vmem:[%s14802_s2 + $0x20] sm:$0xff]   ;;  %v11404_v33 = vpack.c.bf16 %v1718_v32, %v1717_v31  ;;  %v1402_v13 = vld [vmem:[#allocation2 + $0xb3] sm:$0xff]  ;;  %482 = vst.msk [vmem:[#allocation2 + $0x15a] sm:$0xff] %vm327_vm0, %v450_v22 }
  0x4b   : > { %1199 = vrot.lane.b32.xlu0 %v11140_v50, %s10919_s23  ;;  %9581 = vmatpush3.bf16.msra.mxu0 %v10773_v30  ;;  %v444_v30 = vld [vmem:[%s11087_s19 + $0x98] sm:$0xff]  ;;  %541 = vst.msk [vmem:[#allocation4 + $0xe0] sm:$0xff] %vm327_vm0, %v525_v24 }
  0x4c   : > { %9582 = vmatprep.subr.bf16.mxu0 %v10775_v52  ;;  %476 = vst.msk [vmem:[#allocation2 + $0x112] sm:$0xff] %vm327_vm0, %v444_v30  ;;  %v11350_v52 = vpack.c.bf16 %v1908_v47, %v1907_v46  ;;  %v1400_v36 = vld [vmem:[#allocation2 + $0x9b] sm:$0xff]  ;;  %v951_v47 = vld [vmem:[#allocation2 + $0x84] sm:$0xff] }
  0x4d   : > { %v1426_v38 = vpack.c.bf16 %v1400_v36, %v1399_v35  ;;  %v950_v46 = vld [vmem:[#allocation2 + $0x7c] sm:$0xff]  ;;  %v952_v32 = vld [vmem:[#allocation2 + $0x94] sm:$0xff]  ;;  %394 = vst.msk [vmem:[#allocation3 + $0x48] sm:$0x3] %vm392_vm8, %v10917_v0  ;;  %395 = vst.msk [vmem:[#allocation3 + $0x60] sm:$0x3] %vm392_vm8, %v10917_v0 }
  0x4e   : > { %748 = vrot.lane.b32.xlu1 %v11148_v59, %s10919_s23  ;;  %v2163_v59 = vld [vmem:[#allocation2 + $0x80] sm:$0xff]  ;;  %396 = vst.msk [vmem:[#allocation3 + $0x78] sm:$0x3] %vm392_vm8, %v10917_v0  ;;  %397 = vst.msk [vmem:[#allocation3 + $0x90] sm:$0x3] %vm392_vm8, %v10917_v0 }
  0x4f   : > { %1327 = vrot.lane.b32.xlu0 %v11124_v42, %s10920_s24  ;;  %9583 = vmatpush3.bf16.msra.mxu0 %v10777_v55  ;;  %v11297_v5 = vpack.c.bf16 %v2163_v59, %v2162_v58  ;;  %v1275_v44 = vld [vmem:[#allocation2 + $0xc2] sm:$0xff]  ;;  %v496_v58 = vld [vmem:[#allocation2 + $0x50] sm:$0xff]  ;;  %1442 = vst.msk [vmem:[#allocation4 + $0x128] sm:$0xff] %vm327_vm0, %v1426_v38 }
  0x50   : > { %9584 = vmatprep.subr.bf16.mxu0 %v10779_v60  ;;  %v2035_v55 = vld [vmem:[#allocation2 + $0x7c] sm:$0xff]  ;;  %v2164_v59 = vld [vmem:[#allocation2 + $0x90] sm:$0xff]  ;;  %v2041_v31 = vld [vmem:[#allocation2 + $0xc4] sm:$0xff]  ;;  %398 = vst.msk [vmem:[#allocation3 + $0xa8] sm:$0x3] %vm392_vm8, %v10917_v0 }
  0x51   : > { %v2165_v60 = vld [vmem:[#allocation2 + $0x98] sm:$0xff]  ;;  %v2064_v62 = vpack.c.bf16 %v2036_v57, %v2035_v55  ;;  %v500_v55 = vld [vmem:[#allocation2 + $0x80] sm:$0xff]  ;;  %v501_v38 = vld [vmem:[#allocation2 + $0x90] sm:$0xff]  ;;  %399 = vst.msk [vmem:[#allocation3 + $0xc0] sm:$0x3] %vm392_vm8, %v10917_v0 }
  0x52   : > { %877 = vrot.lane.b32.xlu1 %v11111_v34, %s10920_s24  ;;  %v11279_v34 = vpack.c.bf16 %v2034_v51, %v2033_v49  ;;  %v946_v49 = vld [vmem:[#allocation2 + $0x4c] sm:$0xff]  ;;  %v947_v51 = vld [vmem:[#allocation2 + $0x54] sm:$0xff]  ;;  %v953_v35 = vld [vmem:[#allocation2 + $0x9c] sm:$0xff]  ;;  %400 = vst.msk [vmem:[#allocation3 + $0xd8] sm:$0x3] %vm392_vm8, %v10917_v0 }
  0x53   : > { %1969 = vrot.lane.b32.xlu0 %v11261_v53, %s10918_s22  ;;  %9585 = vmatpush3.bf16.msra.mxu0 %v10781_v1  ;;  %v975_v54 = vpack.c.bf16 %v947_v51, %v946_v49  ;;  %v1716_v1 = vld [vmem:[#allocation2 + $0x81] sm:$0xff]  ;;  %v977_v51 = vpack.c.bf16 %v951_v47, %v950_v46  ;;  %v1722_v47 = vld [vmem:[#allocation2 + $0xc9] sm:$0xff]  ;;  %401 = vst.msk [vmem:[#allocation3 + $0xf0] sm:$0x3] %vm392_vm8, %v10917_v0  ;;  %402 = vst.msk [vmem:[#allocation3 + $0x108] sm:$0x3] %vm392_vm8, %v10917_v0 }
  0x54   : > { %9586 = vmatprep.subr.bf16.mxu0 %v10783_v3  ;;  %v11365_v2 = vpack.c.bf16 %v1716_v1, %v1715_v63  ;;  %v1397_v3 = vld [vmem:[#allocation2 + $0x7b] sm:$0xff]  ;;  %403 = vst.msk [vmem:[#allocation3 + $0x120] sm:$0x3] %vm392_vm8, %v10917_v0  ;;  %404 = vst.msk [vmem:[#allocation3 + $0x138] sm:$0x3] %vm392_vm8, %v10917_v0 }
  0x55   : > { %991 = vst.msk [vmem:[#allocation4 + $0xb0] sm:$0xff] %vm327_vm0, %v975_v54  ;;  %v499_v54 = vld [vmem:[#allocation2 + $0x78] sm:$0xff]  ;;  %993 = vst.msk [vmem:[#allocation4 + $0x120] sm:$0xff] %vm327_vm0, %v977_v51  ;;  %v1721_v46 = vld [vmem:[#allocation2 + $0xc1] sm:$0xff] }
  0x56   : > { %1521 = vrot.lane.b32.xlu1 %v11186_v18, %s10918_s22  ;;  %v439_v18 = vld [vmem:[%s11087_s19 + $0x70] sm:$0xff]  ;;  %v526_v57 = vpack.c.bf16 %v500_v55, %v499_v54  ;;  %405 = vst.msk [vmem:[#allocation3 + $0x150] sm:$0x3] %vm392_vm8, %v10917_v0  ;;  %406 = vst.msk [vmem:[#allocation3 + $0x168] sm:$0x3] %vm392_vm8, %v10917_v0 }
  0x57   : > { %2097 = vrot.lane.b32.xlu0 %v11279_v34, %s10919_s23  ;;  %9587 = vmatpush3.bf16.msra.mxu0 %v10784_v10  ;;  %471 = vst.msk [vmem:[#allocation2 + $0xda] sm:$0xff] %vm327_vm0, %v439_v18  ;;  %v1278_v10 = vld [vmem:[#allocation2 + $0xe2] sm:$0xff] }
  0x58   : > { %v948_v18 = vld [vmem:[#allocation2 + $0x64] sm:$0xff]  ;;  %542 = vst.msk [vmem:[#allocation4 + $0x118] sm:$0xff] %vm327_vm0, %v526_v57 }
  0x59   : > { %v976_v20 = vpack.c.bf16 %v949_v19, %v948_v18  ;;  %407 = vst.msk [vmem:[#allocation3 + $0x180] sm:$0x3] %vm392_vm8, %v10917_v0  ;;  %408 = vst.msk [vmem:[#allocation3 + $0x198] sm:$0x3] %vm392_vm8, %v10917_v0 }
  0x5a   : > { %1649 = vrot.lane.b32.xlu1 %v11197_v26, %s10919_s23  ;;  %410 = vst.msk [vmem:[#allocation3 + $0x5a] sm:$0x3] %vm392_vm8, %v10917_v0  ;;  %411 = vst.msk [vmem:[#allocation3 + $0x72] sm:$0x3] %vm392_vm8, %v10917_v0 }
  0x5b   : > { %2226 = vrot.lane.b32.xlu0 %v11297_v5, %s10920_s24  ;;  %992 = vst.msk [vmem:[#allocation4 + $0xe8] sm:$0xff] %vm327_vm0, %v976_v20  ;;  %v449_v20 = vld [vmem:[%s11087_s19 + $0xc0] sm:$0xff] }
  0x5c   : > { %481 = vst.msk [vmem:[#allocation2 + $0x152] sm:$0xff] %vm327_vm0, %v449_v20  ;;  %v954_v20 = vld [vmem:[#allocation2 + $0xac] sm:$0xff] }
  0x5d   : > { %412 = vst.msk [vmem:[#allocation3 + $0x8a] sm:$0x3] %vm392_vm8, %v10917_v0  ;;  %413 = vst.msk [vmem:[#allocation3 + $0xa2] sm:$0x3] %vm392_vm8, %v10917_v0 }
  0x5e   : > { %1777 = vrot.lane.b32.xlu1 %v11301_v8, %s10920_s24  ;;  %v1277_v7 = vld [vmem:[#allocation2 + $0xda] sm:$0xff]  ;;  %414 = vst.msk [vmem:[#allocation3 + $0xba] sm:$0x3] %vm392_vm8, %v10917_v0  ;;  %415 = vst.msk [vmem:[#allocation3 + $0xd2] sm:$0x3] %vm392_vm8, %v10917_v0 }
  0x5f   : > { %1073 = vrot.lane.b32.xlu0 %v11136_v48, %s10918_s22  ;;  %v1424_v48 = vpack.c.bf16 %v1396_v41, %v1395_v40  ;;  %v11371_v11 = vpack.c.bf16 %v1278_v10, %v1277_v7  ;;  %v1280_v40 = vld [vmem:[#allocation2 + $0xfa] sm:$0xff]  ;;  %v1401_v10 = vld [vmem:[#allocation2 + $0xab] sm:$0xff]  ;;  %416 = vst.msk [vmem:[#allocation3 + $0xea] sm:$0x3] %vm392_vm8, %v10917_v0  ;;  %417 = vst.msk [vmem:[#allocation3 + $0x102] sm:$0x3] %vm392_vm8, %v10917_v0 }
  0x60   : > { %v11410_v41 = vpack.c.bf16 %v1280_v40, %v1279_v39  ;;  %v1427_v14 = vpack.c.bf16 %v1402_v13, %v1401_v10  ;;  %v502_v39 = vld [vmem:[#allocation2 + $0x98] sm:$0xff]  ;;  %v2042_v40 = vld [vmem:[#allocation2 + $0xcc] sm:$0xff]  ;;  %418 = vst.msk [vmem:[#allocation3 + $0x11a] sm:$0x3] %vm392_vm8, %v10917_v0  ;;  %419 = vst.msk [vmem:[#allocation3 + $0x132] sm:$0x3] %vm392_vm8, %v10917_v0 }
  0x61   : > { %1440 = vst.msk [vmem:[#allocation4 + $0xb8] sm:$0xff] %vm327_vm0, %v1424_v48  ;;  %1892 = vst.msk [vmem:[#allocation4 + $0x1a0] sm:$0xff] %vm327_vm0, %v11371_v11  ;;  %v448_v48 = vld [vmem:[%s11087_s19 + $0xb8] sm:$0xff]  ;;  %v451_v10 = vld [vmem:[%s11087_s19 + $0xd0] sm:$0xff] }
  0x62   : > { %621 = vrot.lane.b32.xlu1 %v11140_v50, %s10918_s22  ;;  %v11337_v50 = vpack.c.bf16 %v1276_v43, %v1275_v44  ;;  %1893 = vst.msk [vmem:[#allocation4 + $0x1d8] sm:$0xff] %vm327_vm0, %v11410_v41  ;;  %v447_v44 = vld [vmem:[%s11087_s19 + $0xb0] sm:$0xff]  ;;  %480 = vst.msk [vmem:[#allocation2 + $0x142] sm:$0xff] %vm327_vm0, %v448_v48 }
  0x63   : > { %1201 = vrot.lane.b32.xlu0 %v11204_v29, %s10919_s23  ;;  %479 = vst.msk [vmem:[#allocation2 + $0x13a] sm:$0xff] %vm327_vm0, %v447_v44  ;;  %v1912_v43 = vld [vmem:[#allocation2 + $0xb3] sm:$0xff]  ;;  %1443 = vst.msk [vmem:[#allocation4 + $0x160] sm:$0xff] %vm327_vm0, %v1427_v14  ;;  %v527_v44 = vpack.c.bf16 %v502_v39, %v501_v38  ;;  %v1724_v38 = vld [vmem:[#allocation2 + $0xe1] sm:$0xff] }
  0x64   : > { %1891 = vst.msk [vmem:[#allocation4 + $0x168] sm:$0xff] %vm327_vm0, %v11337_v50  ;;  %v452_v14 = vld [vmem:[%s11087_s19 + $0xd8] sm:$0xff]  ;;  %483 = vst.msk [vmem:[#allocation2 + $0x16a] sm:$0xff] %vm327_vm0, %v451_v10 }
  0x65   : > { %543 = vst.msk [vmem:[#allocation4 + $0x150] sm:$0xff] %vm327_vm0, %v527_v44  ;;  %484 = vst.msk [vmem:[#allocation2 + $0x172] sm:$0xff] %vm327_vm0, %v452_v14  ;;  %v506_v14 = vld [vmem:[#allocation2 + $0xc8] sm:$0xff] }
  0x66   : > { %750 = vrot.lane.b32.xlu1 %v11124_v42, %s10919_s23  ;;  %v495_v42 = vld [vmem:[#allocation2 + $0x48] sm:$0xff]  ;;  %420 = vst.msk [vmem:[#allocation3 + $0x14a] sm:$0x3] %vm392_vm8, %v10917_v0  ;;  %421 = vst.msk [vmem:[#allocation3 + $0x162] sm:$0x3] %vm392_vm8, %v10917_v0 }
  0x67   : > { %1329 = vrot.lane.b32.xlu0 %v11142_v56, %s10920_s24  ;;  %v524_v61 = vpack.c.bf16 %v496_v58, %v495_v42  ;;  %422 = vst.msk [vmem:[#allocation3 + $0x17a] sm:$0x3] %vm392_vm8, %v10917_v0  ;;  %423 = vst.msk [vmem:[#allocation3 + $0x192] sm:$0x3] %vm392_vm8, %v10917_v0 }
  0x68   : > { %424 = vst.msk [vmem:[#allocation3 + $0x1aa] sm:$0x3] %vm392_vm8, %v10917_v0 }
  0x69   : > { %540 = vst.msk [vmem:[#allocation4 + $0xa8] sm:$0xff] %vm327_vm0, %v524_v61 }
  0x6a   : > { %879 = vrot.lane.b32.xlu1 %v11118_v37, %s10920_s24  ;;  %v11361_v37 = vpack.c.bf16 %v2165_v60, %v2164_v59  ;;  %v2168_v59 = vld [vmem:[#allocation2 + $0xc0] sm:$0xff]  ;;  %v2169_v60 = vld [vmem:[#allocation2 + $0xc8] sm:$0xff] }
  0x6b   : > { %1971 = vrot.lane.b32.xlu0 %v11350_v52, %s10918_s22 }
  0x6e   : > { %1523 = vrot.lane.b32.xlu1 %v11279_v34, %s10918_s22  ;;  %v1425_v34 = vpack.c.bf16 %v1398_v6, %v1397_v3  ;;  %v11447_v3 = vpack.c.bf16 %v2169_v60, %v2168_v59  ;;  %v1404_v59 = vld [vmem:[#allocation2 + $0xcb] sm:$0xff] }
  0x6f   : > { %2099 = vrot.lane.b32.xlu0 %v2064_v62, %s10919_s23 }
  0x70   : > { %1441 = vst.msk [vmem:[#allocation4 + $0xf0] sm:$0xff] %vm327_vm0, %v1425_v34 }
  0x72   : > { %1651 = vrot.lane.b32.xlu1 %v11297_v5, %s10919_s23 }
  0x73   : > { %2228 = vrot.lane.b32.xlu0 %v11361_v37, %s10920_s24 }
  0x76   : > { %1779 = vrot.lane.b32.xlu1 %v11365_v2, %s10920_s24 }
  0x77   : > { %1075 = vrot.lane.b32.xlu0 %v11197_v26, %s10918_s22  ;;  %v1910_v26 = vld [vmem:[#allocation2 + $0x9b] sm:$0xff] }
  0x7a   : > { %623 = vrot.lane.b32.xlu1 %v11204_v29, %s10918_s22  ;;  %v11390_v29 = vpack.c.bf16 %v1910_v26, %v1909_v15  ;;  %v1281_v15 = vld [vmem:[#allocation2 + $0x10a] sm:$0xff]  ;;  %v1282_v26 = vld [vmem:[#allocation2 + $0x112] sm:$0xff] }
  0x7b   : > { %1203 = vrot.lane.b32.xlu0 %v11301_v8, %s10919_s23  ;;  %v11460_v18 = vpack.c.bf16 %v1282_v26, %v1281_v15 }
  0x7d   : > { %1894 = vst.msk [vmem:[#allocation4 + $0x210] sm:$0xff] %vm327_vm0, %v11460_v18 }
  0x7e   : > { %752 = vrot.lane.b32.xlu1 %v11142_v56, %s10919_s23  ;;  %v2166_v56 = vld [vmem:[#allocation2 + $0xa8] sm:$0xff] }
  0x7f   : > { %1331 = vrot.lane.b32.xlu0 %v11158_v4, %s10920_s24 }
  0x82   : > { %881 = vrot.lane.b32.xlu1 %v11170_v12, %s10920_s24  ;;  %v11400_v12 = vpack.c.bf16 %v2167_v25, %v2166_v56 }
  0x83   : > { %1973 = vrot.lane.b32.xlu0 %v11390_v29, %s10918_s22 }
  0x86   : > { %1525 = vrot.lane.b32.xlu1 %v2064_v62, %s10918_s22  ;;  %v1720_v62 = vld [vmem:[#allocation2 + $0xb1] sm:$0xff] }
  0x87   : > { %2101 = vrot.lane.b32.xlu0 %v2065_v28, %s10919_s23 }
  0x8a   : > { %1653 = vrot.lane.b32.xlu1 %v11361_v37, %s10919_s23 }
  0x8b   : > { %2230 = vrot.lane.b32.xlu0 %v11400_v12, %s10920_s24  ;;  %v1518_v45 = vpop.permute.xlu0 %1517 }
  0x8c   : > { %1565 = vst.msk [vmem:[#allocation4 + $0x10] sm:$0xff] %vm665_vm3, %v1518_v45  ;;  %v618_v30 = vpop.permute.xlu1 %617 }
  0x8d   : > { %666 = vst.msk [vmem:[#allocation4] sm:$0xff] %vm665_vm3, %v618_v30  ;;  %v2170_v30 = vld [vmem:[#allocation2 + $0xd8] sm:$0xff] }
  0x8e   : > { %1781 = vrot.lane.b32.xlu1 %v11404_v33, %s10920_s24 }
  0x8f   : > { %1077 = vrot.lane.b32.xlu0 %v11297_v5, %s10918_s22  ;;  %v1911_v5 = vld [vmem:[#allocation2 + $0xab] sm:$0xff]  ;;  %v1070_v42 = vpop.permute.xlu0 %1069 }
  0x90   : > { %v11431_v49 = vpack.c.bf16 %v1912_v43, %v1911_v5  ;;  %1117 = vst.msk [vmem:[#allocation4 + $0x8] sm:$0xff] %vm665_vm3, %v1070_v42  ;;  %v747_v58 = vpop.permute.xlu1 %746 }
  0x91   : > { %795 = vst.msk [vmem:[#allocation4] sm:$0xff] %vm794_vm4, %v747_v58  ;;  %v1403_v58 = vld [vmem:[#allocation2 + $0xc3] sm:$0xff] }
  0x92   : > { %625 = vrot.lane.b32.xlu1 %v11301_v8, %s10918_s22  ;;  %v2039_v8 = vld [vmem:[#allocation2 + $0xac] sm:$0xff]  ;;  %v1428_v60 = vpack.c.bf16 %v1404_v59, %v1403_v58  ;;  %v453_v58 = vld [vmem:[%s11087_s19 + $0xe0] sm:$0xff] }
  0x93   : > { %1205 = vrot.lane.b32.xlu0 %v11365_v2, %s10919_s23  ;;  %v1198_v63 = vpop.permute.xlu0 %1197  ;;  %485 = vst.msk [vmem:[#allocation2 + $0x182] sm:$0xff] %vm327_vm0, %v453_v58 }
  0x94   : > { %1245 = vst.msk [vmem:[#allocation4 + $0x8] sm:$0xff] %vm794_vm4, %v1198_v63 }
  0x95   : > { %1444 = vst.msk [vmem:[#allocation4 + $0x198] sm:$0xff] %vm327_vm0, %v1428_v60  ;;  %v454_v60 = vld [vmem:[%s11087_s19 + $0xe8] sm:$0xff] }
  0x96   : > { %754 = vrot.lane.b32.xlu1 %v11158_v4, %s10919_s23  ;;  %v2040_v4 = vld [vmem:[#allocation2 + $0xb4] sm:$0xff]  ;;  %486 = vst.msk [vmem:[#allocation2 + $0x18a] sm:$0xff] %vm327_vm0, %v454_v60  ;;  %v508_v60 = vld [vmem:[#allocation2 + $0xe0] sm:$0xff] }
  0x97   : > { %1333 = vrot.lane.b32.xlu0 %v11179_v16, %s10920_s24  ;;  %v11441_v61 = vpack.c.bf16 %v2040_v4, %v2039_v8  ;;  %v2171_v8 = vld [vmem:[#allocation2 + $0xe0] sm:$0xff]  ;;  %v11507_v4 = vpack.c.bf16 %v1722_v47, %v1721_v46 }
  0x98   : > { %v11503_v55 = vpack.c.bf16 %v2171_v8, %v2170_v30  ;;  %v1406_v30 = vld [vmem:[#allocation2 + $0xe3] sm:$0xff] }
  0x99   : > { %v1286_v46 = vld [vmem:[#allocation2 + $0x142] sm:$0xff] }
  0x9a   : > { %883 = vrot.lane.b32.xlu1 %v11261_v53, %s10920_s24  ;;  %v1719_v53 = vld [vmem:[#allocation2 + $0xa9] sm:$0xff] }
  0x9b   : > { %1975 = vrot.lane.b32.xlu0 %v11431_v49, %s10918_s22  ;;  %v11451_v6 = vpack.c.bf16 %v1720_v62, %v1719_v53  ;;  %v1284_v53 = vld [vmem:[#allocation2 + $0x12a] sm:$0xff] }
  0x9e   : > { %1527 = vrot.lane.b32.xlu1 %v2065_v28, %s10918_s22 }
  0x9f   : > { %2103 = vrot.lane.b32.xlu0 %v11441_v61, %s10919_s23 }
  0xa0   : > { %v2094_v1 = vpop.permute.xlu1 %2093 }
  0xa1   : > { %v1966_v34 = vpop.permute.xlu0 %1965 }
  0xa2   : > { %1655 = vrot.lane.b32.xlu1 %v11400_v12, %s10919_s23  ;;  %2013 = vst.msk [vmem:[#allocation4 + $0x18] sm:$0xff] %vm665_vm3, %v1966_v34 }
  0xa3   : > { %2141 = vst.msk [vmem:[#allocation4 + $0x18] sm:$0xff] %vm794_vm4, %v2094_v1  ;;  %2232 = vrot.lane.b32.xlu0 %v11447_v3, %s10920_s24 }
  0xa4   : > { %v1646_v7 = vpop.permute.xlu1 %1645 }
  0xa5   : > { %1693 = vst.msk [vmem:[#allocation4 + $0x10] sm:$0xff] %vm794_vm4, %v1646_v7  ;;  %v2223_v17 = vpop.permute.xlu0 %2222 }
  0xa6   : > { %1783 = vrot.lane.b32.xlu1 %v11451_v6, %s10920_s24  ;;  %2270 = vst.msk [vmem:[#allocation4 + $0x18] sm:$0xff] %vm923_vm5, %v2223_v17 }
  0xa7   : > { %1079 = vrot.lane.b32.xlu0 %v11361_v37, %s10918_s22  ;;  %v1913_v37 = vld [vmem:[#allocation2 + $0xc3] sm:$0xff] }
  0xa8   : > { %v1774_v19 = vpop.permute.xlu1 %1773 }
  0xa9   : > { %1821 = vst.msk [vmem:[#allocation4 + $0x10] sm:$0xff] %vm923_vm5, %v1774_v19  ;;  %v1326_v21 = vpop.permute.xlu0 %1325  ;;  %v2043_v19 = vld [vmem:[#allocation2 + $0xdc] sm:$0xff] }
  0xaa   : > { %627 = vrot.lane.b32.xlu1 %v11365_v2, %s10918_s22  ;;  %1373 = vst.msk [vmem:[#allocation4 + $0x8] sm:$0xff] %vm923_vm5, %v1326_v21  ;;  %v1914_v2 = vld [vmem:[#allocation2 + $0xcb] sm:$0xff]  ;;  %v955_v21 = vld [vmem:[#allocation2 + $0xb4] sm:$0xff] }
  0xab   : > { %1207 = vrot.lane.b32.xlu0 %v11404_v33, %s10919_s23  ;;  %v11485_v36 = vpack.c.bf16 %v1914_v2, %v1913_v37  ;;  %v503_v37 = vld [vmem:[#allocation2 + $0xa8] sm:$0xff]  ;;  %v504_v2 = vld [vmem:[#allocation2 + $0xb0] sm:$0xff] }
  0xac   : > { %v876_v23 = vpop.permute.xlu1 %875 }
  0xad   : > { %924 = vst.msk [vmem:[#allocation4] sm:$0xff] %vm923_vm5, %v876_v23  ;;  %v1968_v24 = vpop.permute.xlu0 %1967  ;;  %v3250_v56 = vld [vmem:[#allocation4 + $0x18] sm:$0xff]  ;;  %v979_v23 = vpack.c.bf16 %v955_v21, %v954_v20  ;;  %v2174_v20 = vld [vmem:[#allocation2 + $0x108] sm:$0xff]  ;;  %v2175_v21 = vld [vmem:[#allocation2 + $0x110] sm:$0xff] }
  0xae   : > { %756 = vrot.lane.b32.xlu1 %v11179_v16, %s10919_s23  ;;  %2014 = vst.msk [vmem:[#allocation4 + $0x50] sm:$0xff] %vm665_vm3, %v1968_v24  ;;  %4007 = vmatprep.mubr.bf16.mxu1 %v3250_v56  ;;  %v978_v16 = vpack.c.bf16 %v953_v35, %v952_v32  ;;  %v528_v24 = vpack.c.bf16 %v504_v2, %v503_v37  ;;  %v2172_v32 = vld [vmem:[#allocation2 + $0xf0] sm:$0xff]  ;;  %v2173_v35 = vld [vmem:[#allocation2 + $0xf8] sm:$0xff] }
  0xaf   : > { %1335 = vrot.lane.b32.xlu0 %v11303_v9, %s10920_s24  ;;  %995 = vst.msk [vmem:[#allocation4 + $0x190] sm:$0xff] %vm327_vm0, %v979_v23  ;;  %v11558_v44 = vpack.c.bf16 %v2173_v35, %v2172_v32  ;;  %v1725_v37 = vld [vmem:[#allocation2 + $0xf1] sm:$0xff]  ;;  %v1726_v2 = vld [vmem:[#allocation2 + $0xf9] sm:$0xff] }
  0xb0   : > { %v1520_v25 = vpop.permute.xlu1 %1519  ;;  %v3249_v28 = vld [vmem:[#allocation4 + $0x10] sm:$0xff]  ;;  %994 = vst.msk [vmem:[#allocation4 + $0x158] sm:$0xff] %vm327_vm0, %v978_v16  ;;  %544 = vst.msk [vmem:[#allocation4 + $0x188] sm:$0xff] %vm327_vm0, %v528_v24  ;;  %v1723_v16 = vld [vmem:[#allocation2 + $0xd9] sm:$0xff]  ;;  %v11613_v24 = vpack.c.bf16 %v2175_v21, %v2174_v20 }
  0xb1   : > { %1566 = vst.msk [vmem:[#allocation4 + $0x48] sm:$0xff] %vm665_vm3, %v1520_v25  ;;  %4008 = vmatmul.mubr.bf16.vlgmr.msra.gmra.mrb[0].mxu1 %v3249_v28  ;;  %v2096_v48 = vpop.permute.xlu0 %2095  ;;  %v3248_v5 = vld [vmem:[#allocation4 + $0x8] sm:$0xff]  ;;  %v1408_v32 = vld [vmem:[#allocation2 + $0xfb] sm:$0xff] }
  0xb2   : > { %885 = vrot.lane.b32.xlu1 %v11350_v52, %s10920_s24  ;;  %2142 = vst.msk [vmem:[#allocation4 + $0x50] sm:$0xff] %vm794_vm4, %v2096_v48  ;;  %3846 = vmatprep.mubr.bf16.mxu0 %v3248_v5  ;;  %v11495_v52 = vpack.c.bf16 %v2042_v40, %v2041_v31  ;;  %v11562_v48 = vpack.c.bf16 %v1724_v38, %v1723_v16  ;;  %v1288_v16 = vld [vmem:[#allocation2 + $0x15a] sm:$0xff]  ;;  %v1289_v21 = vld [vmem:[#allocation2 + $0x16a] sm:$0xff] }
  0xb3   : > { %1977 = vrot.lane.b32.xlu0 %v11485_v36, %s10918_s22 }
  0xb4   : > { %v1648_v43 = vpop.permute.xlu1 %1647  ;;  %v3247_v45 = vld [vmem:[#allocation4] sm:$0xff] }
  0xb5   : > { %1694 = vst.msk [vmem:[#allocation4 + $0x48] sm:$0xff] %vm794_vm4, %v1648_v43  ;;  %3847 = vmatmul.mubr.bf16.vlgmr.msra.gmra.mrb[0].mxu0 %v3247_v45  ;;  %v2225_v51 = vpop.permute.xlu0 %2224  ;;  %v1405_v45 = vld [vmem:[#allocation2 + $0xdb] sm:$0xff] }
  0xb6   : > { %1529 = vrot.lane.b32.xlu1 %v11441_v61, %s10918_s22  ;;  %2271 = vst.msk [vmem:[#allocation4 + $0x50] sm:$0xff] %vm923_vm5, %v2225_v51  ;;  %v1283_v61 = vld [vmem:[#allocation2 + $0x122] sm:$0xff]  ;;  %v1429_v8 = vpack.c.bf16 %v1406_v30, %v1405_v45  ;;  %v455_v45 = vld [vmem:[%s11087_s19 + $0xf0] sm:$0xff] }
  0xb7   : > { %2105 = vrot.lane.b32.xlu0 %v11495_v52, %s10919_s23  ;;  %v11515_v1 = vpack.c.bf16 %v1284_v53, %v1283_v61  ;;  %487 = vst.msk [vmem:[#allocation2 + $0x19a] sm:$0xff] %vm327_vm0, %v455_v45  ;;  %v510_v45 = vld [vmem:[#allocation2 + $0xf8] sm:$0xff] }
  0xb8   : > { %v1776_v54 = vpop.permute.xlu1 %1775  ;;  %1445 = vst.msk [vmem:[#allocation4 + $0x1d0] sm:$0xff] %vm327_vm0, %v1429_v8  ;;  %v456_v8 = vld [vmem:[%s11087_s19 + $0xf8] sm:$0xff]  ;;  %s14774_s19 = scalar_lea.vmem %s14801_s1, %s9570_s30 }
  0xb9   : > { %1822 = vst.msk [vmem:[#allocation4 + $0x48] sm:$0xff] %vm923_vm5, %v1776_v54  ;;  %v1072_v57 = vpop.permute.xlu0 %1071 }
  0xba   : > { %1657 = vrot.lane.b32.xlu1 %v11447_v3, %s10919_s23  ;;  %1118 = vst.msk [vmem:[#allocation4 + $0x40] sm:$0xff] %vm665_vm3, %v1072_v57 }
  0xbb   : > { %2234 = vrot.lane.b32.xlu0 %v11503_v55, %s10920_s24  ;;  %1895 = vst.msk [vmem:[#allocation4 + $0x248] sm:$0xff] %vm327_vm0, %v11515_v1  ;;  %488 = vst.msk [vmem:[#allocation2 + $0x1a2] sm:$0xff] %vm327_vm0, %v456_v8 }
  0xbc   : > { %v620_v42 = vpop.permute.xlu1 %619 }
  0xbd   : > { %667 = vst.msk [vmem:[#allocation4 + $0x38] sm:$0xff] %vm665_vm3, %v620_v42  ;;  %v1200_v62 = vpop.permute.xlu0 %1199  ;;  %v3257_v63 = vld [vmem:[#allocation4 + $0x50] sm:$0xff] }
  0xbe   : > { %1785 = vrot.lane.b32.xlu1 %v11507_v4, %s10920_s24  ;;  %1246 = vst.msk [vmem:[#allocation4 + $0x40] sm:$0xff] %vm794_vm4, %v1200_v62  ;;  %4015 = vmatprep.mubr.bf16.mxu1 %v3257_v63  ;;  %v956_v63 = vld [vmem:[#allocation2 + $0xc4] sm:$0xff] }
  0xbf   : > { %1081 = vrot.lane.b32.xlu0 %v11400_v12, %s10918_s22  ;;  %v1915_v12 = vld [vmem:[#allocation2 + $0xdb] sm:$0xff] }
  0xc0   : > { %v749_v34 = vpop.permute.xlu1 %748  ;;  %v3256_v7 = vld [vmem:[#allocation4 + $0x48] sm:$0xff] }
  0xc1   : > { %796 = vst.msk [vmem:[#allocation4 + $0x38] sm:$0xff] %vm794_vm4, %v749_v34  ;;  %4016 = vmatmul.mubr.bf16.gmra.mrb[4].mxu1 %v3256_v7  ;;  %v1328_v13 = vpop.permute.xlu0 %1327  ;;  %v957_v34 = vld [vmem:[#allocation2 + $0xcc] sm:$0xff] }
  0xc2   : > { %629 = vrot.lane.b32.xlu1 %v11404_v33, %s10918_s22  ;;  %1374 = vst.msk [vmem:[#allocation4 + $0x40] sm:$0xff] %vm923_vm5, %v1328_v13  ;;  %v1916_v33 = vld [vmem:[#allocation2 + $0xe3] sm:$0xff]  ;;  %v980_v10 = vpack.c.bf16 %v957_v34, %v956_v63 }
  0xc3   : > { %1209 = vrot.lane.b32.xlu0 %v11451_v6, %s10919_s23  ;;  %v11540_v22 = vpack.c.bf16 %v1916_v33, %v1915_v12  ;;  %v505_v13 = vld [vmem:[#allocation2 + $0xc0] sm:$0xff] }
  0xc4   : > { %v878_v15 = vpop.permute.xlu1 %877  ;;  %v529_v12 = vpack.c.bf16 %v506_v14, %v505_v13  ;;  %996 = vst.msk [vmem:[#allocation4 + $0x1c8] sm:$0xff] %vm327_vm0, %v980_v10  ;;  %v2176_v34 = vld [vmem:[#allocation2 + $0x120] sm:$0xff]  ;;  %v2177_v10 = vld [vmem:[#allocation2 + $0x128] sm:$0xff] }
  0xc5   : > { %925 = vst.msk [vmem:[#allocation4 + $0x38] sm:$0xff] %vm923_vm5, %v878_v15  ;;  %v1970_v26 = vpop.permute.xlu0 %1969  ;;  %v2046_v15 = vld [vmem:[#allocation2 + $0xfc] sm:$0xff]  ;;  %v1727_v14 = vld [vmem:[#allocation2 + $0x109] sm:$0xff] }
  0xc6   : > { %758 = vrot.lane.b32.xlu1 %v11303_v9, %s10919_s23  ;;  %2015 = vst.msk [vmem:[#allocation4 + $0x88] sm:$0xff] %vm665_vm3, %v1970_v26  ;;  %v2044_v9 = vld [vmem:[#allocation2 + $0xe4] sm:$0xff] }
  0xc7   : > { %1337 = vrot.lane.b32.xlu0 %v11320_v27, %s10920_s24  ;;  %545 = vst.msk [vmem:[#allocation4 + $0x1c0] sm:$0xff] %vm327_vm0, %v529_v12  ;;  %v11668_v12 = vpack.c.bf16 %v2177_v10, %v2176_v34  ;;  %v1292_v34 = vld [vmem:[#allocation2 + $0x18a] sm:$0xff] }
  0xc8   : > { %v1522_v17 = vpop.permute.xlu1 %1521 }
  0xc9   : > { %1567 = vst.msk [vmem:[#allocation4 + $0x80] sm:$0xff] %vm665_vm3, %v1522_v17  ;;  %v2098_v56 = vpop.permute.xlu0 %2097  ;;  %v3255_v25 = vld [vmem:[#allocation4 + $0x40] sm:$0xff] }
  0xca   : > { %887 = vrot.lane.b32.xlu1 %v11390_v29, %s10920_s24  ;;  %2143 = vst.msk [vmem:[#allocation4 + $0x88] sm:$0xff] %vm794_vm4, %v2098_v56  ;;  %3854 = vmatprep.mubr.bf16.mxu0 %v3255_v25  ;;  %v11550_v29 = vpack.c.bf16 %v2044_v9, %v2043_v19  ;;  %v11617_v56 = vpack.c.bf16 %v1726_v2, %v1725_v37 }
  0xcb   : > { %1979 = vrot.lane.b32.xlu0 %v11540_v22, %s10918_s22 }
  0xcc   : > { %v1650_v28 = vpop.permute.xlu1 %1649  ;;  %v3254_v31 = vld [vmem:[#allocation4 + $0x38] sm:$0xff] }
  0xcd   : > { %1695 = vst.msk [vmem:[#allocation4 + $0x80] sm:$0xff] %vm794_vm4, %v1650_v28  ;;  %3855 = vmatmul.mubr.bf16.gmra.mrb[4].mxu0 %v3254_v31  ;;  %v2227_v39 = vpop.permute.xlu0 %2226  ;;  %v1407_v31 = vld [vmem:[#allocation2 + $0xf3] sm:$0xff] }
  0xce   : > { %1531 = vrot.lane.b32.xlu1 %v11495_v52, %s10918_s22  ;;  %2272 = vst.msk [vmem:[#allocation4 + $0x88] sm:$0xff] %vm923_vm5, %v2227_v39  ;;  %v1285_v52 = vld [vmem:[#allocation2 + $0x13a] sm:$0xff]  ;;  %v1430_v35 = vpack.c.bf16 %v1408_v32, %v1407_v31 }
  0xcf   : > { %2107 = vrot.lane.b32.xlu0 %v11550_v29, %s10919_s23  ;;  %v11570_v54 = vpack.c.bf16 %v1286_v46, %v1285_v52 }
  0xd0   : > { %v1778_v40 = vpop.permute.xlu1 %1777  ;;  %1446 = vst.msk [vmem:[#allocation4 + $0x208] sm:$0xff] %vm327_vm0, %v1430_v35  ;;  %v1922_v35 = vld [vmem:[#allocation2 + $0x12b] sm:$0xff] }
  0xd1   : > { %1823 = vst.msk [vmem:[#allocation4 + $0x80] sm:$0xff] %vm923_vm5, %v1778_v40  ;;  %v1074_v5 = vpop.permute.xlu0 %1073 }
  0xd2   : > { %1659 = vrot.lane.b32.xlu1 %v11503_v55, %s10919_s23  ;;  %1119 = vst.msk [vmem:[#allocation4 + $0x78] sm:$0xff] %vm665_vm3, %v1074_v5 }
  0xd3   : > { %2236 = vrot.lane.b32.xlu0 %v11558_v44, %s10920_s24  ;;  %1896 = vst.msk [vmem:[#allocation4 + $0x280] sm:$0xff] %vm327_vm0, %v11570_v54 }
  0xd4   : > { %v622_v43 = vpop.permute.xlu1 %621 }
  0xd5   : > { %668 = vst.msk [vmem:[#allocation4 + $0x70] sm:$0xff] %vm665_vm3, %v622_v43  ;;  %v1202_v47 = vpop.permute.xlu0 %1201  ;;  %v3264_v51 = vld [vmem:[#allocation4 + $0x88] sm:$0xff] }
  0xd6   : > { %1787 = vrot.lane.b32.xlu1 %v11562_v48, %s10920_s24  ;;  %1247 = vst.msk [vmem:[#allocation4 + $0x78] sm:$0xff] %vm794_vm4, %v1202_v47  ;;  %4023 = vmatprep.mubr.bf16.mxu1 %v3264_v51  ;;  %v958_v51 = vld [vmem:[#allocation2 + $0xdc] sm:$0xff] }
  0xd7   : > { %1083 = vrot.lane.b32.xlu0 %v11447_v3, %s10918_s22  ;;  %v1917_v3 = vld [vmem:[#allocation2 + $0xf3] sm:$0xff] }
  0xd8   : > { %v751_v57 = vpop.permute.xlu1 %750  ;;  %v3263_v42 = vld [vmem:[#allocation4 + $0x80] sm:$0xff] }
  0xd9   : > { %797 = vst.msk [vmem:[#allocation4 + $0x70] sm:$0xff] %vm794_vm4, %v751_v57  ;;  %4024 = vmatmul.mubr.bf16.gmra.mrb[8].mxu1 %v3263_v42  ;;  %v1330_v59 = vpop.permute.xlu0 %1329  ;;  %v959_v57 = vld [vmem:[#allocation2 + $0xe4] sm:$0xff] }
  0xda   : > { %631 = vrot.lane.b32.xlu1 %v11451_v6, %s10918_s22  ;;  %1375 = vst.msk [vmem:[#allocation4 + $0x78] sm:$0xff] %vm923_vm5, %v1330_v59  ;;  %v1918_v6 = vld [vmem:[#allocation2 + $0xfb] sm:$0xff]  ;;  %v981_v58 = vpack.c.bf16 %v959_v57, %v958_v51 }
  0xdb   : > { %1211 = vrot.lane.b32.xlu0 %v11507_v4, %s10919_s23  ;;  %v11595_v7 = vpack.c.bf16 %v1918_v6, %v1917_v3  ;;  %v507_v59 = vld [vmem:[#allocation2 + $0xd8] sm:$0xff]  ;;  %v2179_v51 = vld [vmem:[#allocation2 + $0x140] sm:$0xff] }
  0xdc   : > { %v880_v61 = vpop.permute.xlu1 %879  ;;  %v530_v3 = vpack.c.bf16 %v508_v60, %v507_v59  ;;  %997 = vst.msk [vmem:[#allocation4 + $0x200] sm:$0xff] %vm327_vm0, %v981_v58  ;;  %v1729_v58 = vld [vmem:[#allocation2 + $0x121] sm:$0xff]  ;;  %v1730_v59 = vld [vmem:[#allocation2 + $0x129] sm:$0xff] }
  0xdd   : > { %926 = vst.msk [vmem:[#allocation4 + $0x70] sm:$0xff] %vm923_vm5, %v880_v61  ;;  %v1972_v53 = vpop.permute.xlu0 %1971  ;;  %v2048_v61 = vld [vmem:[#allocation2 + $0x114] sm:$0xff] }
  0xde   : > { %760 = vrot.lane.b32.xlu1 %v11320_v27, %s10919_s23  ;;  %2016 = vst.msk [vmem:[#allocation4 + $0xc0] sm:$0xff] %vm665_vm3, %v1972_v53  ;;  %v2045_v27 = vld [vmem:[#allocation2 + $0xf4] sm:$0xff] }
  0xdf   : > { %1339 = vrot.lane.b32.xlu0 %v11337_v50, %s10920_s24  ;;  %546 = vst.msk [vmem:[#allocation4 + $0x1f8] sm:$0xff] %vm327_vm0, %v530_v3 }
  0xe0   : > { %v1524_v62 = vpop.permute.xlu1 %1523 }
  0xe1   : > { %1568 = vst.msk [vmem:[#allocation4 + $0xb8] sm:$0xff] %vm665_vm3, %v1524_v62  ;;  %v2100_v33 = vpop.permute.xlu0 %2099  ;;  %v3262_v26 = vld [vmem:[#allocation4 + $0x78] sm:$0xff] }
  0xe2   : > { %889 = vrot.lane.b32.xlu1 %v11431_v49, %s10920_s24  ;;  %2144 = vst.msk [vmem:[#allocation4 + $0xc0] sm:$0xff] %vm794_vm4, %v2100_v33  ;;  %3862 = vmatprep.mubr.bf16.mxu0 %v3262_v26  ;;  %v11605_v49 = vpack.c.bf16 %v2046_v15, %v2045_v27  ;;  %v1728_v27 = vld [vmem:[#allocation2 + $0x111] sm:$0xff] }
  0xe3   : > { %1981 = vrot.lane.b32.xlu0 %v11595_v7, %s10918_s22  ;;  %v11672_v33 = vpack.c.bf16 %v1728_v27, %v1727_v14 }
  0xe4   : > { %v1652_v17 = vpop.permute.xlu1 %1651  ;;  %v3261_v19 = vld [vmem:[#allocation4 + $0x70] sm:$0xff] }
  0xe5   : > { %1696 = vst.msk [vmem:[#allocation4 + $0xb8] sm:$0xff] %vm794_vm4, %v1652_v17  ;;  %3863 = vmatmul.mubr.bf16.gmra.mrb[8].mxu0 %v3261_v19  ;;  %v2229_v23 = vpop.permute.xlu0 %2228  ;;  %v1409_v19 = vld [vmem:[#allocation2 + $0x10b] sm:$0xff] }
  0xe6   : > { %1533 = vrot.lane.b32.xlu1 %v11550_v29, %s10918_s22  ;;  %2273 = vst.msk [vmem:[#allocation4 + $0xc0] sm:$0xff] %vm923_vm5, %v2229_v23  ;;  %v1287_v29 = vld [vmem:[#allocation2 + $0x152] sm:$0xff] }
  0xe7   : > { %2109 = vrot.lane.b32.xlu0 %v11605_v49, %s10919_s23  ;;  %v11625_v40 = vpack.c.bf16 %v1288_v16, %v1287_v29  ;;  %v1290_v23 = vld [vmem:[#allocation2 + $0x172] sm:$0xff] }
  0xe8   : > { %v1780_v9 = vpop.permute.xlu1 %1779 }
  0xe9   : > { %1824 = vst.msk [vmem:[#allocation4 + $0xb8] sm:$0xff] %vm923_vm5, %v1780_v9  ;;  %v1076_v25 = vpop.permute.xlu0 %1075  ;;  %v11680_v9 = vpack.c.bf16 %v1290_v23, %v1289_v21  ;;  %v962_v21 = vld [vmem:[#allocation2 + $0x10c] sm:$0xff] }
  0xea   : > { %1661 = vrot.lane.b32.xlu1 %v11558_v44, %s10919_s23  ;;  %1120 = vst.msk [vmem:[#allocation4 + $0xb0] sm:$0xff] %vm665_vm3, %v1076_v25 }
  0xeb   : > { %2238 = vrot.lane.b32.xlu0 %v11613_v24, %s10920_s24  ;;  %1897 = vst.msk [vmem:[#allocation4 + $0x2b8] sm:$0xff] %vm327_vm0, %v11625_v40  ;;  %1898 = vst.msk [vmem:[#allocation4 + $0x2f0] sm:$0xff] %vm327_vm0, %v11680_v9 }
  0xec   : > { %v624_v28 = vpop.permute.xlu1 %623 }
  0xed   : > { %669 = vst.msk [vmem:[#allocation4 + $0xa8] sm:$0xff] %vm665_vm3, %v624_v28  ;;  %v1204_v38 = vpop.permute.xlu0 %1203  ;;  %v3271_v39 = vld [vmem:[#allocation4 + $0xc0] sm:$0xff] }
  0xee   : > { %1789 = vrot.lane.b32.xlu1 %v11617_v56, %s10920_s24  ;;  %1248 = vst.msk [vmem:[#allocation4 + $0xb0] sm:$0xff] %vm794_vm4, %v1204_v38  ;;  %4031 = vmatprep.mubr.bf16.mxu1 %v3271_v39  ;;  %v960_v38 = vld [vmem:[#allocation2 + $0xf4] sm:$0xff] }
  0xef   : > { %1085 = vrot.lane.b32.xlu0 %v11503_v55, %s10918_s22  ;;  %v1919_v55 = vld [vmem:[#allocation2 + $0x10b] sm:$0xff] }
  0xf0   : > { %v753_v5 = vpop.permute.xlu1 %752  ;;  %v3270_v43 = vld [vmem:[#allocation4 + $0xb8] sm:$0xff] }
  0xf1   : > { %798 = vst.msk [vmem:[#allocation4 + $0xa8] sm:$0xff] %vm794_vm4, %v753_v5  ;;  %4032 = vmatmul.mubr.bf16.gmra.mrb[12].mxu1 %v3270_v43  ;;  %v1332_v30 = vpop.permute.xlu0 %1331  ;;  %v509_v43 = vld [vmem:[#allocation2 + $0xf0] sm:$0xff] }
  0xf2   : > { %633 = vrot.lane.b32.xlu1 %v11507_v4, %s10918_s22  ;;  %1376 = vst.msk [vmem:[#allocation4 + $0xb0] sm:$0xff] %vm923_vm5, %v1332_v30  ;;  %v1920_v4 = vld [vmem:[#allocation2 + $0x113] sm:$0xff]  ;;  %v531_v8 = vpack.c.bf16 %v510_v45, %v509_v43  ;;  %v1732_v43 = vld [vmem:[#allocation2 + $0x141] sm:$0xff] }
  0xf3   : > { %1213 = vrot.lane.b32.xlu0 %v11562_v48, %s10919_s23  ;;  %v11650_v42 = vpack.c.bf16 %v1920_v4, %v1919_v55  ;;  %v2050_v30 = vld [vmem:[#allocation2 + $0x12c] sm:$0xff] }
  0xf4   : > { %v882_v52 = vpop.permute.xlu1 %881  ;;  %547 = vst.msk [vmem:[#allocation4 + $0x230] sm:$0xff] %vm327_vm0, %v531_v8 }
  0xf5   : > { %927 = vst.msk [vmem:[#allocation4 + $0xa8] sm:$0xff] %vm923_vm5, %v882_v52  ;;  %v1974_v46 = vpop.permute.xlu0 %1973 }
  0xf6   : > { %762 = vrot.lane.b32.xlu1 %v11337_v50, %s10919_s23  ;;  %2017 = vst.msk [vmem:[#allocation4 + $0xf8] sm:$0xff] %vm665_vm3, %v1974_v46  ;;  %v2047_v50 = vld [vmem:[#allocation2 + $0x10c] sm:$0xff] }
  0xf7   : > { %1341 = vrot.lane.b32.xlu0 %v11371_v11, %s10920_s24 }
  0xf8   : > { %v1526_v47 = vpop.permute.xlu1 %1525 }
  0xf9   : > { %1569 = vst.msk [vmem:[#allocation4 + $0xf0] sm:$0xff] %vm665_vm3, %v1526_v47  ;;  %v2102_v6 = vpop.permute.xlu0 %2101  ;;  %v3269_v53 = vld [vmem:[#allocation4 + $0xb0] sm:$0xff]  ;;  %v2178_v47 = vld [vmem:[#allocation2 + $0x138] sm:$0xff] }
  0xfa   : > { %891 = vrot.lane.b32.xlu1 %v11485_v36, %s10920_s24  ;;  %2145 = vst.msk [vmem:[#allocation4 + $0xf8] sm:$0xff] %vm794_vm4, %v2102_v6  ;;  %3870 = vmatprep.mubr.bf16.mxu0 %v3269_v53  ;;  %v11660_v36 = vpack.c.bf16 %v2048_v61, %v2047_v50  ;;  %v11719_v50 = vpack.c.bf16 %v2179_v51, %v2178_v47  ;;  %v1411_v53 = vld [vmem:[#allocation2 + $0x123] sm:$0xff] }
  0xfb   : > { %1983 = vrot.lane.b32.xlu0 %v11650_v42, %s10918_s22  ;;  %v11723_v61 = vpack.c.bf16 %v1730_v59, %v1729_v58 }
  0xfc   : > { %v1654_v62 = vpop.permute.xlu1 %1653  ;;  %v3268_v63 = vld [vmem:[#allocation4 + $0xa8] sm:$0xff] }
  0xfd   : > { %1697 = vst.msk [vmem:[#allocation4 + $0xf0] sm:$0xff] %vm794_vm4, %v1654_v62  ;;  %3871 = vmatmul.mubr.bf16.gmra.mrb[12].mxu0 %v3268_v63  ;;  %v2231_v13 = vpop.permute.xlu0 %2230  ;;  %v1412_v62 = vld [vmem:[#allocation2 + $0x12b] sm:$0xff] }
  0xfe   : > { %1535 = vrot.lane.b32.xlu1 %v11605_v49, %s10918_s22  ;;  %2274 = vst.msk [vmem:[#allocation4 + $0xf8] sm:$0xff] %vm923_vm5, %v2231_v13  ;;  %v1410_v49 = vld [vmem:[#allocation2 + $0x113] sm:$0xff]  ;;  %v1432_v63 = vpack.c.bf16 %v1412_v62, %v1411_v53  ;;  %v964_v53 = vld [vmem:[#allocation2 + $0x124] sm:$0xff] }
  0xff   : > { %2111 = vrot.lane.b32.xlu0 %v11660_v36, %s10919_s23  ;;  %v1431_v20 = vpack.c.bf16 %v1410_v49, %v1409_v19  ;;  %v1924_v19 = vld [vmem:[#allocation2 + $0x143] sm:$0xff] }
 0x100   : > { %v1782_v15 = vpop.permute.xlu1 %1781  ;;  %1448 = vst.msk [vmem:[#allocation4 + $0x278] sm:$0xff] %vm327_vm0, %v1432_v63 }
 0x101   : > { %1825 = vst.msk [vmem:[#allocation4 + $0xf0] sm:$0xff] %vm923_vm5, %v1782_v15  ;;  %v1078_v26 = vpop.permute.xlu0 %1077 }
 0x102   : > { %1663 = vrot.lane.b32.xlu1 %v11613_v24, %s10919_s23  ;;  %1121 = vst.msk [vmem:[#allocation4 + $0xe8] sm:$0xff] %vm665_vm3, %v1078_v26 }
 0x103   : > { %2240 = vrot.lane.b32.xlu0 %v11668_v12, %s10920_s24  ;;  %1447 = vst.msk [vmem:[#allocation4 + $0x240] sm:$0xff] %vm327_vm0, %v1431_v20 }
 0x104   : > { %v626_v17 = vpop.permute.xlu1 %625 }
 0x105   : > { %670 = vst.msk [vmem:[#allocation4 + $0xe0] sm:$0xff] %vm665_vm3, %v626_v17  ;;  %v1206_v37 = vpop.permute.xlu0 %1205  ;;  %v3278_v2 = vld [vmem:[#allocation4 + $0xf8] sm:$0xff] }
 0x106   : > { %1791 = vrot.lane.b32.xlu1 %v11672_v33, %s10920_s24  ;;  %1249 = vst.msk [vmem:[#allocation4 + $0xe8] sm:$0xff] %vm794_vm4, %v1206_v37  ;;  %4039 = vmatprep.mubr.bf16.mxu1 %v3278_v2  ;;  %v511_v2 = vld [vmem:[#allocation2 + $0x108] sm:$0xff] }
 0x107   : > { %1087 = vrot.lane.b32.xlu0 %v11558_v44, %s10918_s22  ;;  %v1921_v44 = vld [vmem:[#allocation2 + $0x123] sm:$0xff] }
 0x108   : > { %v755_v25 = vpop.permute.xlu1 %754  ;;  %v3277_v28 = vld [vmem:[#allocation4 + $0xf0] sm:$0xff]  ;;  %v11701_v39 = vpack.c.bf16 %v1922_v35, %v1921_v44 }
 0x109   : > { %799 = vst.msk [vmem:[#allocation4 + $0xe0] sm:$0xff] %vm794_vm4, %v755_v25  ;;  %4040 = vmatmul.mubr.bf16.gmra.mrb[16].mxu1 %v3277_v28  ;;  %v1334_v31 = vpop.permute.xlu0 %1333  ;;  %v512_v25 = vld [vmem:[#allocation2 + $0x110] sm:$0xff]  ;;  %v2052_v28 = vld [vmem:[#allocation2 + $0x144] sm:$0xff] }
 0x10a   : > { %635 = vrot.lane.b32.xlu1 %v11562_v48, %s10918_s22  ;;  %1377 = vst.msk [vmem:[#allocation4 + $0xe8] sm:$0xff] %vm923_vm5, %v1334_v31  ;;  %v961_v48 = vld [vmem:[#allocation2 + $0xfc] sm:$0xff]  ;;  %v532_v31 = vpack.c.bf16 %v512_v25, %v511_v2 }
 0x10b   : > { %1215 = vrot.lane.b32.xlu0 %v11617_v56, %s10919_s23  ;;  %v982_v5 = vpack.c.bf16 %v961_v48, %v960_v38  ;;  %v2181_v38 = vld [vmem:[#allocation2 + $0x158] sm:$0xff] }
 0x10c   : > { %v884_v32 = vpop.permute.xlu1 %883  ;;  %548 = vst.msk [vmem:[#allocation4 + $0x268] sm:$0xff] %vm327_vm0, %v532_v31  ;;  %v1416_v31 = vld [vmem:[#allocation2 + $0x15b] sm:$0xff] }
 0x10d   : > { %928 = vst.msk [vmem:[#allocation4 + $0xe0] sm:$0xff] %vm923_vm5, %v884_v32  ;;  %v1976_v29 = vpop.permute.xlu0 %1975 }
 0x10e   : > { %764 = vrot.lane.b32.xlu1 %v11371_v11, %s10919_s23  ;;  %2018 = vst.msk [vmem:[#allocation4 + $0x130] sm:$0xff] %vm665_vm3, %v1976_v29  ;;  %v2049_v11 = vld [vmem:[#allocation2 + $0x124] sm:$0xff] }
 0x10f   : > { %1343 = vrot.lane.b32.xlu0 %v11410_v41, %s10920_s24  ;;  %998 = vst.msk [vmem:[#allocation4 + $0x238] sm:$0xff] %vm327_vm0, %v982_v5  ;;  %v1731_v5 = vld [vmem:[#allocation2 + $0x139] sm:$0xff] }
 0x110   : > { %v1528_v16 = vpop.permute.xlu1 %1527 }
 0x111   : > { %1570 = vst.msk [vmem:[#allocation4 + $0x128] sm:$0xff] %vm665_vm3, %v1528_v16  ;;  %v2104_v52 = vpop.permute.xlu0 %2103  ;;  %v3276_v55 = vld [vmem:[#allocation4 + $0xe8] sm:$0xff]  ;;  %v2180_v16 = vld [vmem:[#allocation2 + $0x150] sm:$0xff] }
 0x112   : > { %893 = vrot.lane.b32.xlu1 %v11540_v22, %s10920_s24  ;;  %2146 = vst.msk [vmem:[#allocation4 + $0x130] sm:$0xff] %vm794_vm4, %v2104_v52  ;;  %3878 = vmatprep.mubr.bf16.mxu0 %v3276_v55  ;;  %v11711_v22 = vpack.c.bf16 %v2050_v30, %v2049_v11  ;;  %v11770_v11 = vpack.c.bf16 %v2181_v38, %v2180_v16  ;;  %v1413_v55 = vld [vmem:[#allocation2 + $0x13b] sm:$0xff] }
 0x113   : > { %1985 = vrot.lane.b32.xlu0 %v11701_v39, %s10918_s22  ;;  %v11774_v30 = vpack.c.bf16 %v1732_v43, %v1731_v5  ;;  %v1928_v5 = vld [vmem:[#allocation2 + $0x173] sm:$0xff] }
 0x114   : > { %v1656_v4 = vpop.permute.xlu1 %1655  ;;  %v3275_v46 = vld [vmem:[#allocation4 + $0xe0] sm:$0xff] }
 0x115   : > { %1698 = vst.msk [vmem:[#allocation4 + $0x128] sm:$0xff] %vm794_vm4, %v1656_v4  ;;  %3879 = vmatmul.mubr.bf16.gmra.mrb[16].mxu0 %v3275_v46  ;;  %v2233_v57 = vpop.permute.xlu0 %2232  ;;  %v1414_v4 = vld [vmem:[#allocation2 + $0x143] sm:$0xff] }
 0x116   : > { %1537 = vrot.lane.b32.xlu1 %v11660_v36, %s10918_s22  ;;  %2275 = vst.msk [vmem:[#allocation4 + $0x130] sm:$0xff] %vm923_vm5, %v2233_v57  ;;  %v1291_v36 = vld [vmem:[#allocation2 + $0x182] sm:$0xff]  ;;  %v1433_v46 = vpack.c.bf16 %v1414_v4, %v1413_v55  ;;  %v515_v55 = vld [vmem:[#allocation2 + $0x138] sm:$0xff] }
 0x117   : > { %2113 = vrot.lane.b32.xlu0 %v11711_v22, %s10919_s23  ;;  %v11731_v14 = vpack.c.bf16 %v1292_v34, %v1291_v36  ;;  %v513_v36 = vld [vmem:[#allocation2 + $0x120] sm:$0xff]  ;;  %v514_v34 = vld [vmem:[#allocation2 + $0x128] sm:$0xff] }
 0x118   : > { %v1784_v60 = vpop.permute.xlu1 %1783  ;;  %1449 = vst.msk [vmem:[#allocation4 + $0x2b0] sm:$0xff] %vm327_vm0, %v1433_v46  ;;  %v516_v4 = vld [vmem:[#allocation2 + $0x140] sm:$0xff]  ;;  %v2056_v46 = vld [vmem:[#allocation2 + $0x174] sm:$0xff] }
 0x119   : > { %1826 = vst.msk [vmem:[#allocation4 + $0x128] sm:$0xff] %vm923_vm5, %v1784_v60  ;;  %v1080_v3 = vpop.permute.xlu0 %1079  ;;  %v1925_v60 = vld [vmem:[#allocation2 + $0x153] sm:$0xff] }
 0x11a   : > { %1665 = vrot.lane.b32.xlu1 %v11668_v12, %s10919_s23  ;;  %1122 = vst.msk [vmem:[#allocation4 + $0x120] sm:$0xff] %vm665_vm3, %v1080_v3  ;;  %v1926_v3 = vld [vmem:[#allocation2 + $0x15b] sm:$0xff] }
 0x11b   : > { %2242 = vrot.lane.b32.xlu0 %v11719_v50, %s10920_s24  ;;  %1899 = vst.msk [vmem:[#allocation4 + $0x328] sm:$0xff] %vm327_vm0, %v11731_v14  ;;  %v11799_v62 = vpack.c.bf16 %v1926_v3, %v1925_v60 }
 0x11c   : > { %v628_v6 = vpop.permute.xlu1 %627 }
 0x11d   : > { %671 = vst.msk [vmem:[#allocation4 + $0x118] sm:$0xff] %vm665_vm3, %v628_v6  ;;  %v1208_v10 = vpop.permute.xlu0 %1207  ;;  %v3285_v13 = vld [vmem:[#allocation4 + $0x130] sm:$0xff] }
 0x11e   : > { %1793 = vrot.lane.b32.xlu1 %v11723_v61, %s10920_s24  ;;  %1250 = vst.msk [vmem:[#allocation4 + $0x120] sm:$0xff] %vm794_vm4, %v1208_v10  ;;  %4047 = vmatprep.mubr.bf16.mxu1 %v3285_v13  ;;  %v2054_v10 = vld [vmem:[#allocation2 + $0x15c] sm:$0xff]  ;;  %v533_v13 = vpack.c.bf16 %v514_v34, %v513_v36 }
 0x11f   : > { %1089 = vrot.lane.b32.xlu0 %v11613_v24, %s10918_s22  ;;  %v1923_v24 = vld [vmem:[#allocation2 + $0x13b] sm:$0xff] }
 0x120   : > { %v757_v27 = vpop.permute.xlu1 %756  ;;  %v3284_v15 = vld [vmem:[#allocation4 + $0x128] sm:$0xff]  ;;  %v11752_v23 = vpack.c.bf16 %v1924_v19, %v1923_v24  ;;  %549 = vst.msk [vmem:[#allocation4 + $0x2a0] sm:$0xff] %vm327_vm0, %v533_v13  ;;  %v2183_v19 = vld [vmem:[#allocation2 + $0x170] sm:$0xff] }
 0x121   : > { %800 = vst.msk [vmem:[#allocation4 + $0x118] sm:$0xff] %vm794_vm4, %v757_v27  ;;  %4048 = vmatmul.mubr.bf16.gmra.mrb[20].mxu1 %v3284_v15  ;;  %v1336_v26 = vpop.permute.xlu0 %1335  ;;  %v2182_v24 = vld [vmem:[#allocation2 + $0x168] sm:$0xff] }
 0x122   : > { %637 = vrot.lane.b32.xlu1 %v11617_v56, %s10918_s22  ;;  %1378 = vst.msk [vmem:[#allocation4 + $0x120] sm:$0xff] %vm923_vm5, %v1336_v26  ;;  %v963_v56 = vld [vmem:[#allocation2 + $0x114] sm:$0xff] }
 0x123   : > { %1217 = vrot.lane.b32.xlu0 %v11672_v33, %s10919_s23  ;;  %v983_v37 = vpack.c.bf16 %v963_v56, %v962_v21  ;;  %v1734_v21 = vld [vmem:[#allocation2 + $0x159] sm:$0xff] }
 0x124   : > { %v886_v17 = vpop.permute.xlu1 %885 }
 0x125   : > { %929 = vst.msk [vmem:[#allocation4 + $0x118] sm:$0xff] %vm923_vm5, %v886_v17  ;;  %v1978_v49 = vpop.permute.xlu0 %1977 }
 0x126   : > { %766 = vrot.lane.b32.xlu1 %v11410_v41, %s10919_s23  ;;  %2019 = vst.msk [vmem:[#allocation4 + $0x168] sm:$0xff] %vm665_vm3, %v1978_v49  ;;  %v2051_v41 = vld [vmem:[#allocation2 + $0x13c] sm:$0xff] }
 0x127   : > { %1345 = vrot.lane.b32.xlu0 %v11460_v18, %s10920_s24  ;;  %999 = vst.msk [vmem:[#allocation4 + $0x270] sm:$0xff] %vm327_vm0, %v983_v37  ;;  %v11817_v37 = vpack.c.bf16 %v2183_v19, %v2182_v24  ;;  %v2614_v24 = vld [vmem:[#allocation2 + $0xac] sm:$0xff]  ;;  %v2615_v19 = vld [vmem:[#allocation2 + $0xb4] sm:$0xff] }
 0x128   : > { %v1530_v20 = vpop.permute.xlu1 %1529 }
 0x129   : > { %1571 = vst.msk [vmem:[#allocation4 + $0x160] sm:$0xff] %vm665_vm3, %v1530_v20  ;;  %v2106_v32 = vpop.permute.xlu0 %2105  ;;  %v3283_v44 = vld [vmem:[#allocation4 + $0x120] sm:$0xff]  ;;  %v1733_v20 = vld [vmem:[#allocation2 + $0x151] sm:$0xff] }
 0x12a   : > { %895 = vrot.lane.b32.xlu1 %v11595_v7, %s10920_s24  ;;  %2147 = vst.msk [vmem:[#allocation4 + $0x168] sm:$0xff] %vm794_vm4, %v2106_v32  ;;  %3886 = vmatprep.mubr.bf16.mxu0 %v3283_v44  ;;  %v11762_v7 = vpack.c.bf16 %v2052_v28, %v2051_v41  ;;  %v11821_v2 = vpack.c.bf16 %v1734_v21, %v1733_v20  ;;  %v1415_v28 = vld [vmem:[#allocation2 + $0x153] sm:$0xff] }
 0x12b   : > { %1987 = vrot.lane.b32.xlu0 %v11752_v23, %s10918_s22  ;;  %v1434_v32 = vpack.c.bf16 %v1416_v31, %v1415_v28  ;;  %v11888_v21 = vpack.c.bf16 %v2615_v19, %v2614_v24  ;;  %v968_v31 = vld [vmem:[#allocation2 + $0x154] sm:$0xff] }
 0x12c   : > { %v1658_v35 = vpop.permute.xlu1 %1657  ;;  %v3282_v29 = vld [vmem:[#allocation4 + $0x118] sm:$0xff] }
 0x12d   : > { %1699 = vst.msk [vmem:[#allocation4 + $0x160] sm:$0xff] %vm794_vm4, %v1658_v35  ;;  %3887 = vmatmul.mubr.bf16.gmra.mrb[20].mxu0 %v3282_v29  ;;  %v2235_v48 = vpop.permute.xlu0 %2234 }
 0x12e   : > { %1539 = vrot.lane.b32.xlu1 %v11711_v22, %s10918_s22  ;;  %2276 = vst.msk [vmem:[#allocation4 + $0x168] sm:$0xff] %vm923_vm5, %v2235_v48  ;;  %v1927_v48 = vld [vmem:[#allocation2 + $0x16b] sm:$0xff] }
 0x12f   : > { %2115 = vrot.lane.b32.xlu0 %v11762_v7, %s10919_s23  ;;  %1450 = vst.msk [vmem:[#allocation4 + $0x2e8] sm:$0xff] %vm327_vm0, %v1434_v32  ;;  %3234 = vst.msk [vmem:[#allocation4 + $0xd8] sm:$0xff] %vm327_vm0, %v11888_v21  ;;  %v969_v32 = vld [vmem:[#allocation2 + $0x15c] sm:$0xff] }
 0x130   : > { %v1786_v45 = vpop.permute.xlu1 %1785 }
 0x131   : > { %1827 = vst.msk [vmem:[#allocation4 + $0x160] sm:$0xff] %vm923_vm5, %v1786_v45  ;;  %v1082_v8 = vpop.permute.xlu0 %1081  ;;  %v966_v45 = vld [vmem:[#allocation2 + $0x13c] sm:$0xff] }
 0x132   : > { %1667 = vrot.lane.b32.xlu1 %v11719_v50, %s10919_s23  ;;  %1123 = vst.msk [vmem:[#allocation4 + $0x158] sm:$0xff] %vm665_vm3, %v1082_v8  ;;  %v11846_v8 = vpack.c.bf16 %v1928_v5, %v1927_v48 }
 0x133   : > { %2244 = vrot.lane.b32.xlu0 %v11770_v11, %s10920_s24 }
 0x134   : > { %v630_v52 = vpop.permute.xlu1 %629 }
 0x135   : > { %672 = vst.msk [vmem:[#allocation4 + $0x150] sm:$0xff] %vm665_vm3, %v630_v52  ;;  %v1210_v22 = vpop.permute.xlu0 %1209  ;;  %v3292_v47 = vld [vmem:[#allocation4 + $0x168] sm:$0xff] }
 0x136   : > { %1795 = vrot.lane.b32.xlu1 %v11774_v30, %s10920_s24  ;;  %1251 = vst.msk [vmem:[#allocation4 + $0x158] sm:$0xff] %vm794_vm4, %v1210_v22  ;;  %4055 = vmatprep.mubr.bf16.mxu1 %v3292_v47  ;;  %v534_v22 = vpack.c.bf16 %v516_v4, %v515_v55  ;;  %v2186_v4 = vld [vmem:[#allocation2 + $0x198] sm:$0xff] }
 0x137   : > { %1091 = vrot.lane.b32.xlu0 %v11668_v12, %s10918_s22 }
 0x138   : > { %v759_v51 = vpop.permute.xlu1 %758  ;;  %v3291_v57 = vld [vmem:[#allocation4 + $0x160] sm:$0xff]  ;;  %550 = vst.msk [vmem:[#allocation4 + $0x2d8] sm:$0xff] %vm327_vm0, %v534_v22 }
 0x139   : > { %801 = vst.msk [vmem:[#allocation4 + $0x150] sm:$0xff] %vm794_vm4, %v759_v51  ;;  %4056 = vmatmul.mubr.bf16.gmra.mrb[24].mxu1 %v3291_v57  ;;  %v1338_v58 = vpop.permute.xlu0 %1337  ;;  %v2612_v57 = vld [vmem:[#allocation2 + $0x94] sm:$0xff]  ;;  %v1737_v22 = vld [vmem:[#allocation2 + $0x181] sm:$0xff] }
 0x13a   : > { %639 = vrot.lane.b32.xlu1 %v11672_v33, %s10918_s22  ;;  %1379 = vst.msk [vmem:[#allocation4 + $0x158] sm:$0xff] %vm923_vm5, %v1338_v58  ;;  %v965_v33 = vld [vmem:[#allocation2 + $0x12c] sm:$0xff]  ;;  %v2613_v58 = vld [vmem:[#allocation2 + $0x9c] sm:$0xff] }
 0x13b   : > { %1219 = vrot.lane.b32.xlu0 %v11723_v61, %s10919_s23  ;;  %v984_v63 = vpack.c.bf16 %v965_v33, %v964_v53  ;;  %v11856_v3 = vpack.c.bf16 %v2613_v58, %v2612_v57  ;;  %v1735_v33 = vld [vmem:[#allocation2 + $0x169] sm:$0xff] }
 0x13c   : > { %v888_v59 = vpop.permute.xlu1 %887 }
 0x13d   : > { %930 = vst.msk [vmem:[#allocation4 + $0x150] sm:$0xff] %vm923_vm5, %v888_v59  ;;  %v1980_v6 = vpop.permute.xlu0 %1979 }
 0x13e   : > { %768 = vrot.lane.b32.xlu1 %v11460_v18, %s10919_s23  ;;  %2020 = vst.msk [vmem:[#allocation4 + $0x1a0] sm:$0xff] %vm665_vm3, %v1980_v6  ;;  %v2053_v18 = vld [vmem:[#allocation2 + $0x154] sm:$0xff]  ;;  %v2184_v6 = vld [vmem:[#allocation2 + $0x180] sm:$0xff] }
 0x13f   : > { %1347 = vrot.lane.b32.xlu0 %v11515_v1, %s10920_s24  ;;  %1000 = vst.msk [vmem:[#allocation4 + $0x2a8] sm:$0xff] %vm327_vm0, %v984_v63  ;;  %3233 = vst.msk [vmem:[#allocation4 + $0xa0] sm:$0xff] %vm327_vm0, %v11856_v3  ;;  %v1736_v63 = vld [vmem:[#allocation2 + $0x171] sm:$0xff] }
 0x140   : > { %v1532_v12 = vpop.permute.xlu1 %1531 }
 0x141   : > { %1572 = vst.msk [vmem:[#allocation4 + $0x198] sm:$0xff] %vm665_vm3, %v1532_v12  ;;  %v2108_v27 = vpop.permute.xlu0 %2107  ;;  %v3290_v15 = vld [vmem:[#allocation4 + $0x158] sm:$0xff]  ;;  %v2185_v12 = vld [vmem:[#allocation2 + $0x188] sm:$0xff] }
 0x142   : > { %897 = vrot.lane.b32.xlu1 %v11650_v42, %s10920_s24  ;;  %2148 = vst.msk [vmem:[#allocation4 + $0x1a0] sm:$0xff] %vm794_vm4, %v2108_v27  ;;  %3894 = vmatprep.mubr.bf16.mxu0 %v3290_v15  ;;  %v11809_v42 = vpack.c.bf16 %v2054_v10, %v2053_v18  ;;  %v11871_v34 = vpack.c.bf16 %v2185_v12, %v2184_v6  ;;  %v1417_v27 = vld [vmem:[#allocation2 + $0x16b] sm:$0xff]  ;;  %v1418_v15 = vld [vmem:[#allocation2 + $0x173] sm:$0xff]  ;;  %v1868_v6 = vld [vmem:[#allocation2 + $0x1a2] sm:$0xff] }
 0x143   : > { %1989 = vrot.lane.b32.xlu0 %v11799_v62, %s10918_s22  ;;  %v11875_v18 = vpack.c.bf16 %v1736_v63, %v1735_v33  ;;  %v1420_v33 = vld [vmem:[#allocation2 + $0x18b] sm:$0xff] }
 0x144   : > { %v1660_v26 = vpop.permute.xlu1 %1659  ;;  %v3289_v17 = vld [vmem:[#allocation4 + $0x150] sm:$0xff] }
 0x145   : > { %1700 = vst.msk [vmem:[#allocation4 + $0x198] sm:$0xff] %vm794_vm4, %v1660_v26  ;;  %3895 = vmatmul.mubr.bf16.gmra.mrb[24].mxu0 %v3289_v17  ;;  %v2237_v49 = vpop.permute.xlu0 %2236  ;;  %v11883_v26 = vpack.c.bf16 %v1418_v15, %v1417_v27  ;;  %v2619_v27 = vld [vmem:[#allocation2 + $0xe4] sm:$0xff] }
 0x146   : > { %1541 = vrot.lane.b32.xlu1 %v11762_v7, %s10918_s22  ;;  %2277 = vst.msk [vmem:[#allocation4 + $0x1a0] sm:$0xff] %vm923_vm5, %v2237_v49 }
 0x147   : > { %2117 = vrot.lane.b32.xlu0 %v11809_v42, %s10919_s23  ;;  %1451 = vst.msk [vmem:[#allocation4 + $0x320] sm:$0xff] %vm327_vm0, %v11883_v26 }
 0x148   : > { %v1788_v56 = vpop.permute.xlu1 %1787 }
 0x149   : > { %1828 = vst.msk [vmem:[#allocation4 + $0x198] sm:$0xff] %vm923_vm5, %v1788_v56  ;;  %v1084_v25 = vpop.permute.xlu0 %1083 }
 0x14a   : > { %1669 = vrot.lane.b32.xlu1 %v11770_v11, %s10919_s23  ;;  %1124 = vst.msk [vmem:[#allocation4 + $0x190] sm:$0xff] %vm665_vm3, %v1084_v25 }
 0x14b   : > { %2246 = vrot.lane.b32.xlu0 %v11817_v37, %s10920_s24 }
 0x14c   : > { %v632_v41 = vpop.permute.xlu1 %631 }
 0x14d   : > { %673 = vst.msk [vmem:[#allocation4 + $0x188] sm:$0xff] %vm665_vm3, %v632_v41  ;;  %v1212_v44 = vpop.permute.xlu0 %1211  ;;  %v3299_v35 = vld [vmem:[#allocation4 + $0x1a0] sm:$0xff]  ;;  %v1930_v41 = vld [vmem:[#allocation2 + $0x18b] sm:$0xff] }
 0x14e   : > { %1797 = vrot.lane.b32.xlu1 %v11821_v2, %s10920_s24  ;;  %1252 = vst.msk [vmem:[#allocation4 + $0x190] sm:$0xff] %vm794_vm4, %v1212_v44  ;;  %4063 = vmatprep.mubr.bf16.mxu1 %v3299_v35  ;;  %v11907_v35 = vpack.c.bf16 %v969_v32, %v968_v31 }
 0x14f   : > { %1093 = vrot.lane.b32.xlu0 %v11719_v50, %s10918_s22 }
 0x150   : > { %v761_v29 = vpop.permute.xlu1 %760  ;;  %v3298_v7 = vld [vmem:[#allocation4 + $0x198] sm:$0xff]  ;;  %1002 = vst.msk [vmem:[#allocation4 + $0x318] sm:$0xff] %vm327_vm0, %v11907_v35 }
 0x151   : > { %802 = vst.msk [vmem:[#allocation4 + $0x188] sm:$0xff] %vm794_vm4, %v761_v29  ;;  %4064 = vmatmul.mubr.bf16.gmra.mrb[28].mxu1 %v3298_v7  ;;  %v1340_v16 = vpop.permute.xlu0 %1339  ;;  %v517_v29 = vld [vmem:[#allocation2 + $0x150] sm:$0xff]  ;;  %v518_v7 = vld [vmem:[#allocation2 + $0x158] sm:$0xff] }
 0x152   : > { %641 = vrot.lane.b32.xlu1 %v11723_v61, %s10918_s22  ;;  %1380 = vst.msk [vmem:[#allocation4 + $0x190] sm:$0xff] %vm923_vm5, %v1340_v16  ;;  %v967_v61 = vld [vmem:[#allocation2 + $0x144] sm:$0xff]  ;;  %v2058_v16 = vld [vmem:[#allocation2 + $0x18c] sm:$0xff] }
 0x153   : > { %1221 = vrot.lane.b32.xlu0 %v11774_v30, %s10919_s23  ;;  %v11848_v52 = vpack.c.bf16 %v967_v61, %v966_v45 }
 0x154   : > { %v890_v38 = vpop.permute.xlu1 %889 }
 0x155   : > { %931 = vst.msk [vmem:[#allocation4 + $0x188] sm:$0xff] %vm923_vm5, %v890_v38  ;;  %v1982_v43 = vpop.permute.xlu0 %1981  ;;  %v535_v38 = vpack.c.bf16 %v518_v7, %v517_v29  ;;  %v970_v29 = vld [vmem:[#allocation2 + $0x16c] sm:$0xff]  ;;  %v971_v7 = vld [vmem:[#allocation2 + $0x174] sm:$0xff] }
 0x156   : > { %770 = vrot.lane.b32.xlu1 %v11515_v1, %s10919_s23  ;;  %2021 = vst.msk [vmem:[#allocation4 + $0x1d8] sm:$0xff] %vm665_vm3, %v1982_v43  ;;  %v2055_v1 = vld [vmem:[#allocation2 + $0x16c] sm:$0xff]  ;;  %v2616_v43 = vld [vmem:[#allocation2 + $0xc4] sm:$0xff] }
 0x157   : > { %1349 = vrot.lane.b32.xlu0 %v11570_v54, %s10920_s24  ;;  %1001 = vst.msk [vmem:[#allocation4 + $0x2e0] sm:$0xff] %vm327_vm0, %v11848_v52  ;;  %551 = vst.msk [vmem:[#allocation4 + $0x310] sm:$0xff] %vm327_vm0, %v535_v38  ;;  %v11977_v38 = vpack.c.bf16 %v971_v7, %v970_v29  ;;  %v2317_v29 = vld [vmem:[#allocation2 + $0x1b9] sm:$0xff] }
 0x158   : > { %v1534_v50 = vpop.permute.xlu1 %1533 }
 0x159   : > { %1573 = vst.msk [vmem:[#allocation4 + $0x1d0] sm:$0xff] %vm665_vm3, %v1534_v50  ;;  %v2110_v47 = vpop.permute.xlu0 %2109  ;;  %v3297_v51 = vld [vmem:[#allocation4 + $0x190] sm:$0xff] }
 0x15a   : > { %899 = vrot.lane.b32.xlu1 %v11701_v39, %s10920_s24  ;;  %2149 = vst.msk [vmem:[#allocation4 + $0x1d8] sm:$0xff] %vm794_vm4, %v2110_v47  ;;  %3902 = vmatprep.mubr.bf16.mxu0 %v3297_v51  ;;  %v11861_v39 = vpack.c.bf16 %v2056_v46, %v2055_v1  ;;  %v2617_v50 = vld [vmem:[#allocation2 + $0xcc] sm:$0xff]  ;;  %v2187_v1 = vld [vmem:[#allocation2 + $0x1a0] sm:$0xff] }
 0x15b   : > { %1991 = vrot.lane.b32.xlu0 %v11846_v8, %s10918_s22  ;;  %v11915_v55 = vpack.c.bf16 %v2617_v50, %v2616_v43  ;;  %v1738_v47 = vld [vmem:[#allocation2 + $0x189] sm:$0xff]  ;;  %v11929_v57 = vpack.c.bf16 %v2187_v1, %v2186_v4  ;;  %1003 = vst.msk [vmem:[#allocation4 + $0x350] sm:$0xff] %vm327_vm0, %v11977_v38 }
 0x15c   : > { %v1662_v59 = vpop.permute.xlu1 %1661  ;;  %v3296_v60 = vld [vmem:[#allocation4 + $0x188] sm:$0xff]  ;;  %v11933_v58 = vpack.c.bf16 %v1738_v47, %v1737_v22 }
 0x15d   : > { %1701 = vst.msk [vmem:[#allocation4 + $0x1d0] sm:$0xff] %vm794_vm4, %v1662_v59  ;;  %3903 = vmatmul.mubr.bf16.gmra.mrb[28].mxu0 %v3296_v60  ;;  %v2239_v53 = vpop.permute.xlu0 %2238  ;;  %v10787_v47 = vld [vmem:[%s14802_s2 + $0x148] sm:$0xff]  }
 0x15e   : > { %1543 = vrot.lane.b32.xlu1 %v11809_v42, %s10918_s22  ;;  %2278 = vst.msk [vmem:[#allocation4 + $0x1d8] sm:$0xff] %vm923_vm5, %v2239_v53  ;;  %v1419_v53 = vld [vmem:[#allocation2 + $0x183] sm:$0xff] }
 0x15f   : > { %2119 = vrot.lane.b32.xlu0 %v11861_v39, %s10919_s23  ;;  %3235 = vst.msk [vmem:[#allocation4 + $0x110] sm:$0xff] %vm327_vm0, %v11915_v55  ;;  %v11941_v63 = vpack.c.bf16 %v1420_v33, %v1419_v53 }
 0x160   : > { %v1790_v36 = vpop.permute.xlu1 %1789 }
 0x161   : > { %1829 = vst.msk [vmem:[#allocation4 + $0x1d0] sm:$0xff] %vm923_vm5, %v1790_v36  ;;  %v1086_v10 = vpop.permute.xlu0 %1085 }
 0x162   : > { %1671 = vrot.lane.b32.xlu1 %v11817_v37, %s10919_s23  ;;  %1125 = vst.msk [vmem:[#allocation4 + $0x1c8] sm:$0xff] %vm665_vm3, %v1086_v10 }
 0x163   : > { %2248 = vrot.lane.b32.xlu0 %v11871_v34, %s10920_s24  ;;  %1452 = vst.msk [vmem:[#allocation4 + $0x358] sm:$0xff] %vm327_vm0, %v11941_v63 }
 0x164   : > { %v634_v13 = vpop.permute.xlu1 %633 }
 0x165   : > { %674 = vst.msk [vmem:[#allocation4 + $0x1c0] sm:$0xff] %vm665_vm3, %v634_v13  ;;  %v1214_v17 = vpop.permute.xlu0 %1213  ;;  %v3306_v42 = vld [vmem:[#allocation4 + $0x1d8] sm:$0xff] }
 0x166   : > { %1799 = vrot.lane.b32.xlu1 %v11875_v18, %s10920_s24  ;;  %1253 = vst.msk [vmem:[#allocation4 + $0x1c8] sm:$0xff] %vm794_vm4, %v1214_v17  ;;  %4071 = vmatprep.mubr.bf16.mxu1 %v3306_v42  ;;  %v2618_v13 = vld [vmem:[#allocation2 + $0xdc] sm:$0xff] }
 0x167   : > { %1095 = vrot.lane.b32.xlu0 %v11770_v11, %s10918_s22  ;;  %v1929_v11 = vld [vmem:[#allocation2 + $0x183] sm:$0xff]  ;;  %v11947_v42 = vpack.c.bf16 %v2619_v27, %v2618_v13  ;;  %v2189_v13 = vld [vmem:[#allocation2 + $0x1b8] sm:$0xff] }
 0x168   : > { %v763_v49 = vpop.permute.xlu1 %762  ;;  %v3305_v20 = vld [vmem:[#allocation4 + $0x1d0] sm:$0xff]  ;;  %v1947_v44 = vpack.c.bf16 %v1930_v41, %v1929_v11 }
 0x169   : > { %803 = vst.msk [vmem:[#allocation4 + $0x1c0] sm:$0xff] %vm794_vm4, %v763_v49  ;;  %4072 = vmatmul.mubr.bf16.gmra.mrb[32].mxu1 %v3305_v20  ;;  %v1342_v56 = vpop.permute.xlu0 %1341 }
 0x16a   : > { %643 = vrot.lane.b32.xlu1 %v11774_v30, %s10918_s22  ;;  %1381 = vst.msk [vmem:[#allocation4 + $0x1c8] sm:$0xff] %vm923_vm5, %v1342_v56 }
 0x16b   : > { %1223 = vrot.lane.b32.xlu0 %v11821_v2, %s10919_s23  ;;  %3236 = vst.msk [vmem:[#allocation4 + $0x148] sm:$0xff] %vm327_vm0, %v11947_v42 }
 0x16c   : > { %v892_v25 = vpop.permute.xlu1 %891 }
 0x16d   : > { %932 = vst.msk [vmem:[#allocation4 + $0x1c0] sm:$0xff] %vm923_vm5, %v892_v25  ;;  %v1984_v28 = vpop.permute.xlu0 %1983  ;;  %v1932_v25 = vld [vmem:[#allocation2 + $0x1a3] sm:$0xff] }
 0x16e   : > { %772 = vrot.lane.b32.xlu1 %v11570_v54, %s10919_s23  ;;  %2022 = vst.msk [vmem:[#allocation4 + $0x210] sm:$0xff] %vm665_vm3, %v1984_v28  ;;  %v2057_v54 = vld [vmem:[#allocation2 + $0x184] sm:$0xff] }
 0x16f   : > { %1351 = vrot.lane.b32.xlu0 %v11625_v40, %s10920_s24  ;;  %v10785_v28 = vld [vmem:[%s14802_s2 + $0x140] sm:$0xff]  }
 0x170   : > { %v1536_v30 = vpop.permute.xlu1 %1535  ;;  %10714 = vmatprep.subr.bf16.mxu1 %v10785_v28  ;;  %9796 = vmatprep.subr.bf16.mxu0 %v10785_v28  ;;  %v10792_v28 = vld [vmem:[%s14802_s2 + $0x118] sm:$0xff]  }
 0x171   : > { %1574 = vst.msk [vmem:[#allocation4 + $0x208] sm:$0xff] %vm665_vm3, %v1536_v30  ;;  %v2112_v48 = vpop.permute.xlu0 %2111  ;;  %v3304_v5 = vld [vmem:[#allocation4 + $0x1c8] sm:$0xff] }
 0x172   : > { %901 = vrot.lane.b32.xlu1 %v11752_v23, %s10920_s24  ;;  %2150 = vst.msk [vmem:[#allocation4 + $0x210] sm:$0xff] %vm794_vm4, %v2112_v48  ;;  %3910 = vmatprep.mubr.bf16.mxu0 %v3304_v5  ;;  %v11919_v23 = vpack.c.bf16 %v2058_v16, %v2057_v54  ;;  %v519_v48 = vld [vmem:[#allocation2 + $0x168] sm:$0xff]  ;;  %v520_v5 = vld [vmem:[#allocation2 + $0x170] sm:$0xff] }
 0x173   : > { %1993 = vrot.lane.b32.xlu0 %v1947_v44, %s10918_s22  ;;  %v10786_v44 = vld [vmem:[%s14802_s2 + $0x100] sm:$0xff]   ;;  %v536_v4 = vpack.c.bf16 %v520_v5, %v519_v48 }
 0x174   : > { %v1664_v45 = vpop.permute.xlu1 %1663  ;;  %v3303_v61 = vld [vmem:[#allocation4 + $0x1c0] sm:$0xff]  ;;  %10722 = vmatpush3.bf16.msra.mxu1 %v10786_v44  ;;  %9797 = vmatpush3.bf16.msra.mxu0 %v10786_v44  ;;  %v2316_v44 = vld [vmem:[#allocation2 + $0x1b1] sm:$0xff] }
 0x175   : > { %1702 = vst.msk [vmem:[#allocation4 + $0x208] sm:$0xff] %vm794_vm4, %v1664_v45  ;;  %3911 = vmatmul.mubr.bf16.gmra.mrb[32].mxu0 %v3303_v61  ;;  %v2241_v46 = vpop.permute.xlu0 %2240  ;;  %v2059_v45 = vld [vmem:[#allocation2 + $0x19c] sm:$0xff]  ;;  %v2060_v61 = vld [vmem:[#allocation2 + $0x1a4] sm:$0xff]  ;;  %10715 = vmatprep.subr.bf16.mxu1 %v10787_v47 }
 0x176   : > { %1545 = vrot.lane.b32.xlu1 %v11861_v39, %s10918_s22  ;;  %2279 = vst.msk [vmem:[#allocation4 + $0x210] sm:$0xff] %vm923_vm5, %v2241_v46  ;;  %v1867_v39 = vld [vmem:[#allocation2 + $0x19a] sm:$0xff]  ;;  %v2076_v53 = vpack.c.bf16 %v2060_v61, %v2059_v45  ;;  %9798 = vmatprep.subr.bf16.mxu0 %v10787_v47  ;;  %v2622_v45 = vld [vmem:[#allocation2 + $0x10c] sm:$0xff] }
 0x177   : > { %2121 = vrot.lane.b32.xlu0 %v11919_v23, %s10919_s23  ;;  %v1884_v12 = vpack.c.bf16 %v1868_v6, %v1867_v39  ;;  %552 = vst.msk [vmem:[#allocation4 + $0x348] sm:$0xff] %vm327_vm0, %v536_v4  ;;  %v10788_v6 = vld [vmem:[%s14802_s2 + $0x108] sm:$0xff]  }
 0x178   : > { %v1792_v51 = vpop.permute.xlu1 %1791  ;;  %10723 = vmatpush3.bf16.msra.mxu1 %v10788_v6  ;;  %9799 = vmatpush3.bf16.msra.mxu0 %v10788_v6  ;;  %v2380_v6 = vld [vmem:[#allocation2 + $0x1b2] sm:$0xff] }
 0x179   : > { %1830 = vst.msk [vmem:[#allocation4 + $0x208] sm:$0xff] %vm923_vm5, %v1792_v51  ;;  %v1088_v59 = vpop.permute.xlu0 %1087  ;;  %v2620_v51 = vld [vmem:[#allocation2 + $0xf4] sm:$0xff] }
 0x17a   : > { %1673 = vrot.lane.b32.xlu1 %v11871_v34, %s10919_s23  ;;  %1126 = vst.msk [vmem:[#allocation4 + $0x200] sm:$0xff] %vm665_vm3, %v1088_v59 }
 0x17b   : > { %2250 = vrot.lane.b32.xlu0 %v11929_v57, %s10920_s24  ;;  %1900 = vst.msk [vmem:[#allocation4 + $0x360] sm:$0xff] %vm327_vm0, %v1884_v12  ;;  %v2621_v12 = vld [vmem:[#allocation2 + $0xfc] sm:$0xff] }
 0x17c   : > { %v636_v60 = vpop.permute.xlu1 %635  ;;  %v11994_v33 = vpack.c.bf16 %v2621_v12, %v2620_v51  ;;  %v2381_v12 = vld [vmem:[#allocation2 + $0x1ba] sm:$0xff] }
 0x17d   : > { %675 = vst.msk [vmem:[#allocation4 + $0x1f8] sm:$0xff] %vm665_vm3, %v636_v60  ;;  %v1216_v36 = vpop.permute.xlu0 %1215  ;;  %v3313_v10 = vld [vmem:[#allocation4 + $0x210] sm:$0xff] }
 0x17e   : > { %1801 = vrot.lane.b32.xlu1 %v11933_v58, %s10920_s24  ;;  %1254 = vst.msk [vmem:[#allocation4 + $0x200] sm:$0xff] %vm794_vm4, %v1216_v36  ;;  %4079 = vmatprep.mubr.bf16.mxu1 %v3313_v10  ;;  %v2188_v10 = vld [vmem:[#allocation2 + $0x1b0] sm:$0xff] }
 0x17f   : > { %1097 = vrot.lane.b32.xlu0 %v11817_v37, %s10918_s22  ;;  %3237 = vst.msk [vmem:[#allocation4 + $0x180] sm:$0xff] %vm327_vm0, %v11994_v33 }
 0x180   : > { %v765_v15 = vpop.permute.xlu1 %764  ;;  %v3312_v17 = vld [vmem:[#allocation4 + $0x208] sm:$0xff] }
 0x181   : > { %804 = vst.msk [vmem:[#allocation4 + $0x1f8] sm:$0xff] %vm794_vm4, %v765_v15  ;;  %4080 = vmatmul.mubr.bf16.gmra.mrb[36].mxu1 %v3312_v17  ;;  %v1344_v24 = vpop.permute.xlu0 %1343  ;;  %v1739_v17 = vld [vmem:[#allocation2 + $0x199] sm:$0xff] }
 0x182   : > { %645 = vrot.lane.b32.xlu1 %v11821_v2, %s10918_s22  ;;  %1382 = vst.msk [vmem:[#allocation4 + $0x200] sm:$0xff] %vm923_vm5, %v1344_v24  ;;  %v1931_v2 = vld [vmem:[#allocation2 + $0x19b] sm:$0xff] }
 0x183   : > { %1225 = vrot.lane.b32.xlu0 %v11875_v18, %s10919_s23  ;;  %v1948_v16 = vpack.c.bf16 %v1932_v25, %v1931_v2  ;;  %v1740_v24 = vld [vmem:[#allocation2 + $0x1a1] sm:$0xff]  ;;  %v10791_v25 = vld [vmem:[%s14802_s2 + $0x158] sm:$0xff]  }
 0x184   : > { %v9700_v19 = vpop.f32.mrb[0].mxu1  ;;  %v894_v49 = vpop.permute.xlu1 %893 }
 0x185   : > { %933 = vst.msk [vmem:[#allocation4 + $0x1f8] sm:$0xff] %vm923_vm5, %v894_v49  ;;  %v9701_v20 = vpop.f32.mrb[1].mxu1  ;;  %v1986_v41 = vpop.permute.xlu0 %1985  ;;  %v10790_v49 = vld [vmem:[%s14802_s2 + $0x110] sm:$0xff]  }
 0x186   : > { %v9702_v56 = vadd.f32 %v9701_v20, %v9700_v19  ;;  %v9703_v37 = vpop.f32.mrb[2].mxu1  ;;  %774 = vrot.lane.b32.xlu1 %v11625_v40, %s10919_s23  ;;  %2023 = vst.msk [vmem:[#allocation4 + $0x248] sm:$0xff] %vm665_vm3, %v1986_v41  ;;  %v11973_v40 = vld [vmem:[%s14803_s3] ss:$0 sm:$0xff]  ;;  %v10789_v19 = vld [vmem:[%s14802_s2 + $0x150] sm:$0xff]  }
 0x187   : > { %v9704_v11 = vpop.f32.mrb[3].mxu1  ;;  %1353 = vrot.lane.b32.xlu0 %v11680_v9, %s10920_s24  ;;  %10716 = vmatprep.subr.bf16.mxu1 %v10789_v19 }
 0x188   : > { %v9705_v30 = vadd.f32 %v9704_v11, %v9703_v37  ;;  %v9588_v31 = vpop.f32.mrb[0].mxu0  ;;  %v1538_v32 = vpop.permute.xlu1 %1537  ;;  %v1756_v37 = vpack.c.bf16 %v1740_v24, %v1739_v17  ;;  %9800 = vmatprep.subr.bf16.mxu0 %v10789_v19  ;;  %10724 = vmatpush3.bf16.msra.mxu1 %v10790_v49  ;;  %v2957_v24 = vld [vmem:[#allocation2 + $0x1ca] sm:$0xff] }
 0x189   : > { %1575 = vst.msk [vmem:[#allocation4 + $0x240] sm:$0xff] %vm665_vm3, %v1538_v32  ;;  %v9589_v54 = vpop.f32.mrb[1].mxu0  ;;  %v2114_v46 = vpop.permute.xlu0 %2113  ;;  %v3311_v22 = vld [vmem:[#allocation4 + $0x200] sm:$0xff]  ;;  %9801 = vmatpush3.bf16.msra.mxu0 %v10790_v49  ;;  %10717 = vmatprep.subr.bf16.mxu1 %v10791_v25  ;;  %v2287_v49 = vld [vmem:[#allocation2 + $0x51] sm:$0xff] }
 0x18a   : > { %v9590_v43 = vadd.f32 %v9589_v54, %v9588_v31  ;;  %v9591_v50 = vpop.f32.mrb[2].mxu0  ;;  %903 = vrot.lane.b32.xlu1 %v11799_v62, %s10920_s24  ;;  %2151 = vst.msk [vmem:[#allocation4 + $0x248] sm:$0xff] %vm794_vm4, %v2114_v46  ;;  %3918 = vmatprep.mubr.bf16.mxu0 %v3311_v22  ;;  %v2766_v31 = vld [vmem:[#allocation2 + $0x1d0] sm:$0xff]  ;;  %v10794_v46 = vld [vmem:[%s14802_s2 + $0x120] sm:$0xff]  }
 0x18b   : > { %v9592_v1 = vpop.f32.mrb[3].mxu0  ;;  %1995 = vrot.lane.b32.xlu0 %v1948_v16, %s10918_s22  ;;  %v12028_v16 = vpack.c.bf16 %v2317_v29, %v2316_v44  ;;  %9802 = vmatprep.subr.bf16.mxu0 %v10791_v25  ;;  %v2623_v22 = vld [vmem:[#allocation2 + $0x114] sm:$0xff] }
 0x18c   : > { %v3849_v59 = vadd.f32 %v9590_v43, %v11973_v40  ;;  %v9593_v60 = vadd.f32 %v9592_v1, %v9591_v50  ;;  %v1666_v62 = vpop.permute.xlu1 %1665  ;;  %v3310_v39 = vld [vmem:[#allocation4 + $0x1f8] sm:$0xff]  ;;  %10725 = vmatpush3.bf16.msra.mxu1 %v10792_v28  ;;  %v10793_v50 = vld [vmem:[%s14802_s2 + $0x160] sm:$0xff]   ;;  %v12045_v47 = vpack.c.bf16 %v2623_v22, %v2622_v45  ;;  %v3085_v45 = vld [vmem:[#allocation2 + $0x1cb] sm:$0xff] }
 0x18d   : > { %1703 = vst.msk [vmem:[#allocation4 + $0x240] sm:$0xff] %vm794_vm4, %v1666_v62  ;;  %3919 = vmatmul.mubr.bf16.gmra.mrb[36].mxu0 %v3310_v39  ;;  %v2243_v15 = vpop.permute.xlu0 %2242  ;;  %10718 = vmatprep.subr.bf16.mxu1 %v10793_v50  ;;  %v2830_v62 = vld [vmem:[#allocation2 + $0x1d1] sm:$0xff] }
 0x18e   : > { %v3852_v36 = vadd.f32 %v9593_v60, %v11973_v40  ;;  %1547 = vrot.lane.b32.xlu1 %v11919_v23, %s10918_s22  ;;  %v11999_v27 = vadd.f32 %v9702_v56, %v3849_v59  ;;  %2280 = vst.msk [vmem:[#allocation4 + $0x248] sm:$0xff] %vm923_vm5, %v2243_v15  ;;  %v2205_v56 = vpack.c.bf16 %v2189_v13, %v2188_v10  ;;  %v10795_v59 = vld [vmem:[%s14802_s2 + $0x168] sm:$0xff]   ;;  %v2958_v25 = vld [vmem:[#allocation2 + $0x1d2] sm:$0xff] }
 0x18f   : > { %2123 = vrot.lane.b32.xlu0 %v2076_v53, %s10919_s23  ;;  %2349 = vst.msk [vmem:[#allocation4 + $0x368] sm:$0xff] %vm327_vm0, %v12028_v16  ;;  %9803 = vmatpush3.bf16.msra.mxu0 %v10792_v28  ;;  %3238 = vst.msk [vmem:[#allocation4 + $0x1b8] sm:$0xff] %vm327_vm0, %v12045_v47  ;;  %v10796_v60 = vld [vmem:[%s14802_s2 + $0x128] sm:$0xff]   ;;  %v10797_v53 = vld [vmem:[%s14802_s2 + $0x170] sm:$0xff]  }
 0x190   : > { %v1794_v23 = vpop.permute.xlu1 %1793  ;;  %v12010_v20 = vadd.f32 %v9705_v30, %v3852_v36  ;;  %v2765_v30 = vld [vmem:[#allocation2 + $0x1c8] sm:$0xff]  ;;  %10726 = vmatpush3.bf16.msra.mxu1 %v10794_v46  ;;  %9804 = vmatprep.subr.bf16.mxu0 %v10793_v50 }
 0x191   : > { %1831 = vst.msk [vmem:[#allocation4 + $0x240] sm:$0xff] %vm923_vm5, %v1794_v23  ;;  %v1090_v2 = vpop.permute.xlu0 %1089  ;;  %v2782_v32 = vpack.c.bf16 %v2766_v31, %v2765_v30  ;;  %10719 = vmatprep.subr.bf16.mxu1 %v10795_v59  ;;  %v2736_v13 = vld [vmem:[#allocation2 + $0x68] sm:$0xff] }
 0x192   : > { %1675 = vrot.lane.b32.xlu1 %v11929_v57, %s10919_s23  ;;  %1127 = vst.msk [vmem:[#allocation4 + $0x238] sm:$0xff] %vm665_vm3, %v1090_v2  ;;  %v2286_v23 = vld [vmem:[#allocation2 + $0x49] sm:$0xff]  ;;  %v2397_v2 = vpack.c.bf16 %v2381_v12, %v2380_v6  ;;  %v10801_v6 = vld [vmem:[%s14802_s2 + $0x180] sm:$0xff]  }
 0x193   : > { %2252 = vrot.lane.b32.xlu0 %v2205_v56, %s10920_s24  ;;  %2798 = vst.msk [vmem:[#allocation4 + $0x370] sm:$0xff] %vm327_vm0, %v2782_v32  ;;  %9805 = vmatpush3.bf16.msra.mxu0 %v10794_v46  ;;  %v2318_v28 = vpack.c.bf16 %v2287_v49, %v2286_v23  ;;  %v2624_v32 = vld [vmem:[#allocation2 + $0x124] sm:$0xff]  ;;  %v3184_v46 = vld [vmem:[#allocation2 + $0x6c] sm:$0xff]  ;;  %v2737_v23 = vld [vmem:[#allocation2 + $0x78] sm:$0xff] }
 0x194   : > { %v9706_v11 = vpop.f32.mrb[4].mxu1  ;;  %v638_v41 = vpop.permute.xlu1 %637  ;;  %9806 = vmatprep.subr.bf16.mxu0 %v10795_v59  ;;  %10727 = vmatpush3.bf16.msra.mxu1 %v10796_v60  ;;  %v2636_v59 = vld [vmem:[#allocation2 + $0x1b4] sm:$0xff]  ;;  %v3186_v12 = vld [vmem:[#allocation2 + $0x84] sm:$0xff] }
 0x195   : > { %676 = vst.msk [vmem:[#allocation4 + $0x230] sm:$0xff] %vm665_vm3, %v638_v41  ;;  %v9707_v57 = vpop.f32.mrb[5].mxu1  ;;  %v1218_v5 = vpop.permute.xlu0 %1217  ;;  %v3320_v43 = vld [vmem:[#allocation4 + $0x248] sm:$0xff]  ;;  %10720 = vmatprep.subr.bf16.mxu1 %v10797_v53  ;;  %v2509_v41 = vld [vmem:[#allocation2 + $0x1bb] sm:$0xff] }
 0x196   : > { %v12025_v7 = vadd.f32 %v9707_v57, %v9706_v11  ;;  %v9709_v54 = vpop.f32.mrb[6].mxu1  ;;  %1803 = vrot.lane.b32.xlu1 %v1756_v37, %s10920_s24  ;;  %1255 = vst.msk [vmem:[#allocation4 + $0x238] sm:$0xff] %vm794_vm4, %v1218_v5  ;;  %4087 = vmatprep.mubr.bf16.mxu1 %v3320_v43  ;;  %v2508_v11 = vld [vmem:[#allocation2 + $0x1b3] sm:$0xff]  ;;  %v2974_v43 = vpack.c.bf16 %v2958_v25, %v2957_v24  ;;  %v2738_v49 = vld [vmem:[#allocation2 + $0x80] sm:$0xff] }
 0x197   : > { %v9710_v48 = vpop.f32.mrb[7].mxu1  ;;  %1099 = vrot.lane.b32.xlu0 %v11871_v34, %s10918_s22  ;;  %9807 = vmatpush3.bf16.msra.mxu0 %v10796_v60  ;;  %v10799_v57 = vld [vmem:[%s14802_s2 + $0x178] sm:$0xff]   ;;  %2334 = vst.msk [vmem:[#allocation4 + $0x20] sm:$0xff] %vm327_vm0, %v2318_v28  ;;  %v2625_v5 = vld [vmem:[#allocation2 + $0x12c] sm:$0xff]  ;;  %v2525_v50 = vpack.c.bf16 %v2509_v41, %v2508_v11  ;;  %v2288_v25 = vld [vmem:[#allocation2 + $0x61] sm:$0xff] }
 0x198   : > { %v12034_v61 = vadd.f32 %v9710_v48, %v9709_v54  ;;  %v767_v4 = vpop.permute.xlu1 %766  ;;  %v3319_v1 = vld [vmem:[#allocation4 + $0x240] sm:$0xff]  ;;  %9808 = vmatprep.subr.bf16.mxu0 %v10797_v53  ;;  %v10800_v48 = vld [vmem:[%s14802_s2 + $0x138] sm:$0xff]   ;;  %v2289_v11 = vld [vmem:[#allocation2 + $0x69] sm:$0xff] }
 0x199   : > { %805 = vst.msk [vmem:[#allocation4 + $0x230] sm:$0xff] %vm794_vm4, %v767_v4  ;;  %4088 = vmatmul.mubr.bf16.gmra.mrb[40].mxu1 %v3319_v1  ;;  %v1346_v51 = vpop.permute.xlu0 %1345  ;;  %v12087_v4 = vpack.c.bf16 %v2625_v5, %v2624_v32  ;;  %v3183_v1 = vld [vmem:[#allocation2 + $0x64] sm:$0xff]  ;;  %v3185_v60 = vld [vmem:[#allocation2 + $0x7c] sm:$0xff]  ;;  %v2351_v24 = vld [vmem:[#allocation2 + $0x52] sm:$0xff] }
 0x19a   : > { %647 = vrot.lane.b32.xlu1 %v11875_v18, %s10918_s22  ;;  %1383 = vst.msk [vmem:[#allocation4 + $0x238] sm:$0xff] %vm923_vm5, %v1346_v51  ;;  %v2829_v18 = vld [vmem:[#allocation2 + $0x1c9] sm:$0xff]  ;;  %v3086_v51 = vld [vmem:[#allocation2 + $0x1d3] sm:$0xff] }
 0x19b   : > { %1227 = vrot.lane.b32.xlu0 %v11933_v58, %s10919_s23  ;;  %v10798_v58 = vld [vmem:[%s14802_s2 + $0x130] sm:$0xff]   ;;  %v2846_v17 = vpack.c.bf16 %v2830_v62, %v2829_v18  ;;  %3239 = vst.msk [vmem:[#allocation4 + $0x1f0] sm:$0xff] %vm327_vm0, %v12087_v4 }
 0x19c   : > { %v896_v34 = vpop.permute.xlu1 %895  ;;  %10728 = vmatpush3.bf16.msra.mxu1 %v10798_v58  ;;  %9809 = vmatpush3.bf16.msra.mxu0 %v10798_v58 }
 0x19d   : > { %934 = vst.msk [vmem:[#allocation4 + $0x230] sm:$0xff] %vm923_vm5, %v896_v34  ;;  %v1988_v39 = vpop.permute.xlu0 %1987  ;;  %10721 = vmatprep.subr.bf16.mxu1 %v10799_v57  ;;  %v3215_v34 = vpack.c.bf16 %v3184_v46, %v3183_v1  ;;  %9810 = vmatprep.subr.bf16.mxu0 %v10799_v57  ;;  %v2319_v57 = vpack.c.bf16 %v2289_v11, %v2288_v25  ;;  %v3056_v46 = vld [vmem:[#allocation2 + $0x6b] sm:$0xff] }
 0x19e   : > { %776 = vrot.lane.b32.xlu1 %v11680_v9, %s10919_s23  ;;  %2024 = vst.msk [vmem:[#allocation4 + $0x280] sm:$0xff] %vm665_vm3, %v1988_v39  ;;  %v2735_v9 = vld [vmem:[#allocation2 + $0x60] sm:$0xff] }
 0x19f   : > { %1355 = vrot.lane.b32.xlu0 %v11731_v14, %s10920_s24  ;;  %v2767_v19 = vpack.c.bf16 %v2736_v13, %v2735_v9  ;;  %v2637_v39 = vld [vmem:[#allocation2 + $0x1bc] sm:$0xff]  ;;  %3231 = vst.msk [vmem:[#allocation4 + $0x30] sm:$0xff] %vm327_vm0, %v3215_v34  ;;  %v2800_v13 = vld [vmem:[#allocation2 + $0x69] sm:$0xff]  ;;  %2335 = vst.msk [vmem:[#allocation4 + $0x58] sm:$0xff] %vm327_vm0, %v2319_v57 }
 0x1a0   : > { %v9594_v36 = vpop.f32.mrb[4].mxu0  ;;  %v1540_v10 = vpop.permute.xlu1 %1539  ;;  %10729 = vmatpush3.bf16.msra.mxu1 %v10800_v48  ;;  %9811 = vmatpush3.bf16.msra.mxu0 %v10800_v48  ;;  %v2653_v58 = vpack.c.bf16 %v2637_v39, %v2636_v59  ;;  %v2799_v9 = vld [vmem:[#allocation2 + $0x61] sm:$0xff]  ;;  %v2606_v34 = vld [vmem:[#allocation2 + $0x4c] sm:$0xff] }
 0x1a1   : > { %1576 = vst.msk [vmem:[#allocation4 + $0x278] sm:$0xff] %vm665_vm3, %v1540_v10  ;;  %v9595_v15 = vpop.f32.mrb[5].mxu0  ;;  %v2116_v31 = vpop.permute.xlu0 %2115  ;;  %v3318_v14 = vld [vmem:[#allocation4 + $0x238] sm:$0xff]  ;;  %v3102_v10 = vpack.c.bf16 %v3086_v51, %v3085_v45  ;;  %10638 = vmatprep.subr.bf16.mxu1 %v10801_v6  ;;  %v3055_v45 = vld [vmem:[#allocation2 + $0x63] sm:$0xff] }
 0x1a2   : > { %v9596_v56 = vadd.f32 %v9595_v15, %v9594_v36  ;;  %v9597_v37 = vpop.f32.mrb[6].mxu0  ;;  %905 = vrot.lane.b32.xlu1 %v11846_v8, %s10920_s24  ;;  %2783 = vst.msk [vmem:[#allocation4 + $0x28] sm:$0xff] %vm327_vm0, %v2767_v19  ;;  %3926 = vmatprep.mubr.bf16.mxu0 %v3318_v14  ;;  %v3216_v36 = vpack.c.bf16 %v3186_v12, %v3185_v60  ;;  %v2928_v14 = vld [vmem:[#allocation2 + $0x6a] sm:$0xff]  ;;  %v2607_v60 = vld [vmem:[#allocation2 + $0x54] sm:$0xff] }
 0x1a3   : > { %v9598_v30 = vpop.f32.mrb[7].mxu0  ;;  %2152 = vst.msk [vmem:[#allocation4 + $0x280] sm:$0xff] %vm794_vm4, %v2116_v31  ;;  %2893 = vrot.lane.b32.xlu0 %v2846_v17, %s10918_s22  ;;  %v2350_v17 = vld [vmem:[#allocation2 + $0x4a] sm:$0xff]  ;;  %v2927_v31 = vld [vmem:[#allocation2 + $0x62] sm:$0xff]  ;;  %v3087_v6 = vpack.c.bf16 %v3056_v46, %v3055_v45  ;;  %v2638_v12 = vpack.c.bf16 %v2607_v60, %v2606_v34 }
 0x1a4   : > { %v3857_v44 = vadd.f32 %v9596_v56, %v11973_v40  ;;  %v9599_v8 = vadd.f32 %v9598_v30, %v9597_v37  ;;  %v1668_v29 = vpop.permute.xlu1 %1667  ;;  %v3317_v54 = vld [vmem:[#allocation4 + $0x230] sm:$0xff]  ;;  %3232 = vst.msk [vmem:[#allocation4 + $0x68] sm:$0xff] %vm327_vm0, %v3216_v36  ;;  %v2831_v37 = vpack.c.bf16 %v2800_v13, %v2799_v9  ;;  %v2382_v30 = vpack.c.bf16 %v2351_v24, %v2350_v17  ;;  %v2802_v36 = vld [vmem:[#allocation2 + $0x81] sm:$0xff] }
 0x1a5   : > { %1704 = vst.msk [vmem:[#allocation4 + $0x278] sm:$0xff] %vm794_vm4, %v1668_v29  ;;  %3927 = vmatmul.mubr.bf16.gmra.mrb[40].mxu0 %v3317_v54  ;;  %v2245_v62 = vpop.permute.xlu0 %2244  ;;  %v2478_v29 = vld [vmem:[#allocation2 + $0x4b] sm:$0xff]  ;;  %v2479_v54 = vld [vmem:[#allocation2 + $0x53] sm:$0xff] }
 0x1a6   : > { %v3860_v22 = vadd.f32 %v9599_v8, %v11973_v40  ;;  %2444 = vrot.lane.b32.xlu1 %v2397_v2, %s10918_s22  ;;  %v12092_v18 = vadd.f32 %v12025_v7, %v3857_v44  ;;  %2281 = vst.msk [vmem:[#allocation4 + $0x280] sm:$0xff] %vm923_vm5, %v2245_v62  ;;  %v2768_v2 = vpack.c.bf16 %v2738_v49, %v2737_v23  ;;  %v2822_v51 = vld [vmem:[#allocation2 + $0x171] sm:$0xff]  ;;  %v2291_v23 = vld [vmem:[#allocation2 + $0x81] sm:$0xff] }
 0x1a7   : > { %3021 = vrot.lane.b32.xlu0 %v2974_v43, %s10919_s23  ;;  %v2510_v1 = vpack.c.bf16 %v2479_v54, %v2478_v29  ;;  %v2739_v13 = vld [vmem:[#allocation2 + $0x90] sm:$0xff]  ;;  %v3058_v54 = vld [vmem:[#allocation2 + $0x83] sm:$0xff] }
 0x1a8   : > { %v1796_v53 = vpop.permute.xlu1 %1795  ;;  %v12102_v7 = vadd.f32 %v12034_v61, %v3860_v22  ;;  %2784 = vst.msk [vmem:[#allocation4 + $0x60] sm:$0xff] %vm327_vm0, %v2768_v2  ;;  %v2821_v22 = vld [vmem:[#allocation2 + $0x169] sm:$0xff]  ;;  %v2803_v60 = vld [vmem:[#allocation2 + $0x91] sm:$0xff] }
 0x1a9   : > { %1832 = vst.msk [vmem:[#allocation4 + $0x278] sm:$0xff] %vm923_vm5, %v1796_v53  ;;  %v1092_v15 = vpop.permute.xlu0 %1091  ;;  %v12122_v62 = vpack.c.bf16 %v2822_v51, %v2821_v22  ;;  %v2801_v53 = vld [vmem:[#allocation2 + $0x79] sm:$0xff]  ;;  %v2930_v2 = vld [vmem:[#allocation2 + $0x82] sm:$0xff]  ;;  %v2609_v22 = vld [vmem:[#allocation2 + $0x6c] sm:$0xff] }
 0x1aa   : > { %2572 = vrot.lane.b32.xlu1 %v2525_v50, %s10919_s23  ;;  %1128 = vst.msk [vmem:[#allocation4 + $0x270] sm:$0xff] %vm665_vm3, %v1092_v15  ;;  %v2959_v50 = vpack.c.bf16 %v2928_v14, %v2927_v31  ;;  %v2740_v15 = vld [vmem:[#allocation2 + $0x98] sm:$0xff]  ;;  %v2832_v24 = vpack.c.bf16 %v2802_v36, %v2801_v53  ;;  %v2608_v46 = vld [vmem:[#allocation2 + $0x64] sm:$0xff] }
 0x1ab   : > { %3149 = vrot.lane.b32.xlu0 %v3102_v10, %s10920_s24  ;;  %2346 = vst.msk [vmem:[#allocation4 + $0x2c0] sm:$0xff] %vm327_vm0, %v12122_v62 }
 0x1ac   : > { %v9712_v61 = vpop.f32.mrb[8].mxu1  ;;  %v640_v19 = vpop.permute.xlu1 %639 }
 0x1ad   : > { %677 = vst.msk [vmem:[#allocation4 + $0x268] sm:$0xff] %vm665_vm3, %v640_v19  ;;  %v9713_v56 = vpop.f32.mrb[9].mxu1  ;;  %v1220_v44 = vpop.permute.xlu0 %1219  ;;  %v3327_v8 = vld [vmem:[#allocation4 + $0x280] sm:$0xff] }
 0x1ae   : > { %v12111_v41 = vadd.f32 %v9713_v56, %v9712_v61  ;;  %v9715_v28 = vpop.f32.mrb[10].mxu1  ;;  %2700 = vrot.lane.b32.xlu1 %v2653_v58, %s10920_s24  ;;  %1256 = vst.msk [vmem:[#allocation4 + $0x270] sm:$0xff] %vm794_vm4, %v1220_v44  ;;  %4095 = vmatprep.mubr.bf16.mxu1 %v3327_v8  ;;  %v2769_v61 = vpack.c.bf16 %v2740_v15, %v2739_v13  ;;  %v2290_v19 = vld [vmem:[#allocation2 + $0x79] sm:$0xff]  ;;  %v2742_v13 = vld [vmem:[#allocation2 + $0xb0] sm:$0xff] }
 0x1af   : > { %v9716_v32 = vpop.f32.mrb[11].mxu1  ;;  %2863 = vrot.lane.b32.xlu0 %v2831_v37, %s10918_s22  ;;  %v2929_v37 = vld [vmem:[#allocation2 + $0x7a] sm:$0xff]  ;;  %v2320_v25 = vpack.c.bf16 %v2291_v23, %v2290_v19 }
 0x1b0   : > { %v12115_v48 = vadd.f32 %v9716_v32, %v9715_v28  ;;  %v769_v5 = vpop.permute.xlu1 %768  ;;  %v3326_v43 = vld [vmem:[#allocation4 + $0x278] sm:$0xff]  ;;  %2785 = vst.msk [vmem:[#allocation4 + $0x98] sm:$0xff] %vm327_vm0, %v2769_v61  ;;  %v2960_v44 = vpack.c.bf16 %v2930_v2, %v2929_v37 }
 0x1b1   : > { %806 = vst.msk [vmem:[#allocation4 + $0x268] sm:$0xff] %vm794_vm4, %v769_v5  ;;  %4096 = vmatmul.mubr.bf16.gmra.mrb[44].mxu1 %v3326_v43  ;;  %v1348_v59 = vpop.permute.xlu0 %1347  ;;  %v3057_v8 = vld [vmem:[#allocation2 + $0x7b] sm:$0xff]  ;;  %v2824_v43 = vld [vmem:[#allocation2 + $0x189] sm:$0xff]  ;;  %v2292_v61 = vld [vmem:[#allocation2 + $0x91] sm:$0xff] }
 0x1b2   : > { %2414 = vrot.lane.b32.xlu1 %v2382_v30, %s10918_s22  ;;  %1384 = vst.msk [vmem:[#allocation4 + $0x270] sm:$0xff] %vm923_vm5, %v1348_v59  ;;  %v2823_v5 = vld [vmem:[#allocation2 + $0x181] sm:$0xff]  ;;  %v2293_v19 = vld [vmem:[#allocation2 + $0x99] sm:$0xff] }
 0x1b3   : > { %2991 = vrot.lane.b32.xlu0 %v2959_v50, %s10919_s23  ;;  %2336 = vst.msk [vmem:[#allocation4 + $0x90] sm:$0xff] %vm327_vm0, %v2320_v25  ;;  %v12145_v51 = vpack.c.bf16 %v2824_v43, %v2823_v5  ;;  %v2321_v37 = vpack.c.bf16 %v2293_v19, %v2292_v61  ;;  %v3201_v2 = vld [vmem:[#allocation2 + $0x13c] sm:$0xff]  ;;  %v3202_v25 = vld [vmem:[#allocation2 + $0x144] sm:$0xff] }
 0x1b4   : > { %v898_v39 = vpop.permute.xlu1 %897  ;;  %v2825_v5 = vld [vmem:[#allocation2 + $0x199] sm:$0xff]  ;;  %v2826_v43 = vld [vmem:[#allocation2 + $0x1a1] sm:$0xff] }
 0x1b5   : > { %935 = vst.msk [vmem:[#allocation4 + $0x268] sm:$0xff] %vm923_vm5, %v898_v39  ;;  %v1990_v10 = vpop.permute.xlu0 %1989  ;;  %v2804_v39 = vld [vmem:[#allocation2 + $0x99] sm:$0xff] }
 0x1b6   : > { %2542 = vrot.lane.b32.xlu1 %v2510_v1, %s10919_s23  ;;  %2025 = vst.msk [vmem:[#allocation4 + $0x2b8] sm:$0xff] %vm665_vm3, %v1990_v10  ;;  %v2833_v10 = vpack.c.bf16 %v2804_v39, %v2803_v60  ;;  %v3203_v60 = vld [vmem:[#allocation2 + $0x154] sm:$0xff]  ;;  %v3204_v39 = vld [vmem:[#allocation2 + $0x15c] sm:$0xff] }
 0x1b7   : > { %3119 = vrot.lane.b32.xlu0 %v3087_v6, %s10920_s24  ;;  %2347 = vst.msk [vmem:[#allocation4 + $0x2f8] sm:$0xff] %vm327_vm0, %v12145_v51  ;;  %2337 = vst.msk [vmem:[#allocation4 + $0xc8] sm:$0xff] %vm327_vm0, %v2321_v37 }
 0x1b8   : > { %v1542_v58 = vpop.permute.xlu1 %1541  ;;  %v9600_v9 = vpop.f32.mrb[8].mxu0 }
 0x1b9   : > { %1577 = vst.msk [vmem:[#allocation4 + $0x2b0] sm:$0xff] %vm665_vm3, %v1542_v58  ;;  %v9601_v17 = vpop.f32.mrb[9].mxu0  ;;  %v2118_v11 = vpop.permute.xlu0 %2117  ;;  %v3325_v30 = vld [vmem:[#allocation4 + $0x270] sm:$0xff] }
 0x1ba   : > { %v9602_v49 = vadd.f32 %v9601_v17, %v9600_v9  ;;  %2670 = vrot.lane.b32.xlu1 %v2638_v12, %s10920_s24  ;;  %v9603_v56 = vpop.f32.mrb[10].mxu0  ;;  %2153 = vst.msk [vmem:[#allocation4 + $0x2b8] sm:$0xff] %vm794_vm4, %v2118_v11  ;;  %3934 = vmatprep.mubr.bf16.mxu0 %v3325_v30  ;;  %v2931_v58 = vld [vmem:[#allocation2 + $0x92] sm:$0xff]  ;;  %v2741_v9 = vld [vmem:[#allocation2 + $0xa8] sm:$0xff]  ;;  %v2932_v17 = vld [vmem:[#allocation2 + $0x9a] sm:$0xff] }
 0x1bb   : > { %v9604_v28 = vpop.f32.mrb[11].mxu0  ;;  %2865 = vrot.lane.b32.xlu0 %v2832_v24, %s10918_s22  ;;  %v2770_v24 = vpack.c.bf16 %v2742_v13, %v2741_v9  ;;  %v2934_v13 = vld [vmem:[#allocation2 + $0xb2] sm:$0xff] }
 0x1bc   : > { %v3865_v31 = vadd.f32 %v9602_v49, %v11973_v40  ;;  %v9605_v14 = vadd.f32 %v9604_v28, %v9603_v56  ;;  %v1670_v57 = vpop.permute.xlu1 %1669  ;;  %v3324_v32 = vld [vmem:[#allocation4 + $0x268] sm:$0xff] }
 0x1bd   : > { %1705 = vst.msk [vmem:[#allocation4 + $0x2b0] sm:$0xff] %vm794_vm4, %v1670_v57  ;;  %3935 = vmatmul.mubr.bf16.gmra.mrb[44].mxu0 %v3324_v32  ;;  %v2247_v1 = vpop.permute.xlu0 %2246  ;;  %v3059_v57 = vld [vmem:[#allocation2 + $0x93] sm:$0xff]  ;;  %v3060_v32 = vld [vmem:[#allocation2 + $0x9b] sm:$0xff] }
 0x1be   : > { %v3868_v29 = vadd.f32 %v9605_v14, %v11973_v40  ;;  %2416 = vrot.lane.b32.xlu1 %v2959_v50, %s10918_s22  ;;  %v12143_v45 = vadd.f32 %v12111_v41, %v3865_v31  ;;  %2282 = vst.msk [vmem:[#allocation4 + $0x2b8] sm:$0xff] %vm923_vm5, %v2247_v1  ;;  %v3088_v50 = vpack.c.bf16 %v3058_v54, %v3057_v8  ;;  %v2610_v8 = vld [vmem:[#allocation2 + $0x7c] sm:$0xff]  ;;  %v2611_v54 = vld [vmem:[#allocation2 + $0x84] sm:$0xff] }
 0x1bf   : > { %2993 = vrot.lane.b32.xlu0 %v2960_v44, %s10919_s23  ;;  %v2639_v41 = vpack.c.bf16 %v2609_v22, %v2608_v46  ;;  %2786 = vst.msk [vmem:[#allocation4 + $0xd0] sm:$0xff] %vm327_vm0, %v2770_v24  ;;  %v3224_v31 = vpack.c.bf16 %v3202_v25, %v3201_v2  ;;  %v12168_v14 = vpack.c.bf16 %v2932_v17, %v2931_v58  ;;  %v2805_v22 = vld [vmem:[#allocation2 + $0xa9] sm:$0xff] }
 0x1c0   : > { %v1798_v59 = vpop.permute.xlu1 %1797  ;;  %v12149_v34 = vadd.f32 %v12115_v48, %v3868_v29  ;;  %v12174_v46 = vpack.c.bf16 %v2826_v43, %v2825_v5  ;;  %v3205_v58 = vld [vmem:[#allocation2 + $0x16c] sm:$0xff] }
 0x1c1   : > { %1833 = vst.msk [vmem:[#allocation4 + $0x2b0] sm:$0xff] %vm923_vm5, %v1798_v59  ;;  %v1094_v12 = vpop.permute.xlu0 %1093  ;;  %v2640_v59 = vpack.c.bf16 %v2611_v54, %v2610_v8  ;;  %v2744_v17 = vld [vmem:[#allocation2 + $0xc8] sm:$0xff] }
 0x1c2   : > { %2544 = vrot.lane.b32.xlu1 %v3087_v6, %s10919_s23  ;;  %1129 = vst.msk [vmem:[#allocation4 + $0x2a8] sm:$0xff] %vm665_vm3, %v1094_v12  ;;  %v2633_v54 = vld [vmem:[#allocation2 + $0x18c] sm:$0xff] }
 0x1c3   : > { %3121 = vrot.lane.b32.xlu0 %v3088_v50, %s10920_s24  ;;  %3240 = vst.msk [vmem:[#allocation4 + $0x228] sm:$0xff] %vm327_vm0, %v3224_v31  ;;  %2348 = vst.msk [vmem:[#allocation4 + $0x330] sm:$0xff] %vm327_vm0, %v12174_v46 }
 0x1c4   : > { %v9718_v53 = vpop.f32.mrb[12].mxu1  ;;  %v642_v36 = vpop.permute.xlu1 %641 }
 0x1c5   : > { %678 = vst.msk [vmem:[#allocation4 + $0x2a0] sm:$0xff] %vm665_vm3, %v642_v36  ;;  %v9719_v48 = vpop.f32.mrb[13].mxu1  ;;  %v1222_v23 = vpop.permute.xlu0 %1221  ;;  %v3334_v56 = vld [vmem:[#allocation4 + $0x2b8] sm:$0xff] }
 0x1c6   : > { %v12159_v15 = vadd.f32 %v9719_v48, %v9718_v53  ;;  %v9721_v6 = vpop.f32.mrb[14].mxu1  ;;  %2672 = vrot.lane.b32.xlu1 %v2639_v41, %s10920_s24  ;;  %1257 = vst.msk [vmem:[#allocation4 + $0x2a8] sm:$0xff] %vm794_vm4, %v1222_v23  ;;  %4103 = vmatprep.mubr.bf16.mxu1 %v3334_v56  ;;  %v2806_v41 = vld [vmem:[#allocation2 + $0xb1] sm:$0xff]  ;;  %v3225_v53 = vpack.c.bf16 %v3204_v39, %v3203_v60  ;;  %v2294_v23 = vld [vmem:[#allocation2 + $0xa9] sm:$0xff]  ;;  %v3209_v39 = vld [vmem:[#allocation2 + $0x19c] sm:$0xff] }
 0x1c7   : > { %v9722_v49 = vpop.f32.mrb[15].mxu1  ;;  %2867 = vrot.lane.b32.xlu0 %v2833_v10, %s10918_s22  ;;  %v2933_v10 = vld [vmem:[#allocation2 + $0xaa] sm:$0xff]  ;;  %v2834_v9 = vpack.c.bf16 %v2806_v41, %v2805_v22  ;;  %v3206_v56 = vld [vmem:[#allocation2 + $0x174] sm:$0xff] }
 0x1c8   : > { %v12163_v11 = vadd.f32 %v9722_v49, %v9721_v6  ;;  %v771_v28 = vpop.permute.xlu1 %770  ;;  %v3333_v30 = vld [vmem:[#allocation4 + $0x2b0] sm:$0xff]  ;;  %v2743_v6 = vld [vmem:[#allocation2 + $0xc0] sm:$0xff]  ;;  %3241 = vst.msk [vmem:[#allocation4 + $0x260] sm:$0xff] %vm327_vm0, %v3225_v53  ;;  %v2962_v5 = vpack.c.bf16 %v2934_v13, %v2933_v10 }
 0x1c9   : > { %807 = vst.msk [vmem:[#allocation4 + $0x2a0] sm:$0xff] %vm794_vm4, %v771_v28  ;;  %4104 = vmatmul.mubr.bf16.gmra.mrb[48].mxu1 %v3333_v30  ;;  %v1350_v29 = vpop.permute.xlu0 %1349  ;;  %v2771_v19 = vpack.c.bf16 %v2744_v17, %v2743_v6  ;;  %v2295_v49 = vld [vmem:[#allocation2 + $0xb1] sm:$0xff]  ;;  %v3226_v30 = vpack.c.bf16 %v3206_v56, %v3205_v58 }
 0x1ca   : > { %2418 = vrot.lane.b32.xlu1 %v2960_v44, %s10918_s22  ;;  %1385 = vst.msk [vmem:[#allocation4 + $0x2a8] sm:$0xff] %vm923_vm5, %v1350_v29  ;;  %v12179_v44 = vpack.c.bf16 %v3060_v32, %v3059_v57  ;;  %v2322_v28 = vpack.c.bf16 %v2295_v49, %v2294_v23  ;;  %v2632_v29 = vld [vmem:[#allocation2 + $0x184] sm:$0xff]  ;;  %v2745_v17 = vld [vmem:[#allocation2 + $0xd8] sm:$0xff] }
 0x1cb   : > { %2995 = vrot.lane.b32.xlu0 %v12168_v14, %s10919_s23  ;;  %2787 = vst.msk [vmem:[#allocation4 + $0x108] sm:$0xff] %vm327_vm0, %v2771_v19  ;;  %v12196_v43 = vpack.c.bf16 %v2633_v54, %v2632_v29  ;;  %3242 = vst.msk [vmem:[#allocation4 + $0x298] sm:$0xff] %vm327_vm0, %v3226_v30  ;;  %v3061_v22 = vld [vmem:[#allocation2 + $0xab] sm:$0xff]  ;;  %v2296_v23 = vld [vmem:[#allocation2 + $0xc1] sm:$0xff] }
 0x1cc   : > { %v900_v1 = vpop.permute.xlu1 %899  ;;  %2338 = vst.msk [vmem:[#allocation4 + $0x100] sm:$0xff] %vm327_vm0, %v2322_v28  ;;  %v2936_v6 = vld [vmem:[#allocation2 + $0xca] sm:$0xff]  ;;  %v3211_v56 = vld [vmem:[#allocation2 + $0x1b4] sm:$0xff] }
 0x1cd   : > { %936 = vst.msk [vmem:[#allocation4 + $0x2a0] sm:$0xff] %vm923_vm5, %v900_v1  ;;  %v1992_v12 = vpop.permute.xlu0 %1991  ;;  %v2297_v49 = vld [vmem:[#allocation2 + $0xc9] sm:$0xff]  ;;  %v3214_v54 = vld [vmem:[#allocation2 + $0x1d4] sm:$0xff] }
 0x1ce   : > { %2546 = vrot.lane.b32.xlu1 %v3088_v50, %s10919_s23  ;;  %2026 = vst.msk [vmem:[#allocation4 + $0x2f0] sm:$0xff] %vm665_vm3, %v1992_v12  ;;  %v3210_v12 = vld [vmem:[#allocation2 + $0x1a4] sm:$0xff]  ;;  %v2323_v28 = vpack.c.bf16 %v2297_v49, %v2296_v23  ;;  %v3213_v29 = vld [vmem:[#allocation2 + $0x1cc] sm:$0xff] }
 0x1cf   : > { %3123 = vrot.lane.b32.xlu0 %v12179_v44, %s10920_s24  ;;  %3243 = vst.msk [vmem:[#allocation4 + $0x2d0] sm:$0xff] %vm327_vm0, %v12196_v43 }
 0x1d0   : > { %v1544_v36 = vpop.permute.xlu1 %1543  ;;  %v9606_v48 = vpop.f32.mrb[12].mxu0  ;;  %2339 = vst.msk [vmem:[#allocation4 + $0x138] sm:$0xff] %vm327_vm0, %v2323_v28 }
 0x1d1   : > { %1578 = vst.msk [vmem:[#allocation4 + $0x2e8] sm:$0xff] %vm665_vm3, %v1544_v36  ;;  %v9607_v50 = vpop.f32.mrb[13].mxu0  ;;  %v2120_v37 = vpop.permute.xlu0 %2119  ;;  %v3332_v25 = vld [vmem:[#allocation4 + $0x2a8] sm:$0xff]  ;;  %v12208_v36 = vpack.c.bf16 %v3210_v12, %v3209_v39 }
 0x1d2   : > { %v9608_v24 = vadd.f32 %v9607_v50, %v9606_v48  ;;  %2674 = vrot.lane.b32.xlu1 %v2640_v59, %s10920_s24  ;;  %v9609_v61 = vpop.f32.mrb[14].mxu0  ;;  %2154 = vst.msk [vmem:[#allocation4 + $0x2f0] sm:$0xff] %vm794_vm4, %v2120_v37  ;;  %3942 = vmatprep.mubr.bf16.mxu0 %v3332_v25  ;;  %v3062_v59 = vld [vmem:[#allocation2 + $0xb3] sm:$0xff]  ;;  %v2808_v48 = vld [vmem:[#allocation2 + $0xc9] sm:$0xff] }
 0x1d3   : > { %v9610_v2 = vpop.f32.mrb[15].mxu0  ;;  %2869 = vrot.lane.b32.xlu0 %v2834_v9, %s10918_s22  ;;  %3244 = vst.msk [vmem:[#allocation4 + $0x308] sm:$0xff] %vm327_vm0, %v12208_v36 }
 0x1d4   : > { %v3873_v31 = vadd.f32 %v9608_v24, %v11973_v40  ;;  %v9611_v57 = vadd.f32 %v9610_v2, %v9609_v61  ;;  %v1672_v32 = vpop.permute.xlu1 %1671  ;;  %v3331_v8 = vld [vmem:[#allocation4 + $0x2a0] sm:$0xff] }
 0x1d5   : > { %1706 = vst.msk [vmem:[#allocation4 + $0x2e8] sm:$0xff] %vm794_vm4, %v1672_v32  ;;  %3943 = vmatmul.mubr.bf16.gmra.mrb[48].mxu0 %v3331_v8  ;;  %v2249_v60 = vpop.permute.xlu0 %2248  ;;  %v3212_v32 = vld [vmem:[#allocation2 + $0x1bc] sm:$0xff] }
 0x1d6   : > { %v3876_v1 = vadd.f32 %v9611_v57, %v11973_v40  ;;  %2420 = vrot.lane.b32.xlu1 %v12168_v14, %s10918_s22  ;;  %v12203_v41 = vadd.f32 %v12159_v15, %v3873_v31  ;;  %2283 = vst.msk [vmem:[#allocation4 + $0x2f0] sm:$0xff] %vm923_vm5, %v2249_v60  ;;  %v3090_v15 = vpack.c.bf16 %v3062_v59, %v3061_v22  ;;  %v2807_v14 = vld [vmem:[#allocation2 + $0xc1] sm:$0xff]  ;;  %v3064_v22 = vld [vmem:[#allocation2 + $0xcb] sm:$0xff] }
 0x1d7   : > { %2997 = vrot.lane.b32.xlu0 %v2962_v5, %s10919_s23  ;;  %v2835_v13 = vpack.c.bf16 %v2808_v48, %v2807_v14  ;;  %v3229_v8 = vpack.c.bf16 %v3212_v32, %v3211_v56  ;;  %v3230_v59 = vpack.c.bf16 %v3214_v54, %v3213_v29  ;;  %v3066_v29 = vld [vmem:[#allocation2 + $0xe3] sm:$0xff] }
 0x1d8   : > { %v1800_v53 = vpop.permute.xlu1 %1799  ;;  %v12211_v40 = vadd.f32 %v12163_v11, %v3876_v1  ;;  %v2935_v11 = vld [vmem:[#allocation2 + $0xc2] sm:$0xff] }
 0x1d9   : > { %1834 = vst.msk [vmem:[#allocation4 + $0x2e8] sm:$0xff] %vm923_vm5, %v1800_v53  ;;  %v1096_v10 = vpop.permute.xlu0 %1095  ;;  %v3063_v1 = vld [vmem:[#allocation2 + $0xc3] sm:$0xff]  ;;  %v2809_v53 = vld [vmem:[#allocation2 + $0xd9] sm:$0xff] }
 0x1da   : > { %2548 = vrot.lane.b32.xlu1 %v12179_v44, %s10919_s23  ;;  %1130 = vst.msk [vmem:[#allocation4 + $0x2e0] sm:$0xff] %vm665_vm3, %v1096_v10  ;;  %v2746_v44 = vld [vmem:[#allocation2 + $0xe0] sm:$0xff]  ;;  %v3091_v12 = vpack.c.bf16 %v3064_v22, %v3063_v1 }
 0x1db   : > { %3125 = vrot.lane.b32.xlu0 %v3090_v15, %s10920_s24  ;;  %v2772_v19 = vpack.c.bf16 %v2746_v44, %v2745_v17  ;;  %3245 = vst.msk [vmem:[#allocation4 + $0x340] sm:$0xff] %vm327_vm0, %v3229_v8  ;;  %3246 = vst.msk [vmem:[#allocation4 + $0x378] sm:$0xff] %vm327_vm0, %v3230_v59  ;;  %v2938_v17 = vld [vmem:[#allocation2 + $0xe2] sm:$0xff] }
 0x1dc   : > { %v9724_v58 = vpop.f32.mrb[16].mxu1  ;;  %v644_v50 = vpop.permute.xlu1 %643  ;;  %v3065_v8 = vld [vmem:[#allocation2 + $0xdb] sm:$0xff] }
 0x1dd   : > { %679 = vst.msk [vmem:[#allocation4 + $0x2d8] sm:$0xff] %vm665_vm3, %v644_v50  ;;  %v9725_v9 = vpop.f32.mrb[17].mxu1  ;;  %v1224_v37 = vpop.permute.xlu0 %1223  ;;  %v3341_v25 = vld [vmem:[#allocation4 + $0x2f0] sm:$0xff] }
 0x1de   : > { %v12222_v24 = vadd.f32 %v9725_v9, %v9724_v58  ;;  %v9727_v61 = vpop.f32.mrb[18].mxu1  ;;  %2676 = vrot.lane.b32.xlu1 %v11856_v3, %s10920_s24  ;;  %1258 = vst.msk [vmem:[#allocation4 + $0x2e0] sm:$0xff] %vm794_vm4, %v1224_v37  ;;  %4111 = vmatprep.mubr.bf16.mxu1 %v3341_v25  ;;  %v2963_v3 = vpack.c.bf16 %v2936_v6, %v2935_v11  ;;  %v2937_v11 = vld [vmem:[#allocation2 + $0xda] sm:$0xff]  ;;  %v2747_v9 = vld [vmem:[#allocation2 + $0xf0] sm:$0xff] }
 0x1df   : > { %v9728_v2 = vpop.f32.mrb[19].mxu1  ;;  %2788 = vst.msk [vmem:[#allocation4 + $0x140] sm:$0xff] %vm327_vm0, %v2772_v19  ;;  %2871 = vrot.lane.b32.xlu0 %v2835_v13, %s10918_s22  ;;  %v2748_v13 = vld [vmem:[#allocation2 + $0xf8] sm:$0xff]  ;;  %v2299_v19 = vld [vmem:[#allocation2 + $0xe1] sm:$0xff] }
 0x1e0   : > { %v12227_v30 = vadd.f32 %v9728_v2, %v9727_v61  ;;  %v773_v31 = vpop.permute.xlu1 %772  ;;  %v3340_v57 = vld [vmem:[#allocation4 + $0x2e8] sm:$0xff]  ;;  %v2773_v44 = vpack.c.bf16 %v2748_v13, %v2747_v9  ;;  %v2298_v61 = vld [vmem:[#allocation2 + $0xd9] sm:$0xff]  ;;  %v2300_v13 = vld [vmem:[#allocation2 + $0xf1] sm:$0xff] }
 0x1e1   : > { %808 = vst.msk [vmem:[#allocation4 + $0x2d8] sm:$0xff] %vm794_vm4, %v773_v31  ;;  %4112 = vmatmul.mubr.bf16.gmra.mrb[52].mxu1 %v3340_v57  ;;  %v1352_v60 = vpop.permute.xlu0 %1351  ;;  %v2324_v37 = vpack.c.bf16 %v2299_v19, %v2298_v61  ;;  %v12248_v2 = vld [vmem:[%s14803_s3] ss:$0 sm:$0xff]  ;;  %v2964_v57 = vpack.c.bf16 %v2938_v17, %v2937_v11 }
 0x1e2   : > { %2422 = vrot.lane.b32.xlu1 %v2962_v5, %s10918_s22  ;;  %1386 = vst.msk [vmem:[#allocation4 + $0x2e0] sm:$0xff] %vm923_vm5, %v1352_v60  ;;  %v2810_v5 = vld [vmem:[#allocation2 + $0xe1] sm:$0xff]  ;;  %v3092_v60 = vpack.c.bf16 %v3066_v29, %v3065_v8 }
 0x1e3   : > { %2999 = vrot.lane.b32.xlu0 %v2963_v3, %s10919_s23  ;;  %v2836_v50 = vpack.c.bf16 %v2810_v5, %v2809_v53  ;;  %2789 = vst.msk [vmem:[#allocation4 + $0x178] sm:$0xff] %vm327_vm0, %v2773_v44  ;;  %2340 = vst.msk [vmem:[#allocation4 + $0x170] sm:$0xff] %vm327_vm0, %v2324_v37  ;;  %v3068_v37 = vld [vmem:[#allocation2 + $0xfb] sm:$0xff] }
 0x1e4   : > { %v902_v39 = vpop.permute.xlu1 %901 }
 0x1e5   : > { %937 = vst.msk [vmem:[#allocation4 + $0x2d8] sm:$0xff] %vm923_vm5, %v902_v39  ;;  %v1994_v14 = vpop.permute.xlu0 %1993  ;;  %v2812_v39 = vld [vmem:[#allocation2 + $0xf9] sm:$0xff] }
 0x1e6   : > { %2550 = vrot.lane.b32.xlu1 %v3090_v15, %s10919_s23  ;;  %2027 = vst.msk [vmem:[#allocation4 + $0x328] sm:$0xff] %vm665_vm3, %v1994_v14 }
 0x1e7   : > { %3127 = vrot.lane.b32.xlu0 %v3091_v12, %s10920_s24 }
 0x1e8   : > { %v1546_v48 = vpop.permute.xlu1 %1545  ;;  %v9612_v10 = vpop.f32.mrb[16].mxu0 }
 0x1e9   : > { %1579 = vst.msk [vmem:[#allocation4 + $0x320] sm:$0xff] %vm665_vm3, %v1546_v48  ;;  %v9613_v58 = vpop.f32.mrb[17].mxu0  ;;  %v2122_v23 = vpop.permute.xlu0 %2121  ;;  %v3339_v56 = vld [vmem:[#allocation4 + $0x2e0] sm:$0xff]  ;;  %v2939_v48 = vld [vmem:[#allocation2 + $0xf2] sm:$0xff] }
 0x1ea   : > { %v9614_v6 = vadd.f32 %v9613_v58, %v9612_v10  ;;  %2678 = vrot.lane.b32.xlu1 %v11888_v21, %s10920_s24  ;;  %v9615_v15 = vpop.f32.mrb[18].mxu0  ;;  %2155 = vst.msk [vmem:[#allocation4 + $0x328] sm:$0xff] %vm794_vm4, %v2122_v23  ;;  %3950 = vmatprep.mubr.bf16.mxu0 %v3339_v56  ;;  %v2749_v10 = vld [vmem:[#allocation2 + $0x108] sm:$0xff]  ;;  %v2750_v58 = vld [vmem:[#allocation2 + $0x110] sm:$0xff] }
 0x1eb   : > { %v9616_v49 = vpop.f32.mrb[19].mxu0  ;;  %2873 = vrot.lane.b32.xlu0 %v2836_v50, %s10918_s22  ;;  %v2774_v9 = vpack.c.bf16 %v2750_v58, %v2749_v10  ;;  %v3067_v56 = vld [vmem:[#allocation2 + $0xf3] sm:$0xff] }
 0x1ec   : > { %v3881_v25 = vadd.f32 %v12248_v2, %v9614_v6  ;;  %v9617_v28 = vadd.f32 %v9616_v49, %v9615_v15  ;;  %v1674_v21 = vpop.permute.xlu1 %1673  ;;  %v3338_v31 = vld [vmem:[#allocation4 + $0x2d8] sm:$0xff] }
 0x1ed   : > { %1707 = vst.msk [vmem:[#allocation4 + $0x320] sm:$0xff] %vm794_vm4, %v1674_v21  ;;  %3951 = vmatmul.mubr.bf16.gmra.mrb[52].mxu0 %v3338_v31  ;;  %v2251_v1 = vpop.permute.xlu0 %2250  ;;  %v2301_v6 = vld [vmem:[#allocation2 + $0xf9] sm:$0xff]  ;;  %v3093_v21 = vpack.c.bf16 %v3068_v37, %v3067_v56  ;;  %v2813_v31 = vld [vmem:[#allocation2 + $0x109] sm:$0xff] }
 0x1ee   : > { %v3884_v32 = vadd.f32 %v12248_v2, %v9617_v28  ;;  %2424 = vrot.lane.b32.xlu1 %v2963_v3, %s10918_s22  ;;  %v12259_v54 = vadd.f32 %v12222_v24, %v3881_v25  ;;  %2284 = vst.msk [vmem:[#allocation4 + $0x328] sm:$0xff] %vm923_vm5, %v2251_v1  ;;  %v2811_v3 = vld [vmem:[#allocation2 + $0xf1] sm:$0xff]  ;;  %v2325_v61 = vpack.c.bf16 %v2301_v6, %v2300_v13 }
 0x1ef   : > { %3001 = vrot.lane.b32.xlu0 %v2964_v57, %s10919_s23  ;;  %v2837_v14 = vpack.c.bf16 %v2812_v39, %v2811_v3  ;;  %2790 = vst.msk [vmem:[#allocation4 + $0x1b0] sm:$0xff] %vm327_vm0, %v2774_v9  ;;  %v2941_v3 = vld [vmem:[#allocation2 + $0x10a] sm:$0xff]  ;;  %v2751_v39 = vld [vmem:[#allocation2 + $0x120] sm:$0xff] }
 0x1f0   : > { %v1802_v22 = vpop.permute.xlu1 %1801  ;;  %v12263_v59 = vadd.f32 %v12227_v30, %v3884_v32  ;;  %2341 = vst.msk [vmem:[#allocation4 + $0x1a8] sm:$0xff] %vm327_vm0, %v2325_v61  ;;  %v2814_v32 = vld [vmem:[#allocation2 + $0x111] sm:$0xff] }
 0x1f1   : > { %1835 = vst.msk [vmem:[#allocation4 + $0x320] sm:$0xff] %vm923_vm5, %v1802_v22  ;;  %v1098_v53 = vpop.permute.xlu0 %1097  ;;  %v2838_v22 = vpack.c.bf16 %v2814_v32, %v2813_v31  ;;  %v3070_v61 = vld [vmem:[#allocation2 + $0x113] sm:$0xff] }
 0x1f2   : > { %2552 = vrot.lane.b32.xlu1 %v3091_v12, %s10919_s23  ;;  %1131 = vst.msk [vmem:[#allocation4 + $0x318] sm:$0xff] %vm665_vm3, %v1098_v53  ;;  %v2940_v12 = vld [vmem:[#allocation2 + $0xfa] sm:$0xff]  ;;  %v2752_v53 = vld [vmem:[#allocation2 + $0x128] sm:$0xff] }
 0x1f3   : > { %3129 = vrot.lane.b32.xlu0 %v3092_v60, %s10920_s24 }
 0x1f4   : > { %v9730_v24 = vpop.f32.mrb[20].mxu1  ;;  %v646_v5 = vpop.permute.xlu1 %645 }
 0x1f5   : > { %680 = vst.msk [vmem:[#allocation4 + $0x310] sm:$0xff] %vm665_vm3, %v646_v5  ;;  %v9731_v30 = vpop.f32.mrb[21].mxu1  ;;  %v1226_v15 = vpop.permute.xlu0 %1225  ;;  %v3348_v44 = vld [vmem:[#allocation4 + $0x328] sm:$0xff]  ;;  %v2942_v5 = vld [vmem:[#allocation2 + $0x112] sm:$0xff] }
 0x1f6   : > { %v12271_v50 = vadd.f32 %v9731_v30, %v9730_v24  ;;  %v9733_v11 = vpop.f32.mrb[22].mxu1  ;;  %2680 = vrot.lane.b32.xlu1 %v11915_v55, %s10920_s24  ;;  %1259 = vst.msk [vmem:[#allocation4 + $0x318] sm:$0xff] %vm794_vm4, %v1226_v15  ;;  %4119 = vmatprep.mubr.bf16.mxu1 %v3348_v44  ;;  %v2965_v55 = vpack.c.bf16 %v2940_v12, %v2939_v48  ;;  %v2303_v48 = vld [vmem:[#allocation2 + $0x111] sm:$0xff] }
 0x1f7   : > { %v9734_v17 = vpop.f32.mrb[23].mxu1  ;;  %2875 = vrot.lane.b32.xlu0 %v2837_v14, %s10918_s22  ;;  %v2775_v30 = vpack.c.bf16 %v2752_v53, %v2751_v39  ;;  %v2302_v14 = vld [vmem:[#allocation2 + $0x109] sm:$0xff]  ;;  %v2304_v53 = vld [vmem:[#allocation2 + $0x121] sm:$0xff] }
 0x1f8   : > { %v12276_v19 = vadd.f32 %v9734_v17, %v9733_v11  ;;  %v775_v23 = vpop.permute.xlu1 %774  ;;  %v3347_v49 = vld [vmem:[#allocation4 + $0x320] sm:$0xff]  ;;  %v2326_v12 = vpack.c.bf16 %v2303_v48, %v2302_v14  ;;  %v3069_v44 = vld [vmem:[#allocation2 + $0x10b] sm:$0xff] }
 0x1f9   : > { %809 = vst.msk [vmem:[#allocation4 + $0x310] sm:$0xff] %vm794_vm4, %v775_v23  ;;  %4120 = vmatmul.mubr.bf16.gmra.mrb[56].mxu1 %v3347_v49  ;;  %v1354_v25 = vpop.permute.xlu0 %1353 }
 0x1fa   : > { %2426 = vrot.lane.b32.xlu1 %v2964_v57, %s10918_s22  ;;  %1387 = vst.msk [vmem:[#allocation4 + $0x318] sm:$0xff] %vm923_vm5, %v1354_v25  ;;  %v3094_v25 = vpack.c.bf16 %v3070_v61, %v3069_v44 }
 0x1fb   : > { %3003 = vrot.lane.b32.xlu0 %v2965_v55, %s10919_s23  ;;  %2791 = vst.msk [vmem:[#allocation4 + $0x1e8] sm:$0xff] %vm327_vm0, %v2775_v30  ;;  %2342 = vst.msk [vmem:[#allocation4 + $0x1e0] sm:$0xff] %vm327_vm0, %v2326_v12  ;;  %v3072_v12 = vld [vmem:[#allocation2 + $0x12b] sm:$0xff] }
 0x1fc   : > { %v904_v28 = vpop.permute.xlu1 %903 }
 0x1fd   : > { %938 = vst.msk [vmem:[#allocation4 + $0x310] sm:$0xff] %vm923_vm5, %v904_v28  ;;  %v1996_v8 = vpop.permute.xlu0 %1995  ;;  %v2816_v28 = vld [vmem:[#allocation2 + $0x129] sm:$0xff] }
 0x1fe   : > { %2554 = vrot.lane.b32.xlu1 %v3092_v60, %s10919_s23  ;;  %2028 = vst.msk [vmem:[#allocation4 + $0x360] sm:$0xff] %vm665_vm3, %v1996_v8 }
 0x1ff   : > { %3131 = vrot.lane.b32.xlu0 %v3093_v21, %s10920_s24 }
 0x200   : > { %v1548_v29 = vpop.permute.xlu1 %1547  ;;  %v9618_v57 = vpop.f32.mrb[20].mxu0 }
 0x201   : > { %1580 = vst.msk [vmem:[#allocation4 + $0x358] sm:$0xff] %vm665_vm3, %v1548_v29  ;;  %v9619_v1 = vpop.f32.mrb[21].mxu0  ;;  %v2124_v10 = vpop.permute.xlu0 %2123  ;;  %v3346_v11 = vld [vmem:[#allocation4 + $0x318] sm:$0xff]  ;;  %v2943_v29 = vld [vmem:[#allocation2 + $0x122] sm:$0xff] }
 0x202   : > { %v9620_v24 = vadd.f32 %v9619_v1, %v9618_v57  ;;  %2682 = vrot.lane.b32.xlu1 %v11947_v42, %s10920_s24  ;;  %v9621_v60 = vpop.f32.mrb[22].mxu0  ;;  %2156 = vst.msk [vmem:[#allocation4 + $0x360] sm:$0xff] %vm794_vm4, %v2124_v10  ;;  %3958 = vmatprep.mubr.bf16.mxu0 %v3346_v11  ;;  %v2966_v42 = vpack.c.bf16 %v2942_v5, %v2941_v3  ;;  %v2753_v57 = vld [vmem:[#allocation2 + $0x138] sm:$0xff]  ;;  %v2754_v1 = vld [vmem:[#allocation2 + $0x140] sm:$0xff] }
 0x203   : > { %v9622_v58 = vpop.f32.mrb[23].mxu0  ;;  %2877 = vrot.lane.b32.xlu0 %v2838_v22, %s10918_s22  ;;  %v2776_v39 = vpack.c.bf16 %v2754_v1, %v2753_v57  ;;  %v3071_v11 = vld [vmem:[#allocation2 + $0x123] sm:$0xff] }
 0x204   : > { %v3889_v9 = vadd.f32 %v12248_v2, %v9620_v24  ;;  %v9623_v13 = vadd.f32 %v9622_v58, %v9621_v60  ;;  %v1676_v6 = vpop.permute.xlu1 %1675  ;;  %v3345_v15 = vld [vmem:[#allocation4 + $0x310] sm:$0xff] }
 0x205   : > { %1708 = vst.msk [vmem:[#allocation4 + $0x358] sm:$0xff] %vm794_vm4, %v1676_v6  ;;  %3959 = vmatmul.mubr.bf16.gmra.mrb[56].mxu0 %v3345_v15  ;;  %v2253_v49 = vpop.permute.xlu0 %2252  ;;  %v2305_v24 = vld [vmem:[#allocation2 + $0x129] sm:$0xff]  ;;  %v3095_v6 = vpack.c.bf16 %v3072_v12, %v3071_v11  ;;  %v2817_v15 = vld [vmem:[#allocation2 + $0x139] sm:$0xff] }
 0x206   : > { %v3892_v17 = vadd.f32 %v12248_v2, %v9623_v13  ;;  %2428 = vrot.lane.b32.xlu1 %v2965_v55, %s10918_s22  ;;  %v12301_v23 = vadd.f32 %v12271_v50, %v3889_v9  ;;  %2285 = vst.msk [vmem:[#allocation4 + $0x360] sm:$0xff] %vm923_vm5, %v2253_v49  ;;  %v2815_v55 = vld [vmem:[#allocation2 + $0x121] sm:$0xff]  ;;  %v2327_v14 = vpack.c.bf16 %v2305_v24, %v2304_v53 }
 0x207   : > { %3005 = vrot.lane.b32.xlu0 %v2966_v42, %s10919_s23  ;;  %v2839_v8 = vpack.c.bf16 %v2816_v28, %v2815_v55  ;;  %2792 = vst.msk [vmem:[#allocation4 + $0x220] sm:$0xff] %vm327_vm0, %v2776_v39  ;;  %v2945_v55 = vld [vmem:[#allocation2 + $0x13a] sm:$0xff]  ;;  %v2755_v28 = vld [vmem:[#allocation2 + $0x150] sm:$0xff] }
 0x208   : > { %v1804_v56 = vpop.permute.xlu1 %1803  ;;  %v12305_v37 = vadd.f32 %v12276_v19, %v3892_v17  ;;  %2343 = vst.msk [vmem:[#allocation4 + $0x218] sm:$0xff] %vm327_vm0, %v2327_v14  ;;  %v2818_v17 = vld [vmem:[#allocation2 + $0x141] sm:$0xff] }
 0x209   : > { %1836 = vst.msk [vmem:[#allocation4 + $0x358] sm:$0xff] %vm923_vm5, %v1804_v56  ;;  %v1100_v31 = vpop.permute.xlu0 %1099  ;;  %v2840_v56 = vpack.c.bf16 %v2818_v17, %v2817_v15  ;;  %v3074_v14 = vld [vmem:[#allocation2 + $0x143] sm:$0xff] }
 0x20a   : > { %2556 = vrot.lane.b32.xlu1 %v3093_v21, %s10919_s23  ;;  %1132 = vst.msk [vmem:[#allocation4 + $0x350] sm:$0xff] %vm665_vm3, %v1100_v31  ;;  %v2944_v21 = vld [vmem:[#allocation2 + $0x12a] sm:$0xff]  ;;  %v2756_v31 = vld [vmem:[#allocation2 + $0x158] sm:$0xff] }
 0x20b   : > { %3133 = vrot.lane.b32.xlu0 %v3094_v25, %s10920_s24 }
 0x20c   : > { %v9736_v50 = vpop.f32.mrb[24].mxu1  ;;  %v648_v32 = vpop.permute.xlu1 %647 }
 0x20d   : > { %681 = vst.msk [vmem:[#allocation4 + $0x348] sm:$0xff] %vm665_vm3, %v648_v32  ;;  %v9737_v19 = vpop.f32.mrb[25].mxu1  ;;  %v1228_v60 = vpop.permute.xlu0 %1227  ;;  %v3355_v30 = vld [vmem:[#allocation4 + $0x360] sm:$0xff] }
 0x20e   : > { %v12313_v22 = vadd.f32 %v9737_v19, %v9736_v50  ;;  %v9739_v3 = vpop.f32.mrb[26].mxu1  ;;  %2684 = vrot.lane.b32.xlu1 %v11994_v33, %s10920_s24  ;;  %1260 = vst.msk [vmem:[#allocation4 + $0x350] sm:$0xff] %vm794_vm4, %v1228_v60  ;;  %4127 = vmatprep.mubr.bf16.mxu1 %v3355_v30  ;;  %v2967_v33 = vpack.c.bf16 %v2944_v21, %v2943_v29  ;;  %v2946_v32 = vld [vmem:[#allocation2 + $0x142] sm:$0xff] }
 0x20f   : > { %v9740_v5 = vpop.f32.mrb[27].mxu1  ;;  %2879 = vrot.lane.b32.xlu0 %v2839_v8, %s10918_s22  ;;  %v2777_v19 = vpack.c.bf16 %v2756_v31, %v2755_v28  ;;  %v2306_v8 = vld [vmem:[#allocation2 + $0x139] sm:$0xff]  ;;  %v2307_v29 = vld [vmem:[#allocation2 + $0x141] sm:$0xff]  ;;  %v2308_v31 = vld [vmem:[#allocation2 + $0x151] sm:$0xff] }
 0x210   : > { %v12318_v48 = vadd.f32 %v9740_v5, %v9739_v3  ;;  %v777_v10 = vpop.permute.xlu1 %776  ;;  %v3354_v58 = vld [vmem:[#allocation4 + $0x358] sm:$0xff]  ;;  %v2328_v21 = vpack.c.bf16 %v2307_v29, %v2306_v8  ;;  %v10802_v8 = vld [vmem:[%s14802_s2 + $0x188] sm:$0xff]  }
 0x211   : > { %810 = vst.msk [vmem:[#allocation4 + $0x348] sm:$0xff] %vm794_vm4, %v777_v10  ;;  %4128 = vmatmul.mubr.bf16.gmra.mrb[60].mxu1 %v3354_v58  ;;  %v1356_v9 = vpop.permute.xlu0 %1355  ;;  %v3073_v30 = vld [vmem:[#allocation2 + $0x13b] sm:$0xff] }
 0x212   : > { %2430 = vrot.lane.b32.xlu1 %v2966_v42, %s10918_s22  ;;  %1388 = vst.msk [vmem:[#allocation4 + $0x350] sm:$0xff] %vm923_vm5, %v1356_v9  ;;  %v3096_v9 = vpack.c.bf16 %v3074_v14, %v3073_v30 }
 0x213   : > { %3007 = vrot.lane.b32.xlu0 %v2967_v33, %s10919_s23  ;;  %2793 = vst.msk [vmem:[#allocation4 + $0x258] sm:$0xff] %vm327_vm0, %v2777_v19  ;;  %2344 = vst.msk [vmem:[#allocation4 + $0x250] sm:$0xff] %vm327_vm0, %v2328_v21 }
 0x214   : > { %v906_v13 = vpop.permute.xlu1 %905 }
 0x215   : > { %939 = vst.msk [vmem:[#allocation4 + $0x348] sm:$0xff] %vm923_vm5, %v906_v13  ;;  %v2894_v44 = vpop.permute.xlu0 %2893  ;;  %v2820_v13 = vld [vmem:[#allocation2 + $0x159] sm:$0xff] }
 0x216   : > { %2558 = vrot.lane.b32.xlu1 %v3094_v25, %s10919_s23  ;;  %2926 = vst.msk [vmem:[#allocation4 + $0x370] sm:$0xff] %vm665_vm3, %v2894_v44 }
 0x217   : > { %3135 = vrot.lane.b32.xlu0 %v3095_v6, %s10920_s24 }
 0x218   : > { %v2445_v61 = vpop.permute.xlu1 %2444  ;;  %v9624_v42 = vpop.f32.mrb[24].mxu0 }
 0x219   : > { %2477 = vst.msk [vmem:[#allocation4 + $0x368] sm:$0xff] %vm665_vm3, %v2445_v61  ;;  %v9625_v49 = vpop.f32.mrb[25].mxu0  ;;  %v3022_v57 = vpop.permute.xlu0 %3021  ;;  %v3353_v3 = vld [vmem:[#allocation4 + $0x350] sm:$0xff] }
 0x21a   : > { %v9626_v50 = vadd.f32 %v9625_v49, %v9624_v42  ;;  %2686 = vrot.lane.b32.xlu1 %v12045_v47, %s10920_s24  ;;  %v9627_v25 = vpop.f32.mrb[26].mxu0  ;;  %3054 = vst.msk [vmem:[#allocation4 + $0x370] sm:$0xff] %vm794_vm4, %v3022_v57  ;;  %3966 = vmatprep.mubr.bf16.mxu0 %v3353_v3  ;;  %v2968_v47 = vpack.c.bf16 %v2946_v32, %v2945_v55  ;;  %v2947_v61 = vld [vmem:[#allocation2 + $0x152] sm:$0xff]  ;;  %v2757_v42 = vld [vmem:[#allocation2 + $0x168] sm:$0xff] }
 0x21b   : > { %v9628_v1 = vpop.f32.mrb[27].mxu0  ;;  %2881 = vrot.lane.b32.xlu0 %v2840_v56, %s10918_s22  ;;  %v2758_v49 = vld [vmem:[#allocation2 + $0x170] sm:$0xff] }
 0x21c   : > { %v3897_v39 = vadd.f32 %v12248_v2, %v9626_v50  ;;  %v9629_v53 = vadd.f32 %v9628_v1, %v9627_v25  ;;  %v2573_v24 = vpop.permute.xlu1 %2572  ;;  %v3352_v60 = vld [vmem:[#allocation4 + $0x348] sm:$0xff]  ;;  %v2778_v28 = vpack.c.bf16 %v2758_v49, %v2757_v42  ;;  %v2309_v50 = vld [vmem:[#allocation2 + $0x159] sm:$0xff] }
 0x21d   : > { %2605 = vst.msk [vmem:[#allocation4 + $0x368] sm:$0xff] %vm794_vm4, %v2573_v24  ;;  %3967 = vmatmul.mubr.bf16.gmra.mrb[60].mxu0 %v3352_v60  ;;  %v3150_v58 = vpop.permute.xlu0 %3149  ;;  %v2329_v29 = vpack.c.bf16 %v2309_v50, %v2308_v31  ;;  %v3076_v24 = vld [vmem:[#allocation2 + $0x15b] sm:$0xff] }
 0x21e   : > { %v3900_v5 = vadd.f32 %v12248_v2, %v9629_v53  ;;  %2432 = vrot.lane.b32.xlu1 %v2967_v33, %s10918_s22  ;;  %v12343_v10 = vadd.f32 %v12313_v22, %v3897_v39  ;;  %3182 = vst.msk [vmem:[#allocation4 + $0x370] sm:$0xff] %vm923_vm5, %v3150_v58  ;;  %v2819_v33 = vld [vmem:[#allocation2 + $0x151] sm:$0xff]  ;;  %v10906_v39 = vld [vmem:[%s14802_s2 + $0x180] sm:$0xff]  }
 0x21f   : > { %3009 = vrot.lane.b32.xlu0 %v2968_v47, %s10919_s23  ;;  %v2841_v44 = vpack.c.bf16 %v2820_v13, %v2819_v33  ;;  %2794 = vst.msk [vmem:[#allocation4 + $0x290] sm:$0xff] %vm327_vm0, %v2778_v28  ;;  %2345 = vst.msk [vmem:[#allocation4 + $0x288] sm:$0xff] %vm327_vm0, %v2329_v29  ;;  %v3075_v53 = vld [vmem:[#allocation2 + $0x153] sm:$0xff]  ;;  %v3267_v58 = vld [vmem:[#allocation4 + $0xa0] sm:$0xff] }
 0x220   : > { %v2701_v11 = vpop.permute.xlu1 %2700  ;;  %v12347_v12 = vadd.f32 %v12318_v48, %v3900_v5  ;;  %v3097_v30 = vpack.c.bf16 %v3076_v24, %v3075_v53  ;;  %v3281_v29 = vld [vmem:[#allocation4 + $0x110] sm:$0xff] }
 0x221   : > { %2733 = vst.msk [vmem:[#allocation4 + $0x368] sm:$0xff] %vm923_vm5, %v2701_v11  ;;  %v2864_v15 = vpop.permute.xlu0 %2863 }
 0x222   : > { %2560 = vrot.lane.b32.xlu1 %v3095_v6, %s10919_s23  ;;  %2911 = vst.msk [vmem:[#allocation4 + $0x28] sm:$0xff] %vm665_vm3, %v2864_v15  ;;  %v2948_v6 = vld [vmem:[#allocation2 + $0x15a] sm:$0xff] }
 0x223   : > { %3137 = vrot.lane.b32.xlu0 %v3096_v9, %s10920_s24  ;;  %v2969_v21 = vpack.c.bf16 %v2948_v6, %v2947_v61  ;;  %v2759_v15 = vld [vmem:[#allocation2 + $0x180] sm:$0xff] }
 0x224   : > { %v9742_v22 = vpop.f32.mrb[28].mxu1  ;;  %v2415_v17 = vpop.permute.xlu1 %2414 }
 0x225   : > { %2462 = vst.msk [vmem:[#allocation4 + $0x20] sm:$0xff] %vm665_vm3, %v2415_v17  ;;  %v9743_v48 = vpop.f32.mrb[29].mxu1  ;;  %v2992_v25 = vpop.permute.xlu0 %2991  ;;  %v3357_v19 = vld [vmem:[#allocation4 + $0x370] sm:$0xff] }
 0x226   : > { %v12355_v56 = vadd.f32 %v9743_v48, %v9742_v22  ;;  %v9745_v55 = vpop.f32.mrb[30].mxu1  ;;  %2688 = vrot.lane.b32.xlu1 %v12087_v4, %s10920_s24  ;;  %3039 = vst.msk [vmem:[#allocation4 + $0x28] sm:$0xff] %vm794_vm4, %v2992_v25  ;;  %4288 = vmatprep.mubr.bf16.mxu1 %v3357_v19  ;;  %v3253_v4 = vld [vmem:[#allocation4 + $0x30] sm:$0xff]  ;;  %v2760_v22 = vld [vmem:[#allocation2 + $0x188] sm:$0xff] }
 0x227   : > { %v9746_v32 = vpop.f32.mrb[31].mxu1  ;;  %2883 = vrot.lane.b32.xlu0 %v2841_v44, %s10918_s22  ;;  %v2949_v48 = vld [vmem:[#allocation2 + $0x16a] sm:$0xff]  ;;  %v2950_v44 = vld [vmem:[#allocation2 + $0x172] sm:$0xff]  ;;  %v2779_v61 = vpack.c.bf16 %v2760_v22, %v2759_v15 }
 0x228   : > { %v12363_v57 = vadd.f32 %v9746_v32, %v9745_v55  ;;  %v2543_v1 = vpop.permute.xlu1 %2542  ;;  %v3356_v3 = vld [vmem:[#allocation4 + $0x368] sm:$0xff]  ;;  %v3274_v32 = vld [vmem:[#allocation4 + $0xd8] sm:$0xff] }
 0x229   : > { %2590 = vst.msk [vmem:[#allocation4 + $0x20] sm:$0xff] %vm794_vm4, %v2543_v1  ;;  %4289 = vmatmul.mubr.bf16.vlgmr.msra.gmra.mrb[64].mxu1 %v3356_v3  ;;  %v3120_v60 = vpop.permute.xlu0 %3119 }
 0x22a   : > { %2434 = vrot.lane.b32.xlu1 %v2968_v47, %s10918_s22  ;;  %10639 = vmatpush3.bf16.msra.mxu1 %v10906_v39  ;;  %3167 = vst.msk [vmem:[#allocation4 + $0x28] sm:$0xff] %vm923_vm5, %v3120_v60  ;;  %v3260_v47 = vld [vmem:[#allocation4 + $0x68] sm:$0xff]  ;;  %v2762_v39 = vld [vmem:[#allocation2 + $0x1a0] sm:$0xff] }
 0x22b   : > { %10640 = vmatprep.subr.bf16.mxu1 %v10802_v8  ;;  %10642 = vmatprep.mubr.msk.bf16.mxu1 %vm327_vm0, %v3253_v4  ;;  %2795 = vst.msk [vmem:[#allocation4 + $0x2c8] sm:$0xff] %vm327_vm0, %v2779_v61  ;;  %v3288_v60 = vld [vmem:[#allocation4 + $0x148] sm:$0xff]  ;;  %v3302_v61 = vld [vmem:[#allocation4 + $0x1b8] sm:$0xff] }
 0x22c   : > { %v2671_v5 = vpop.permute.xlu1 %2670  ;;  %3011 = vrot.lane.b32.xlu0 %v2969_v21, %s10919_s23 }
 0x22d   : > { %2718 = vst.msk [vmem:[#allocation4 + $0x20] sm:$0xff] %vm923_vm5, %v2671_v5  ;;  %v2866_v14 = vpop.permute.xlu0 %2865  ;;  %v2951_v5 = vld [vmem:[#allocation2 + $0x182] sm:$0xff] }
 0x22e   : > { %2562 = vrot.lane.b32.xlu1 %v3096_v9, %s10919_s23  ;;  %10641 = vmatpush3.bf16.msra.mxu1 %v10802_v8  ;;  %2912 = vst.msk [vmem:[#allocation4 + $0x60] sm:$0xff] %vm665_vm3, %v2866_v14 }
 0x230   : > { %v2417_v11 = vpop.permute.xlu1 %2416  ;;  %v9630_v33 = vpop.f32.mrb[28].mxu0  ;;  %3139 = vrot.lane.b32.xlu0 %v3097_v30, %s10920_s24 }
 0x231   : > { %2463 = vst.msk [vmem:[#allocation4 + $0x58] sm:$0xff] %vm665_vm3, %v2417_v11  ;;  %v9631_v13 = vpop.f32.mrb[29].mxu0  ;;  %10643 = vmatmul.mubr.msk.bf16.vlgmr.msra.gmra.mrb[68].mxu1 %vm327_vm0, %v3260_v47  ;;  %v2994_v42 = vpop.permute.xlu0 %2993  ;;  %v3252_v55 = vld [vmem:[#allocation4 + $0x28] sm:$0xff] }
 0x232   : > { %v9632_v17 = vadd.f32 %v9631_v13, %v9630_v33  ;;  %2690 = vrot.lane.b32.xlu1 %v11848_v52, %s10920_s24  ;;  %v9633_v9 = vpop.f32.mrb[30].mxu0  ;;  %10646 = vmatprep.mubr.msk.bf16.mxu1 %vm327_vm0, %v3267_v58  ;;  %3040 = vst.msk [vmem:[#allocation4 + $0x60] sm:$0xff] %vm794_vm4, %v2994_v42  ;;  %v2970_v52 = vpack.c.bf16 %v2950_v44, %v2949_v48  ;;  %v2502_v33 = vld [vmem:[#allocation2 + $0x16b] sm:$0xff]  ;;  %v2503_v13 = vld [vmem:[#allocation2 + $0x173] sm:$0xff] }
 0x233   : > { %v9634_v49 = vpop.f32.mrb[31].mxu0  ;;  %4168 = vmatprep.mubr.bf16.mxu0 %v3252_v55  ;;  %v3309_v55 = vld [vmem:[#allocation4 + $0x1f0] sm:$0xff] }
 0x234   : > { %v3905_v6 = vadd.f32 %v12248_v2, %v9632_v17  ;;  %v9635_v28 = vadd.f32 %v9634_v49, %v9633_v9  ;;  %v2545_v31 = vpop.permute.xlu1 %2544  ;;  %v3251_v50 = vld [vmem:[#allocation4 + $0x20] sm:$0xff]  ;;  %2885 = vrot.lane.b32.xlu0 %v12122_v62, %s10918_s22  ;;  %v2522_v9 = vpack.c.bf16 %v2503_v13, %v2502_v33 }
 0x235   : > { %2591 = vst.msk [vmem:[#allocation4 + $0x58] sm:$0xff] %vm794_vm4, %v2545_v31  ;;  %4169 = vmatmul.mubr.bf16.vlgmr.msra.gmra.mrb[64].mxu0 %v3251_v50  ;;  %v3122_v8 = vpop.permute.xlu0 %3121  ;;  %v3295_v17 = vld [vmem:[#allocation4 + $0x180] sm:$0xff]  ;;  %v2764_v31 = vld [vmem:[#allocation2 + $0x1b8] sm:$0xff] }
 0x236   : > { %v3908_v25 = vadd.f32 %v12248_v2, %v9635_v28  ;;  %2436 = vrot.lane.b32.xlu1 %v2969_v21, %s10918_s22  ;;  %v12394_v19 = vadd.f32 %v12355_v56, %v3905_v6  ;;  %3168 = vst.msk [vmem:[#allocation4 + $0x60] sm:$0xff] %vm923_vm5, %v3122_v8  ;;  %v2761_v21 = vld [vmem:[#allocation2 + $0x198] sm:$0xff]  ;;  %v2763_v28 = vld [vmem:[#allocation2 + $0x1b0] sm:$0xff]  ;;  %v3323_v33 = vld [vmem:[#allocation4 + $0x260] sm:$0xff] }
 0x237   : > { %v2780_v47 = vpack.c.bf16 %v2762_v39, %v2761_v21  ;;  %v2781_v8 = vpack.c.bf16 %v2764_v31, %v2763_v28  ;;  %v3337_v28 = vld [vmem:[#allocation4 + $0x2d0] sm:$0xff] }
 0x238   : > { %v2673_v1 = vpop.permute.xlu1 %2672  ;;  %v12398_v3 = vadd.f32 %v12363_v57, %v3908_v25  ;;  %3013 = vrot.lane.b32.xlu0 %v2970_v52, %s10919_s23  ;;  %v2953_v25 = vld [vmem:[#allocation2 + $0x19a] sm:$0xff] }
 0x239   : > { %2719 = vst.msk [vmem:[#allocation4 + $0x58] sm:$0xff] %vm923_vm5, %v2673_v1  ;;  %10647 = vmatmul.mubr.msk.bf16.gmra.mrb[72].mxu1 %vm327_vm0, %v3274_v32  ;;  %v2868_v62 = vpop.permute.xlu0 %2867  ;;  %v2954_v32 = vld [vmem:[#allocation2 + $0x1a2] sm:$0xff]  ;;  %v3083_v31 = vld [vmem:[#allocation2 + $0x1b3] sm:$0xff] }
 0x23a   : > { %2564 = vrot.lane.b32.xlu1 %v3097_v30, %s10919_s23  ;;  %10650 = vmatprep.mubr.msk.bf16.mxu1 %vm327_vm0, %v3281_v29  ;;  %2913 = vst.msk [vmem:[#allocation4 + $0x98] sm:$0xff] %vm665_vm3, %v2868_v62  ;;  %v2952_v30 = vld [vmem:[#allocation2 + $0x18a] sm:$0xff] }
 0x23b   : > { %2796 = vst.msk [vmem:[#allocation4 + $0x300] sm:$0xff] %vm327_vm0, %v2780_v47  ;;  %2797 = vst.msk [vmem:[#allocation4 + $0x338] sm:$0xff] %vm327_vm0, %v2781_v8  ;;  %v3344_v8 = vld [vmem:[#allocation4 + $0x308] sm:$0xff] }
 0x23c   : > { %v9748_v56 = vpop.f32.mrb[32].mxu1  ;;  %v2419_v4 = vpop.permute.xlu1 %2418  ;;  %3141 = vrot.lane.b32.xlu0 %v11883_v26, %s10920_s24 }
 0x23d   : > { %2464 = vst.msk [vmem:[#allocation4 + $0x90] sm:$0xff] %vm665_vm3, %v2419_v4  ;;  %v9749_v57 = vpop.f32.mrb[33].mxu1  ;;  %v2996_v14 = vpop.permute.xlu0 %2995  ;;  %v3259_v11 = vld [vmem:[#allocation4 + $0x60] sm:$0xff] }
 0x23e   : > { %v12409_v53 = vadd.f32 %v9749_v57, %v9748_v56  ;;  %v9751_v24 = vpop.f32.mrb[34].mxu1  ;;  %2692 = vrot.lane.b32.xlu1 %v11907_v35, %s10920_s24  ;;  %3041 = vst.msk [vmem:[#allocation4 + $0x98] sm:$0xff] %vm794_vm4, %v2996_v14  ;;  %4176 = vmatprep.mubr.bf16.mxu0 %v3259_v11  ;;  %v2971_v35 = vpack.c.bf16 %v2952_v30, %v2951_v5  ;;  %v2504_v56 = vld [vmem:[#allocation2 + $0x183] sm:$0xff]  ;;  %v3081_v5 = vld [vmem:[#allocation2 + $0x19b] sm:$0xff] }
 0x23f   : > { %v9752_v58 = vpop.f32.mrb[35].mxu1  ;;  %v3082_v30 = vld [vmem:[#allocation2 + $0x1a3] sm:$0xff] }
 0x240   : > { %v12414_v26 = vadd.f32 %v9752_v58, %v9751_v24  ;;  %v2547_v15 = vpop.permute.xlu1 %2546  ;;  %v3258_v22 = vld [vmem:[#allocation4 + $0x58] sm:$0xff]  ;;  %2887 = vrot.lane.b32.xlu0 %v12145_v51, %s10918_s22  ;;  %v3316_v58 = vld [vmem:[#allocation4 + $0x228] sm:$0xff]  ;;  %v3100_v13 = vpack.c.bf16 %v3082_v30, %v3081_v5 }
 0x241   : > { %2592 = vst.msk [vmem:[#allocation4 + $0x90] sm:$0xff] %vm794_vm4, %v2547_v15  ;;  %4177 = vmatmul.mubr.bf16.gmra.mrb[68].mxu0 %v3258_v22  ;;  %10651 = vmatmul.mubr.msk.bf16.gmra.mrb[76].mxu1 %vm327_vm0, %v3288_v60  ;;  %v3124_v48 = vpop.permute.xlu0 %3123 }
 0x242   : > { %2438 = vrot.lane.b32.xlu1 %v2970_v52, %s10918_s22  ;;  %10654 = vmatprep.mubr.msk.bf16.mxu1 %vm327_vm0, %v3295_v17  ;;  %3169 = vst.msk [vmem:[#allocation4 + $0x98] sm:$0xff] %vm923_vm5, %v3124_v48  ;;  %v2956_v48 = vld [vmem:[#allocation2 + $0x1ba] sm:$0xff] }
 0x244   : > { %v2675_v44 = vpop.permute.xlu1 %2674  ;;  %3015 = vrot.lane.b32.xlu0 %v2971_v35, %s10919_s23 }
 0x245   : > { %2720 = vst.msk [vmem:[#allocation4 + $0x90] sm:$0xff] %vm923_vm5, %v2675_v44  ;;  %v2870_v51 = vpop.permute.xlu0 %2869 }
 0x246   : > { %2566 = vrot.lane.b32.xlu1 %v2522_v9, %s10919_s23  ;;  %2914 = vst.msk [vmem:[#allocation4 + $0xd0] sm:$0xff] %vm665_vm3, %v2870_v51  ;;  %v2955_v9 = vld [vmem:[#allocation2 + $0x1b2] sm:$0xff] }
 0x248   : > { %v2421_v42 = vpop.permute.xlu1 %2420  ;;  %v9636_v49 = vpop.f32.mrb[32].mxu0  ;;  %3143 = vrot.lane.b32.xlu0 %v11941_v63, %s10920_s24  ;;  %v2505_v63 = vld [vmem:[#allocation2 + $0x18b] sm:$0xff] }
 0x249   : > { %2465 = vst.msk [vmem:[#allocation4 + $0xc8] sm:$0xff] %vm665_vm3, %v2421_v42  ;;  %v9637_v6 = vpop.f32.mrb[33].mxu0  ;;  %10655 = vmatmul.mubr.msk.bf16.gmra.mrb[80].mxu1 %vm327_vm0, %v3302_v61  ;;  %v2998_v29 = vpop.permute.xlu0 %2997  ;;  %v3266_v62 = vld [vmem:[#allocation4 + $0x98] sm:$0xff]  ;;  %v2523_v60 = vpack.c.bf16 %v2505_v63, %v2504_v56 }
 0x24a   : > { %v9638_v50 = vadd.f32 %v9637_v6, %v9636_v49  ;;  %2694 = vrot.lane.b32.xlu1 %v11977_v38, %s10920_s24  ;;  %v9639_v52 = vpop.f32.mrb[34].mxu0  ;;  %10658 = vmatprep.mubr.msk.bf16.mxu1 %vm327_vm0, %v3309_v55  ;;  %3042 = vst.msk [vmem:[#allocation4 + $0xd0] sm:$0xff] %vm794_vm4, %v2998_v29  ;;  %v2972_v38 = vpack.c.bf16 %v2954_v32, %v2953_v25  ;;  %v3330_v42 = vld [vmem:[#allocation4 + $0x298] sm:$0xff] }
 0x24b   : > { %v9640_v1 = vpop.f32.mrb[35].mxu0  ;;  %4184 = vmatprep.mubr.bf16.mxu0 %v3266_v62  ;;  %v3351_v62 = vld [vmem:[#allocation4 + $0x340] sm:$0xff] }
 0x24c   : > { %v3913_v4 = vadd.f32 %v12248_v2, %v9638_v50  ;;  %v9641_v57 = vadd.f32 %v9640_v1, %v9639_v52  ;;  %v2549_v21 = vpop.permute.xlu1 %2548  ;;  %v3265_v39 = vld [vmem:[#allocation4 + $0x90] sm:$0xff]  ;;  %2889 = vrot.lane.b32.xlu0 %v12174_v46, %s10918_s22  ;;  %v3084_v50 = vld [vmem:[#allocation2 + $0x1bb] sm:$0xff] }
 0x24d   : > { %2593 = vst.msk [vmem:[#allocation4 + $0xc8] sm:$0xff] %vm794_vm4, %v2549_v21  ;;  %4185 = vmatmul.mubr.bf16.gmra.mrb[72].mxu0 %v3265_v39  ;;  %v3126_v14 = vpop.permute.xlu0 %3125  ;;  %v3101_v32 = vpack.c.bf16 %v3084_v50, %v3083_v31 }
 0x24e   : > { %v3916_v24 = vadd.f32 %v12248_v2, %v9641_v57  ;;  %2440 = vrot.lane.b32.xlu1 %v2971_v35, %s10918_s22  ;;  %v12444_v47 = vadd.f32 %v12409_v53, %v3913_v4  ;;  %3170 = vst.msk [vmem:[#allocation4 + $0xd0] sm:$0xff] %vm923_vm5, %v3126_v14 }
 0x250   : > { %v2677_v11 = vpop.permute.xlu1 %2676  ;;  %v12448_v46 = vadd.f32 %v12414_v26, %v3916_v24  ;;  %3017 = vrot.lane.b32.xlu0 %v2972_v38, %s10919_s23 }
 0x251   : > { %2721 = vst.msk [vmem:[#allocation4 + $0xc8] sm:$0xff] %vm923_vm5, %v2677_v11  ;;  %10659 = vmatmul.mubr.msk.bf16.gmra.mrb[84].mxu1 %vm327_vm0, %v3316_v58  ;;  %v2872_v53 = vpop.permute.xlu0 %2871  ;;  %v3358_v58 = vld [vmem:[#allocation4 + $0x378] sm:$0xff] }
 0x252   : > { %2568 = vrot.lane.b32.xlu1 %v2523_v60, %s10919_s23  ;;  %10662 = vmatprep.mubr.msk.bf16.mxu1 %vm327_vm0, %v3323_v33  ;;  %2915 = vst.msk [vmem:[#allocation4 + $0x108] sm:$0xff] %vm665_vm3, %v2872_v53 }
 0x254   : > { %v9754_v15 = vpop.f32.mrb[36].mxu1  ;;  %v2423_v22 = vpop.permute.xlu1 %2422  ;;  %3145 = vrot.lane.b32.xlu0 %v3100_v13, %s10920_s24 }
 0x255   : > { %2466 = vst.msk [vmem:[#allocation4 + $0x100] sm:$0xff] %vm665_vm3, %v2423_v22  ;;  %v9755_v26 = vpop.f32.mrb[37].mxu1  ;;  %v3000_v44 = vpop.permute.xlu0 %2999  ;;  %v3273_v61 = vld [vmem:[#allocation4 + $0xd0] sm:$0xff] }
 0x256   : > { %v9756_v17 = vadd.f32 %v9755_v26, %v9754_v15  ;;  %v9757_v35 = vpop.f32.mrb[38].mxu1  ;;  %2696 = vrot.lane.b32.xlu1 %v12196_v43, %s10920_s24  ;;  %3043 = vst.msk [vmem:[#allocation4 + $0x108] sm:$0xff] %vm794_vm4, %v3000_v44  ;;  %4192 = vmatprep.mubr.bf16.mxu0 %v3273_v61  ;;  %v2973_v43 = vpack.c.bf16 %v2956_v48, %v2955_v9 }
 0x257   : > { %v9758_v51 = vpop.f32.mrb[39].mxu1 }
 0x258   : > { %v9759_v49 = vadd.f32 %v9758_v51, %v9757_v35  ;;  %v2551_v55 = vpop.permute.xlu1 %2550  ;;  %v3272_v6 = vld [vmem:[#allocation4 + $0xc8] sm:$0xff]  ;;  %2891 = vrot.lane.b32.xlu0 %v12028_v16, %s10918_s22 }
 0x259   : > { %2594 = vst.msk [vmem:[#allocation4 + $0x100] sm:$0xff] %vm794_vm4, %v2551_v55  ;;  %4193 = vmatmul.mubr.bf16.gmra.mrb[76].mxu0 %v3272_v6  ;;  %10663 = vmatmul.mubr.msk.bf16.gmra.mrb[88].mxu1 %vm327_vm0, %v3330_v42  ;;  %v3128_v52 = vpop.permute.xlu0 %3127 }
 0x25a   : > { %2442 = vrot.lane.b32.xlu1 %v2972_v38, %s10918_s22  ;;  %10666 = vmatprep.mubr.msk.bf16.mxu1 %vm327_vm0, %v3337_v28  ;;  %3171 = vst.msk [vmem:[#allocation4 + $0x108] sm:$0xff] %vm923_vm5, %v3128_v52 }
 0x25c   : > { %v2679_v25 = vpop.permute.xlu1 %2678  ;;  %3019 = vrot.lane.b32.xlu0 %v2973_v43, %s10919_s23 }
 0x25d   : > { %2722 = vst.msk [vmem:[#allocation4 + $0x100] sm:$0xff] %vm923_vm5, %v2679_v25  ;;  %v2874_v16 = vpop.permute.xlu0 %2873 }
 0x25e   : > { %2570 = vrot.lane.b32.xlu1 %v3100_v13, %s10919_s23  ;;  %2916 = vst.msk [vmem:[#allocation4 + $0x140] sm:$0xff] %vm665_vm3, %v2874_v16 }
 0x260   : > { %v2425_v29 = vpop.permute.xlu1 %2424  ;;  %v9642_v1 = vpop.f32.mrb[36].mxu0  ;;  %3147 = vrot.lane.b32.xlu0 %v3101_v32, %s10920_s24 }
 0x261   : > { %2467 = vst.msk [vmem:[#allocation4 + $0x138] sm:$0xff] %vm665_vm3, %v2425_v29  ;;  %v9643_v56 = vpop.f32.mrb[37].mxu0  ;;  %10667 = vmatmul.mubr.msk.bf16.gmra.mrb[92].mxu1 %vm327_vm0, %v3344_v8  ;;  %v3002_v57 = vpop.permute.xlu0 %3001  ;;  %v3280_v39 = vld [vmem:[#allocation4 + $0x108] sm:$0xff] }
 0x262   : > { %v9644_v63 = vadd.f32 %v9643_v56, %v9642_v1  ;;  %2698 = vrot.lane.b32.xlu1 %v12208_v36, %s10920_s24  ;;  %v9645_v4 = vpop.f32.mrb[38].mxu0  ;;  %10670 = vmatprep.mubr.msk.bf16.mxu1 %vm327_vm0, %v3351_v62  ;;  %3044 = vst.msk [vmem:[#allocation4 + $0x140] sm:$0xff] %vm794_vm4, %v3002_v57  ;;  %v12503_v62 = vld [vmem:[%s14803_s3] ss:$0 sm:$0xff] }
 0x263   : > { %v9646_v21 = vpop.f32.mrb[39].mxu0  ;;  %4200 = vmatprep.mubr.bf16.mxu0 %v3280_v39 }
 0x264   : > { %v3921_v38 = vadd.f32 %v12248_v2, %v9644_v63  ;;  %v9647_v24 = vadd.f32 %v9646_v21, %v9645_v4  ;;  %v2553_v60 = vpop.permute.xlu1 %2552  ;;  %v3279_v5 = vld [vmem:[#allocation4 + $0x100] sm:$0xff] }
 0x265   : > { %2595 = vst.msk [vmem:[#allocation4 + $0x138] sm:$0xff] %vm794_vm4, %v2553_v60  ;;  %4201 = vmatmul.mubr.bf16.gmra.mrb[80].mxu0 %v3279_v5  ;;  %v3130_v14 = vpop.permute.xlu0 %3129 }
 0x266   : > { %v3924_v30 = vadd.f32 %v12248_v2, %v9647_v24  ;;  %v12482_v36 = vadd.f32 %v9756_v17, %v3921_v38  ;;  %3172 = vst.msk [vmem:[#allocation4 + $0x140] sm:$0xff] %vm923_vm5, %v3130_v14 }
 0x268   : > { %v2681_v11 = vpop.permute.xlu1 %2680  ;;  %v12485_v33 = vadd.f32 %v9759_v49, %v3924_v30 }
 0x269   : > { %2723 = vst.msk [vmem:[#allocation4 + $0x138] sm:$0xff] %vm923_vm5, %v2681_v11  ;;  %10671 = vmatmul.mubr.msk.bf16.gmra.mrb[96].mxu1 %vm327_vm0, %v3358_v58  ;;  %v2876_v13 = vpop.permute.xlu0 %2875 }
 0x26a   : > { %2917 = vst.msk [vmem:[#allocation4 + $0x178] sm:$0xff] %vm665_vm3, %v2876_v13 }
 0x26c   : > { %v9760_v53 = vpop.f32.mrb[40].mxu1  ;;  %v2427_v15 = vpop.permute.xlu1 %2426 }
 0x26d   : > { %2468 = vst.msk [vmem:[#allocation4 + $0x170] sm:$0xff] %vm665_vm3, %v2427_v15  ;;  %v9761_v22 = vpop.f32.mrb[41].mxu1  ;;  %v3004_v35 = vpop.permute.xlu0 %3003  ;;  %v3287_v48 = vld [vmem:[#allocation4 + $0x140] sm:$0xff] }
 0x26e   : > { %v9762_v26 = vadd.f32 %v9761_v22, %v9760_v53  ;;  %v9763_v17 = vpop.f32.mrb[42].mxu1  ;;  %3045 = vst.msk [vmem:[#allocation4 + $0x178] sm:$0xff] %vm794_vm4, %v3004_v35  ;;  %4208 = vmatprep.mubr.bf16.mxu0 %v3287_v48  ;;  %v4587_v48 = vld [vmem:[#allocation3 + $0x9] sm:$0xff] }
 0x26f   : > { %v9764_v9 = vpop.f32.mrb[43].mxu1 }
 0x270   : > { %v9765_v44 = vadd.f32 %v9764_v9, %v9763_v17  ;;  %v2555_v51 = vpop.permute.xlu1 %2554  ;;  %v3286_v61 = vld [vmem:[#allocation4 + $0x138] sm:$0xff]  ;;  %v4780_v17 = vld [vmem:[#allocation3 + $0xb] sm:$0xff]  ;;  %v4586_v9 = vld [vmem:[#allocation3 + $0x1] sm:$0xff] }
 0x271   : > { %2596 = vst.msk [vmem:[#allocation4 + $0x170] sm:$0xff] %vm794_vm4, %v2555_v51  ;;  %4209 = vmatmul.mubr.bf16.gmra.mrb[84].mxu0 %v3286_v61  ;;  %v3132_v42 = vpop.permute.xlu0 %3131 }
 0x272   : > { %3173 = vst.msk [vmem:[#allocation4 + $0x178] sm:$0xff] %vm923_vm5, %v3132_v42 }
 0x274   : > { %v2683_v49 = vpop.permute.xlu1 %2682 }
 0x275   : > { %2724 = vst.msk [vmem:[#allocation4 + $0x170] sm:$0xff] %vm923_vm5, %v2683_v49  ;;  %v2878_v55 = vpop.permute.xlu0 %2877 }
 0x276   : > { %2918 = vst.msk [vmem:[#allocation4 + $0x1b0] sm:$0xff] %vm665_vm3, %v2878_v55 }
 0x278   : > { %v2429_v6 = vpop.permute.xlu1 %2428  ;;  %v9648_v28 = vpop.f32.mrb[40].mxu0 }
 0x279   : > { %2469 = vst.msk [vmem:[#allocation4 + $0x1a8] sm:$0xff] %vm665_vm3, %v2429_v6  ;;  %v9649_v43 = vpop.f32.mrb[41].mxu0  ;;  %v3006_v52 = vpop.permute.xlu0 %3005  ;;  %v3294_v32 = vld [vmem:[#allocation4 + $0x178] sm:$0xff] }
 0x27a   : > { %v9650_v31 = vadd.f32 %v9649_v43, %v9648_v28  ;;  %v9651_v50 = vpop.f32.mrb[42].mxu0  ;;  %3046 = vst.msk [vmem:[#allocation4 + $0x1b0] sm:$0xff] %vm794_vm4, %v3006_v52  ;;  %4216 = vmatprep.mubr.bf16.mxu0 %v3294_v32 }
 0x27b   : > { %v9652_v25 = vpop.f32.mrb[43].mxu0 }
 0x27c   : > { %v3929_v16 = vadd.f32 %v12248_v2, %v9650_v31  ;;  %v9653_v8 = vadd.f32 %v9652_v25, %v9651_v50  ;;  %v2557_v29 = vpop.permute.xlu1 %2556  ;;  %v3293_v1 = vld [vmem:[#allocation4 + $0x170] sm:$0xff] }
 0x27d   : > { %2597 = vst.msk [vmem:[#allocation4 + $0x1a8] sm:$0xff] %vm794_vm4, %v2557_v29  ;;  %4217 = vmatmul.mubr.bf16.gmra.mrb[88].mxu0 %v3293_v1  ;;  %v3134_v4 = vpop.permute.xlu0 %3133  ;;  %v4588_v1 = vld [vmem:[#allocation3 + $0x19] sm:$0xff] }
 0x27e   : > { %v3932_v56 = vadd.f32 %v12503_v62, %v9653_v8  ;;  %v12506_v63 = vadd.f32 %v9762_v26, %v3929_v16  ;;  %3174 = vst.msk [vmem:[#allocation4 + $0x1b0] sm:$0xff] %vm923_vm5, %v3134_v4  ;;  %v4779_v26 = vld [vmem:[#allocation3 + $0x3] sm:$0xff]  ;;  %v4781_v16 = vld [vmem:[#allocation3 + $0x1b] sm:$0xff] }
 0x27f   : > { %v4811_v35 = vpack.c.bf16 %v4780_v17, %v4779_v26  ;;  %v4782_v8 = vld [vmem:[#allocation3 + $0x23] sm:$0xff] }
 0x280   : > { %v2685_v2 = vpop.permute.xlu1 %2684  ;;  %v12509_v57 = vadd.f32 %v9765_v44, %v3932_v56  ;;  %v4618_v44 = vpack.c.bf16 %v4587_v48, %v4586_v9  ;;  %v4812_v29 = vpack.c.bf16 %v4782_v8, %v4781_v16  ;;  %v4589_v56 = vld [vmem:[#allocation3 + $0x21] sm:$0xff] }
 0x281   : > { %2725 = vst.msk [vmem:[#allocation4 + $0x1a8] sm:$0xff] %vm923_vm5, %v2685_v2  ;;  %v2880_v21 = vpop.permute.xlu0 %2879  ;;  %4843 = vrot.lane.b32.xlu0 %v4811_v35, %s10919_s23  ;;  %v4619_v2 = vpack.c.bf16 %v4589_v56, %v4588_v1 }
 0x282   : > { %2919 = vst.msk [vmem:[#allocation4 + $0x1e8] sm:$0xff] %vm665_vm3, %v2880_v21  ;;  %4650 = vrot.lane.b32.xlu1 %v4618_v44, %s10919_s23 }
 0x284   : > { %v9766_v39 = vpop.f32.mrb[44].mxu1  ;;  %v2431_v38 = vpop.permute.xlu1 %2430 }
 0x285   : > { %2470 = vst.msk [vmem:[#allocation4 + $0x1e0] sm:$0xff] %vm665_vm3, %v2431_v38  ;;  %v9767_v24 = vpop.f32.mrb[45].mxu1  ;;  %v3008_v30 = vpop.permute.xlu0 %3007  ;;  %v3301_v58 = vld [vmem:[#allocation4 + $0x1b0] sm:$0xff]  ;;  %4845 = vrot.lane.b32.xlu0 %v4812_v29, %s10919_s23 }
 0x286   : > { %v12534_v60 = vadd.f32 %v9767_v24, %v9766_v39  ;;  %v9769_v5 = vpop.f32.mrb[46].mxu1  ;;  %3047 = vst.msk [vmem:[#allocation4 + $0x1e8] sm:$0xff] %vm794_vm4, %v3008_v30  ;;  %4224 = vmatprep.mubr.bf16.mxu0 %v3301_v58  ;;  %4652 = vrot.lane.b32.xlu1 %v4619_v2, %s10919_s23 }
 0x287   : > { %v9770_v14 = vpop.f32.mrb[47].mxu1 }
 0x288   : > { %v12537_v11 = vadd.f32 %v9770_v14, %v9769_v5  ;;  %v2559_v13 = vpop.permute.xlu1 %2558  ;;  %v3300_v53 = vld [vmem:[#allocation4 + $0x1a8] sm:$0xff] }
 0x289   : > { %2598 = vst.msk [vmem:[#allocation4 + $0x1e0] sm:$0xff] %vm794_vm4, %v2559_v13  ;;  %4225 = vmatmul.mubr.bf16.gmra.mrb[92].mxu0 %v3300_v53  ;;  %v3136_v15 = vpop.permute.xlu0 %3135 }
 0x28a   : > { %3175 = vst.msk [vmem:[#allocation4 + $0x1e8] sm:$0xff] %vm923_vm5, %v3136_v15 }
 0x28c   : > { %v2687_v22 = vpop.permute.xlu1 %2686 }
 0x28d   : > { %2726 = vst.msk [vmem:[#allocation4 + $0x1e0] sm:$0xff] %vm923_vm5, %v2687_v22  ;;  %v2882_v51 = vpop.permute.xlu0 %2881 }
 0x28e   : > { %2920 = vst.msk [vmem:[#allocation4 + $0x220] sm:$0xff] %vm665_vm3, %v2882_v51 }
 0x290   : > { %v2433_v61 = vpop.permute.xlu1 %2432  ;;  %v9654_v42 = vpop.f32.mrb[44].mxu0 }
 0x291   : > { %2471 = vst.msk [vmem:[#allocation4 + $0x218] sm:$0xff] %vm665_vm3, %v2433_v61  ;;  %v9655_v49 = vpop.f32.mrb[45].mxu0  ;;  %v3010_v28 = vpop.permute.xlu0 %3009  ;;  %v3308_v31 = vld [vmem:[#allocation4 + $0x1e8] sm:$0xff] }
 0x292   : > { %v9656_v55 = vadd.f32 %v9655_v49, %v9654_v42  ;;  %v9657_v6 = vpop.f32.mrb[46].mxu0  ;;  %3048 = vst.msk [vmem:[#allocation4 + $0x220] sm:$0xff] %vm794_vm4, %v3010_v28  ;;  %4232 = vmatprep.mubr.bf16.mxu0 %v3308_v31 }
 0x293   : > { %v9658_v43 = vpop.f32.mrb[47].mxu0 }
 0x294   : > { %v3937_v50 = vadd.f32 %v12503_v62, %v9656_v55  ;;  %v9659_v52 = vadd.f32 %v9658_v43, %v9657_v6  ;;  %v2561_v25 = vpop.permute.xlu1 %2560  ;;  %v3307_v32 = vld [vmem:[#allocation4 + $0x1e0] sm:$0xff] }
 0x295   : > { %2599 = vst.msk [vmem:[#allocation4 + $0x218] sm:$0xff] %vm794_vm4, %v2561_v25  ;;  %4233 = vmatmul.mubr.bf16.gmra.mrb[96].mxu0 %v3307_v32  ;;  %v3138_v21 = vpop.permute.xlu0 %3137 }
 0x296   : > { %v3940_v4 = vadd.f32 %v12503_v62, %v9659_v52  ;;  %v12615_v0 = vadd.f32 %v12534_v60, %v3937_v50  ;;  %3176 = vst.msk [vmem:[#allocation4 + $0x220] sm:$0xff] %vm923_vm5, %v3138_v21 }
 0x298   : > { %v2689_v39 = vpop.permute.xlu1 %2688  ;;  %v12621_v38 = vadd.f32 %v12537_v11, %v3940_v4 }
 0x299   : > { %2727 = vst.msk [vmem:[#allocation4 + $0x218] sm:$0xff] %vm923_vm5, %v2689_v39  ;;  %v2884_v24 = vpop.permute.xlu0 %2883 }
 0x29a   : > { %2921 = vst.msk [vmem:[#allocation4 + $0x258] sm:$0xff] %vm665_vm3, %v2884_v24 }
 0x29c   : > { %v9772_v5 = vpop.f32.mrb[48].mxu1  ;;  %v2435_v30 = vpop.permute.xlu1 %2434 }
 0x29d   : > { %2472 = vst.msk [vmem:[#allocation4 + $0x250] sm:$0xff] %vm665_vm3, %v2435_v30  ;;  %v9773_v60 = vpop.f32.mrb[49].mxu1  ;;  %v3315_v15 = vld [vmem:[#allocation4 + $0x220] sm:$0xff] }
 0x29e   : > { %v9774_v14 = vadd.f32 %v9773_v60, %v9772_v5  ;;  %v9775_v58 = vpop.f32.mrb[50].mxu1  ;;  %v3012_v13 = vpop.permute.xlu0 %3011  ;;  %4240 = vmatprep.mubr.bf16.mxu0 %v3315_v15 }
 0x29f   : > { %v9776_v53 = vpop.f32.mrb[51].mxu1  ;;  %3049 = vst.msk [vmem:[#allocation4 + $0x258] sm:$0xff] %vm794_vm4, %v3012_v13 }
 0x2a0   : > { %v9777_v22 = vadd.f32 %v9776_v53, %v9775_v58  ;;  %v2563_v11 = vpop.permute.xlu1 %2562  ;;  %v3314_v26 = vld [vmem:[#allocation4 + $0x218] sm:$0xff] }
 0x2a1   : > { %2600 = vst.msk [vmem:[#allocation4 + $0x250] sm:$0xff] %vm794_vm4, %v2563_v11  ;;  %4241 = vmatmul.mubr.bf16.gmra.mrb[100].mxu0 %v3314_v26 }
 0x2a2   : > { %v3140_v17 = vpop.permute.xlu0 %3139 }
 0x2a3   : > { %3177 = vst.msk [vmem:[#allocation4 + $0x258] sm:$0xff] %vm923_vm5, %v3140_v17 }
 0x2a4   : > { %v2691_v35 = vpop.permute.xlu1 %2690 }
 0x2a5   : > { %2728 = vst.msk [vmem:[#allocation4 + $0x250] sm:$0xff] %vm923_vm5, %v2691_v35 }
 0x2a6   : > { %v2886_v9 = vpop.permute.xlu0 %2885 }
 0x2a7   : > { %2922 = vst.msk [vmem:[#allocation4 + $0x290] sm:$0xff] %vm665_vm3, %v2886_v9 }
 0x2a8   : > { %v2437_v48 = vpop.permute.xlu1 %2436  ;;  %v9660_v44 = vpop.f32.mrb[48].mxu0 }
 0x2a9   : > { %2473 = vst.msk [vmem:[#allocation4 + $0x288] sm:$0xff] %vm665_vm3, %v2437_v48  ;;  %v9661_v51 = vpop.f32.mrb[49].mxu0 }
 0x2aa   : > { %v9662_v61 = vadd.f32 %v9661_v51, %v9660_v44  ;;  %v9663_v42 = vpop.f32.mrb[50].mxu0  ;;  %v3014_v49 = vpop.permute.xlu0 %3013  ;;  %v3322_v6 = vld [vmem:[#allocation4 + $0x258] sm:$0xff] }
 0x2ab   : > { %v9664_v55 = vpop.f32.mrb[51].mxu0  ;;  %3050 = vst.msk [vmem:[#allocation4 + $0x290] sm:$0xff] %vm794_vm4, %v3014_v49  ;;  %4248 = vmatprep.mubr.bf16.mxu0 %v3322_v6 }
 0x2ac   : > { %v3945_v28 = vadd.f32 %v12503_v62, %v9662_v61  ;;  %v9665_v43 = vadd.f32 %v9664_v55, %v9663_v42  ;;  %v2565_v31 = vpop.permute.xlu1 %2564  ;;  %v3321_v50 = vld [vmem:[#allocation4 + $0x250] sm:$0xff] }
 0x2ad   : > { %2601 = vst.msk [vmem:[#allocation4 + $0x288] sm:$0xff] %vm794_vm4, %v2565_v31  ;;  %4249 = vmatmul.mubr.bf16.gmra.mrb[104].mxu0 %v3321_v50 }
 0x2ae   : > { %v3948_v52 = vadd.f32 %v12503_v62, %v9665_v43  ;;  %v12636_v25 = vadd.f32 %v9774_v14, %v3945_v28  ;;  %v3142_v32 = vpop.permute.xlu0 %3141 }
 0x2af   : > { %3178 = vst.msk [vmem:[#allocation4 + $0x290] sm:$0xff] %vm923_vm5, %v3142_v32 }
 0x2b0   : > { %v2693_v16 = vpop.permute.xlu1 %2692  ;;  %v12639_v8 = vadd.f32 %v9777_v22, %v3948_v52 }
 0x2b1   : > { %2729 = vst.msk [vmem:[#allocation4 + $0x288] sm:$0xff] %vm923_vm5, %v2693_v16 }
 0x2b2   : > { %14862 = vst [vmem:[#allocation6_spill] sm:$0xff] %v12639_v8  ;;  %v2888_v29 = vpop.permute.xlu0 %2887 }
 0x2b3   : > { %2923 = vst.msk [vmem:[#allocation4 + $0x2c8] sm:$0xff] %vm665_vm3, %v2888_v29 }
 0x2b4   : > { %v9778_v1 = vpop.f32.mrb[52].mxu1  ;;  %v2439_v56 = vpop.permute.xlu1 %2438 }
 0x2b5   : > { %2474 = vst.msk [vmem:[#allocation4 + $0x2c0] sm:$0xff] %vm665_vm3, %v2439_v56  ;;  %v9779_v4 = vpop.f32.mrb[53].mxu1 }
 0x2b6   : > { %v9780_v2 = vadd.f32 %v9779_v4, %v9778_v1  ;;  %v9781_v21 = vpop.f32.mrb[54].mxu1  ;;  %v3016_v39 = vpop.permute.xlu0 %3015  ;;  %v3329_v5 = vld [vmem:[#allocation4 + $0x290] sm:$0xff] }
 0x2b7   : > { %v9782_v24 = vpop.f32.mrb[55].mxu1  ;;  %3051 = vst.msk [vmem:[#allocation4 + $0x2c8] sm:$0xff] %vm794_vm4, %v3016_v39  ;;  %4256 = vmatprep.mubr.bf16.mxu0 %v3329_v5 }
 0x2b8   : > { %v9783_v30 = vadd.f32 %v9782_v24, %v9781_v21  ;;  %v2567_v60 = vpop.permute.xlu1 %2566  ;;  %v3328_v14 = vld [vmem:[#allocation4 + $0x288] sm:$0xff] }
 0x2b9   : > { %2602 = vst.msk [vmem:[#allocation4 + $0x2c0] sm:$0xff] %vm794_vm4, %v2567_v60  ;;  %4257 = vmatmul.mubr.bf16.gmra.mrb[108].mxu0 %v3328_v14 }
 0x2ba   : > { %v3144_v58 = vpop.permute.xlu0 %3143 }
 0x2bb   : > { %3179 = vst.msk [vmem:[#allocation4 + $0x2c8] sm:$0xff] %vm923_vm5, %v3144_v58 }
 0x2bc   : > { %v2695_v13 = vpop.permute.xlu1 %2694 }
 0x2bd   : > { %2730 = vst.msk [vmem:[#allocation4 + $0x2c0] sm:$0xff] %vm923_vm5, %v2695_v13 }
 0x2be   : > { %v2890_v53 = vpop.permute.xlu0 %2889 }
 0x2bf   : > { %2924 = vst.msk [vmem:[#allocation4 + $0x300] sm:$0xff] %vm665_vm3, %v2890_v53 }
 0x2c0   : > { %v2441_v15 = vpop.permute.xlu1 %2440  ;;  %v9666_v22 = vpop.f32.mrb[52].mxu0 }
 0x2c1   : > { %2475 = vst.msk [vmem:[#allocation4 + $0x2f8] sm:$0xff] %vm665_vm3, %v2441_v15  ;;  %v9667_v11 = vpop.f32.mrb[53].mxu0 }
 0x2c2   : > { %v9668_v26 = vadd.f32 %v9667_v11, %v9666_v22  ;;  %v9669_v17 = vpop.f32.mrb[54].mxu0  ;;  %v3018_v35 = vpop.permute.xlu0 %3017  ;;  %v3336_v48 = vld [vmem:[#allocation4 + $0x2c8] sm:$0xff] }
 0x2c3   : > { %v9670_v9 = vpop.f32.mrb[55].mxu0  ;;  %3052 = vst.msk [vmem:[#allocation4 + $0x300] sm:$0xff] %vm794_vm4, %v3018_v35  ;;  %4264 = vmatprep.mubr.bf16.mxu0 %v3336_v48 }
 0x2c4   : > { %v3953_v44 = vadd.f32 %v12503_v62, %v9668_v26  ;;  %v9671_v51 = vadd.f32 %v9670_v9, %v9669_v17  ;;  %v2569_v61 = vpop.permute.xlu1 %2568  ;;  %v3335_v42 = vld [vmem:[#allocation4 + $0x2c0] sm:$0xff] }
 0x2c5   : > { %2603 = vst.msk [vmem:[#allocation4 + $0x2f8] sm:$0xff] %vm794_vm4, %v2569_v61  ;;  %4265 = vmatmul.mubr.bf16.gmra.mrb[112].mxu0 %v3335_v42 }
 0x2c6   : > { %v3956_v49 = vadd.f32 %v12503_v62, %v9671_v51  ;;  %v12654_v55 = vadd.f32 %v9780_v2, %v3953_v44  ;;  %v3146_v6 = vpop.permute.xlu0 %3145 }
 0x2c7   : > { %3180 = vst.msk [vmem:[#allocation4 + $0x300] sm:$0xff] %vm923_vm5, %v3146_v6  ;;  %v10804_v6 = vld [vmem:[%s14804_s4] sm:$0xff]  }
 0x2c8   : > { %14863 = vst [vmem:[#allocation7_spill] sm:$0xff] %v12654_v55  ;;  %v2697_v28 = vpop.permute.xlu1 %2696  ;;  %v12657_v43 = vadd.f32 %v9783_v30, %v3956_v49  ;;  %v10803_v49 = vld [vmem:[%s14804_s4 + $0x40] sm:$0xff]  }
 0x2c9   : > { %2731 = vst.msk [vmem:[#allocation4 + $0x2f8] sm:$0xff] %vm923_vm5, %v2697_v28  ;;  %9926 = vmatprep.subr.bf16.mxu1 %v10803_v49  ;;  %v10805_v28 = vld [vmem:[%s14804_s4 + $0x48] sm:$0xff]  }
 0x2ca   : > { %14864 = vst [vmem:[#allocation8_spill] sm:$0xff] %v12657_v43  ;;  %v2892_v31 = vpop.permute.xlu0 %2891  ;;  %9927 = vmatpush3.bf16.msra.mxu1 %v10804_v6 }
 0x2cb   : > { %2925 = vst.msk [vmem:[#allocation4 + $0x338] sm:$0xff] %vm665_vm3, %v2892_v31  ;;  %v10806_v31 = vld [vmem:[%s14804_s4 + $0x8] sm:$0xff]   ;;  %9928 = vmatprep.subr.bf16.mxu1 %v10805_v28  ;;  %v10815_v28 = vld [vmem:[%s14804_s4 + $0x70] sm:$0xff]  }
 0x2cc   : > { %v9784_v50 = vpop.f32.mrb[56].mxu1  ;;  %v2443_v52 = vpop.permute.xlu1 %2442 }
 0x2cd   : > { %2476 = vst.msk [vmem:[#allocation4 + $0x330] sm:$0xff] %vm665_vm3, %v2443_v52  ;;  %v9785_v32 = vpop.f32.mrb[57].mxu1 }
 0x2ce   : > { %v9786_v16 = vadd.f32 %v9785_v32, %v9784_v50  ;;  %v9787_v29 = vpop.f32.mrb[58].mxu1  ;;  %v3020_v1 = vpop.permute.xlu0 %3019  ;;  %v3343_v4 = vld [vmem:[#allocation4 + $0x300] sm:$0xff]  ;;  %9929 = vmatpush3.bf16.msra.mxu1 %v10806_v31  ;;  %v10807_v32 = vld [vmem:[%s14804_s4 + $0x50] sm:$0xff]  }
 0x2cf   : > { %v9788_v56 = vpop.f32.mrb[59].mxu1  ;;  %3053 = vst.msk [vmem:[#allocation4 + $0x338] sm:$0xff] %vm794_vm4, %v3020_v1  ;;  %4272 = vmatprep.mubr.bf16.mxu0 %v3343_v4  ;;  %v10808_v1 = vld [vmem:[%s14804_s4 + $0x10] sm:$0xff]   ;;  %9930 = vmatprep.subr.bf16.mxu1 %v10807_v32 }
 0x2d0   : > { %v9789_v2 = vadd.f32 %v9788_v56, %v9787_v29  ;;  %v2571_v21 = vpop.permute.xlu1 %2570  ;;  %v3342_v39 = vld [vmem:[#allocation4 + $0x2f8] sm:$0xff] }
 0x2d1   : > { %2604 = vst.msk [vmem:[#allocation4 + $0x330] sm:$0xff] %vm794_vm4, %v2571_v21  ;;  %4273 = vmatmul.mubr.bf16.gmra.mrb[116].mxu0 %v3342_v39  ;;  %v10809_v21 = vld [vmem:[%s14804_s4 + $0x58] sm:$0xff]  }
 0x2d2   : > { %v3148_v24 = vpop.permute.xlu0 %3147  ;;  %9931 = vmatpush3.bf16.msra.mxu1 %v10808_v1 }
 0x2d3   : > { %3181 = vst.msk [vmem:[#allocation4 + $0x338] sm:$0xff] %vm923_vm5, %v3148_v24  ;;  %9932 = vmatprep.subr.bf16.mxu1 %v10809_v21 }
 0x2d4   : > { %v2699_v5 = vpop.permute.xlu1 %2698 }
 0x2d5   : > { %2732 = vst.msk [vmem:[#allocation4 + $0x330] sm:$0xff] %vm923_vm5, %v2699_v5  ;;  %v10810_v5 = vld [vmem:[%s14804_s4 + $0x18] sm:$0xff]  }
 0x2d6   : > { %9933 = vmatpush3.bf16.msra.mxu1 %v10810_v5  ;;  %v4525_v5 = vld [vmem:[#allocation3 + $0x20] sm:$0xff] }
 0x2d8   : > { %v9672_v30 = vpop.f32.mrb[56].mxu0 }
 0x2d9   : > { %v9673_v60 = vpop.f32.mrb[57].mxu0 }
 0x2da   : > { %v9674_v14 = vadd.f32 %v9673_v60, %v9672_v30  ;;  %v9675_v58 = vpop.f32.mrb[58].mxu0  ;;  %v3350_v53 = vld [vmem:[#allocation4 + $0x338] sm:$0xff]  ;;  %v10811_v60 = vld [vmem:[%s14804_s4 + $0x60] sm:$0xff]  }
 0x2db   : > { %v9676_v13 = vpop.f32.mrb[59].mxu0  ;;  %4280 = vmatprep.mubr.bf16.mxu0 %v3350_v53  ;;  %9934 = vmatprep.subr.bf16.mxu1 %v10811_v60 }
 0x2dc   : > { %v3961_v15 = vadd.f32 %v12503_v62, %v9674_v14  ;;  %v9677_v22 = vadd.f32 %v9676_v13, %v9675_v58  ;;  %v3349_v11 = vld [vmem:[#allocation4 + $0x330] sm:$0xff]  ;;  %v10812_v14 = vld [vmem:[%s14804_s4 + $0x20] sm:$0xff]   ;;  %v10813_v13 = vld [vmem:[%s14804_s4 + $0x68] sm:$0xff]  }
 0x2dd   : > { %4281 = vmatmul.mubr.bf16.gmra.mrb[120].mxu0 %v3349_v11  ;;  %9935 = vmatpush3.bf16.msra.mxu1 %v10812_v14  ;;  %v4715_v11 = vld [vmem:[#allocation3 + $0x2] sm:$0xff] }
 0x2de   : > { %v3964_v26 = vadd.f32 %v12503_v62, %v9677_v22  ;;  %v12668_v17 = vadd.f32 %v9786_v16, %v3961_v15  ;;  %v10814_v22 = vld [vmem:[%s14804_s4 + $0x28] sm:$0xff]   ;;  %9936 = vmatprep.subr.bf16.mxu1 %v10813_v13 }
 0x2e0   : > { %14865 = vst [vmem:[#allocation9_spill] sm:$0xff] %v12668_v17  ;;  %v12670_v35 = vadd.f32 %v9789_v2, %v3964_v26  ;;  %v4716_v26 = vld [vmem:[#allocation3 + $0xa] sm:$0xff] }
 0x2e1   : > { %9937 = vmatpush3.bf16.msra.mxu1 %v10814_v22 }
 0x2e2   : > { %14866 = vst [vmem:[#allocation10_spill] sm:$0xff] %v12670_v35  ;;  %9938 = vmatprep.subr.bf16.mxu1 %v10815_v28 }
 0x2e4   : > { %v9790_v9 = vpop.f32.mrb[60].mxu1 }
 0x2e5   : > { %v9791_v48 = vpop.f32.mrb[61].mxu1 }
 0x2e6   : > { %v9792_v44 = vadd.f32 %v9791_v48, %v9790_v9  ;;  %v9793_v51 = vpop.f32.mrb[62].mxu1  ;;  %v4747_v48 = vpack.c.bf16 %v4716_v26, %v4715_v11 }
 0x2e7   : > { %v9794_v61 = vpop.f32.mrb[63].mxu1 }
 0x2e8   : > { %v9795_v42 = vadd.f32 %v9794_v61, %v9793_v51  ;;  %v4523_v51 = vld [vmem:[#allocation3 + $0x8] sm:$0xff]  ;;  %4763 = vst.msk [vmem:[#allocation5 + $0x8] sm:$0xff] %vm376_vm6, %v4747_v48 }
 0x2f0   : > { %v9678_v50 = vpop.f32.mrb[60].mxu0 }
 0x2f1   : > { %v9679_v52 = vpop.f32.mrb[61].mxu0 }
 0x2f2   : > { %v9680_v16 = vadd.f32 %v9679_v52, %v9678_v50  ;;  %v9681_v29 = vpop.f32.mrb[62].mxu0  ;;  %v10816_v52 = vld [vmem:[%s14804_s4 + $0x30] sm:$0xff]  }
 0x2f3   : > { %v9682_v56 = vpop.f32.mrb[63].mxu0  ;;  %v4844_v6 = vpop.permute.xlu0 %4843  ;;  %9939 = vmatpush3.bf16.msra.mxu1 %v10816_v52 }
 0x2f4   : > { %v3969_v4 = vadd.f32 %v12503_v62, %v9680_v16  ;;  %v9683_v2 = vadd.f32 %v9682_v56, %v9681_v29  ;;  %4891 = vst.msk [vmem:[#allocation5 + $0x8] sm:$0xff] %vm4698_vm9, %v4844_v6  ;;  %v4651_v50 = vpop.permute.xlu1 %4650  ;;  %v10817_v29 = vld [vmem:[%s14804_s4 + $0x78] sm:$0xff]  }
 0x2f5   : > { %v10818_v56 = vld [vmem:[%s14804_s4 + $0x38] sm:$0xff]   ;;  %9940 = vmatprep.subr.bf16.mxu1 %v10817_v29 }
 0x2f6   : > { %v3972_v39 = vadd.f32 %v12503_v62, %v9683_v2  ;;  %v4130_v24 = vadd.f32 %v9792_v44, %v3969_v4  ;;  %v4522_v44 = vld [vmem:[#allocation3] sm:$0xff] }
 0x2f7   : > { %v4554_v49 = vpack.c.bf16 %v4523_v51, %v4522_v44  ;;  %v4717_v4 = vld [vmem:[#allocation3 + $0x1a] sm:$0xff]  ;;  %v4718_v2 = vld [vmem:[#allocation3 + $0x22] sm:$0xff]  ;;  %9941 = vmatpush3.bf16.msra.mxu1 %v10818_v56 }
 0x2f8   : > { %v4133_v30 = vadd.f32 %v9795_v42, %v3972_v39  ;;  %v12732_v39 = vpack.c.bf16 %v4718_v2, %v4717_v4 }
 0x2f9   : > { %4570 = vst.msk [vmem:[#allocation5] sm:$0xff] %vm376_vm6, %v4554_v49 }
 0x2fa   : > { %4699 = vst.msk [vmem:[#allocation5] sm:$0xff] %vm4698_vm9, %v4651_v50 }
 0x2fb   : > { %4764 = vst.msk [vmem:[#allocation5 + $0x70] sm:$0xff] %vm376_vm6, %v12732_v39 }
 0x2fc   : > { %v9902_v58 = vpop.f32.mrb[64].mxu1 }
 0x2fd   : > { %v9903_v62 = vpop.f32.mrb[65].mxu1 }
 0x2fe   : > { %v9904_v53 = vadd.f32 %v9903_v62, %v9902_v58  ;;  %v9905_v15 = vpop.f32.mrb[66].mxu1  ;;  %v4846_v58 = vpop.permute.xlu0 %4845  ;;  %v6895_v62 = vld [vmem:[#allocation5 + $0x8] sm:$0xff] }
 0x2ff   : > { %v9906_v9 = vpop.f32.mrb[67].mxu1  ;;  %4892 = vst.msk [vmem:[#allocation5 + $0x70] sm:$0xff] %vm4698_vm9, %v4846_v58  ;;  %7989 = vmatprep.mubr.bf16.mxu1 %v6895_v62 }
 0x300   : > { %v9907_v61 = vadd.f32 %v9906_v9, %v9905_v15  ;;  %v12710_v42 = vadd.f32 %v9904_v53, %v4130_v24  ;;  %v4524_v24 = vld [vmem:[#allocation3 + $0x18] sm:$0xff]  ;;  %v4653_v15 = vpop.permute.xlu1 %4652 }
 0x301   : > { %v12734_v60 = vpack.c.bf16 %v4525_v5, %v4524_v24  ;;  %v6894_v22 = vld [vmem:[#allocation5] sm:$0xff] }
 0x302   : > { %v12716_v31 = vadd.f32 %v9907_v61, %v4133_v30  ;;  %7990 = vmatmul.mubr.bf16.vlgmr.msra.gmra.mrb[100].mxu1 %v6894_v22 }
 0x303   : > { %4571 = vst.msk [vmem:[#allocation5 + $0x68] sm:$0xff] %vm376_vm6, %v12734_v60 }
 0x304   : > { %v10644_v32 = vpop.f32.mrb[68].mxu1  ;;  %4700 = vst.msk [vmem:[#allocation5 + $0x68] sm:$0xff] %vm4698_vm9, %v4653_v15 }
 0x305   : > { %v4331_v16 = vpop.f32.mrb[69].mxu1 }
 0x306   : > { %v12727_v1 = vpop.f32.mrb[70].mxu1  ;;  %v6908_v52 = vld [vmem:[#allocation5 + $0x70] sm:$0xff] }
 0x307   : > { %v4334_v21 = vpop.f32.mrb[71].mxu1  ;;  %7997 = vmatprep.mubr.bf16.mxu1 %v6908_v52 }
 0x308   : > { %v9812_v30 = vpop.f32.mrb[64].mxu0 }
 0x309   : > { %v9813_v14 = vpop.f32.mrb[65].mxu0 }
 0x30a   : > { %v9814_v13 = vadd.f32 %v9813_v14, %v9812_v30  ;;  %v9815_v53 = vpop.f32.mrb[66].mxu0 }
 0x30b   : > { %v9816_v11 = vpop.f32.mrb[67].mxu0  ;;  %v6907_v56 = vld [vmem:[#allocation5 + $0x68] sm:$0xff] }
 0x30c   : > { %v9817_v26 = vadd.f32 %v9816_v11, %v9815_v53  ;;  %v4171_v9 = vadd.f32 %v9814_v13, %v11999_v27  ;;  %v12743_v48 = vpop.f32.mrb[72].mxu1  ;;  %7998 = vmatmul.mubr.bf16.gmra.mrb[104].mxu1 %v6907_v56 }
 0x30d   : > { %v12745_v44 = vpop.f32.mrb[73].mxu1 }
 0x30e   : > { %v4332_v51 = vadd.f32 %v4331_v16, %v4171_v9  ;;  %v4174_v61 = vadd.f32 %v9817_v26, %v12010_v20  ;;  %v12748_v49 = vpop.f32.mrb[74].mxu1 }
 0x30f   : > { %v12750_v6 = vpop.f32.mrb[75].mxu1 }
 0x310   : > { %v4458_v28 = vmax.f32 %v4332_v51, 0.0  ;;  %v4335_v50 = vadd.f32 %v4334_v21, %v4174_v61 }
 0x312   : > { %4490 = vst.msk [vmem:[#allocation3 + $0x32] sm:$0xff] %vm376_vm6, %v4458_v28  ;;  %v4459_v29 = vmax.f32 %v4335_v50, 0.0 }
 0x314   : > { %4491 = vst.msk [vmem:[#allocation3 + $0x3a] sm:$0xff] %vm376_vm6, %v4459_v29  ;;  %v9818_v27 = vpop.f32.mrb[68].mxu0  ;;  %v12754_v16 = vpop.f32.mrb[76].mxu1 }
 0x315   : > { %v9819_v4 = vpop.f32.mrb[69].mxu0  ;;  %v12756_v24 = vpop.f32.mrb[77].mxu1 }
 0x316   : > { %v9820_v20 = vadd.f32 %v9819_v4, %v9818_v27  ;;  %v9821_v2 = vpop.f32.mrb[70].mxu0  ;;  %v12758_v30 = vpop.f32.mrb[78].mxu1 }
 0x317   : > { %v9822_v5 = vpop.f32.mrb[71].mxu0  ;;  %v12761_v58 = vpop.f32.mrb[79].mxu1 }
 0x318   : > { %v4179_v21 = vadd.f32 %v9820_v20, %v12092_v18  ;;  %v9823_v14 = vadd.f32 %v9822_v5, %v9821_v2 }
 0x319   : > { %v4590_v62 = vld [vmem:[#allocation3 + $0x31] sm:$0xff] }
 0x31a   : > { %v4340_v13 = vadd.f32 %v10644_v32, %v4179_v21  ;;  %v4182_v53 = vadd.f32 %v9823_v14, %v12102_v7  ;;  %v4719_v15 = vld [vmem:[#allocation3 + $0x32] sm:$0xff] }
 0x31b   : > { %v4526_v22 = vld [vmem:[#allocation3 + $0x30] sm:$0xff]  ;;  %v4784_v9 = vld [vmem:[#allocation3 + $0x3b] sm:$0xff] }
 0x31c   : > { %v5548_v11 = vld [vmem:[#allocation3 + $0x31] sm:$0xff]  ;;  %v4591_v51 = vld [vmem:[#allocation3 + $0x39] sm:$0xff]  ;;  %v4460_v61 = vmax.f32 %v4340_v13, 0.0  ;;  %v4343_v28 = vadd.f32 %v12727_v1, %v4182_v53  ;;  %v12765_v4 = vpop.f32.mrb[80].mxu1 }
 0x31d   : > { %v4783_v26 = vld [vmem:[#allocation3 + $0x33] sm:$0xff]  ;;  %v4620_v52 = vpack.c.bf16 %v4591_v51, %v4590_v62  ;;  %v5359_v5 = vld [vmem:[#allocation3 + $0x3c] sm:$0xff]  ;;  %v12776_v14 = vpop.f32.mrb[81].mxu1 }
 0x31e   : > { %v4813_v50 = vpack.c.bf16 %v4784_v9, %v4783_v26  ;;  %v4720_v29 = vld [vmem:[#allocation3 + $0x3a] sm:$0xff]  ;;  %v5484_v27 = vld [vmem:[#allocation3 + $0x30] sm:$0xff]  ;;  %4492 = vst.msk [vmem:[#allocation3 + $0x4a] sm:$0xff] %vm376_vm6, %v4460_v61  ;;  %v4461_v1 = vmax.f32 %v4343_v28, 0.0 }
 0x31f   : > { %v4527_v18 = vld [vmem:[#allocation3 + $0x38] sm:$0xff]  ;;  %v12767_v32 = vpack.c.bf16 %v4720_v29, %v4719_v15  ;;  %4654 = vrot.lane.b32.xlu1 %v4620_v52, %s10919_s23 }
 0x320   : > { %v5549_v56 = vld [vmem:[#allocation3 + $0x39] sm:$0xff]  ;;  %v12769_v7 = vpack.c.bf16 %v4527_v18, %v4526_v22  ;;  %4847 = vrot.lane.b32.xlu0 %v4813_v50, %s10919_s23  ;;  %v12780_v22 = vpop.f32.mrb[82].mxu1  ;;  %4493 = vst.msk [vmem:[#allocation3 + $0x52] sm:$0xff] %vm376_vm6, %v4461_v1  ;;  %v9824_v28 = vpop.f32.mrb[72].mxu0 }
 0x321   : > { %v12771_v20 = vpack.c.bf16 %v5549_v56, %v5548_v11  ;;  %v5358_v2 = vld [vmem:[#allocation3 + $0x34] sm:$0xff]  ;;  %4765 = vst.msk [vmem:[#allocation5 + $0xd8] sm:$0xff] %vm376_vm6, %v12767_v32  ;;  %v5869_v9 = vld [vmem:[#allocation3 + $0x3c] sm:$0xff]  ;;  %v12791_v50 = vpop.f32.mrb[83].mxu1  ;;  %v9825_v18 = vpop.f32.mrb[73].mxu0 }
 0x322   : > { %v5740_v21 = vld [vmem:[#allocation3 + $0x33] sm:$0xff]  ;;  %v12778_v62 = vpack.c.bf16 %v5359_v5, %v5358_v2  ;;  %v5741_v13 = vld [vmem:[#allocation3 + $0x3b] sm:$0xff]  ;;  %4572 = vst.msk [vmem:[#allocation5 + $0xd0] sm:$0xff] %vm376_vm6, %v12769_v7  ;;  %v9826_v56 = vadd.f32 %v9825_v18, %v9824_v28 }
 0x323   : > { %14867 = vst [vmem:[#allocation11_spill] sm:$0xff] %v12771_v20  ;;  %v5485_v53 = vld [vmem:[#allocation3 + $0x38] sm:$0xff]  ;;  %5149 = vst.msk [vmem:[#allocation5 + $0x80] sm:$0xff] %vm376_vm6, %v12771_v20  ;;  %v12788_v11 = vpack.c.bf16 %v5741_v13, %v5740_v21 }
 0x324   : > { %14868 = vst [vmem:[#allocation12_spill] sm:$0xff] %v12778_v62  ;;  %v5868_v15 = vld [vmem:[#allocation3 + $0x34] sm:$0xff]  ;;  %v5516_v26 = vpack.c.bf16 %v5485_v53, %v5484_v27  ;;  %4957 = vst.msk [vmem:[#allocation5 + $0xe0] sm:$0xff] %vm376_vm6, %v12778_v62  ;;  %v9827_v27 = vpop.f32.mrb[74].mxu0  ;;  %v4187_v21 = vadd.f32 %v9826_v56, %v12143_v45  ;;  %v12801_v13 = vpop.f32.mrb[84].mxu1 }
 0x325   : > { %14869 = vst [vmem:[#allocation13_spill] sm:$0xff] %v12788_v11  ;;  %v5676_v51 = vld [vmem:[#allocation3 + $0x32] sm:$0xff]  ;;  %v5677_v61 = vld [vmem:[#allocation3 + $0x3a] sm:$0xff]  ;;  %v5900_v52 = vpack.c.bf16 %v5869_v9, %v5868_v15  ;;  %5341 = vst.msk [vmem:[#allocation5 + $0x88] sm:$0xff] %vm376_vm6, %v12788_v11  ;;  %v9828_v2 = vpop.f32.mrb[75].mxu0 }
 0x326   : > { %v5708_v29 = vpack.c.bf16 %v5677_v61, %v5676_v51  ;;  %5532 = vst.msk [vmem:[#allocation5 + $0x28] sm:$0xff] %vm376_vm6, %v5516_v26  ;;  %v9829_v5 = vadd.f32 %v9828_v2, %v9827_v27  ;;  %v4592_v1 = vld [vmem:[#allocation3 + $0x49] sm:$0xff]  ;;  %v4348_v53 = vadd.f32 %v12745_v44, %v4187_v21  ;;  %v12805_v26 = vpop.f32.mrb[85].mxu1 }
 0x327   : > { %5916 = vst.msk [vmem:[#allocation5 + $0x38] sm:$0xff] %vm376_vm6, %v5900_v52  ;;  %v4721_v9 = vld [vmem:[#allocation3 + $0x4a] sm:$0xff]  ;;  %v4786_v52 = vld [vmem:[#allocation3 + $0x53] sm:$0xff] }
 0x328   : > { %5724 = vst.msk [vmem:[#allocation5 + $0x30] sm:$0xff] %vm376_vm6, %v5708_v29  ;;  %v4190_v15 = vadd.f32 %v9829_v5, %v12149_v34  ;;  %v4528_v51 = vld [vmem:[#allocation3 + $0x48] sm:$0xff]  ;;  %v4593_v18 = vld [vmem:[#allocation3 + $0x51] sm:$0xff]  ;;  %v12807_v29 = vpop.f32.mrb[86].mxu1  ;;  %v4462_v2 = vmax.f32 %v4348_v53, 0.0 }
 0x329   : > { %v5550_v61 = vld [vmem:[#allocation3 + $0x49] sm:$0xff]  ;;  %v4621_v11 = vpack.c.bf16 %v4593_v18, %v4592_v1  ;;  %v12810_v62 = vpop.f32.mrb[87].mxu1  ;;  %v4722_v44 = vld [vmem:[#allocation3 + $0x52] sm:$0xff] }
 0x32a   : > { %v4785_v28 = vld [vmem:[#allocation3 + $0x4b] sm:$0xff]  ;;  %v4351_v45 = vadd.f32 %v12750_v6, %v4190_v15  ;;  %v12812_v21 = vpack.c.bf16 %v4722_v44, %v4721_v9  ;;  %v5361_v43 = vld [vmem:[#allocation3 + $0x54] sm:$0xff]  ;;  %4494 = vst.msk [vmem:[#allocation3 + $0x62] sm:$0xff] %vm376_vm6, %v4462_v2 }
 0x32b   : > { %v5933_v27 = vld [vmem:[#allocation3 + $0x48] sm:$0xff]  ;;  %v4814_v56 = vpack.c.bf16 %v4786_v52, %v4785_v28  ;;  %v4529_v34 = vld [vmem:[#allocation3 + $0x50] sm:$0xff]  ;;  %4656 = vrot.lane.b32.xlu1 %v4621_v11, %s10919_s23 }
 0x32c   : > { %v5551_v5 = vld [vmem:[#allocation3 + $0x51] sm:$0xff]  ;;  %14870 = vst [vmem:[#allocation14_spill] sm:$0xff] %v12812_v21  ;;  %v12814_v20 = vpack.c.bf16 %v4529_v34, %v4528_v51  ;;  %v4463_v53 = vmax.f32 %v4351_v45, 0.0  ;;  %4766 = vst.msk [vmem:[#allocation5 + $0x140] sm:$0xff] %vm376_vm6, %v12812_v21  ;;  %v12838_v52 = vpop.f32.mrb[88].mxu1 }
 0x32d   : > { %v12816_v35 = vpack.c.bf16 %v5551_v5, %v5550_v61  ;;  %v5360_v17 = vld [vmem:[#allocation3 + $0x4c] sm:$0xff]  ;;  %4849 = vrot.lane.b32.xlu0 %v4814_v56, %s10919_s23  ;;  %v12842_v34 = vpop.f32.mrb[89].mxu1 }
 0x32e   : > { %14871 = vst [vmem:[#allocation15_spill] sm:$0xff] %v12814_v20  ;;  %v5934_v55 = vld [vmem:[#allocation3 + $0x50] sm:$0xff]  ;;  %v12821_v6 = vpack.c.bf16 %v5361_v43, %v5360_v17  ;;  %4573 = vst.msk [vmem:[#allocation5 + $0x138] sm:$0xff] %vm376_vm6, %v12814_v20  ;;  %v9830_v43 = vpop.f32.mrb[76].mxu0 }
 0x32f   : > { %14872 = vst [vmem:[#allocation16_spill] sm:$0xff] %v12816_v35  ;;  %v12823_v1 = vpack.c.bf16 %v5934_v55, %v5933_v27  ;;  %v5742_v15 = vld [vmem:[#allocation3 + $0x4b] sm:$0xff]  ;;  %v5743_v9 = vld [vmem:[#allocation3 + $0x53] sm:$0xff]  ;;  %5150 = vst.msk [vmem:[#allocation5 + $0xe8] sm:$0xff] %vm376_vm6, %v12816_v35  ;;  %v9831_v28 = vpop.f32.mrb[77].mxu0 }
 0x330   : > { %14873 = vst [vmem:[#allocation17_spill] sm:$0xff] %v12821_v6  ;;  %v12831_v51 = vpack.c.bf16 %v5743_v9, %v5742_v15  ;;  %v5870_v61 = vld [vmem:[#allocation3 + $0x4c] sm:$0xff]  ;;  %4495 = vst.msk [vmem:[#allocation3 + $0x6a] sm:$0xff] %vm376_vm6, %v4463_v53  ;;  %v5871_v55 = vld [vmem:[#allocation3 + $0x54] sm:$0xff]  ;;  %v9832_v56 = vadd.f32 %v9831_v28, %v9830_v43  ;;  %v9833_v44 = vpop.f32.mrb[78].mxu0 }
 0x331   : > { %14874 = vst [vmem:[#allocation18_spill] sm:$0xff] %v12823_v1  ;;  %4958 = vst.msk [vmem:[#allocation5 + $0x148] sm:$0xff] %vm376_vm6, %v12821_v6  ;;  %v5678_v17 = vld [vmem:[#allocation3 + $0x4a] sm:$0xff]  ;;  %v5679_v11 = vld [vmem:[#allocation3 + $0x52] sm:$0xff]  ;;  %v5901_v18 = vpack.c.bf16 %v5871_v55, %v5870_v61  ;;  %v9834_v9 = vpop.f32.mrb[79].mxu0 }
 0x332   : > { %14875 = vst [vmem:[#allocation19_spill] sm:$0xff] %v12831_v51  ;;  %5533 = vst.msk [vmem:[#allocation5 + $0x90] sm:$0xff] %vm376_vm6, %v12823_v1  ;;  %v5709_v27 = vpack.c.bf16 %v5679_v11, %v5678_v17  ;;  %v6253_v2 = vld [vmem:[#allocation3 + $0x4b] sm:$0xff]  ;;  %v6254_v45 = vld [vmem:[#allocation3 + $0x53] sm:$0xff]  ;;  %v12844_v1 = vpop.f32.mrb[90].mxu1  ;;  %v4195_v61 = vadd.f32 %v9832_v56, %v12203_v41  ;;  %v9835_v55 = vadd.f32 %v9834_v9, %v9833_v44 }
 0x333   : > { %5342 = vst.msk [vmem:[#allocation5 + $0xf0] sm:$0xff] %vm376_vm6, %v12831_v51  ;;  %v6285_v5 = vpack.c.bf16 %v6254_v45, %v6253_v2  ;;  %v6061_v53 = vld [vmem:[#allocation3 + $0x49] sm:$0xff]  ;;  %v6062_v15 = vld [vmem:[#allocation3 + $0x51] sm:$0xff]  ;;  %5917 = vst.msk [vmem:[#allocation5 + $0xa0] sm:$0xff] %vm376_vm6, %v5901_v18  ;;  %v12849_v17 = vpop.f32.mrb[91].mxu1 }
 0x334   : > { %5725 = vst.msk [vmem:[#allocation5 + $0x98] sm:$0xff] %vm376_vm6, %v5709_v27  ;;  %v6093_v6 = vpack.c.bf16 %v6062_v15, %v6061_v53  ;;  %v4594_v43 = vld [vmem:[#allocation3 + $0x61] sm:$0xff]  ;;  %v4356_v11 = vadd.f32 %v12743_v48, %v4195_v61  ;;  %v4198_v28 = vadd.f32 %v9835_v55, %v12211_v40 }
 0x335   : > { %6301 = vst.msk [vmem:[#allocation5 + $0x48] sm:$0xff] %vm376_vm6, %v6285_v5  ;;  %v4723_v2 = vld [vmem:[#allocation3 + $0x62] sm:$0xff] }
 0x336   : > { %6109 = vst.msk [vmem:[#allocation5 + $0x40] sm:$0xff] %vm376_vm6, %v6093_v6  ;;  %v4530_v45 = vld [vmem:[#allocation3 + $0x60] sm:$0xff]  ;;  %v4464_v41 = vmax.f32 %v4356_v11, 0.0  ;;  %v4359_v56 = vadd.f32 %v12748_v49, %v4198_v28  ;;  %v12856_v6 = vpop.f32.mrb[92].mxu1 }
 0x337   : > { %v5552_v18 = vld [vmem:[#allocation3 + $0x61] sm:$0xff]  ;;  %v4788_v27 = vld [vmem:[#allocation3 + $0x6b] sm:$0xff]  ;;  %v12867_v49 = vpop.f32.mrb[93].mxu1 }
 0x338   : > { %v4787_v51 = vld [vmem:[#allocation3 + $0x63] sm:$0xff]  ;;  %v5363_v21 = vld [vmem:[#allocation3 + $0x6c] sm:$0xff]  ;;  %4496 = vst.msk [vmem:[#allocation3 + $0x7a] sm:$0xff] %vm376_vm6, %v4464_v41  ;;  %v4465_v11 = vmax.f32 %v4359_v56, 0.0 }
 0x339   : > { %v4595_v53 = vld [vmem:[#allocation3 + $0x69] sm:$0xff]  ;;  %v5935_v15 = vld [vmem:[#allocation3 + $0x60] sm:$0xff]  ;;  %v4815_v44 = vpack.c.bf16 %v4788_v27, %v4787_v51 }
 0x33a   : > { %v4622_v9 = vpack.c.bf16 %v4595_v53, %v4594_v43  ;;  %v4724_v5 = vld [vmem:[#allocation3 + $0x6a] sm:$0xff]  ;;  %4497 = vst.msk [vmem:[#allocation3 + $0x82] sm:$0xff] %vm376_vm6, %v4465_v11  ;;  %v6510_v27 = vld [vmem:[#allocation3 + $0x61] sm:$0xff] }
 0x33b   : > { %v4531_v35 = vld [vmem:[#allocation3 + $0x68] sm:$0xff]  ;;  %v12858_v48 = vpack.c.bf16 %v4724_v5, %v4723_v2  ;;  %4851 = vrot.lane.b32.xlu0 %v4815_v44, %s10919_s23 }
 0x33c   : > { %v5553_v20 = vld [vmem:[#allocation3 + $0x69] sm:$0xff]  ;;  %v12860_v40 = vpack.c.bf16 %v4531_v35, %v4530_v45  ;;  %4658 = vrot.lane.b32.xlu1 %v4622_v9, %s10919_s23 }
 0x33d   : > { %14876 = vst [vmem:[#allocation20_spill] sm:$0xff] %v12858_v48  ;;  %v12862_v61 = vpack.c.bf16 %v5553_v20, %v5552_v18  ;;  %v5362_v55 = vld [vmem:[#allocation3 + $0x64] sm:$0xff]  ;;  %v12873_v20 = vpop.f32.mrb[94].mxu1  ;;  %4767 = vst.msk [vmem:[#allocation5 + $0x1a8] sm:$0xff] %vm376_vm6, %v12858_v48  ;;  %v5873_v9 = vld [vmem:[#allocation3 + $0x6c] sm:$0xff] }
 0x33e   : > { %14877 = vst [vmem:[#allocation21_spill] sm:$0xff] %v12860_v40  ;;  %v5936_v8 = vld [vmem:[#allocation3 + $0x68] sm:$0xff]  ;;  %v12869_v51 = vpack.c.bf16 %v5363_v21, %v5362_v55  ;;  %14881 = vst [vmem:[#allocation25_spill] sm:$0xff] %v12873_v20  ;;  %v12884_v21 = vpop.f32.mrb[95].mxu1  ;;  %v5356_v20 = vld [vmem:[#allocation3 + $0x1c] sm:$0xff] }
 0x33f   : > { %14878 = vst [vmem:[#allocation22_spill] sm:$0xff] %v12862_v61  ;;  %v12871_v43 = vpack.c.bf16 %v5936_v8, %v5935_v15  ;;  %v5744_v35 = vld [vmem:[#allocation3 + $0x63] sm:$0xff]  ;;  %v5745_v28 = vld [vmem:[#allocation3 + $0x6b] sm:$0xff]  ;;  %4574 = vst.msk [vmem:[#allocation5 + $0x1a0] sm:$0xff] %vm376_vm6, %v12860_v40  ;;  %v9836_v8 = vpop.f32.mrb[80].mxu0 }
 0x340   : > { %14879 = vst [vmem:[#allocation23_spill] sm:$0xff] %v12869_v51  ;;  %5151 = vst.msk [vmem:[#allocation5 + $0x150] sm:$0xff] %vm376_vm6, %v12862_v61  ;;  %v12881_v2 = vpack.c.bf16 %v5745_v28, %v5744_v35  ;;  %v6702_v45 = vld [vmem:[#allocation3 + $0x63] sm:$0xff]  ;;  %v6703_v18 = vld [vmem:[#allocation3 + $0x6b] sm:$0xff]  ;;  %v9837_v15 = vpop.f32.mrb[81].mxu0 }
 0x341   : > { %14880 = vst [vmem:[#allocation24_spill] sm:$0xff] %v12871_v43  ;;  %4959 = vst.msk [vmem:[#allocation5 + $0x1b0] sm:$0xff] %vm376_vm6, %v12869_v51  ;;  %v6511_v53 = vld [vmem:[#allocation3 + $0x69] sm:$0xff]  ;;  %v12892_v41 = vpack.c.bf16 %v6703_v18, %v6702_v45  ;;  %v9838_v55 = vadd.f32 %v9837_v15, %v9836_v8  ;;  %v9839_v11 = vpop.f32.mrb[82].mxu0  ;;  %v6446_v18 = vld [vmem:[#allocation3 + $0x60] sm:$0xff] }
 0x342   : > { %14882 = vst [vmem:[#allocation26_spill] sm:$0xff] %v12881_v2  ;;  %5534 = vst.msk [vmem:[#allocation5 + $0xf8] sm:$0xff] %vm376_vm6, %v12871_v43  ;;  %v12894_v56 = vpack.c.bf16 %v6511_v53, %v6510_v27  ;;  %v5872_v44 = vld [vmem:[#allocation3 + $0x64] sm:$0xff]  ;;  %v9840_v61 = vpop.f32.mrb[83].mxu0 }
 0x343   : > { %5343 = vst.msk [vmem:[#allocation5 + $0x158] sm:$0xff] %vm376_vm6, %v12881_v2  ;;  %14883 = vst [vmem:[#allocation27_spill] sm:$0xff] %v12892_v41  ;;  %v5680_v5 = vld [vmem:[#allocation3 + $0x62] sm:$0xff]  ;;  %v5902_v35 = vpack.c.bf16 %v5873_v9, %v5872_v44  ;;  %v5681_v28 = vld [vmem:[#allocation3 + $0x6a] sm:$0xff]  ;;  %v4203_v2 = vadd.f32 %v9838_v55, %v12259_v54  ;;  %v9841_v8 = vadd.f32 %v9840_v61, %v9839_v11  ;;  %v10672_v9 = vpop.f32.mrb[96].mxu1 }
 0x344   : > { %14884 = vst [vmem:[#allocation28_spill] sm:$0xff] %v12894_v56  ;;  %v6638_v51 = vld [vmem:[#allocation3 + $0x62] sm:$0xff]  ;;  %v6639_v43 = vld [vmem:[#allocation3 + $0x6a] sm:$0xff]  ;;  %v5710_v40 = vpack.c.bf16 %v5681_v28, %v5680_v5  ;;  %6302 = vst.msk [vmem:[#allocation5 + $0xb0] sm:$0xff] %vm376_vm6, %v12892_v41 }
 0x345   : > { %6110 = vst.msk [vmem:[#allocation5 + $0xa8] sm:$0xff] %vm376_vm6, %v12894_v56  ;;  %v6670_v45 = vpack.c.bf16 %v6639_v43, %v6638_v51  ;;  %v6447_v27 = vld [vmem:[#allocation3 + $0x68] sm:$0xff]  ;;  %5918 = vst.msk [vmem:[#allocation5 + $0x108] sm:$0xff] %vm376_vm6, %v5902_v35  ;;  %v4364_v28 = vadd.f32 %v12756_v24, %v4203_v2  ;;  %v4206_v51 = vadd.f32 %v9841_v8, %v12263_v59  ;;  %v12907_v56 = vpop.f32.mrb[97].mxu1  ;;  %v4596_v54 = vld [vmem:[#allocation3 + $0x79] sm:$0xff] }
 0x346   : > { %v6830_v53 = vld [vmem:[#allocation3 + $0x64] sm:$0xff]  ;;  %v6478_v15 = vpack.c.bf16 %v6447_v27, %v6446_v18  ;;  %v6831_v44 = vld [vmem:[#allocation3 + $0x6c] sm:$0xff]  ;;  %5726 = vst.msk [vmem:[#allocation5 + $0x100] sm:$0xff] %vm376_vm6, %v5710_v40  ;;  %v4452_v43 = vadd.f32 %v10672_v9, %v12710_v42  ;;  %14885 = vst [vmem:[#allocation29_spill] sm:$0xff] %v12907_v56  ;;  %v10673_v11 = vpop.f32.mrb[98].mxu1 }
 0x347   : > { %6686 = vst.msk [vmem:[#allocation5 + $0x58] sm:$0xff] %vm376_vm6, %v6670_v45  ;;  %v6862_v5 = vpack.c.bf16 %v6831_v44, %v6830_v53  ;;  %v4725_v61 = vld [vmem:[#allocation3 + $0x7a] sm:$0xff]  ;;  %v4790_v18 = vld [vmem:[#allocation3 + $0x83] sm:$0xff]  ;;  %v4466_v45 = vmax.f32 %v4364_v28, 0.0  ;;  %v4367_v24 = vadd.f32 %v12761_v58, %v4206_v51  ;;  %v4455_v42 = vadd.f32 %v10673_v11, %v12716_v31  ;;  %v12913_v8 = vpop.f32.mrb[99].mxu1 }
 0x348   : > { %v4532_v55 = vld [vmem:[#allocation3 + $0x78] sm:$0xff]  ;;  %6494 = vst.msk [vmem:[#allocation5 + $0x50] sm:$0xff] %vm376_vm6, %v6478_v15  ;;  %v4597_v40 = vld [vmem:[#allocation3 + $0x81] sm:$0xff]  ;;  %v4488_v59 = vmax.f32 %v4452_v43, 0.0 }
 0x349   : > { %v4789_v35 = vld [vmem:[#allocation3 + $0x7b] sm:$0xff]  ;;  %6878 = vst.msk [vmem:[#allocation5 + $0x60] sm:$0xff] %vm376_vm6, %v6862_v5  ;;  %v4623_v41 = vpack.c.bf16 %v4597_v40, %v4596_v54  ;;  %v5357_v5 = vld [vmem:[#allocation3 + $0x24] sm:$0xff]  ;;  %4498 = vst.msk [vmem:[#allocation3 + $0x92] sm:$0xff] %vm376_vm6, %v4466_v45  ;;  %v4467_v58 = vmax.f32 %v4367_v24, 0.0  ;;  %v4489_v31 = vmax.f32 %v4455_v42, 0.0 }
 0x34a   : > { %v5554_v27 = vld [vmem:[#allocation3 + $0x79] sm:$0xff]  ;;  %v4726_v2 = vld [vmem:[#allocation3 + $0x82] sm:$0xff]  ;;  %v4816_v15 = vpack.c.bf16 %v4790_v18, %v4789_v35  ;;  %4520 = vst.msk [vmem:[#allocation3 + $0x19a] sm:$0xff] %vm376_vm6, %v4488_v59  ;;  %v12921_v51 = vpack.c.bf16 %v5357_v5, %v5356_v20  ;;  %v9842_v18 = vpop.f32.mrb[84].mxu0 }
 0x34b   : > { %v4533_v53 = vld [vmem:[#allocation3 + $0x80] sm:$0xff]  ;;  %v5937_v9 = vld [vmem:[#allocation3 + $0x78] sm:$0xff]  ;;  %v12915_v56 = vpack.c.bf16 %v4726_v2, %v4725_v61  ;;  %4660 = vrot.lane.b32.xlu1 %v4623_v41, %s10919_s23  ;;  %4499 = vst.msk [vmem:[#allocation3 + $0x9a] sm:$0xff] %vm376_vm6, %v4467_v58  ;;  %4521 = vst.msk [vmem:[#allocation3 + $0x1a2] sm:$0xff] %vm376_vm6, %v4489_v31  ;;  %v9843_v45 = vpop.f32.mrb[85].mxu0 }
 0x34c   : > { %v5555_v44 = vld [vmem:[#allocation3 + $0x81] sm:$0xff]  ;;  %v12917_v48 = vpack.c.bf16 %v4533_v53, %v4532_v55  ;;  %4853 = vrot.lane.b32.xlu0 %v4816_v15, %s10919_s23  ;;  %4956 = vst.msk [vmem:[#allocation5 + $0x78] sm:$0xff] %vm376_vm6, %v12921_v51  ;;  %v6512_v59 = vld [vmem:[#allocation3 + $0x79] sm:$0xff]  ;;  %v9844_v53 = vadd.f32 %v9843_v45, %v9842_v18 }
 0x34d   : > { %v5364_v28 = vld [vmem:[#allocation3 + $0x7c] sm:$0xff]  ;;  %v12923_v43 = vpack.c.bf16 %v5555_v44, %v5554_v27  ;;  %v5365_v11 = vld [vmem:[#allocation3 + $0x84] sm:$0xff]  ;;  %4768 = vst.msk [vmem:[#allocation5 + $0x210] sm:$0xff] %vm376_vm6, %v12915_v56  ;;  %v9845_v44 = vpop.f32.mrb[86].mxu0 }
 0x34e   : > { %v5938_v35 = vld [vmem:[#allocation3 + $0x80] sm:$0xff]  ;;  %4575 = vst.msk [vmem:[#allocation5 + $0x208] sm:$0xff] %vm376_vm6, %v12917_v48  ;;  %v12931_v61 = vpack.c.bf16 %v5365_v11, %v5364_v28  ;;  %v9846_v58 = vpop.f32.mrb[87].mxu0 }
 0x34f   : > { %v5746_v54 = vld [vmem:[#allocation3 + $0x7b] sm:$0xff]  ;;  %v12933_v55 = vpack.c.bf16 %v5938_v35, %v5937_v9  ;;  %v5747_v20 = vld [vmem:[#allocation3 + $0x83] sm:$0xff]  ;;  %5152 = vst.msk [vmem:[#allocation5 + $0x1b8] sm:$0xff] %vm376_vm6, %v12923_v43  ;;  %v9847_v18 = vadd.f32 %v9846_v58, %v9845_v44 }
 0x350   : > { %v12941_v41 = vpack.c.bf16 %v5747_v20, %v5746_v54  ;;  %v6704_v40 = vld [vmem:[#allocation3 + $0x7b] sm:$0xff]  ;;  %v6705_v27 = vld [vmem:[#allocation3 + $0x83] sm:$0xff]  ;;  %4960 = vst.msk [vmem:[#allocation5 + $0x218] sm:$0xff] %vm376_vm6, %v12931_v61  ;;  %v4211_v20 = vadd.f32 %v9844_v53, %v12301_v23 }
 0x351   : > { %5535 = vst.msk [vmem:[#allocation5 + $0x160] sm:$0xff] %vm376_vm6, %v12933_v55  ;;  %v12947_v24 = vpack.c.bf16 %v6705_v27, %v6704_v40  ;;  %v6513_v42 = vld [vmem:[#allocation3 + $0x81] sm:$0xff]  ;;  %v6448_v27 = vld [vmem:[#allocation3 + $0x78] sm:$0xff] }
 0x352   : > { %v5874_v2 = vld [vmem:[#allocation3 + $0x7c] sm:$0xff]  ;;  %5344 = vst.msk [vmem:[#allocation5 + $0x1c0] sm:$0xff] %vm376_vm6, %v12941_v41  ;;  %v12951_v9 = vpack.c.bf16 %v6513_v42, %v6512_v59  ;;  %v5875_v15 = vld [vmem:[#allocation3 + $0x84] sm:$0xff]  ;;  %v4372_v42 = vadd.f32 %v12754_v16, %v4211_v20  ;;  %v4791_v44 = vld [vmem:[#allocation3 + $0x93] sm:$0xff] }
 0x353   : > { %14886 = vst [vmem:[#allocation30_spill] sm:$0xff] %v12947_v24  ;;  %v5682_v5 = vld [vmem:[#allocation3 + $0x7a] sm:$0xff]  ;;  %v5683_v28 = vld [vmem:[#allocation3 + $0x82] sm:$0xff]  ;;  %v5903_v31 = vpack.c.bf16 %v5875_v15, %v5874_v2  ;;  %6303 = vst.msk [vmem:[#allocation5 + $0x118] sm:$0xff] %vm376_vm6, %v12947_v24  ;;  %v4214_v2 = vadd.f32 %v9847_v18, %v12305_v37 }
 0x354   : > { %14887 = vst [vmem:[#allocation31_spill] sm:$0xff] %v12951_v9  ;;  %v5711_v11 = vpack.c.bf16 %v5683_v28, %v5682_v5  ;;  %v6640_v35 = vld [vmem:[#allocation3 + $0x7a] sm:$0xff]  ;;  %v6641_v54 = vld [vmem:[#allocation3 + $0x82] sm:$0xff]  ;;  %6111 = vst.msk [vmem:[#allocation5 + $0x110] sm:$0xff] %vm376_vm6, %v12951_v9 }
 0x355   : > { %v6671_v40 = vpack.c.bf16 %v6641_v54, %v6640_v35  ;;  %v6449_v45 = vld [vmem:[#allocation3 + $0x80] sm:$0xff]  ;;  %5919 = vst.msk [vmem:[#allocation5 + $0x170] sm:$0xff] %vm376_vm6, %v5903_v31  ;;  %v4598_v15 = vld [vmem:[#allocation3 + $0x91] sm:$0xff]  ;;  %v4468_v35 = vmax.f32 %v4372_v42, 0.0  ;;  %v4375_v31 = vadd.f32 %v12758_v30, %v4214_v2 }
 0x356   : > { %5727 = vst.msk [vmem:[#allocation5 + $0x168] sm:$0xff] %vm376_vm6, %v5711_v11  ;;  %v6479_v59 = vpack.c.bf16 %v6449_v45, %v6448_v27  ;;  %v4727_v5 = vld [vmem:[#allocation3 + $0x92] sm:$0xff]  ;;  %v6856_v23 = vld [vmem:[#allocation3 + $0x19c] sm:$0xff]  ;;  %v6857_v53 = vld [vmem:[#allocation3 + $0x1a4] sm:$0xff] }
 0x357   : > { %6687 = vst.msk [vmem:[#allocation5 + $0xc0] sm:$0xff] %vm376_vm6, %v6671_v40  ;;  %v4534_v28 = vld [vmem:[#allocation3 + $0x90] sm:$0xff]  ;;  %v6875_v58 = vpack.c.bf16 %v6857_v53, %v6856_v23  ;;  %v4792_v11 = vld [vmem:[#allocation3 + $0x9b] sm:$0xff]  ;;  %4500 = vst.msk [vmem:[#allocation3 + $0xaa] sm:$0xff] %vm376_vm6, %v4468_v35  ;;  %v4469_v9 = vmax.f32 %v4375_v31, 0.0 }
 0x358   : > { %6495 = vst.msk [vmem:[#allocation5 + $0xb8] sm:$0xff] %vm376_vm6, %v6479_v59  ;;  %v4599_v54 = vld [vmem:[#allocation3 + $0x99] sm:$0xff]  ;;  %v4817_v16 = vpack.c.bf16 %v4792_v11, %v4791_v44  ;;  %v5556_v45 = vld [vmem:[#allocation3 + $0x91] sm:$0xff]  ;;  %v9848_v44 = vpop.f32.mrb[88].mxu0 }
 0x359   : > { %v4728_v27 = vld [vmem:[#allocation3 + $0x9a] sm:$0xff]  ;;  %v4624_v20 = vpack.c.bf16 %v4599_v54, %v4598_v15  ;;  %6891 = vst.msk [vmem:[#allocation5 + $0x5a8] sm:$0xff] %vm376_vm6, %v6875_v58  ;;  %v5939_v30 = vld [vmem:[#allocation3 + $0x90] sm:$0xff]  ;;  %4501 = vst.msk [vmem:[#allocation3 + $0xb2] sm:$0xff] %vm376_vm6, %v4469_v9  ;;  %v9849_v35 = vpop.f32.mrb[89].mxu0 }
 0x35a   : > { %v12965_v37 = vpack.c.bf16 %v4728_v27, %v4727_v5  ;;  %v4535_v18 = vld [vmem:[#allocation3 + $0x98] sm:$0xff]  ;;  %4855 = vrot.lane.b32.xlu0 %v4817_v16, %s10919_s23  ;;  %v5962_v54 = vld [vmem:[#allocation3 + $0x1a0] sm:$0xff]  ;;  %v9850_v27 = vadd.f32 %v9849_v35, %v9848_v44  ;;  %v9851_v9 = vpop.f32.mrb[90].mxu0 }
 0x35b   : > { %v5557_v40 = vld [vmem:[#allocation3 + $0x99] sm:$0xff]  ;;  %v12969_v59 = vpack.c.bf16 %v4535_v18, %v4534_v28  ;;  %4662 = vrot.lane.b32.xlu1 %v4624_v20, %s10919_s23 }
 0x35c   : > { %v12971_v42 = vpack.c.bf16 %v5557_v40, %v5556_v45  ;;  %v5940_v2 = vld [vmem:[#allocation3 + $0x98] sm:$0xff]  ;;  %4769 = vst.msk [vmem:[#allocation5 + $0x278] sm:$0xff] %vm376_vm6, %v12965_v37  ;;  %v9852_v45 = vpop.f32.mrb[91].mxu0 }
 0x35d   : > { %v12977_v15 = vpack.c.bf16 %v5940_v2, %v5939_v30  ;;  %v5748_v5 = vld [vmem:[#allocation3 + $0x93] sm:$0xff]  ;;  %v5749_v23 = vld [vmem:[#allocation3 + $0x9b] sm:$0xff]  ;;  %4576 = vst.msk [vmem:[#allocation5 + $0x270] sm:$0xff] %vm376_vm6, %v12969_v59 }
 0x35e   : > { %v4919_v53 = vld [vmem:[#allocation3 + $0x94] sm:$0xff]  ;;  %5153 = vst.msk [vmem:[#allocation5 + $0x220] sm:$0xff] %vm376_vm6, %v12971_v42  ;;  %v12984_v28 = vpack.c.bf16 %v5749_v23, %v5748_v5  ;;  %v4920_v58 = vld [vmem:[#allocation3 + $0x9c] sm:$0xff]  ;;  %v4219_v23 = vadd.f32 %v9850_v27, %v12343_v10  ;;  %v4729_v10 = vld [vmem:[#allocation3 + $0xaa] sm:$0xff] }
 0x35f   : > { %v12986_v31 = vpack.c.bf16 %v4920_v58, %v4919_v53  ;;  %5536 = vst.msk [vmem:[#allocation5 + $0x1c8] sm:$0xff] %vm376_vm6, %v12977_v15  ;;  %v5961_v11 = vld [vmem:[#allocation3 + $0x198] sm:$0xff]  ;;  %v9853_v53 = vadd.f32 %v9852_v45, %v9851_v9 }
 0x360   : > { %5345 = vst.msk [vmem:[#allocation5 + $0x228] sm:$0xff] %vm376_vm6, %v12984_v28  ;;  %v12992_v16 = vpack.c.bf16 %v5962_v54, %v5961_v11  ;;  %v6706_v20 = vld [vmem:[#allocation3 + $0x93] sm:$0xff]  ;;  %v6707_v18 = vld [vmem:[#allocation3 + $0x9b] sm:$0xff]  ;;  %v4793_v27 = vld [vmem:[#allocation3 + $0xab] sm:$0xff] }
 0x361   : > { %14888 = vst [vmem:[#allocation32_spill] sm:$0xff] %v12986_v31  ;;  %4961 = vst.msk [vmem:[#allocation5 + $0x280] sm:$0xff] %vm376_vm6, %v12986_v31  ;;  %v12996_v40 = vpack.c.bf16 %v6707_v18, %v6706_v20  ;;  %v6514_v30 = vld [vmem:[#allocation3 + $0x91] sm:$0xff]  ;;  %v6515_v2 = vld [vmem:[#allocation3 + $0x99] sm:$0xff]  ;;  %v4380_v20 = vadd.f32 %v12776_v14, %v4219_v23  ;;  %v4222_v18 = vadd.f32 %v9853_v53, %v12347_v12 }
 0x362   : > { %14889 = vst [vmem:[#allocation33_spill] sm:$0xff] %v12992_v16  ;;  %v5876_v5 = vld [vmem:[#allocation3 + $0x94] sm:$0xff]  ;;  %5547 = vst.msk [vmem:[#allocation5 + $0x640] sm:$0xff] %vm376_vm6, %v12992_v16  ;;  %v13001_v44 = vpack.c.bf16 %v6515_v2, %v6514_v30  ;;  %v5877_v58 = vld [vmem:[#allocation3 + $0x9c] sm:$0xff] }
 0x363   : > { %14890 = vst [vmem:[#allocation34_spill] sm:$0xff] %v12996_v40  ;;  %v5684_v35 = vld [vmem:[#allocation3 + $0x92] sm:$0xff]  ;;  %v5685_v11 = vld [vmem:[#allocation3 + $0x9a] sm:$0xff]  ;;  %v5904_v54 = vpack.c.bf16 %v5877_v58, %v5876_v5  ;;  %6304 = vst.msk [vmem:[#allocation5 + $0x180] sm:$0xff] %vm376_vm6, %v12996_v40  ;;  %v4470_v30 = vmax.f32 %v4380_v20, 0.0  ;;  %v4383_v2 = vadd.f32 %v12791_v50, %v4222_v18 }
 0x364   : > { %14891 = vst [vmem:[#allocation35_spill] sm:$0xff] %v13001_v44  ;;  %v5712_v24 = vpack.c.bf16 %v5685_v11, %v5684_v35  ;;  %v4600_v31 = vld [vmem:[#allocation3 + $0xa9] sm:$0xff]  ;;  %6112 = vst.msk [vmem:[#allocation5 + $0x178] sm:$0xff] %vm376_vm6, %v13001_v44  ;;  %v4794_v9 = vld [vmem:[#allocation3 + $0xb3] sm:$0xff] }
 0x365   : > { %v4601_v45 = vld [vmem:[#allocation3 + $0xb1] sm:$0xff]  ;;  %5920 = vst.msk [vmem:[#allocation5 + $0x1d8] sm:$0xff] %vm376_vm6, %v5904_v54  ;;  %v4818_v5 = vpack.c.bf16 %v4794_v9, %v4793_v27  ;;  %v4536_v23 = vld [vmem:[#allocation3 + $0xa8] sm:$0xff]  ;;  %4502 = vst.msk [vmem:[#allocation3 + $0xc2] sm:$0xff] %vm376_vm6, %v4470_v30  ;;  %v4471_v54 = vmax.f32 %v4383_v2, 0.0 }
 0x366   : > { %5728 = vst.msk [vmem:[#allocation5 + $0x1d0] sm:$0xff] %vm376_vm6, %v5712_v24  ;;  %v4625_v58 = vpack.c.bf16 %v4601_v45, %v4600_v31  ;;  %v4730_v14 = vld [vmem:[#allocation3 + $0xb2] sm:$0xff]  ;;  %v5941_v11 = vld [vmem:[#allocation3 + $0xa8] sm:$0xff]  ;;  %v9854_v45 = vpop.f32.mrb[92].mxu0 }
 0x367   : > { %v4537_v12 = vld [vmem:[#allocation3 + $0xb0] sm:$0xff]  ;;  %v13012_v53 = vpack.c.bf16 %v4730_v14, %v4729_v10  ;;  %4857 = vrot.lane.b32.xlu0 %v4818_v5, %s10919_s23  ;;  %4503 = vst.msk [vmem:[#allocation3 + $0xca] sm:$0xff] %vm376_vm6, %v4471_v54  ;;  %v6729_v16 = vld [vmem:[#allocation3 + $0x1a3] sm:$0xff] }
 0x368   : > { %v13014_v35 = vpack.c.bf16 %v4537_v12, %v4536_v23  ;;  %v5942_v44 = vld [vmem:[#allocation3 + $0xb0] sm:$0xff]  ;;  %4664 = vrot.lane.b32.xlu1 %v4625_v58, %s10919_s23 }
 0x369   : > { %v5112_v40 = vld [vmem:[#allocation3 + $0xa9] sm:$0xff]  ;;  %v13019_v50 = vpack.c.bf16 %v5942_v44, %v5941_v11  ;;  %v5113_v24 = vld [vmem:[#allocation3 + $0xb1] sm:$0xff]  ;;  %4770 = vst.msk [vmem:[#allocation5 + $0x2e0] sm:$0xff] %vm376_vm6, %v13012_v53  ;;  %v9855_v44 = vpop.f32.mrb[93].mxu0 }
 0x36a   : > { %v5750_v31 = vld [vmem:[#allocation3 + $0xab] sm:$0xff]  ;;  %v5751_v20 = vld [vmem:[#allocation3 + $0xb3] sm:$0xff]  ;;  %4577 = vst.msk [vmem:[#allocation5 + $0x2d8] sm:$0xff] %vm376_vm6, %v13014_v35  ;;  %v5138_v18 = vpack.c.bf16 %v5113_v24, %v5112_v40  ;;  %v9856_v40 = vadd.f32 %v9855_v44, %v9854_v45  ;;  %v9857_v5 = vpop.f32.mrb[94].mxu0  ;;  %v6728_v44 = vld [vmem:[#allocation3 + $0x19b] sm:$0xff] }
 0x36b   : > { %v13025_v10 = vpack.c.bf16 %v5751_v20, %v5750_v31  ;;  %v4921_v27 = vld [vmem:[#allocation3 + $0xac] sm:$0xff]  ;;  %v4922_v9 = vld [vmem:[#allocation3 + $0xb4] sm:$0xff]  ;;  %5537 = vst.msk [vmem:[#allocation5 + $0x230] sm:$0xff] %vm376_vm6, %v13019_v50  ;;  %v9858_v12 = vpop.f32.mrb[95].mxu0 }
 0x36c   : > { %v13028_v30 = vpack.c.bf16 %v4922_v9, %v4921_v27  ;;  %5154 = vst.msk [vmem:[#allocation5 + $0x288] sm:$0xff] %vm376_vm6, %v5138_v18  ;;  %v6708_v2 = vld [vmem:[#allocation3 + $0xab] sm:$0xff]  ;;  %v6709_v58 = vld [vmem:[#allocation3 + $0xb3] sm:$0xff]  ;;  %v4227_v18 = vadd.f32 %v9856_v40, %v12394_v19  ;;  %v9859_v27 = vadd.f32 %v9858_v12, %v9857_v5  ;;  %v5178_v19 = vld [vmem:[#allocation3 + $0xc2] sm:$0xff] }
 0x36d   : > { %14892 = vst [vmem:[#allocation36_spill] sm:$0xff] %v13025_v10  ;;  %5346 = vst.msk [vmem:[#allocation5 + $0x290] sm:$0xff] %vm376_vm6, %v13025_v10  ;;  %v6516_v14 = vld [vmem:[#allocation3 + $0xa9] sm:$0xff]  ;;  %v6517_v23 = vld [vmem:[#allocation3 + $0xb1] sm:$0xff]  ;;  %v13037_v11 = vpack.c.bf16 %v6709_v58, %v6708_v2  ;;  %v13046_v2 = vpack.c.bf16 %v6729_v16, %v6728_v44 }
 0x36e   : > { %14893 = vst [vmem:[#allocation37_spill] sm:$0xff] %v13028_v30  ;;  %4962 = vst.msk [vmem:[#allocation5 + $0x2e8] sm:$0xff] %vm376_vm6, %v13028_v30  ;;  %v13039_v54 = vpack.c.bf16 %v6517_v23, %v6516_v14  ;;  %v5878_v24 = vld [vmem:[#allocation3 + $0xac] sm:$0xff]  ;;  %v5879_v31 = vld [vmem:[#allocation3 + $0xb4] sm:$0xff]  ;;  %v4388_v58 = vadd.f32 %v12765_v4, %v4227_v18  ;;  %v4230_v14 = vadd.f32 %v9859_v27, %v12398_v3 }
 0x36f   : > { %14894 = vst [vmem:[#allocation38_spill] sm:$0xff] %v13037_v11  ;;  %v5686_v20 = vld [vmem:[#allocation3 + $0xaa] sm:$0xff]  ;;  %v5905_v9 = vpack.c.bf16 %v5879_v31, %v5878_v24  ;;  %v5687_v45 = vld [vmem:[#allocation3 + $0xb2] sm:$0xff]  ;;  %v4602_v10 = vld [vmem:[#allocation3 + $0xc1] sm:$0xff] }
 0x370   : > { %14895 = vst [vmem:[#allocation39_spill] sm:$0xff] %v13039_v54  ;;  %v5713_v30 = vpack.c.bf16 %v5687_v45, %v5686_v20  ;;  %6305 = vst.msk [vmem:[#allocation5 + $0x1e8] sm:$0xff] %vm376_vm6, %v13037_v11  ;;  %v4986_v40 = vld [vmem:[#allocation3 + $0xc0] sm:$0xff]  ;;  %v4796_v12 = vld [vmem:[#allocation3 + $0xcb] sm:$0xff]  ;;  %v4472_v16 = vmax.f32 %v4388_v58, 0.0  ;;  %v4391_v4 = vadd.f32 %v12780_v22, %v4230_v14 }
 0x371   : > { %6113 = vst.msk [vmem:[#allocation5 + $0x1e0] sm:$0xff] %vm376_vm6, %v13039_v54  ;;  %14896 = vst [vmem:[#allocation40_spill] sm:$0xff] %v13046_v2  ;;  %v10819_v5 = vld [vmem:[%s14804_s4 + $0xc0] sm:$0xff]   ;;  %v4603_v24 = vld [vmem:[#allocation3 + $0xc9] sm:$0xff] }
 0x372   : > { %5921 = vst.msk [vmem:[#allocation5 + $0x240] sm:$0xff] %vm376_vm6, %v5905_v9  ;;  %v4795_v23 = vld [vmem:[#allocation3 + $0xc3] sm:$0xff]  ;;  %5729 = vst.msk [vmem:[#allocation5 + $0x238] sm:$0xff] %vm376_vm6, %v5713_v30  ;;  %v4626_v31 = vpack.c.bf16 %v4603_v24, %v4602_v10  ;;  %10038 = vmatprep.subr.bf16.mxu0 %v10819_v5  ;;  %v4473_v44 = vmax.f32 %v4391_v4, 0.0  ;;  %v5753_v5 = vld [vmem:[#allocation3 + $0xcb] sm:$0xff] }
 0x373   : > { %6315 = vst.msk [vmem:[#allocation5 + $0x5f8] sm:$0xff] %vm376_vm6, %v13046_v2  ;;  %v4819_v3 = vpack.c.bf16 %v4796_v12, %v4795_v23  ;;  %v5179_v20 = vld [vmem:[#allocation3 + $0xca] sm:$0xff]  ;;  %v10820_v27 = vld [vmem:[%s14804_s4 + $0x80] sm:$0xff]   ;;  %4504 = vst.msk [vmem:[#allocation3 + $0xda] sm:$0xff] %vm376_vm6, %v4472_v16  ;;  %v9860_v12 = vpop.f32.mrb[96].mxu0 }
 0x374   : > { %v4987_v18 = vld [vmem:[#allocation3 + $0xc8] sm:$0xff]  ;;  %v13061_v9 = vpack.c.bf16 %v5179_v20, %v5178_v19  ;;  %v5943_v30 = vld [vmem:[#allocation3 + $0xc0] sm:$0xff]  ;;  %4666 = vrot.lane.b32.xlu1 %v4626_v31, %s10919_s23  ;;  %10039 = vmatpush3.bf16.msra.mxu0 %v10820_v27  ;;  %4505 = vst.msk [vmem:[#allocation3 + $0xe2] sm:$0xff] %vm376_vm6, %v4473_v44  ;;  %v9861_v4 = vpop.f32.mrb[97].mxu0 }
 0x375   : > { %v13063_v45 = vpack.c.bf16 %v4987_v18, %v4986_v40  ;;  %4859 = vrot.lane.b32.xlu0 %v4819_v3, %s10919_s23  ;;  %v5944_v22 = vld [vmem:[#allocation3 + $0xc8] sm:$0xff]  ;;  %v9862_v27 = vadd.f32 %v9861_v4, %v9860_v12  ;;  %v6536_v2 = vld [vmem:[#allocation3 + $0x199] sm:$0xff] }
 0x376   : > { %v5114_v10 = vld [vmem:[#allocation3 + $0xc1] sm:$0xff]  ;;  %v5115_v58 = vld [vmem:[#allocation3 + $0xc9] sm:$0xff]  ;;  %4771 = vst.msk [vmem:[#allocation5 + $0x348] sm:$0xff] %vm376_vm6, %v13061_v9  ;;  %v13072_v14 = vpack.c.bf16 %v5944_v22, %v5943_v30  ;;  %v9863_v30 = vpop.f32.mrb[98].mxu0 }
 0x377   : > { %4578 = vst.msk [vmem:[#allocation5 + $0x340] sm:$0xff] %vm376_vm6, %v13063_v45  ;;  %v5139_v19 = vpack.c.bf16 %v5115_v58, %v5114_v10  ;;  %v5752_v40 = vld [vmem:[#allocation3 + $0xc3] sm:$0xff]  ;;  %v4924_v16 = vld [vmem:[#allocation3 + $0xcc] sm:$0xff]  ;;  %v4235_v12 = vadd.f32 %v9862_v27, %v12444_v47 }
 0x378   : > { %v4923_v23 = vld [vmem:[#allocation3 + $0xc4] sm:$0xff]  ;;  %v13075_v24 = vpack.c.bf16 %v5753_v5, %v5752_v40  ;;  %5538 = vst.msk [vmem:[#allocation5 + $0x298] sm:$0xff] %vm376_vm6, %v13072_v14  ;;  %v5881_v58 = vld [vmem:[#allocation3 + $0xcc] sm:$0xff]  ;;  %v9864_v40 = vpop.f32.mrb[99].mxu0 }
 0x379   : > { %5155 = vst.msk [vmem:[#allocation5 + $0x2f0] sm:$0xff] %vm376_vm6, %v5139_v19  ;;  %v13078_v3 = vpack.c.bf16 %v4924_v16, %v4923_v23  ;;  %v6710_v31 = vld [vmem:[#allocation3 + $0xc3] sm:$0xff]  ;;  %v6711_v20 = vld [vmem:[#allocation3 + $0xcb] sm:$0xff]  ;;  %v9865_v4 = vadd.f32 %v9864_v40, %v9863_v30 }
 0x37a   : > { %14897 = vst [vmem:[#allocation41_spill] sm:$0xff] %v13075_v24  ;;  %v6518_v18 = vld [vmem:[#allocation3 + $0xc1] sm:$0xff]  ;;  %5347 = vst.msk [vmem:[#allocation5 + $0x2f8] sm:$0xff] %vm376_vm6, %v13075_v24  ;;  %v13084_v44 = vpack.c.bf16 %v6711_v20, %v6710_v31  ;;  %v6519_v22 = vld [vmem:[#allocation3 + $0xc9] sm:$0xff] }
 0x37b   : > { %14898 = vst [vmem:[#allocation42_spill] sm:$0xff] %v13078_v3  ;;  %v5880_v10 = vld [vmem:[#allocation3 + $0xc4] sm:$0xff]  ;;  %4963 = vst.msk [vmem:[#allocation5 + $0x350] sm:$0xff] %vm376_vm6, %v13078_v3  ;;  %v13088_v19 = vpack.c.bf16 %v6519_v22, %v6518_v18  ;;  %v5898_v20 = vld [vmem:[#allocation3 + $0x19c] sm:$0xff]  ;;  %v4238_v47 = vadd.f32 %v9865_v4, %v12448_v46 }
 0x37c   : > { %14899 = vst [vmem:[#allocation43_spill] sm:$0xff] %v13084_v44  ;;  %v5906_v5 = vpack.c.bf16 %v5881_v58, %v5880_v10  ;;  %v5688_v23 = vld [vmem:[#allocation3 + $0xc2] sm:$0xff]  ;;  %v5689_v16 = vld [vmem:[#allocation3 + $0xca] sm:$0xff]  ;;  %6306 = vst.msk [vmem:[#allocation5 + $0x250] sm:$0xff] %vm376_vm6, %v13084_v44  ;;  %v4396_v10 = vadd.f32 %v12805_v26, %v4235_v12 }
 0x37d   : > { %14900 = vst [vmem:[#allocation44_spill] sm:$0xff] %v13088_v19  ;;  %v5714_v54 = vpack.c.bf16 %v5689_v16, %v5688_v23  ;;  %v6537_v31 = vld [vmem:[#allocation3 + $0x1a1] sm:$0xff]  ;;  %v4604_v24 = vld [vmem:[#allocation3 + $0xd9] sm:$0xff]  ;;  %6114 = vst.msk [vmem:[#allocation5 + $0x248] sm:$0xff] %vm376_vm6, %v13088_v19  ;;  %v4399_v26 = vadd.f32 %v12810_v62, %v4238_v47 }
 0x37e   : > { %v5899_v11 = vld [vmem:[#allocation3 + $0x1a4] sm:$0xff]  ;;  %5922 = vst.msk [vmem:[#allocation5 + $0x2a8] sm:$0xff] %vm376_vm6, %v5906_v5  ;;  %v13096_v18 = vpack.c.bf16 %v6537_v31, %v6536_v2  ;;  %v5180_v27 = vld [vmem:[#allocation3 + $0xda] sm:$0xff]  ;;  %v10824_v47 = vld [vmem:[%s14804_s4 + $0x90] sm:$0xff]  }
 0x37f   : > { %v5915_v22 = vpack.c.bf16 %v5899_v11, %v5898_v20  ;;  %v4988_v30 = vld [vmem:[#allocation3 + $0xd8] sm:$0xff]  ;;  %v10821_v58 = vld [vmem:[%s14804_s4 + $0xc8] sm:$0xff]   ;;  %5730 = vst.msk [vmem:[#allocation5 + $0x2a0] sm:$0xff] %vm376_vm6, %v5714_v54  ;;  %v4474_v11 = vmax.f32 %v4396_v10, 0.0  ;;  %v4989_v12 = vld [vmem:[#allocation3 + $0xe0] sm:$0xff]  ;;  %v4475_v62 = vmax.f32 %v4399_v26, 0.0 }
 0x380   : > { %14901 = vst [vmem:[#allocation45_spill] sm:$0xff] %v13096_v18  ;;  %v4797_v40 = vld [vmem:[#allocation3 + $0xdb] sm:$0xff]  ;;  %v4798_v5 = vld [vmem:[#allocation3 + $0xe3] sm:$0xff]  ;;  %6123 = vst.msk [vmem:[#allocation5 + $0x5f0] sm:$0xff] %vm376_vm6, %v13096_v18  ;;  %10040 = vmatprep.subr.bf16.mxu0 %v10821_v58  ;;  %v13113_v31 = vpack.c.bf16 %v4989_v12, %v4988_v30 }
 0x381   : > { %v4605_v23 = vld [vmem:[#allocation3 + $0xe1] sm:$0xff]  ;;  %5931 = vst.msk [vmem:[#allocation5 + $0x650] sm:$0xff] %vm376_vm6, %v5915_v22  ;;  %v4820_v46 = vpack.c.bf16 %v4798_v5, %v4797_v40  ;;  %v10823_v20 = vld [vmem:[%s14804_s4 + $0xd0] sm:$0xff]   ;;  %4506 = vst.msk [vmem:[#allocation3 + $0xf2] sm:$0xff] %vm376_vm6, %v4474_v11  ;;  %v9866_v40 = vpop.f32.mrb[100].mxu0 }
 0x382   : > { %v4627_v2 = vpack.c.bf16 %v4605_v23, %v4604_v24  ;;  %v5181_v16 = vld [vmem:[#allocation3 + $0xe2] sm:$0xff]  ;;  %v5945_v24 = vld [vmem:[#allocation3 + $0xd8] sm:$0xff]  ;;  %4579 = vst.msk [vmem:[#allocation5 + $0x3a8] sm:$0xff] %vm376_vm6, %v13113_v31  ;;  %4507 = vst.msk [vmem:[#allocation3 + $0xfa] sm:$0xff] %vm376_vm6, %v4475_v62 }
 0x383   : > { %v10822_v54 = vld [vmem:[%s14804_s4 + $0x88] sm:$0xff]   ;;  %v13111_v4 = vpack.c.bf16 %v5181_v16, %v5180_v27  ;;  %4861 = vrot.lane.b32.xlu0 %v4820_v46, %s10919_s23  ;;  %v5946_v22 = vld [vmem:[#allocation3 + $0xe0] sm:$0xff]  ;;  %v10825_v27 = vld [vmem:[%s14804_s4 + $0xd8] sm:$0xff]   ;;  %v9867_v46 = vpop.f32.mrb[101].mxu0 }
 0x384   : > { %4668 = vrot.lane.b32.xlu1 %v4627_v2, %s10919_s23  ;;  %v5116_v10 = vld [vmem:[#allocation3 + $0xd9] sm:$0xff]  ;;  %10041 = vmatpush3.bf16.msra.mxu0 %v10822_v54  ;;  %v13131_v30 = vpack.c.bf16 %v5946_v22, %v5945_v24  ;;  %v5117_v58 = vld [vmem:[#allocation3 + $0xe1] sm:$0xff]  ;;  %v9868_v12 = vadd.f32 %v9867_v46, %v9866_v40  ;;  %v9869_v54 = vpop.f32.mrb[102].mxu0 }
 0x385   : > { %4772 = vst.msk [vmem:[#allocation5 + $0x3b0] sm:$0xff] %vm376_vm6, %v13111_v4  ;;  %10042 = vmatprep.subr.bf16.mxu0 %v10823_v20  ;;  %v5140_v5 = vpack.c.bf16 %v5117_v58, %v5116_v10  ;;  %v5754_v23 = vld [vmem:[#allocation3 + $0xdb] sm:$0xff]  ;;  %v5755_v11 = vld [vmem:[#allocation3 + $0xe3] sm:$0xff]  ;;  %v9870_v10 = vpop.f32.mrb[103].mxu0 }
 0x386   : > { %v4925_v26 = vld [vmem:[#allocation3 + $0xdc] sm:$0xff]  ;;  %v13134_v2 = vpack.c.bf16 %v5755_v11, %v5754_v23  ;;  %v4926_v16 = vld [vmem:[#allocation3 + $0xe4] sm:$0xff]  ;;  %5539 = vst.msk [vmem:[#allocation5 + $0x300] sm:$0xff] %vm376_vm6, %v13131_v30 }
 0x387   : > { %5156 = vst.msk [vmem:[#allocation5 + $0x358] sm:$0xff] %vm376_vm6, %v5140_v5  ;;  %v13139_v24 = vpack.c.bf16 %v4926_v16, %v4925_v26  ;;  %v6712_v62 = vld [vmem:[#allocation3 + $0xdb] sm:$0xff]  ;;  %v6713_v22 = vld [vmem:[#allocation3 + $0xe3] sm:$0xff]  ;;  %v4243_v5 = vadd.f32 %v9868_v12, %v12482_v36  ;;  %v9871_v26 = vadd.f32 %v9870_v10, %v9869_v54 }
 0x388   : > { %v6520_v20 = vld [vmem:[#allocation3 + $0xd9] sm:$0xff]  ;;  %10043 = vmatpush3.bf16.msra.mxu0 %v10824_v47  ;;  %5348 = vst.msk [vmem:[#allocation5 + $0x360] sm:$0xff] %vm376_vm6, %v13134_v2  ;;  %v13146_v23 = vpack.c.bf16 %v6713_v22, %v6712_v62  ;;  %v6521_v40 = vld [vmem:[#allocation3 + $0xe1] sm:$0xff]  ;;  %v4606_v19 = vld [vmem:[#allocation3 + $0xf1] sm:$0xff] }
 0x389   : > { %14902 = vst [vmem:[#allocation46_spill] sm:$0xff] %v13139_v24  ;;  %v10826_v58 = vld [vmem:[%s14804_s4 + $0x98] sm:$0xff]   ;;  %10044 = vmatprep.subr.bf16.mxu0 %v10825_v27  ;;  %4964 = vst.msk [vmem:[#allocation5 + $0x3b8] sm:$0xff] %vm376_vm6, %v13139_v24  ;;  %v13151_v46 = vpack.c.bf16 %v6521_v40, %v6520_v20  ;;  %v5883_v47 = vld [vmem:[#allocation3 + $0xe4] sm:$0xff]  ;;  %v4404_v62 = vadd.f32 %v12801_v13, %v4243_v5  ;;  %v4246_v36 = vadd.f32 %v9871_v26, %v12485_v33 }
 0x38a   : > { %14903 = vst [vmem:[#allocation47_spill] sm:$0xff] %v13146_v23  ;;  %v5882_v11 = vld [vmem:[#allocation3 + $0xdc] sm:$0xff]  ;;  %6307 = vst.msk [vmem:[#allocation5 + $0x2b8] sm:$0xff] %vm376_vm6, %v13146_v23  ;;  %v5182_v12 = vld [vmem:[#allocation3 + $0xf2] sm:$0xff] }
 0x38b   : > { %14904 = vst [vmem:[#allocation48_spill] sm:$0xff] %v13151_v46  ;;  %v5690_v16 = vld [vmem:[#allocation3 + $0xda] sm:$0xff]  ;;  %v5691_v18 = vld [vmem:[#allocation3 + $0xe2] sm:$0xff]  ;;  %v5907_v44 = vpack.c.bf16 %v5883_v47, %v5882_v11  ;;  %v4990_v27 = vld [vmem:[#allocation3 + $0xf0] sm:$0xff]  ;;  %v4476_v13 = vmax.f32 %v4404_v62, 0.0  ;;  %v4407_v33 = vadd.f32 %v12807_v29, %v4246_v36 }
 0x38c   : > { %v5715_v3 = vpack.c.bf16 %v5691_v18, %v5690_v16  ;;  %v10827_v54 = vld [vmem:[%s14804_s4 + $0xe0] sm:$0xff]   ;;  %6115 = vst.msk [vmem:[#allocation5 + $0x2b0] sm:$0xff] %vm376_vm6, %v13151_v46  ;;  %v4799_v22 = vld [vmem:[#allocation3 + $0xf3] sm:$0xff]  ;;  %10045 = vmatpush3.bf16.msra.mxu0 %v10826_v58  ;;  %v10831_v62 = vld [vmem:[%s14804_s4 + $0xa8] sm:$0xff]  }
 0x38d   : > { %v4800_v20 = vld [vmem:[#allocation3 + $0xfb] sm:$0xff]  ;;  %5923 = vst.msk [vmem:[#allocation5 + $0x310] sm:$0xff] %vm376_vm6, %v5907_v44  ;;  %10046 = vmatprep.subr.bf16.mxu0 %v10827_v54  ;;  %4508 = vst.msk [vmem:[#allocation3 + $0x10a] sm:$0xff] %vm376_vm6, %v4476_v13  ;;  %v4477_v44 = vmax.f32 %v4407_v33, 0.0  ;;  %v9872_v54 = vpop.f32.mrb[104].mxu0 }
 0x38e   : > { %v4607_v10 = vld [vmem:[#allocation3 + $0xf9] sm:$0xff]  ;;  %5731 = vst.msk [vmem:[#allocation5 + $0x308] sm:$0xff] %vm376_vm6, %v5715_v3  ;;  %v4821_v18 = vpack.c.bf16 %v4800_v20, %v4799_v22  ;;  %v10829_v3 = vld [vmem:[%s14804_s4 + $0xe8] sm:$0xff]   ;;  %v5118_v20 = vld [vmem:[#allocation3 + $0xf1] sm:$0xff]  ;;  %v9873_v13 = vpop.f32.mrb[105].mxu0 }
 0x38f   : > { %v4628_v40 = vpack.c.bf16 %v4607_v10, %v4606_v19  ;;  %v5183_v11 = vld [vmem:[#allocation3 + $0xfa] sm:$0xff]  ;;  %v5947_v19 = vld [vmem:[#allocation3 + $0xf0] sm:$0xff]  ;;  %4509 = vst.msk [vmem:[#allocation3 + $0x112] sm:$0xff] %vm376_vm6, %v4477_v44 }
 0x390   : > { %v4991_v5 = vld [vmem:[#allocation3 + $0xf8] sm:$0xff]  ;;  %v10828_v26 = vld [vmem:[%s14804_s4 + $0xa0] sm:$0xff]   ;;  %v13168_v47 = vpack.c.bf16 %v5183_v11, %v5182_v12  ;;  %4863 = vrot.lane.b32.xlu0 %v4821_v18, %s10919_s23  ;;  %v10833_v11 = vld [vmem:[%s14804_s4 + $0xf0] sm:$0xff]  }
 0x391   : > { %v13170_v16 = vpack.c.bf16 %v4991_v5, %v4990_v27  ;;  %v10830_v29 = vld [vmem:[%s14804_s4 + $0x140] sm:$0xff]   ;;  %4670 = vrot.lane.b32.xlu1 %v4628_v40, %s10919_s23  ;;  %v5948_v58 = vld [vmem:[#allocation3 + $0xf8] sm:$0xff]  ;;  %10047 = vmatpush3.bf16.msra.mxu0 %v10828_v26  ;;  %v4908_v40 = vld [vmem:[#allocation3 + $0xc] sm:$0xff]  ;;  %v9874_v26 = vadd.f32 %v9873_v13, %v9872_v54 }
 0x392   : > { %4773 = vst.msk [vmem:[#allocation5 + $0x418] sm:$0xff] %vm376_vm6, %v13168_v47  ;;  %10150 = vmatprep.subr.bf16.mxu1 %v10830_v29  ;;  %v10832_v36 = vld [vmem:[%s14804_s4 + $0x100] sm:$0xff]   ;;  %v13191_v27 = vpack.c.bf16 %v5948_v58, %v5947_v19  ;;  %10048 = vmatprep.subr.bf16.mxu0 %v10829_v3  ;;  %v9875_v29 = vpop.f32.mrb[106].mxu0  ;;  %v5756_v3 = vld [vmem:[#allocation3 + $0xf3] sm:$0xff] }
 0x393   : > { %4580 = vst.msk [vmem:[#allocation5 + $0x410] sm:$0xff] %vm376_vm6, %v13170_v16  ;;  %v5100_v12 = vld [vmem:[#allocation3 + $0x19] sm:$0xff]  ;;  %v5101_v22 = vld [vmem:[#allocation3 + $0x21] sm:$0xff]  ;;  %10151 = vmatpush3.bf16.msra.mxu1 %v10832_v36  ;;  %v9876_v46 = vpop.f32.mrb[107].mxu0  ;;  %v10834_v36 = vld [vmem:[%s14804_s4 + $0xb0] sm:$0xff]   ;;  %v4251_v54 = vadd.f32 %v9874_v26, %v12506_v63 }
 0x394   : > { %v5119_v10 = vld [vmem:[#allocation3 + $0xf9] sm:$0xff]  ;;  %v5132_v33 = vpack.c.bf16 %v5101_v22, %v5100_v12  ;;  %v4907_v18 = vld [vmem:[#allocation3 + $0x4] sm:$0xff]  ;;  %5540 = vst.msk [vmem:[#allocation5 + $0x368] sm:$0xff] %vm376_vm6, %v13191_v27 }
 0x395   : > { %v5141_v5 = vpack.c.bf16 %v5119_v10, %v5118_v20  ;;  %v4939_v44 = vpack.c.bf16 %v4908_v40, %v4907_v18  ;;  %v5757_v19 = vld [vmem:[#allocation3 + $0xfb] sm:$0xff]  ;;  %10049 = vmatpush3.bf16.msra.mxu0 %v10831_v62  ;;  %v9877_v20 = vadd.f32 %v9876_v46, %v9875_v29  ;;  %v6714_v62 = vld [vmem:[#allocation3 + $0xf3] sm:$0xff]  ;;  %v4412_v40 = vadd.f32 %v12842_v34, %v4251_v54  ;;  %v4992_v63 = vld [vmem:[#allocation3 + $0x108] sm:$0xff] }
 0x396   : > { %v4927_v58 = vld [vmem:[#allocation3 + $0xf4] sm:$0xff]  ;;  %5148 = vst.msk [vmem:[#allocation5 + $0x18] sm:$0xff] %vm376_vm6, %v5132_v33  ;;  %v13204_v12 = vpack.c.bf16 %v5757_v19, %v5756_v3  ;;  %v4928_v22 = vld [vmem:[#allocation3 + $0xfc] sm:$0xff]  ;;  %10050 = vmatprep.subr.bf16.mxu0 %v10833_v11  ;;  %v4608_v33 = vld [vmem:[#allocation3 + $0x109] sm:$0xff] }
 0x397   : > { %5157 = vst.msk [vmem:[#allocation5 + $0x3c0] sm:$0xff] %vm376_vm6, %v5141_v5  ;;  %4955 = vst.msk [vmem:[#allocation5 + $0x10] sm:$0xff] %vm376_vm6, %v4939_v44  ;;  %v13208_v10 = vpack.c.bf16 %v4928_v22, %v4927_v58  ;;  %v6715_v13 = vld [vmem:[#allocation3 + $0xfb] sm:$0xff]  ;;  %v4254_v5 = vadd.f32 %v9877_v20, %v12509_v57  ;;  %v5184_v3 = vld [vmem:[#allocation3 + $0x10a] sm:$0xff]  ;;  %v4478_v44 = vmax.f32 %v4412_v40, 0.0 }
 0x398   : > { %5349 = vst.msk [vmem:[#allocation5 + $0x3c8] sm:$0xff] %vm376_vm6, %v13204_v12  ;;  %v13212_v18 = vpack.c.bf16 %v6715_v13, %v6714_v62  ;;  %v10835_v46 = vld [vmem:[%s14804_s4 + $0xf8] sm:$0xff]   ;;  %v4801_v11 = vld [vmem:[#allocation3 + $0x10b] sm:$0xff] }
 0x399   : > { %14905 = vst [vmem:[#allocation49_spill] sm:$0xff] %v13208_v10  ;;  %4965 = vst.msk [vmem:[#allocation5 + $0x420] sm:$0xff] %vm376_vm6, %v13208_v10  ;;  %v4802_v26 = vld [vmem:[#allocation3 + $0x113] sm:$0xff]  ;;  %10051 = vmatpush3.bf16.msra.mxu0 %v10834_v36  ;;  %v4415_v34 = vadd.f32 %v12849_v17, %v4254_v5  ;;  %v5949_v36 = vld [vmem:[#allocation3 + $0x108] sm:$0xff] }
 0x39a   : > { %14906 = vst [vmem:[#allocation50_spill] sm:$0xff] %v13212_v18  ;;  %v4609_v29 = vld [vmem:[#allocation3 + $0x111] sm:$0xff]  ;;  %6308 = vst.msk [vmem:[#allocation5 + $0x320] sm:$0xff] %vm376_vm6, %v13212_v18  ;;  %v4822_v57 = vpack.c.bf16 %v4802_v26, %v4801_v11  ;;  %10052 = vmatprep.subr.bf16.mxu0 %v10835_v46  ;;  %v9878_v26 = vpop.f32.mrb[108].mxu0  ;;  %v5693_v23 = vld [vmem:[#allocation3 + $0xfa] sm:$0xff] }
 0x39b   : > { %v4629_v19 = vpack.c.bf16 %v4609_v29, %v4608_v33  ;;  %v5185_v58 = vld [vmem:[#allocation3 + $0x112] sm:$0xff]  ;;  %4510 = vst.msk [vmem:[#allocation3 + $0x122] sm:$0xff] %vm376_vm6, %v4478_v44  ;;  %v4479_v13 = vmax.f32 %v4415_v34, 0.0  ;;  %v5120_v33 = vld [vmem:[#allocation3 + $0x109] sm:$0xff]  ;;  %v9879_v34 = vpop.f32.mrb[109].mxu0 }
 0x39c   : > { %v4993_v22 = vld [vmem:[#allocation3 + $0x110] sm:$0xff]  ;;  %v10836_v54 = vld [vmem:[%s14804_s4 + $0xb8] sm:$0xff]   ;;  %v13227_v20 = vpack.c.bf16 %v5185_v58, %v5184_v3  ;;  %4865 = vrot.lane.b32.xlu0 %v4822_v57, %s10919_s23 }
 0x39d   : > { %v13229_v62 = vpack.c.bf16 %v4993_v22, %v4992_v63  ;;  %4672 = vrot.lane.b32.xlu1 %v4629_v19, %s10919_s23  ;;  %v5950_v17 = vld [vmem:[#allocation3 + $0x110] sm:$0xff]  ;;  %10053 = vmatpush3.bf16.msra.mxu0 %v10836_v54  ;;  %4511 = vst.msk [vmem:[#allocation3 + $0x12a] sm:$0xff] %vm376_vm6, %v4479_v13  ;;  %v6523_v58 = vld [vmem:[#allocation3 + $0xf9] sm:$0xff]  ;;  %v9880_v54 = vadd.f32 %v9879_v34, %v9878_v26  ;;  %v10837_v13 = vld [vmem:[%s14804_s4 + $0x148] sm:$0xff]   ;;  %v4655_v34 = vpop.permute.xlu1 %4654 }
 0x39e   : > { %v5121_v40 = vld [vmem:[#allocation3 + $0x111] sm:$0xff]  ;;  %4774 = vst.msk [vmem:[#allocation5 + $0x480] sm:$0xff] %vm376_vm6, %v13227_v20  ;;  %v13238_v5 = vpack.c.bf16 %v5950_v17, %v5949_v36  ;;  %v9881_v36 = vpop.f32.mrb[110].mxu0  ;;  %10152 = vmatprep.subr.bf16.mxu1 %v10837_v13 }
 0x39f   : > { %4581 = vst.msk [vmem:[#allocation5 + $0x478] sm:$0xff] %vm376_vm6, %v13229_v62  ;;  %v5142_v3 = vpack.c.bf16 %v5121_v40, %v5120_v33  ;;  %v5758_v63 = vld [vmem:[#allocation3 + $0x10b] sm:$0xff]  ;;  %v5759_v46 = vld [vmem:[#allocation3 + $0x113] sm:$0xff] }
 0x3a0   : > { %v4929_v11 = vld [vmem:[#allocation3 + $0x10c] sm:$0xff]  ;;  %v13241_v29 = vpack.c.bf16 %v5759_v46, %v5758_v63  ;;  %v4930_v44 = vld [vmem:[#allocation3 + $0x114] sm:$0xff]  ;;  %5541 = vst.msk [vmem:[#allocation5 + $0x3d0] sm:$0xff] %vm376_vm6, %v13238_v5  ;;  %5228 = vrot.lane.b32.xlu0 %v12732_v39, %s10919_s23 }
 0x3a1   : > { %5158 = vst.msk [vmem:[#allocation5 + $0x428] sm:$0xff] %vm376_vm6, %v5142_v3  ;;  %v13244_v57 = vpack.c.bf16 %v4930_v44, %v4929_v11  ;;  %v6522_v19 = vld [vmem:[#allocation3 + $0xf1] sm:$0xff]  ;;  %5036 = vrot.lane.b32.xlu1 %v12734_v60, %s10919_s23  ;;  %v6524_v40 = vld [vmem:[#allocation3 + $0x109] sm:$0xff]  ;;  %v9882_v3 = vpop.f32.mrb[111].mxu0  ;;  %v4259_v11 = vadd.f32 %v9880_v54, %v12615_v0  ;;  %v4848_v44 = vpop.permute.xlu0 %4847 }
 0x3a2   : > { %v6716_v22 = vld [vmem:[#allocation3 + $0x10b] sm:$0xff]  ;;  %5350 = vst.msk [vmem:[#allocation5 + $0x430] sm:$0xff] %vm376_vm6, %v13241_v29  ;;  %v13257_v17 = vpack.c.bf16 %v6523_v58, %v6522_v19  ;;  %v6717_v33 = vld [vmem:[#allocation3 + $0x113] sm:$0xff]  ;;  %v9883_v26 = vadd.f32 %v9882_v3, %v9881_v36  ;;  %v5885_v58 = vld [vmem:[#allocation3 + $0xfc] sm:$0xff] }
 0x3a3   : > { %14907 = vst [vmem:[#allocation51_spill] sm:$0xff] %v13244_v57  ;;  %v10838_v63 = vld [vmem:[%s14804_s4 + $0x108] sm:$0xff]   ;;  %4966 = vst.msk [vmem:[#allocation5 + $0x488] sm:$0xff] %vm376_vm6, %v13244_v57  ;;  %v13264_v39 = vpack.c.bf16 %v6717_v33, %v6716_v22  ;;  %v6525_v60 = vld [vmem:[#allocation3 + $0x111] sm:$0xff]  ;;  %v4420_v0 = vadd.f32 %v12838_v52, %v4259_v11 }
 0x3a4   : > { %14908 = vst [vmem:[#allocation52_spill] sm:$0xff] %v13257_v17  ;;  %v5884_v46 = vld [vmem:[#allocation3 + $0xf4] sm:$0xff]  ;;  %v13267_v19 = vpack.c.bf16 %v6525_v60, %v6524_v40  ;;  %6116 = vst.msk [vmem:[#allocation5 + $0x318] sm:$0xff] %vm376_vm6, %v13257_v17  ;;  %10153 = vmatpush3.bf16.msra.mxu1 %v10838_v63  ;;  %v4262_v54 = vadd.f32 %v9883_v26, %v12621_v38  ;;  %v4610_v36 = vld [vmem:[#allocation3 + $0x121] sm:$0xff] }
 0x3a5   : > { %14909 = vst [vmem:[#allocation53_spill] sm:$0xff] %v13264_v39  ;;  %v5692_v18 = vld [vmem:[#allocation3 + $0xf2] sm:$0xff]  ;;  %4893 = vst.msk [vmem:[#allocation5 + $0xd8] sm:$0xff] %vm4698_vm9, %v4848_v44  ;;  %v5908_v22 = vpack.c.bf16 %v5885_v58, %v5884_v46  ;;  %v5186_v13 = vld [vmem:[#allocation3 + $0x122] sm:$0xff] }
 0x3a6   : > { %14910 = vst [vmem:[#allocation54_spill] sm:$0xff] %v13267_v19  ;;  %4701 = vst.msk [vmem:[#allocation5 + $0xd0] sm:$0xff] %vm4698_vm9, %v4655_v34  ;;  %v5716_v33 = vpack.c.bf16 %v5693_v23, %v5692_v18  ;;  %v4803_v40 = vld [vmem:[#allocation3 + $0x123] sm:$0xff]  ;;  %v4804_v3 = vld [vmem:[#allocation3 + $0x12b] sm:$0xff]  ;;  %v4480_v23 = vmax.f32 %v4420_v0, 0.0  ;;  %v4423_v18 = vadd.f32 %v12844_v1, %v4262_v54 }
 0x3a7   : > { %6309 = vst.msk [vmem:[#allocation5 + $0x388] sm:$0xff] %vm376_vm6, %v13264_v39  ;;  %6117 = vst.msk [vmem:[#allocation5 + $0x380] sm:$0xff] %vm376_vm6, %v13267_v19  ;;  %v4611_v60 = vld [vmem:[#allocation3 + $0x129] sm:$0xff]  ;;  %v4823_v63 = vpack.c.bf16 %v4804_v3, %v4803_v40  ;;  %v4994_v11 = vld [vmem:[#allocation3 + $0x120] sm:$0xff]  ;;  %v4657_v39 = vpop.permute.xlu1 %4656 }
 0x3a8   : > { %5924 = vst.msk [vmem:[#allocation5 + $0x378] sm:$0xff] %vm376_vm6, %v5908_v22  ;;  %5732 = vst.msk [vmem:[#allocation5 + $0x370] sm:$0xff] %vm376_vm6, %v5716_v33  ;;  %v4630_v46 = vpack.c.bf16 %v4611_v60, %v4610_v36  ;;  %v5187_v52 = vld [vmem:[#allocation3 + $0x12a] sm:$0xff]  ;;  %v5951_v34 = vld [vmem:[#allocation3 + $0x120] sm:$0xff]  ;;  %v4481_v22 = vmax.f32 %v4423_v18, 0.0  ;;  %v9884_v60 = vpop.f32.mrb[112].mxu0 }
 0x3a9   : > { %v4995_v38 = vld [vmem:[#allocation3 + $0x128] sm:$0xff]  ;;  %v13282_v26 = vpack.c.bf16 %v5187_v52, %v5186_v13  ;;  %4512 = vst.msk [vmem:[#allocation3 + $0x13a] sm:$0xff] %vm376_vm6, %v4480_v23  ;;  %4867 = vrot.lane.b32.xlu0 %v4823_v63, %s10919_s23  ;;  %v5706_v57 = vld [vmem:[#allocation3 + $0x19a] sm:$0xff] }
 0x3aa   : > { %v13284_v44 = vpack.c.bf16 %v4995_v38, %v4994_v11  ;;  %v5952_v58 = vld [vmem:[#allocation3 + $0x128] sm:$0xff]  ;;  %4674 = vrot.lane.b32.xlu1 %v4630_v46, %s10919_s23  ;;  %4513 = vst.msk [vmem:[#allocation3 + $0x142] sm:$0xff] %vm376_vm6, %v4481_v22  ;;  %v9885_v46 = vpop.f32.mrb[113].mxu0 }
 0x3ab   : > { %v5122_v19 = vld [vmem:[#allocation3 + $0x121] sm:$0xff]  ;;  %v13289_v1 = vpack.c.bf16 %v5952_v58, %v5951_v34  ;;  %v5123_v33 = vld [vmem:[#allocation3 + $0x129] sm:$0xff]  ;;  %4775 = vst.msk [vmem:[#allocation5 + $0x4e8] sm:$0xff] %vm376_vm6, %v13282_v26  ;;  %v9886_v38 = vadd.f32 %v9885_v46, %v9884_v60  ;;  %v9887_v34 = vpop.f32.mrb[114].mxu0  ;;  %v5695_v60 = vld [vmem:[#allocation3 + $0x112] sm:$0xff]  ;;  %v4850_v46 = vpop.permute.xlu0 %4849 }
 0x3ac   : > { %v5760_v0 = vld [vmem:[#allocation3 + $0x123] sm:$0xff]  ;;  %v5761_v54 = vld [vmem:[#allocation3 + $0x12b] sm:$0xff]  ;;  %4582 = vst.msk [vmem:[#allocation5 + $0x4e0] sm:$0xff] %vm376_vm6, %v13284_v44  ;;  %v5143_v36 = vpack.c.bf16 %v5123_v33, %v5122_v19  ;;  %v6921_v23 = vld [vmem:[#allocation5 + $0xd8] sm:$0xff] }
 0x3ad   : > { %v13295_v13 = vpack.c.bf16 %v5761_v54, %v5760_v0  ;;  %v4931_v40 = vld [vmem:[#allocation3 + $0x124] sm:$0xff]  ;;  %v4932_v3 = vld [vmem:[#allocation3 + $0x12c] sm:$0xff]  ;;  %5542 = vst.msk [vmem:[#allocation5 + $0x438] sm:$0xff] %vm376_vm6, %v13289_v1  ;;  %8005 = vmatprep.mubr.bf16.mxu1 %v6921_v23  ;;  %5230 = vrot.lane.b32.xlu0 %v12767_v32, %s10919_s23  ;;  %v5887_v0 = vld [vmem:[#allocation3 + $0x114] sm:$0xff]  ;;  %v9888_v54 = vpop.f32.mrb[115].mxu0  ;;  %v4267_v32 = vadd.f32 %v9886_v38, %v12636_v25 }
 0x3ae   : > { %v6920_v18 = vld [vmem:[#allocation5 + $0xd0] sm:$0xff]  ;;  %v13298_v63 = vpack.c.bf16 %v4932_v3, %v4931_v40  ;;  %5159 = vst.msk [vmem:[#allocation5 + $0x490] sm:$0xff] %vm376_vm6, %v5143_v36  ;;  %v6718_v19 = vld [vmem:[#allocation3 + $0x123] sm:$0xff]  ;;  %5038 = vrot.lane.b32.xlu1 %v12769_v7, %s10919_s23 }
 0x3af   : > { %5351 = vst.msk [vmem:[#allocation5 + $0x498] sm:$0xff] %vm376_vm6, %v13295_v13  ;;  %v6719_v52 = vld [vmem:[#allocation3 + $0x12b] sm:$0xff]  ;;  %v6526_v11 = vld [vmem:[#allocation3 + $0x121] sm:$0xff]  ;;  %8006 = vmatmul.mubr.bf16.gmra.mrb[108].mxu1 %v6920_v18  ;;  %v9889_v18 = vadd.f32 %v9888_v54, %v9887_v34  ;;  %v4428_v25 = vadd.f32 %v12867_v49, %v4267_v32 }
 0x3b0   : > { %14911 = vst [vmem:[#allocation55_spill] sm:$0xff] %v13298_v63  ;;  %4967 = vst.msk [vmem:[#allocation5 + $0x4f0] sm:$0xff] %vm376_vm6, %v13298_v63  ;;  %v13309_v58 = vpack.c.bf16 %v6719_v52, %v6718_v19  ;;  %v6527_v22 = vld [vmem:[#allocation3 + $0x129] sm:$0xff]  ;;  %v14914_v38 = vld [vmem:[#allocation6_spill] sm:$0xff] }
 0x3b1   : > { %v5886_v33 = vld [vmem:[#allocation3 + $0x10c] sm:$0xff]  ;;  %v13313_v36 = vpack.c.bf16 %v6527_v22, %v6526_v11  ;;  %v5888_v23 = vld [vmem:[#allocation3 + $0x124] sm:$0xff]  ;;  %4894 = vst.msk [vmem:[#allocation5 + $0x140] sm:$0xff] %vm4698_vm9, %v4850_v46  ;;  %4702 = vst.msk [vmem:[#allocation5 + $0x138] sm:$0xff] %vm4698_vm9, %v4657_v39  ;;  %v4270_v34 = vadd.f32 %v9889_v18, %v14914_v38 }
 0x3b2   : > { %14912 = vst [vmem:[#allocation56_spill] sm:$0xff] %v13309_v58  ;;  %v5909_v40 = vpack.c.bf16 %v5887_v0, %v5886_v33  ;;  %v5694_v3 = vld [vmem:[#allocation3 + $0x10a] sm:$0xff]  ;;  %v5696_v17 = vld [vmem:[#allocation3 + $0x122] sm:$0xff]  ;;  %6310 = vst.msk [vmem:[#allocation5 + $0x3f0] sm:$0xff] %vm376_vm6, %v13309_v58 }
 0x3b3   : > { %14913 = vst [vmem:[#allocation57_spill] sm:$0xff] %v13313_v36  ;;  %v5717_v19 = vpack.c.bf16 %v5695_v60, %v5694_v3  ;;  %v5889_v52 = vld [vmem:[#allocation3 + $0x12c] sm:$0xff]  ;;  %6118 = vst.msk [vmem:[#allocation5 + $0x3e8] sm:$0xff] %vm376_vm6, %v13313_v36  ;;  %v4612_v22 = vld [vmem:[#allocation3 + $0x139] sm:$0xff]  ;;  %v4431_v49 = vadd.f32 %v12884_v21, %v4270_v34 }
 0x3b4   : > { %v5697_v63 = vld [vmem:[#allocation3 + $0x12a] sm:$0xff]  ;;  %5925 = vst.msk [vmem:[#allocation5 + $0x3e0] sm:$0xff] %vm376_vm6, %v5909_v40  ;;  %v5910_v7 = vpack.c.bf16 %v5889_v52, %v5888_v23  ;;  %v5188_v33 = vld [vmem:[#allocation3 + $0x13a] sm:$0xff]  ;;  %v5189_v60 = vld [vmem:[#allocation3 + $0x142] sm:$0xff] }
 0x3b5   : > { %v5718_v11 = vpack.c.bf16 %v5697_v63, %v5696_v17  ;;  %v10839_v0 = vld [vmem:[%s14804_s4 + $0x150] sm:$0xff]   ;;  %5733 = vst.msk [vmem:[#allocation5 + $0x3d8] sm:$0xff] %vm376_vm6, %v5717_v19  ;;  %v4805_v39 = vld [vmem:[#allocation3 + $0x13b] sm:$0xff]  ;;  %v4806_v54 = vld [vmem:[#allocation3 + $0x143] sm:$0xff]  ;;  %v4482_v17 = vmax.f32 %v4428_v25, 0.0  ;;  %v13332_v18 = vpack.c.bf16 %v5189_v60, %v5188_v33 }
 0x3b6   : > { %v4613_v40 = vld [vmem:[#allocation3 + $0x141] sm:$0xff]  ;;  %5926 = vst.msk [vmem:[#allocation5 + $0x448] sm:$0xff] %vm376_vm6, %v5910_v7  ;;  %v4824_v63 = vpack.c.bf16 %v4806_v54, %v4805_v39  ;;  %v4996_v23 = vld [vmem:[#allocation3 + $0x138] sm:$0xff]  ;;  %10154 = vmatprep.subr.bf16.mxu1 %v10839_v0  ;;  %v10840_v19 = vld [vmem:[%s14804_s4 + $0x110] sm:$0xff]   ;;  %v4483_v7 = vmax.f32 %v4431_v49, 0.0  ;;  %v9890_v39 = vpop.f32.mrb[116].mxu0 }
 0x3b7   : > { %5734 = vst.msk [vmem:[#allocation5 + $0x440] sm:$0xff] %vm376_vm6, %v5718_v11  ;;  %v4631_v3 = vpack.c.bf16 %v4613_v40, %v4612_v22  ;;  %v4997_v32 = vld [vmem:[#allocation3 + $0x140] sm:$0xff]  ;;  %v5953_v52 = vld [vmem:[#allocation3 + $0x138] sm:$0xff]  ;;  %4514 = vst.msk [vmem:[#allocation3 + $0x152] sm:$0xff] %vm376_vm6, %v4482_v17  ;;  %10155 = vmatpush3.bf16.msra.mxu1 %v10840_v19 }
 0x3b8   : > { %v13334_v46 = vpack.c.bf16 %v4997_v32, %v4996_v23  ;;  %4869 = vrot.lane.b32.xlu0 %v4824_v63, %s10919_s23  ;;  %v5954_v21 = vld [vmem:[#allocation3 + $0x140] sm:$0xff]  ;;  %4776 = vst.msk [vmem:[#allocation5 + $0x550] sm:$0xff] %vm376_vm6, %v13332_v18  ;;  %4515 = vst.msk [vmem:[#allocation3 + $0x15a] sm:$0xff] %vm376_vm6, %v4483_v7  ;;  %v6933_v40 = vld [vmem:[#allocation5 + $0x138] sm:$0xff]  ;;  %v9891_v63 = vpop.f32.mrb[117].mxu0 }
 0x3b9   : > { %4676 = vrot.lane.b32.xlu1 %v4631_v3, %s10919_s23  ;;  %v5124_v11 = vld [vmem:[#allocation3 + $0x139] sm:$0xff]  ;;  %v5125_v25 = vld [vmem:[#allocation3 + $0x141] sm:$0xff]  ;;  %v13346_v38 = vpack.c.bf16 %v5954_v21, %v5953_v52  ;;  %v9892_v23 = vadd.f32 %v9891_v63, %v9890_v39  ;;  %v9893_v32 = vpop.f32.mrb[118].mxu0  ;;  %v4852_v63 = vpop.permute.xlu0 %4851 }
 0x3ba   : > { %4583 = vst.msk [vmem:[#allocation5 + $0x548] sm:$0xff] %vm376_vm6, %v13334_v46  ;;  %v5144_v34 = vpack.c.bf16 %v5125_v25, %v5124_v11  ;;  %v5762_v22 = vld [vmem:[#allocation3 + $0x13b] sm:$0xff]  ;;  %v5763_v33 = vld [vmem:[#allocation3 + $0x143] sm:$0xff]  ;;  %v9894_v25 = vpop.f32.mrb[119].mxu0 }
 0x3bb   : > { %v4933_v0 = vld [vmem:[#allocation3 + $0x13c] sm:$0xff]  ;;  %v13349_v17 = vpack.c.bf16 %v5763_v33, %v5762_v22  ;;  %v4934_v49 = vld [vmem:[#allocation3 + $0x144] sm:$0xff]  ;;  %5543 = vst.msk [vmem:[#allocation5 + $0x4a0] sm:$0xff] %vm376_vm6, %v13346_v38 }
 0x3bc   : > { %v6934_v54 = vld [vmem:[#allocation5 + $0x140] sm:$0xff]  ;;  %5160 = vst.msk [vmem:[#allocation5 + $0x4f8] sm:$0xff] %vm376_vm6, %v5144_v34  ;;  %v13352_v3 = vpack.c.bf16 %v4934_v49, %v4933_v0  ;;  %v14918_v11 = vld [vmem:[#allocation15_spill] sm:$0xff]  ;;  %v9895_v49 = vadd.f32 %v9894_v25, %v9893_v32  ;;  %v14922_v32 = vld [vmem:[#allocation8_spill] sm:$0xff] }
 0x3bd   : > { %14915 = vst [vmem:[#allocation6_spill] sm:$0xff] %v13349_v17  ;;  %8013 = vmatprep.mubr.bf16.mxu1 %v6934_v54  ;;  %v6720_v60 = vld [vmem:[#allocation3 + $0x13b] sm:$0xff]  ;;  %5352 = vst.msk [vmem:[#allocation5 + $0x500] sm:$0xff] %vm376_vm6, %v13349_v17  ;;  %v6721_v52 = vld [vmem:[#allocation3 + $0x143] sm:$0xff]  ;;  %5040 = vrot.lane.b32.xlu1 %v14918_v11, %s10919_s23 }
 0x3be   : > { %14916 = vst [vmem:[#allocation58_spill] sm:$0xff] %v13352_v3  ;;  %8014 = vmatmul.mubr.bf16.gmra.mrb[112].mxu1 %v6933_v40  ;;  %v14917_v19 = vld [vmem:[#allocation14_spill] sm:$0xff]  ;;  %4968 = vst.msk [vmem:[#allocation5 + $0x558] sm:$0xff] %vm376_vm6, %v13352_v3  ;;  %v13364_v34 = vpack.c.bf16 %v6721_v52, %v6720_v60  ;;  %v14921_v54 = vld [vmem:[#allocation7_spill] sm:$0xff] }
 0x3bf   : > { %5232 = vrot.lane.b32.xlu0 %v14917_v19, %s10919_s23  ;;  %v6528_v7 = vld [vmem:[#allocation3 + $0x139] sm:$0xff]  ;;  %v6529_v21 = vld [vmem:[#allocation3 + $0x141] sm:$0xff]  ;;  %v4275_v40 = vadd.f32 %v9892_v23, %v14921_v54  ;;  %v4659_v19 = vpop.permute.xlu1 %4658  ;;  %4895 = vst.msk [vmem:[#allocation5 + $0x1a8] sm:$0xff] %vm4698_vm9, %v4852_v63 }
 0x3c0   : > { %14919 = vst [vmem:[#allocation14_spill] sm:$0xff] %v13364_v34  ;;  %v13366_v22 = vpack.c.bf16 %v6529_v21, %v6528_v7  ;;  %v5890_v33 = vld [vmem:[#allocation3 + $0x13c] sm:$0xff]  ;;  %v5891_v0 = vld [vmem:[#allocation3 + $0x144] sm:$0xff]  ;;  %4703 = vst.msk [vmem:[#allocation5 + $0x1a0] sm:$0xff] %vm4698_vm9, %v4659_v19  ;;  %v4278_v7 = vadd.f32 %v9895_v49, %v14922_v32 }
 0x3c1   : > { %v5698_v39 = vld [vmem:[#allocation3 + $0x13a] sm:$0xff]  ;;  %v5911_v36 = vpack.c.bf16 %v5891_v0, %v5890_v33  ;;  %v5699_v58 = vld [vmem:[#allocation3 + $0x142] sm:$0xff]  ;;  %6311 = vst.msk [vmem:[#allocation5 + $0x458] sm:$0xff] %vm376_vm6, %v13364_v34  ;;  %v4436_v23 = vadd.f32 %v12856_v6, %v4275_v40  ;;  %v4614_v21 = vld [vmem:[#allocation3 + $0x151] sm:$0xff]  ;;  %v4854_v34 = vpop.permute.xlu0 %4853 }
 0x3c2   : > { %14920 = vst [vmem:[#allocation15_spill] sm:$0xff] %v13366_v22  ;;  %v5707_v11 = vld [vmem:[#allocation3 + $0x1a2] sm:$0xff]  ;;  %v5719_v60 = vpack.c.bf16 %v5699_v58, %v5698_v39  ;;  %6119 = vst.msk [vmem:[#allocation5 + $0x450] sm:$0xff] %vm376_vm6, %v13366_v22  ;;  %v5190_v25 = vld [vmem:[#allocation3 + $0x152] sm:$0xff] }
 0x3c3   : > { %v5723_v52 = vpack.c.bf16 %v5707_v11, %v5706_v57  ;;  %v10841_v33 = vld [vmem:[%s14804_s4 + $0x158] sm:$0xff]   ;;  %5927 = vst.msk [vmem:[#allocation5 + $0x4b0] sm:$0xff] %vm376_vm6, %v5911_v36  ;;  %v4484_v57 = vmax.f32 %v4436_v23, 0.0  ;;  %v4998_v19 = vld [vmem:[#allocation3 + $0x150] sm:$0xff]  ;;  %v10843_v23 = vld [vmem:[%s14804_s4 + $0x160] sm:$0xff]   ;;  %v4661_v3 = vpop.permute.xlu1 %4660 }
 0x3c4   : > { %v4807_v58 = vld [vmem:[#allocation3 + $0x153] sm:$0xff]  ;;  %v4808_v0 = vld [vmem:[#allocation3 + $0x15b] sm:$0xff]  ;;  %5735 = vst.msk [vmem:[#allocation5 + $0x4a8] sm:$0xff] %vm376_vm6, %v5719_v60  ;;  %10156 = vmatprep.subr.bf16.mxu1 %v10841_v33 }
 0x3c5   : > { %v4615_v39 = vld [vmem:[#allocation3 + $0x159] sm:$0xff]  ;;  %5739 = vst.msk [vmem:[#allocation5 + $0x648] sm:$0xff] %vm376_vm6, %v5723_v52  ;;  %v4825_v40 = vpack.c.bf16 %v4808_v0, %v4807_v58  ;;  %v5955_v60 = vld [vmem:[#allocation3 + $0x150] sm:$0xff]  ;;  %4516 = vst.msk [vmem:[#allocation3 + $0x16a] sm:$0xff] %vm376_vm6, %v4484_v57 }
 0x3c6   : > { %v14923_v54 = vld [vmem:[#allocation25_spill] sm:$0xff]  ;;  %v4632_v49 = vpack.c.bf16 %v4615_v39, %v4614_v21  ;;  %v9896_v39 = vpop.f32.mrb[120].mxu0  ;;  %v6947_v57 = vld [vmem:[#allocation5 + $0x1a8] sm:$0xff]  ;;  %4896 = vst.msk [vmem:[#allocation5 + $0x210] sm:$0xff] %vm4698_vm9, %v4854_v34  ;;  %4704 = vst.msk [vmem:[#allocation5 + $0x208] sm:$0xff] %vm4698_vm9, %v4661_v3 }
 0x3c7   : > { %v4439_v6 = vadd.f32 %v14923_v54, %v4278_v7  ;;  %v5191_v63 = vld [vmem:[#allocation3 + $0x15a] sm:$0xff]  ;;  %4871 = vrot.lane.b32.xlu0 %v4825_v40, %s10919_s23  ;;  %v5126_v21 = vld [vmem:[#allocation3 + $0x151] sm:$0xff]  ;;  %8021 = vmatprep.mubr.bf16.mxu1 %v6947_v57 }
 0x3c8   : > { %v4999_v11 = vld [vmem:[#allocation3 + $0x158] sm:$0xff]  ;;  %v13384_v32 = vpack.c.bf16 %v5191_v63, %v5190_v25  ;;  %4678 = vrot.lane.b32.xlu1 %v4632_v49, %s10919_s23  ;;  %v10844_v25 = vld [vmem:[%s14804_s4 + $0x120] sm:$0xff]   ;;  %v9897_v49 = vpop.f32.mrb[121].mxu0 }
 0x3c9   : > { %v13386_v22 = vpack.c.bf16 %v4999_v11, %v4998_v19  ;;  %v10842_v36 = vld [vmem:[%s14804_s4 + $0x118] sm:$0xff]   ;;  %v4485_v52 = vmax.f32 %v4439_v6, 0.0  ;;  %v6946_v54 = vld [vmem:[#allocation5 + $0x1a0] sm:$0xff] }
 0x3ca   : > { %v5956_v7 = vld [vmem:[#allocation3 + $0x158] sm:$0xff]  ;;  %4777 = vst.msk [vmem:[#allocation5 + $0x5b8] sm:$0xff] %vm376_vm6, %v13384_v32  ;;  %10157 = vmatpush3.bf16.msra.mxu1 %v10842_v36  ;;  %v9898_v36 = vadd.f32 %v9897_v49, %v9896_v39  ;;  %v10846_v39 = vld [vmem:[%s14804_s4 + $0x128] sm:$0xff]  }
 0x3cb   : > { %4584 = vst.msk [vmem:[#allocation5 + $0x5b0] sm:$0xff] %vm376_vm6, %v13386_v22  ;;  %v13404_v33 = vpack.c.bf16 %v5956_v7, %v5955_v60  ;;  %v5127_v58 = vld [vmem:[#allocation3 + $0x159] sm:$0xff]  ;;  %4517 = vst.msk [vmem:[#allocation3 + $0x172] sm:$0xff] %vm376_vm6, %v4485_v52  ;;  %10158 = vmatprep.subr.bf16.mxu1 %v10843_v23  ;;  %v9899_v60 = vpop.f32.mrb[122].mxu0  ;;  %v14926_v7 = vld [vmem:[#allocation20_spill] sm:$0xff]  ;;  %8022 = vmatmul.mubr.bf16.gmra.mrb[116].mxu1 %v6946_v54 }
 0x3cc   : > { %v5764_v0 = vld [vmem:[#allocation3 + $0x153] sm:$0xff]  ;;  %v5145_v6 = vpack.c.bf16 %v5127_v58, %v5126_v21  ;;  %v5765_v40 = vld [vmem:[#allocation3 + $0x15b] sm:$0xff]  ;;  %5234 = vrot.lane.b32.xlu0 %v14926_v7, %s10919_s23  ;;  %v10845_v23 = vld [vmem:[%s14804_s4 + $0x168] sm:$0xff]  }
 0x3cd   : > { %14924 = vst [vmem:[#allocation7_spill] sm:$0xff] %v13404_v33  ;;  %v13407_v63 = vpack.c.bf16 %v5765_v40, %v5764_v0  ;;  %v4935_v19 = vld [vmem:[#allocation3 + $0x154] sm:$0xff]  ;;  %v4936_v11 = vld [vmem:[#allocation3 + $0x15c] sm:$0xff]  ;;  %5544 = vst.msk [vmem:[#allocation5 + $0x508] sm:$0xff] %vm376_vm6, %v13404_v33  ;;  %v9900_v0 = vpop.f32.mrb[123].mxu0 }
 0x3ce   : > { %v14927_v52 = vld [vmem:[#allocation21_spill] sm:$0xff]  ;;  %5161 = vst.msk [vmem:[#allocation5 + $0x560] sm:$0xff] %vm376_vm6, %v5145_v6  ;;  %v13419_v21 = vpack.c.bf16 %v4936_v11, %v4935_v19  ;;  %10159 = vmatpush3.bf16.msra.mxu1 %v10844_v25  ;;  %v4616_v10 = vld [vmem:[#allocation3 + $0x169] sm:$0xff]  ;;  %v14930_v25 = vld [vmem:[#allocation10_spill] sm:$0xff] }
 0x3cf   : > { %14925 = vst [vmem:[#allocation8_spill] sm:$0xff] %v13407_v63  ;;  %5042 = vrot.lane.b32.xlu1 %v14927_v52, %s10919_s23  ;;  %v6722_v58 = vld [vmem:[#allocation3 + $0x153] sm:$0xff]  ;;  %5353 = vst.msk [vmem:[#allocation5 + $0x568] sm:$0xff] %vm376_vm6, %v13407_v63  ;;  %v6723_v57 = vld [vmem:[#allocation3 + $0x15b] sm:$0xff]  ;;  %v9901_v52 = vadd.f32 %v9900_v0, %v9899_v60  ;;  %10160 = vmatprep.subr.bf16.mxu1 %v10845_v23 }
 0x3d0   : > { %v6530_v40 = vld [vmem:[#allocation3 + $0x151] sm:$0xff]  ;;  %4969 = vst.msk [vmem:[#allocation5 + $0x5c0] sm:$0xff] %vm376_vm6, %v13419_v21  ;;  %v13429_v6 = vpack.c.bf16 %v6723_v57, %v6722_v58  ;;  %v6531_v54 = vld [vmem:[#allocation3 + $0x159] sm:$0xff]  ;;  %v5293_v0 = vld [vmem:[#allocation3 + $0x23] sm:$0xff] }
 0x3d1   : > { %v14928_v49 = vld [vmem:[#allocation9_spill] sm:$0xff]  ;;  %v13431_v17 = vpack.c.bf16 %v6531_v54, %v6530_v40  ;;  %v5192_v60 = vld [vmem:[#allocation3 + $0x16a] sm:$0xff] }
 0x3d2   : > { %v4283_v7 = vadd.f32 %v9898_v36, %v14928_v49  ;;  %v5892_v19 = vld [vmem:[#allocation3 + $0x154] sm:$0xff]  ;;  %v5893_v11 = vld [vmem:[#allocation3 + $0x15c] sm:$0xff]  ;;  %v4286_v36 = vadd.f32 %v9901_v52, %v14930_v25  ;;  %6312 = vst.msk [vmem:[#allocation5 + $0x4c0] sm:$0xff] %vm376_vm6, %v13429_v6  ;;  %v4809_v57 = vld [vmem:[#allocation3 + $0x16b] sm:$0xff]  ;;  %10161 = vmatpush3.bf16.msra.mxu1 %v10846_v39 }
 0x3d3   : > { %v5912_v63 = vpack.c.bf16 %v5893_v11, %v5892_v19  ;;  %v14929_v33 = vld [vmem:[#allocation29_spill] sm:$0xff]  ;;  %6120 = vst.msk [vmem:[#allocation5 + $0x4b8] sm:$0xff] %vm376_vm6, %v13431_v17  ;;  %v5000_v54 = vld [vmem:[#allocation3 + $0x168] sm:$0xff]  ;;  %v5001_v19 = vld [vmem:[#allocation3 + $0x170] sm:$0xff] }
 0x3d4   : > { %v4444_v24 = vadd.f32 %v14929_v33, %v4283_v7  ;;  %v5292_v58 = vld [vmem:[#allocation3 + $0x1b] sm:$0xff]  ;;  %v4810_v49 = vld [vmem:[#allocation3 + $0x173] sm:$0xff]  ;;  %v4447_v3 = vadd.f32 %v12913_v8, %v4286_v36  ;;  %v13445_v25 = vpack.c.bf16 %v5001_v19, %v5000_v54  ;;  %v5957_v39 = vld [vmem:[#allocation3 + $0x168] sm:$0xff] }
 0x3d5   : > { %v4617_v23 = vld [vmem:[#allocation3 + $0x171] sm:$0xff]  ;;  %v5324_v40 = vpack.c.bf16 %v5293_v0, %v5292_v58  ;;  %5928 = vst.msk [vmem:[#allocation5 + $0x518] sm:$0xff] %vm376_vm6, %v5912_v63  ;;  %v4826_v33 = vpack.c.bf16 %v4810_v49, %v4809_v57  ;;  %v5128_v58 = vld [vmem:[#allocation3 + $0x169] sm:$0xff] }
 0x3d6   : > { %v4486_v34 = vmax.f32 %v4444_v24, 0.0  ;;  %v4633_v7 = vpack.c.bf16 %v4617_v23, %v4616_v10  ;;  %v5193_v52 = vld [vmem:[#allocation3 + $0x172] sm:$0xff]  ;;  %v4487_v24 = vmax.f32 %v4447_v3, 0.0  ;;  %4585 = vst.msk [vmem:[#allocation5 + $0x618] sm:$0xff] %vm376_vm6, %v13445_v25 }
 0x3d7   : > { %v13443_v11 = vpack.c.bf16 %v5193_v52, %v5192_v60  ;;  %5340 = vst.msk [vmem:[#allocation5 + $0x20] sm:$0xff] %vm376_vm6, %v5324_v40  ;;  %v10847_v63 = vld [vmem:[%s14804_s4 + $0x170] sm:$0xff]   ;;  %4873 = vrot.lane.b32.xlu0 %v4826_v33, %s10919_s23  ;;  %v10849_v10 = vld [vmem:[%s14804_s4 + $0x178] sm:$0xff]  }
 0x3d8   : > { %4518 = vst.msk [vmem:[#allocation3 + $0x182] sm:$0xff] %vm376_vm6, %v4486_v34  ;;  %4680 = vrot.lane.b32.xlu1 %v4633_v7, %s10919_s23  ;;  %v10848_v8 = vld [vmem:[%s14804_s4 + $0x130] sm:$0xff]   ;;  %10162 = vmatprep.subr.bf16.mxu1 %v10847_v63  ;;  %v10850_v36 = vld [vmem:[%s14804_s4 + $0x138] sm:$0xff]   ;;  %4519 = vst.msk [vmem:[#allocation3 + $0x18a] sm:$0xff] %vm376_vm6, %v4487_v24 }
 0x3d9   : > { %4778 = vst.msk [vmem:[#allocation5 + $0x620] sm:$0xff] %vm376_vm6, %v13443_v11  ;;  %v5958_v60 = vld [vmem:[#allocation3 + $0x170] sm:$0xff]  ;;  %10163 = vmatpush3.bf16.msra.mxu1 %v10848_v8  ;;  %v6959_v34 = vld [vmem:[#allocation5 + $0x208] sm:$0xff] }
 0x3da   : > { %v13468_v0 = vpack.c.bf16 %v5958_v60, %v5957_v39  ;;  %v5129_v57 = vld [vmem:[#allocation3 + $0x171] sm:$0xff]  ;;  %10164 = vmatprep.subr.bf16.mxu1 %v10849_v10  ;;  %v6532_v24 = vld [vmem:[#allocation3 + $0x169] sm:$0xff]  ;;  %v5701_v39 = vld [vmem:[#allocation3 + $0x15a] sm:$0xff]  ;;  %v4856_v60 = vpop.permute.xlu0 %4855 }
 0x3db   : > { %v5766_v49 = vld [vmem:[#allocation3 + $0x16b] sm:$0xff]  ;;  %v5767_v23 = vld [vmem:[#allocation3 + $0x173] sm:$0xff]  ;;  %v5146_v3 = vpack.c.bf16 %v5129_v57, %v5128_v58  ;;  %5236 = vrot.lane.b32.xlu0 %v12915_v56, %s10919_s23  ;;  %v4663_v58 = vpop.permute.xlu1 %4662  ;;  %4897 = vst.msk [vmem:[#allocation5 + $0x278] sm:$0xff] %vm4698_vm9, %v4856_v60 }
 0x3dc   : > { %v6960_v40 = vld [vmem:[#allocation5 + $0x210] sm:$0xff]  ;;  %v13470_v33 = vpack.c.bf16 %v5767_v23, %v5766_v49  ;;  %5545 = vst.msk [vmem:[#allocation5 + $0x570] sm:$0xff] %vm376_vm6, %v13468_v0  ;;  %5044 = vrot.lane.b32.xlu1 %v12917_v48, %s10919_s23  ;;  %v14932_v49 = vld [vmem:[#allocation11_spill] sm:$0xff] }
 0x3dd   : > { %v4937_v7 = vld [vmem:[#allocation3 + $0x16c] sm:$0xff]  ;;  %8029 = vmatprep.mubr.bf16.mxu1 %v6960_v40  ;;  %v4938_v52 = vld [vmem:[#allocation3 + $0x174] sm:$0xff]  ;;  %5162 = vst.msk [vmem:[#allocation5 + $0x5c8] sm:$0xff] %vm376_vm6, %v5146_v3  ;;  %10165 = vmatpush3.bf16.msra.mxu1 %v10850_v36 }
 0x3de   : > { %8030 = vmatmul.mubr.bf16.gmra.mrb[120].mxu1 %v6959_v34  ;;  %v13479_v54 = vpack.c.bf16 %v4938_v52, %v4937_v7  ;;  %5354 = vst.msk [vmem:[#allocation5 + $0x5d0] sm:$0xff] %vm376_vm6, %v13470_v33  ;;  %v6724_v19 = vld [vmem:[#allocation3 + $0x16b] sm:$0xff]  ;;  %v6725_v63 = vld [vmem:[#allocation3 + $0x173] sm:$0xff] }
 0x3df   : > { %v13483_v56 = vpack.c.bf16 %v6725_v63, %v6724_v19  ;;  %v6533_v8 = vld [vmem:[#allocation3 + $0x171] sm:$0xff]  ;;  %4705 = vst.msk [vmem:[#allocation5 + $0x270] sm:$0xff] %vm4698_vm9, %v4663_v58  ;;  %5612 = vrot.lane.b32.xlu0 %v14932_v49, %s10919_s23  ;;  %v6854_v36 = vld [vmem:[#allocation3 + $0x184] sm:$0xff] }
 0x3e0   : > { %v5700_v10 = vld [vmem:[#allocation3 + $0x152] sm:$0xff]  ;;  %4970 = vst.msk [vmem:[#allocation5 + $0x628] sm:$0xff] %vm376_vm6, %v13479_v54  ;;  %v13487_v48 = vpack.c.bf16 %v6533_v8, %v6532_v24  ;;  %5420 = vrot.lane.b32.xlu1 %v12921_v51, %s10919_s23  ;;  %v5959_v34 = vld [vmem:[#allocation3 + $0x180] sm:$0xff]  ;;  %v5960_v3 = vld [vmem:[#allocation3 + $0x188] sm:$0xff] }
 0x3e1   : > { %v5720_v57 = vpack.c.bf16 %v5701_v39, %v5700_v10  ;;  %6313 = vst.msk [vmem:[#allocation5 + $0x528] sm:$0xff] %vm376_vm6, %v13483_v56  ;;  %v6855_v23 = vld [vmem:[#allocation3 + $0x18c] sm:$0xff]  ;;  %v5130_v7 = vld [vmem:[#allocation3 + $0x181] sm:$0xff]  ;;  %v13503_v19 = vpack.c.bf16 %v5960_v3, %v5959_v34 }
 0x3e2   : > { %14931 = vst [vmem:[#allocation25_spill] sm:$0xff] %v13487_v48  ;;  %6121 = vst.msk [vmem:[#allocation5 + $0x520] sm:$0xff] %vm376_vm6, %v13487_v48  ;;  %v6874_v40 = vpack.c.bf16 %v6855_v23, %v6854_v36  ;;  %v5131_v52 = vld [vmem:[#allocation3 + $0x189] sm:$0xff]  ;;  %v6534_v60 = vld [vmem:[#allocation3 + $0x181] sm:$0xff] }
 0x3e3   : > { %5736 = vst.msk [vmem:[#allocation5 + $0x510] sm:$0xff] %vm376_vm6, %v5720_v57  ;;  %5238 = vrot.lane.b32.xlu0 %v12965_v37, %s10919_s23  ;;  %v5147_v63 = vpack.c.bf16 %v5131_v52, %v5130_v7  ;;  %v5768_v24 = vld [vmem:[#allocation3 + $0x183] sm:$0xff]  ;;  %v5769_v51 = vld [vmem:[#allocation3 + $0x18b] sm:$0xff]  ;;  %5546 = vst.msk [vmem:[#allocation5 + $0x5d8] sm:$0xff] %vm376_vm6, %v13503_v19 }
 0x3e4   : > { %6890 = vst.msk [vmem:[#allocation5 + $0x540] sm:$0xff] %vm376_vm6, %v6874_v40  ;;  %5046 = vrot.lane.b32.xlu1 %v12969_v59, %s10919_s23  ;;  %v13507_v8 = vpack.c.bf16 %v5769_v51, %v5768_v24  ;;  %v6726_v10 = vld [vmem:[#allocation3 + $0x183] sm:$0xff]  ;;  %v6727_v39 = vld [vmem:[#allocation3 + $0x18b] sm:$0xff]  ;;  %v6973_v37 = vld [vmem:[#allocation5 + $0x278] sm:$0xff] }
 0x3e5   : > { %5163 = vst.msk [vmem:[#allocation5 + $0x630] sm:$0xff] %vm376_vm6, %v5147_v63  ;;  %v6535_v58 = vld [vmem:[#allocation3 + $0x189] sm:$0xff]  ;;  %v13514_v49 = vpack.c.bf16 %v6727_v39, %v6726_v10  ;;  %8037 = vmatprep.mubr.bf16.mxu1 %v6973_v37  ;;  %v5895_v40 = vld [vmem:[#allocation3 + $0x174] sm:$0xff]  ;;  %v4858_v39 = vpop.permute.xlu0 %4857 }
 0x3e6   : > { %v6972_v57 = vld [vmem:[#allocation5 + $0x270] sm:$0xff]  ;;  %5355 = vst.msk [vmem:[#allocation5 + $0x638] sm:$0xff] %vm376_vm6, %v13507_v8  ;;  %v13516_v36 = vpack.c.bf16 %v6535_v58, %v6534_v60  ;;  %v5896_v24 = vld [vmem:[#allocation3 + $0x184] sm:$0xff]  ;;  %v4665_v60 = vpop.permute.xlu1 %4664  ;;  %v6643_v48 = vld [vmem:[#allocation3 + $0x9a] sm:$0xff] }
 0x3e7   : > { %v5894_v59 = vld [vmem:[#allocation3 + $0x16c] sm:$0xff]  ;;  %8038 = vmatmul.mubr.bf16.gmra.mrb[124].mxu1 %v6972_v57  ;;  %v5704_v10 = vld [vmem:[#allocation3 + $0x182] sm:$0xff]  ;;  %6314 = vst.msk [vmem:[#allocation5 + $0x590] sm:$0xff] %vm376_vm6, %v13514_v49 }
 0x3e8   : > { %v14933_v23 = vld [vmem:[#allocation16_spill] sm:$0xff]  ;;  %v5913_v52 = vpack.c.bf16 %v5895_v40, %v5894_v59  ;;  %6122 = vst.msk [vmem:[#allocation5 + $0x588] sm:$0xff] %vm376_vm6, %v13516_v36 }
 0x3e9   : > { %5614 = vrot.lane.b32.xlu0 %v14933_v23, %s10919_s23  ;;  %v5702_v34 = vld [vmem:[#allocation3 + $0x16a] sm:$0xff]  ;;  %v5703_v3 = vld [vmem:[#allocation3 + $0x172] sm:$0xff]  ;;  %4898 = vst.msk [vmem:[#allocation5 + $0x2e0] sm:$0xff] %vm4698_vm9, %v4858_v39  ;;  %4706 = vst.msk [vmem:[#allocation5 + $0x2d8] sm:$0xff] %vm4698_vm9, %v4665_v60 }
 0x3ea   : > { %v14934_v7 = vld [vmem:[#allocation12_spill] sm:$0xff]  ;;  %v5721_v63 = vpack.c.bf16 %v5703_v3, %v5702_v34  ;;  %5929 = vst.msk [vmem:[#allocation5 + $0x580] sm:$0xff] %vm376_vm6, %v5913_v52  ;;  %v6451_v34 = vld [vmem:[#allocation3 + $0x98] sm:$0xff]  ;;  %v6454_v60 = vld [vmem:[#allocation3 + $0xc0] sm:$0xff] }
 0x3eb   : > { %5422 = vrot.lane.b32.xlu1 %v14934_v7, %s10919_s23  ;;  %v5897_v51 = vld [vmem:[#allocation3 + $0x18c] sm:$0xff] }
 0x3ec   : > { %v5914_v58 = vpack.c.bf16 %v5897_v51, %v5896_v24  ;;  %v5705_v37 = vld [vmem:[#allocation3 + $0x18a] sm:$0xff]  ;;  %v6642_v23 = vld [vmem:[#allocation3 + $0x92] sm:$0xff]  ;;  %5737 = vst.msk [vmem:[#allocation5 + $0x578] sm:$0xff] %vm376_vm6, %v5721_v63  ;;  %v6646_v63 = vld [vmem:[#allocation3 + $0xc2] sm:$0xff] }
 0x3ed   : > { %v5722_v57 = vpack.c.bf16 %v5705_v37, %v5704_v10  ;;  %v6672_v59 = vpack.c.bf16 %v6643_v48, %v6642_v23  ;;  %v6450_v40 = vld [vmem:[#allocation3 + $0x90] sm:$0xff]  ;;  %5240 = vrot.lane.b32.xlu0 %v13012_v53, %s10919_s23  ;;  %v6452_v51 = vld [vmem:[#allocation3 + $0xa8] sm:$0xff]  ;;  %v6648_v37 = vld [vmem:[#allocation3 + $0xda] sm:$0xff] }
 0x3ee   : > { %v6644_v3 = vld [vmem:[#allocation3 + $0xaa] sm:$0xff]  ;;  %5930 = vst.msk [vmem:[#allocation5 + $0x5e8] sm:$0xff] %vm376_vm6, %v5914_v58  ;;  %v6480_v7 = vpack.c.bf16 %v6451_v34, %v6450_v40  ;;  %v6645_v24 = vld [vmem:[#allocation3 + $0xb2] sm:$0xff]  ;;  %v6649_v23 = vld [vmem:[#allocation3 + $0xe2] sm:$0xff] }
 0x3ef   : > { %v6453_v39 = vld [vmem:[#allocation3 + $0xb0] sm:$0xff]  ;;  %5048 = vrot.lane.b32.xlu1 %v13014_v35, %s10919_s23  ;;  %5738 = vst.msk [vmem:[#allocation5 + $0x5e0] sm:$0xff] %vm376_vm6, %v5722_v57  ;;  %6688 = vst.msk [vmem:[#allocation5 + $0x128] sm:$0xff] %vm376_vm6, %v6672_v59  ;;  %v6673_v48 = vpack.c.bf16 %v6645_v24, %v6644_v3  ;;  %v6455_v58 = vld [vmem:[#allocation3 + $0xc8] sm:$0xff]  ;;  %v6675_v40 = vpack.c.bf16 %v6649_v23, %v6648_v37 }
 0x3f0   : > { %v6481_v52 = vpack.c.bf16 %v6453_v39, %v6452_v51  ;;  %v6647_v10 = vld [vmem:[#allocation3 + $0xca] sm:$0xff]  ;;  %6496 = vst.msk [vmem:[#allocation5 + $0x120] sm:$0xff] %vm376_vm6, %v6480_v7  ;;  %v6482_v35 = vpack.c.bf16 %v6455_v58, %v6454_v60  ;;  %v6456_v57 = vld [vmem:[#allocation3 + $0xd8] sm:$0xff]  ;;  %v6457_v34 = vld [vmem:[#allocation3 + $0xe0] sm:$0xff] }
 0x3f1   : > { %v6674_v53 = vpack.c.bf16 %v6647_v10, %v6646_v63  ;;  %6689 = vst.msk [vmem:[#allocation5 + $0x190] sm:$0xff] %vm376_vm6, %v6673_v48  ;;  %v6650_v59 = vld [vmem:[#allocation3 + $0xf2] sm:$0xff]  ;;  %v6832_v3 = vld [vmem:[#allocation3 + $0x7c] sm:$0xff]  ;;  %v6483_v7 = vpack.c.bf16 %v6457_v34, %v6456_v57  ;;  %6691 = vst.msk [vmem:[#allocation5 + $0x260] sm:$0xff] %vm376_vm6, %v6675_v40 }
 0x3f2   : > { %6497 = vst.msk [vmem:[#allocation5 + $0x188] sm:$0xff] %vm376_vm6, %v6481_v52  ;;  %v14935_v24 = vld [vmem:[#allocation22_spill] sm:$0xff]  ;;  %v6458_v39 = vld [vmem:[#allocation3 + $0xf0] sm:$0xff]  ;;  %v6459_v63 = vld [vmem:[#allocation3 + $0xf8] sm:$0xff] }
 0x3f3   : > { %5616 = vrot.lane.b32.xlu0 %v14935_v24, %s10919_s23  ;;  %6690 = vst.msk [vmem:[#allocation5 + $0x1f8] sm:$0xff] %vm376_vm6, %v6674_v53  ;;  %v6651_v51 = vld [vmem:[#allocation3 + $0xfa] sm:$0xff]  ;;  %6498 = vst.msk [vmem:[#allocation5 + $0x1f0] sm:$0xff] %vm376_vm6, %v6482_v35  ;;  %v6484_v52 = vpack.c.bf16 %v6459_v63, %v6458_v39  ;;  %v6652_v60 = vld [vmem:[#allocation3 + $0x10a] sm:$0xff] }
 0x3f4   : > { %v14936_v10 = vld [vmem:[#allocation17_spill] sm:$0xff]  ;;  %v6676_v48 = vpack.c.bf16 %v6651_v51, %v6650_v59  ;;  %v6460_v37 = vld [vmem:[#allocation3 + $0x108] sm:$0xff]  ;;  %v6986_v23 = vld [vmem:[#allocation5 + $0x2e0] sm:$0xff]  ;;  %6499 = vst.msk [vmem:[#allocation5 + $0x258] sm:$0xff] %vm376_vm6, %v6483_v7 }
 0x3f5   : > { %5424 = vrot.lane.b32.xlu1 %v14936_v10, %s10919_s23  ;;  %v6653_v58 = vld [vmem:[#allocation3 + $0x112] sm:$0xff]  ;;  %8045 = vmatprep.mubr.bf16.mxu1 %v6986_v23  ;;  %6500 = vst.msk [vmem:[#allocation5 + $0x2c0] sm:$0xff] %vm376_vm6, %v6484_v52  ;;  %v6833_v35 = vld [vmem:[#allocation3 + $0x84] sm:$0xff]  ;;  %v6835_v40 = vld [vmem:[#allocation3 + $0x9c] sm:$0xff]  ;;  %v4667_v23 = vpop.permute.xlu1 %4666 }
 0x3f6   : > { %v6985_v24 = vld [vmem:[#allocation5 + $0x2d8] sm:$0xff]  ;;  %v6677_v53 = vpack.c.bf16 %v6653_v58, %v6652_v60  ;;  %v6461_v57 = vld [vmem:[#allocation3 + $0x110] sm:$0xff]  ;;  %6692 = vst.msk [vmem:[#allocation5 + $0x2c8] sm:$0xff] %vm376_vm6, %v6676_v48  ;;  %v6863_v59 = vpack.c.bf16 %v6833_v35, %v6832_v3  ;;  %v6654_v7 = vld [vmem:[#allocation3 + $0x122] sm:$0xff] }
 0x3f7   : > { %v6485_v34 = vpack.c.bf16 %v6461_v57, %v6460_v37  ;;  %v6834_v10 = vld [vmem:[#allocation3 + $0x94] sm:$0xff]  ;;  %5242 = vrot.lane.b32.xlu0 %v13061_v9, %s10919_s23  ;;  %8046 = vmatmul.mubr.bf16.gmra.mrb[128].mxu1 %v6985_v24  ;;  %v6655_v39 = vld [vmem:[#allocation3 + $0x12a] sm:$0xff]  ;;  %v6462_v63 = vld [vmem:[#allocation3 + $0x120] sm:$0xff]  ;;  %v4860_v37 = vpop.permute.xlu0 %4859  ;;  %4707 = vst.msk [vmem:[#allocation5 + $0x340] sm:$0xff] %vm4698_vm9, %v4667_v23 }
 0x3f8   : > { %6693 = vst.msk [vmem:[#allocation5 + $0x330] sm:$0xff] %vm376_vm6, %v6677_v53  ;;  %v6864_v51 = vpack.c.bf16 %v6835_v40, %v6834_v10  ;;  %v6678_v48 = vpack.c.bf16 %v6655_v39, %v6654_v7  ;;  %v6463_v52 = vld [vmem:[#allocation3 + $0x128] sm:$0xff]  ;;  %v6656_v60 = vld [vmem:[#allocation3 + $0x13a] sm:$0xff]  ;;  %6879 = vst.msk [vmem:[#allocation5 + $0xc8] sm:$0xff] %vm376_vm6, %v6863_v59 }
 0x3f9   : > { %5050 = vrot.lane.b32.xlu1 %v13063_v45, %s10919_s23  ;;  %6501 = vst.msk [vmem:[#allocation5 + $0x328] sm:$0xff] %vm376_vm6, %v6485_v34  ;;  %v6657_v58 = vld [vmem:[#allocation3 + $0x142] sm:$0xff]  ;;  %v6486_v9 = vpack.c.bf16 %v6463_v52, %v6462_v63  ;;  %v6464_v24 = vld [vmem:[#allocation3 + $0x138] sm:$0xff]  ;;  %v6836_v57 = vld [vmem:[#allocation3 + $0xac] sm:$0xff] }
 0x3fa   : > { %6880 = vst.msk [vmem:[#allocation5 + $0x130] sm:$0xff] %vm376_vm6, %v6864_v51  ;;  %v6679_v3 = vpack.c.bf16 %v6657_v58, %v6656_v60  ;;  %v6465_v53 = vld [vmem:[#allocation3 + $0x140] sm:$0xff]  ;;  %6694 = vst.msk [vmem:[#allocation5 + $0x398] sm:$0xff] %vm376_vm6, %v6678_v48  ;;  %v6837_v34 = vld [vmem:[#allocation3 + $0xb4] sm:$0xff] }
 0x3fb   : > { %4899 = vst.msk [vmem:[#allocation5 + $0x348] sm:$0xff] %vm4698_vm9, %v4860_v37  ;;  %v6487_v45 = vpack.c.bf16 %v6465_v53, %v6464_v24  ;;  %v6838_v35 = vld [vmem:[#allocation3 + $0xc4] sm:$0xff]  ;;  %v6839_v10 = vld [vmem:[#allocation3 + $0xcc] sm:$0xff]  ;;  %5618 = vrot.lane.b32.xlu0 %v12923_v43, %s10919_s23  ;;  %v6865_v59 = vpack.c.bf16 %v6837_v34, %v6836_v57  ;;  %v6659_v39 = vld [vmem:[#allocation3 + $0x15a] sm:$0xff] }
 0x3fc   : > { %v10851_v40 = vld [vmem:[%s14804_s4 + $0x1c0] sm:$0xff]   ;;  %6502 = vst.msk [vmem:[#allocation5 + $0x390] sm:$0xff] %vm376_vm6, %v6486_v9  ;;  %6695 = vst.msk [vmem:[#allocation5 + $0x400] sm:$0xff] %vm376_vm6, %v6679_v3  ;;  %v6866_v51 = vpack.c.bf16 %v6839_v10, %v6838_v35  ;;  %v6658_v7 = vld [vmem:[#allocation3 + $0x152] sm:$0xff] }
 0x3fd   : > { %v14937_v63 = vld [vmem:[#allocation23_spill] sm:$0xff]  ;;  %6503 = vst.msk [vmem:[#allocation5 + $0x3f8] sm:$0xff] %vm376_vm6, %v6487_v45  ;;  %v6680_v48 = vpack.c.bf16 %v6659_v39, %v6658_v7  ;;  %v6466_v52 = vld [vmem:[#allocation3 + $0x150] sm:$0xff]  ;;  %v6467_v43 = vld [vmem:[#allocation3 + $0x158] sm:$0xff]  ;;  %10262 = vmatprep.subr.bf16.mxu0 %v10851_v40 }
 0x3fe   : > { %5426 = vrot.lane.b32.xlu1 %v14937_v63, %s10919_s23  ;;  %6881 = vst.msk [vmem:[#allocation5 + $0x198] sm:$0xff] %vm376_vm6, %v6865_v59  ;;  %6882 = vst.msk [vmem:[#allocation5 + $0x200] sm:$0xff] %vm376_vm6, %v6866_v51  ;;  %v6488_v60 = vpack.c.bf16 %v6467_v43, %v6466_v52  ;;  %v6660_v58 = vld [vmem:[#allocation3 + $0x16a] sm:$0xff]  ;;  %v6661_v37 = vld [vmem:[#allocation3 + $0x172] sm:$0xff] }
 0x3ff   : > { %v6468_v23 = vld [vmem:[#allocation3 + $0x168] sm:$0xff]  ;;  %6696 = vst.msk [vmem:[#allocation5 + $0x468] sm:$0xff] %vm376_vm6, %v6680_v48  ;;  %v6681_v9 = vpack.c.bf16 %v6661_v37, %v6660_v58  ;;  %v6469_v3 = vld [vmem:[#allocation3 + $0x170] sm:$0xff]  ;;  %v6840_v24 = vld [vmem:[#allocation3 + $0xdc] sm:$0xff]  ;;  %5244 = vrot.lane.b32.xlu0 %v13111_v4, %s10919_s23 }
 0x400   : > { %v6841_v53 = vld [vmem:[#allocation3 + $0xe4] sm:$0xff]  ;;  %6504 = vst.msk [vmem:[#allocation5 + $0x460] sm:$0xff] %vm376_vm6, %v6488_v60  ;;  %v6489_v57 = vpack.c.bf16 %v6469_v3, %v6468_v23  ;;  %v6842_v34 = vld [vmem:[#allocation3 + $0xf4] sm:$0xff]  ;;  %v6843_v35 = vld [vmem:[#allocation3 + $0xfc] sm:$0xff] }
 0x401   : > { %v6867_v45 = vpack.c.bf16 %v6841_v53, %v6840_v24  ;;  %6697 = vst.msk [vmem:[#allocation5 + $0x4d0] sm:$0xff] %vm376_vm6, %v6681_v9  ;;  %v6868_v10 = vpack.c.bf16 %v6843_v35, %v6842_v34  ;;  %v6662_v40 = vld [vmem:[#allocation3 + $0x182] sm:$0xff]  ;;  %v6663_v59 = vld [vmem:[#allocation3 + $0x18a] sm:$0xff]  ;;  %v6664_v48 = vld [vmem:[#allocation3 + $0x19a] sm:$0xff]  ;;  %v4862_v24 = vpop.permute.xlu0 %4861  ;;  %v4669_v53 = vpop.permute.xlu1 %4668 }
 0x402   : > { %5052 = vrot.lane.b32.xlu1 %v13113_v31, %s10919_s23  ;;  %v6999_v51 = vld [vmem:[#allocation5 + $0x348] sm:$0xff]  ;;  %v6998_v7 = vld [vmem:[#allocation5 + $0x340] sm:$0xff]  ;;  %6505 = vst.msk [vmem:[#allocation5 + $0x4c8] sm:$0xff] %vm376_vm6, %v6489_v57  ;;  %v6682_v4 = vpack.c.bf16 %v6663_v59, %v6662_v40  ;;  %v6472_v60 = vld [vmem:[#allocation3 + $0x198] sm:$0xff] }
 0x403   : > { %6883 = vst.msk [vmem:[#allocation5 + $0x268] sm:$0xff] %vm376_vm6, %v6867_v45  ;;  %v6470_v39 = vld [vmem:[#allocation3 + $0x180] sm:$0xff]  ;;  %8053 = vmatprep.mubr.bf16.mxu1 %v6999_v51  ;;  %6884 = vst.msk [vmem:[#allocation5 + $0x2d0] sm:$0xff] %vm376_vm6, %v6868_v10  ;;  %v6471_v63 = vld [vmem:[#allocation3 + $0x188] sm:$0xff]  ;;  %5620 = vrot.lane.b32.xlu0 %v12971_v42, %s10919_s23 }
 0x404   : > { %v6665_v52 = vld [vmem:[#allocation3 + $0x1a2] sm:$0xff]  ;;  %8054 = vmatmul.mubr.bf16.gmra.mrb[132].mxu1 %v6998_v7  ;;  %6698 = vst.msk [vmem:[#allocation5 + $0x538] sm:$0xff] %vm376_vm6, %v6682_v4  ;;  %v6490_v31 = vpack.c.bf16 %v6471_v63, %v6470_v39  ;;  %v6844_v37 = vld [vmem:[#allocation3 + $0x10c] sm:$0xff]  ;;  %v6845_v3 = vld [vmem:[#allocation3 + $0x114] sm:$0xff]  ;;  %v9942_v7 = vpop.f32.mrb[100].mxu1 }
 0x405   : > { %v6683_v43 = vpack.c.bf16 %v6665_v52, %v6664_v48  ;;  %v6473_v58 = vld [vmem:[#allocation3 + $0x1a0] sm:$0xff]  ;;  %v5559_v23 = vld [vmem:[#allocation3 + $0xb1] sm:$0xff]  ;;  %v6869_v42 = vpack.c.bf16 %v6845_v3, %v6844_v37  ;;  %4900 = vst.msk [vmem:[#allocation5 + $0x3b0] sm:$0xff] %vm4698_vm9, %v4862_v24  ;;  %4708 = vst.msk [vmem:[#allocation5 + $0x3a8] sm:$0xff] %vm4698_vm9, %v4669_v53 }
 0x406   : > { %5428 = vrot.lane.b32.xlu1 %v12931_v61, %s10919_s23  ;;  %v6491_v9 = vpack.c.bf16 %v6473_v58, %v6472_v60  ;;  %v5366_v57 = vld [vmem:[#allocation3 + $0x94] sm:$0xff]  ;;  %6506 = vst.msk [vmem:[#allocation5 + $0x530] sm:$0xff] %vm376_vm6, %v6490_v31  ;;  %v6846_v45 = vld [vmem:[#allocation3 + $0x124] sm:$0xff]  ;;  %v6847_v34 = vld [vmem:[#allocation3 + $0x12c] sm:$0xff]  ;;  %v9943_v31 = vpop.f32.mrb[101].mxu1 }
 0x407   : > { %6699 = vst.msk [vmem:[#allocation5 + $0x5a0] sm:$0xff] %vm376_vm6, %v6683_v43  ;;  %v6848_v35 = vld [vmem:[#allocation3 + $0x13c] sm:$0xff]  ;;  %v6870_v61 = vpack.c.bf16 %v6847_v34, %v6846_v45  ;;  %v6849_v10 = vld [vmem:[#allocation3 + $0x144] sm:$0xff]  ;;  %v6850_v40 = vld [vmem:[#allocation3 + $0x154] sm:$0xff]  ;;  %5246 = vrot.lane.b32.xlu0 %v13168_v47, %s10919_s23  ;;  %v13599_v58 = vadd.f32 %v9943_v31, %v9942_v7  ;;  %v9945_v47 = vpop.f32.mrb[102].mxu1 }
 0x408   : > { %6507 = vst.msk [vmem:[#allocation5 + $0x598] sm:$0xff] %vm376_vm6, %v6491_v9  ;;  %v6851_v59 = vld [vmem:[#allocation3 + $0x15c] sm:$0xff]  ;;  %6885 = vst.msk [vmem:[#allocation5 + $0x338] sm:$0xff] %vm376_vm6, %v6869_v42  ;;  %v6871_v4 = vpack.c.bf16 %v6849_v10, %v6848_v35  ;;  %v6852_v63 = vld [vmem:[#allocation3 + $0x16c] sm:$0xff]  ;;  %v9946_v9 = vpop.f32.mrb[103].mxu1 }
 0x409   : > { %v5367_v51 = vld [vmem:[#allocation3 + $0x9c] sm:$0xff]  ;;  %v6872_v39 = vpack.c.bf16 %v6851_v59, %v6850_v40  ;;  %v6853_v48 = vld [vmem:[#allocation3 + $0x174] sm:$0xff]  ;;  %v5558_v52 = vld [vmem:[#allocation3 + $0xa9] sm:$0xff]  ;;  %6886 = vst.msk [vmem:[#allocation5 + $0x3a0] sm:$0xff] %vm376_vm6, %v6870_v61  ;;  %v9948_v3 = vpop.f32.mrb[104].mxu1  ;;  %v4864_v59 = vpop.permute.xlu0 %4863 }
 0x40a   : > { %5054 = vrot.lane.b32.xlu1 %v13170_v16, %s10919_s23  ;;  %v6873_v43 = vpack.c.bf16 %v6853_v48, %v6852_v63  ;;  %v5585_v60 = vpack.c.bf16 %v5559_v23, %v5558_v52  ;;  %6887 = vst.msk [vmem:[#allocation5 + $0x408] sm:$0xff] %vm376_vm6, %v6871_v4  ;;  %v5393_v37 = vpack.c.bf16 %v5367_v51, %v5366_v57  ;;  %v9949_v24 = vpop.f32.mrb[105].mxu1  ;;  %v5561_v34 = vld [vmem:[#allocation3 + $0xc9] sm:$0xff]  ;;  %v5369_v61 = vld [vmem:[#allocation3 + $0xb4] sm:$0xff]  ;;  %v5560_v40 = vld [vmem:[#allocation3 + $0xc1] sm:$0xff]  ;;  %v4671_v51 = vpop.permute.xlu1 %4670 }
 0x40b   : > { %6888 = vst.msk [vmem:[#allocation5 + $0x470] sm:$0xff] %vm376_vm6, %v6872_v39  ;;  %v13605_v16 = vadd.f32 %v9946_v9, %v9945_v47  ;;  %v13608_v42 = vadd.f32 %v9949_v24, %v9948_v3  ;;  %v9951_v45 = vpop.f32.mrb[106].mxu1  ;;  %v5368_v57 = vld [vmem:[#allocation3 + $0xac] sm:$0xff]  ;;  %v5586_v7 = vpack.c.bf16 %v5561_v34, %v5560_v40  ;;  %v5370_v39 = vld [vmem:[#allocation3 + $0xc4] sm:$0xff] }
 0x40c   : > { %6889 = vst.msk [vmem:[#allocation5 + $0x4d8] sm:$0xff] %vm376_vm6, %v6873_v43  ;;  %5622 = vrot.lane.b32.xlu0 %v5585_v60, %s10919_s23  ;;  %v7012_v23 = vld [vmem:[#allocation5 + $0x3b0] sm:$0xff]  ;;  %v7011_v53 = vld [vmem:[#allocation5 + $0x3a8] sm:$0xff]  ;;  %v9952_v35 = vpop.f32.mrb[107].mxu1  ;;  %v5394_v4 = vpack.c.bf16 %v5369_v61, %v5368_v57  ;;  %v10857_v3 = vld [vmem:[%s14804_s4 + $0x240] sm:$0xff]  }
 0x40d   : > { %8061 = vmatprep.mubr.bf16.mxu1 %v7012_v23  ;;  %v13612_v10 = vadd.f32 %v9952_v35, %v9951_v45  ;;  %4901 = vst.msk [vmem:[#allocation5 + $0x418] sm:$0xff] %vm4698_vm9, %v4864_v59  ;;  %4709 = vst.msk [vmem:[#allocation5 + $0x410] sm:$0xff] %vm4698_vm9, %v4671_v51  ;;  %v5371_v63 = vld [vmem:[#allocation3 + $0xcc] sm:$0xff]  ;;  %10374 = vmatprep.subr.bf16.mxu1 %v10857_v3  ;;  %v5374_v35 = vld [vmem:[#allocation3 + $0xf4] sm:$0xff] }
 0x40e   : > { %5430 = vrot.lane.b32.xlu1 %v5393_v37, %s10919_s23  ;;  %8062 = vmatmul.mubr.bf16.gmra.mrb[136].mxu1 %v7011_v53  ;;  %v5395_v43 = vpack.c.bf16 %v5371_v63, %v5370_v39  ;;  %v4866_v60 = vpop.permute.xlu0 %4865  ;;  %v5373_v37 = vld [vmem:[#allocation3 + $0xe4] sm:$0xff]  ;;  %v5564_v9 = vld [vmem:[#allocation3 + $0xf1] sm:$0xff]  ;;  %v5375_v57 = vld [vmem:[#allocation3 + $0xfc] sm:$0xff] }
 0x40f   : > { %v4673_v47 = vpop.permute.xlu1 %4672  ;;  %4902 = vst.msk [vmem:[#allocation5 + $0x480] sm:$0xff] %vm4698_vm9, %v4866_v60  ;;  %v5567_v34 = vld [vmem:[#allocation3 + $0x111] sm:$0xff]  ;;  %v5566_v61 = vld [vmem:[#allocation3 + $0x109] sm:$0xff]  ;;  %v10852_v40 = vld [vmem:[%s14804_s4 + $0x180] sm:$0xff]  }
 0x410   : > { %5248 = vrot.lane.b32.xlu0 %v13227_v20, %s10919_s23  ;;  %v5563_v20 = vld [vmem:[#allocation3 + $0xe1] sm:$0xff]  ;;  %4710 = vst.msk [vmem:[#allocation5 + $0x478] sm:$0xff] %vm4698_vm9, %v4673_v47  ;;  %v10856_v47 = vld [vmem:[%s14804_s4 + $0x190] sm:$0xff]  }
 0x411   : > { %v10854_v39 = vld [vmem:[%s14804_s4 + $0x188] sm:$0xff]  }
 0x412   : > { %5056 = vrot.lane.b32.xlu1 %v13229_v62, %s10919_s23  ;;  %v5562_v62 = vld [vmem:[#allocation3 + $0xd9] sm:$0xff]  ;;  %v5229_v24 = vpop.permute.xlu0 %5228  ;;  %v5568_v60 = vld [vmem:[#allocation3 + $0x121] sm:$0xff]  ;;  %v5195_v3 = vld [vmem:[#allocation3 + $0x18a] sm:$0xff] }
 0x413   : > { %v5587_v52 = vpack.c.bf16 %v5563_v20, %v5562_v62  ;;  %v5037_v23 = vpop.permute.xlu1 %5036  ;;  %5276 = vst.msk [vmem:[#allocation5 + $0x18] sm:$0xff] %vm4698_vm9, %v5229_v24  ;;  %v10855_v62 = vld [vmem:[%s14804_s4 + $0x1d0] sm:$0xff]   ;;  %v5194_v24 = vld [vmem:[#allocation3 + $0x182] sm:$0xff] }
 0x414   : > { %5624 = vrot.lane.b32.xlu0 %v5586_v7, %s10919_s23  ;;  %v7025_v48 = vld [vmem:[#allocation5 + $0x418] sm:$0xff]  ;;  %v7024_v31 = vld [vmem:[#allocation5 + $0x410] sm:$0xff]  ;;  %5084 = vst.msk [vmem:[#allocation5 + $0x10] sm:$0xff] %vm4698_vm9, %v5037_v23 }
 0x415   : > { %8069 = vmatprep.mubr.bf16.mxu1 %v7025_v48  ;;  %v10860_v23 = vld [vmem:[%s14804_s4 + $0x198] sm:$0xff]  }
 0x416   : > { %5432 = vrot.lane.b32.xlu1 %v5394_v4, %s10919_s23  ;;  %8070 = vmatmul.mubr.bf16.gmra.mrb[140].mxu1 %v7024_v31  ;;  %v5589_v4 = vpack.c.bf16 %v5567_v34, %v5566_v61  ;;  %v5376_v31 = vld [vmem:[#allocation3 + $0x10c] sm:$0xff]  ;;  %v5002_v34 = vld [vmem:[#allocation3 + $0x180] sm:$0xff] }
 0x418   : > { %5250 = vrot.lane.b32.xlu0 %v13282_v26, %s10919_s23  ;;  %v5565_v26 = vld [vmem:[#allocation3 + $0xf9] sm:$0xff] }
 0x419   : > { %v5588_v53 = vpack.c.bf16 %v5565_v26, %v5564_v9  ;;  %v10859_v9 = vld [vmem:[%s14804_s4 + $0x1d8] sm:$0xff]  }
 0x41a   : > { %5058 = vrot.lane.b32.xlu1 %v13284_v44, %s10919_s23  ;;  %v5372_v44 = vld [vmem:[#allocation3 + $0xdc] sm:$0xff] }
 0x41b   : > { %v5396_v45 = vpack.c.bf16 %v5373_v37, %v5372_v44  ;;  %v4868_v59 = vpop.permute.xlu0 %4867  ;;  %v6897_v7 = vld [vmem:[#allocation5 + $0x18] sm:$0xff]  ;;  %v6896_v20 = vld [vmem:[#allocation5 + $0x10] sm:$0xff] }
 0x41c   : > { %5626 = vrot.lane.b32.xlu0 %v5587_v52, %s10919_s23  ;;  %v4675_v51 = vpop.permute.xlu1 %4674  ;;  %4903 = vst.msk [vmem:[#allocation5 + $0x4e8] sm:$0xff] %vm4698_vm9, %v4868_v59  ;;  %8150 = vmatprep.mubr.bf16.mxu0 %v6897_v7  ;;  %v5569_v52 = vld [vmem:[#allocation3 + $0x129] sm:$0xff]  ;;  %v5570_v7 = vld [vmem:[#allocation3 + $0x139] sm:$0xff] }
 0x41d   : > { %4711 = vst.msk [vmem:[#allocation5 + $0x4e0] sm:$0xff] %vm4698_vm9, %v4675_v51  ;;  %8151 = vmatmul.mubr.bf16.vlgmr.msra.gmra.mrb[124].mxu0 %v6896_v20  ;;  %v5590_v44 = vpack.c.bf16 %v5569_v52, %v5568_v60  ;;  %v5378_v59 = vld [vmem:[#allocation3 + $0x124] sm:$0xff]  ;;  %v5379_v51 = vld [vmem:[#allocation3 + $0x12c] sm:$0xff] }
 0x41e   : > { %5434 = vrot.lane.b32.xlu1 %v5395_v43, %s10919_s23  ;;  %10263 = vmatpush3.bf16.msra.mxu0 %v10852_v40  ;;  %v5377_v43 = vld [vmem:[#allocation3 + $0x114] sm:$0xff]  ;;  %v5571_v40 = vld [vmem:[#allocation3 + $0x141] sm:$0xff] }
 0x41f   : > { %v5231_v63 = vpop.permute.xlu0 %5230  ;;  %v14938_v60 = vld [vmem:[#allocation18_spill] sm:$0xff] }
 0x420   : > { %5252 = vrot.lane.b32.xlu0 %v13332_v18, %s10919_s23  ;;  %v7038_v18 = vld [vmem:[#allocation5 + $0x480] sm:$0xff]  ;;  %5277 = vst.msk [vmem:[#allocation5 + $0x80] sm:$0xff] %vm4698_vm9, %v5231_v63  ;;  %v5039_v48 = vpop.permute.xlu1 %5038  ;;  %v5399_v63 = vpack.c.bf16 %v5379_v51, %v5378_v59  ;;  %v14941_v59 = vld [vmem:[#allocation19_spill] sm:$0xff] }
 0x421   : > { %8077 = vmatprep.mubr.bf16.mxu1 %v7038_v18  ;;  %5085 = vst.msk [vmem:[#allocation5 + $0x78] sm:$0xff] %vm4698_vm9, %v5039_v48  ;;  %v5574_v51 = vld [vmem:[#allocation3 + $0x169] sm:$0xff] }
 0x422   : > { %5060 = vrot.lane.b32.xlu1 %v13334_v46, %s10919_s23  ;;  %v7037_v46 = vld [vmem:[#allocation5 + $0x478] sm:$0xff] }
 0x423   : > { %8078 = vmatmul.mubr.bf16.gmra.mrb[144].mxu1 %v7037_v46  ;;  %v7051_v26 = vld [vmem:[#allocation5 + $0x4e8] sm:$0xff]  ;;  %v5211_v46 = vpack.c.bf16 %v5195_v3, %v5194_v24 }
 0x424   : > { %5628 = vrot.lane.b32.xlu0 %v5588_v53, %s10919_s23  ;;  %v7050_v37 = vld [vmem:[#allocation5 + $0x4e0] sm:$0xff]  ;;  %8085 = vmatprep.mubr.bf16.mxu1 %v7051_v26 }
 0x425   : > { %v5381_v26 = vld [vmem:[#allocation3 + $0x144] sm:$0xff] }
 0x426   : > { %5436 = vrot.lane.b32.xlu1 %v5396_v45, %s10919_s23 }
 0x427   : > { %v6910_v18 = vld [vmem:[#allocation5 + $0x80] sm:$0xff] }
 0x428   : > { %5254 = vrot.lane.b32.xlu0 %v13384_v32, %s10919_s23  ;;  %v10853_v32 = vld [vmem:[%s14804_s4 + $0x1c8] sm:$0xff]   ;;  %8158 = vmatprep.mubr.bf16.mxu0 %v6910_v18  ;;  %v6909_v61 = vld [vmem:[#allocation5 + $0x78] sm:$0xff] }
 0x429   : > { %10264 = vmatprep.subr.bf16.mxu0 %v10853_v32  ;;  %8159 = vmatmul.mubr.bf16.gmra.mrb[128].mxu0 %v6909_v61  ;;  %v5591_v32 = vpack.c.bf16 %v5571_v40, %v5570_v7  ;;  %v10870_v18 = vld [vmem:[%s14804_s4 + $0x1b8] sm:$0xff]  }
 0x42a   : > { %5062 = vrot.lane.b32.xlu1 %v13386_v22, %s10919_s23  ;;  %v5397_v22 = vpack.c.bf16 %v5375_v57, %v5374_v35  ;;  %10265 = vmatpush3.bf16.msra.mxu0 %v10854_v39  ;;  %v4870_v53 = vpop.permute.xlu0 %4869  ;;  %v10861_v35 = vld [vmem:[%s14804_s4 + $0x1e0] sm:$0xff]   ;;  %v5382_v61 = vld [vmem:[#allocation3 + $0x154] sm:$0xff] }
 0x42b   : > { %10266 = vmatprep.subr.bf16.mxu0 %v10855_v62  ;;  %8086 = vmatmul.mubr.bf16.gmra.mrb[148].mxu1 %v7050_v37  ;;  %v4677_v45 = vpop.permute.xlu1 %4676  ;;  %4904 = vst.msk [vmem:[#allocation5 + $0x550] sm:$0xff] %vm4698_vm9, %v4870_v53  ;;  %v10865_v62 = vld [vmem:[%s14804_s4 + $0x1a8] sm:$0xff]   ;;  %v5572_v37 = vld [vmem:[#allocation3 + $0x151] sm:$0xff]  ;;  %v5383_v40 = vld [vmem:[#allocation3 + $0x15c] sm:$0xff] }
 0x42c   : > { %5630 = vrot.lane.b32.xlu0 %v5589_v4, %s10919_s23  ;;  %4712 = vst.msk [vmem:[#allocation5 + $0x548] sm:$0xff] %vm4698_vm9, %v4677_v45  ;;  %v10862_v4 = vld [vmem:[%s14804_s4 + $0x1a0] sm:$0xff]  }
 0x42e   : > { %5438 = vrot.lane.b32.xlu1 %v5397_v22, %s10919_s23  ;;  %10267 = vmatpush3.bf16.msra.mxu0 %v10856_v47  ;;  %v10863_v22 = vld [vmem:[%s14804_s4 + $0x1e8] sm:$0xff]   ;;  %v5380_v47 = vld [vmem:[#allocation3 + $0x13c] sm:$0xff] }
 0x42f   : > { %10268 = vmatprep.subr.bf16.mxu0 %v10859_v9  ;;  %v5041_v39 = vpop.permute.xlu1 %5040  ;;  %v10868_v9 = vld [vmem:[%s14804_s4 + $0x1b0] sm:$0xff]   ;;  %v5400_v53 = vpack.c.bf16 %v5381_v26, %v5380_v47 }
 0x430   : > { %5256 = vrot.lane.b32.xlu0 %v13443_v11, %s10919_s23  ;;  %v5398_v11 = vpack.c.bf16 %v5377_v43, %v5376_v31  ;;  %5086 = vst.msk [vmem:[#allocation5 + $0xe0] sm:$0xff] %vm4698_vm9, %v5041_v39  ;;  %v10867_v31 = vld [vmem:[%s14804_s4 + $0x1f0] sm:$0xff]   ;;  %v5573_v43 = vld [vmem:[#allocation3 + $0x159] sm:$0xff] }
 0x431   : > { %v5233_v20 = vpop.permute.xlu0 %5232  ;;  %v5592_v24 = vpack.c.bf16 %v5573_v43, %v5572_v37  ;;  %v14942_v43 = vld [vmem:[#allocation26_spill] sm:$0xff] }
 0x432   : > { %5064 = vrot.lane.b32.xlu1 %v13445_v25, %s10919_s23  ;;  %v5003_v25 = vld [vmem:[#allocation3 + $0x188] sm:$0xff]  ;;  %10269 = vmatpush3.bf16.msra.mxu0 %v10860_v23  ;;  %5278 = vst.msk [vmem:[#allocation5 + $0xe8] sm:$0xff] %vm4698_vm9, %v5233_v20  ;;  %v7064_v48 = vld [vmem:[#allocation5 + $0x550] sm:$0xff]  ;;  %v10869_v23 = vld [vmem:[%s14804_s4 + $0x1f8] sm:$0xff]  }
 0x433   : > { %v5019_v57 = vpack.c.bf16 %v5003_v25, %v5002_v34  ;;  %10270 = vmatprep.subr.bf16.mxu0 %v10861_v35  ;;  %v7063_v52 = vld [vmem:[#allocation5 + $0x548] sm:$0xff]  ;;  %8093 = vmatprep.mubr.bf16.mxu1 %v7064_v48  ;;  %v5575_v35 = vld [vmem:[#allocation3 + $0x171] sm:$0xff] }
 0x434   : > { %5632 = vrot.lane.b32.xlu0 %v5590_v44, %s10919_s23  ;;  %8094 = vmatmul.mubr.bf16.gmra.mrb[152].mxu1 %v7063_v52  ;;  %v14939_v44 = vld [vmem:[#allocation13_spill] sm:$0xff]  ;;  %v5577_v48 = vld [vmem:[#allocation3 + $0x189] sm:$0xff] }
 0x435   : > { %v5384_v52 = vld [vmem:[#allocation3 + $0x16c] sm:$0xff] }
 0x436   : > { %5440 = vrot.lane.b32.xlu1 %v5398_v11, %s10919_s23  ;;  %10271 = vmatpush3.bf16.msra.mxu0 %v10862_v4  ;;  %v5593_v4 = vpack.c.bf16 %v5575_v35, %v5574_v51 }
 0x437   : > { %10272 = vmatprep.subr.bf16.mxu0 %v10863_v22  ;;  %v6922_v45 = vld [vmem:[#allocation5 + $0xe0] sm:$0xff] }
 0x438   : > { %5258 = vrot.lane.b32.xlu0 %v5211_v46, %s10919_s23 }
 0x439   : > { %v4872_v11 = vpop.permute.xlu0 %4871  ;;  %v6923_v25 = vld [vmem:[#allocation5 + $0xe8] sm:$0xff] }
 0x43a   : > { %5066 = vrot.lane.b32.xlu1 %v5019_v57, %s10919_s23  ;;  %10273 = vmatpush3.bf16.msra.mxu0 %v10865_v62  ;;  %v4679_v3 = vpop.permute.xlu1 %4678  ;;  %4905 = vst.msk [vmem:[#allocation5 + $0x5b8] sm:$0xff] %vm4698_vm9, %v4872_v11  ;;  %v14940_v57 = vld [vmem:[#allocation24_spill] sm:$0xff] }
 0x43b   : > { %10274 = vmatprep.subr.bf16.mxu0 %v10867_v31  ;;  %4713 = vst.msk [vmem:[#allocation5 + $0x5b0] sm:$0xff] %vm4698_vm9, %v4679_v3  ;;  %8166 = vmatprep.mubr.bf16.mxu0 %v6923_v25  ;;  %v5385_v31 = vld [vmem:[#allocation3 + $0x174] sm:$0xff]  ;;  %v5579_v25 = vld [vmem:[#allocation3 + $0x1a1] sm:$0xff] }
 0x43c   : > { %5634 = vrot.lane.b32.xlu0 %v5591_v32, %s10919_s23  ;;  %8167 = vmatmul.mubr.bf16.gmra.mrb[132].mxu0 %v6922_v45  ;;  %v5401_v32 = vpack.c.bf16 %v5383_v40, %v5382_v61  ;;  %v5402_v37 = vpack.c.bf16 %v5385_v31, %v5384_v52  ;;  %v10864_v40 = vld [vmem:[%s14804_s4 + $0x248] sm:$0xff]   ;;  %v10872_v31 = vld [vmem:[%s14804_s4 + $0x210] sm:$0xff]  }
 0x43e   : > { %5442 = vrot.lane.b32.xlu1 %v5399_v63, %s10919_s23  ;;  %10275 = vmatpush3.bf16.msra.mxu0 %v10868_v9  ;;  %v5235_v46 = vpop.permute.xlu0 %5234 }
 0x43f   : > { %10276 = vmatprep.subr.bf16.mxu0 %v10869_v23  ;;  %5279 = vst.msk [vmem:[#allocation5 + $0x150] sm:$0xff] %vm4698_vm9, %v5235_v46  ;;  %v5387_v23 = vld [vmem:[#allocation3 + $0x18c] sm:$0xff] }
 0x440   : > { %5997 = vrot.lane.b32.xlu0 %v14938_v60, %s10919_s23  ;;  %v5576_v60 = vld [vmem:[#allocation3 + $0x181] sm:$0xff] }
 0x441   : > { %v5043_v34 = vpop.permute.xlu1 %5042  ;;  %v7077_v7 = vld [vmem:[#allocation5 + $0x5b8] sm:$0xff]  ;;  %v5594_v26 = vpack.c.bf16 %v5577_v48, %v5576_v60  ;;  %v10871_v48 = vld [vmem:[%s14804_s4 + $0x250] sm:$0xff]  }
 0x442   : > { %5804 = vrot.lane.b32.xlu1 %v14939_v44, %s10919_s23  ;;  %5087 = vst.msk [vmem:[#allocation5 + $0x148] sm:$0xff] %vm4698_vm9, %v5043_v34  ;;  %10277 = vmatpush3.bf16.msra.mxu0 %v10870_v18  ;;  %v7076_v20 = vld [vmem:[#allocation5 + $0x5b0] sm:$0xff] }
 0x443   : > { %8101 = vmatprep.mubr.bf16.mxu1 %v7077_v7  ;;  %v6317_v7 = vld [vmem:[#allocation3 + $0x4c] sm:$0xff] }
 0x444   : > { %5636 = vrot.lane.b32.xlu0 %v5592_v24, %s10919_s23  ;;  %8102 = vmatmul.mubr.bf16.gmra.mrb[156].mxu1 %v7076_v20  ;;  %v5386_v24 = vld [vmem:[#allocation3 + $0x184] sm:$0xff]  ;;  %v6126_v20 = vld [vmem:[#allocation3 + $0x52] sm:$0xff] }
 0x445   : > { %v5403_v35 = vpack.c.bf16 %v5387_v23, %v5386_v24 }
 0x446   : > { %5444 = vrot.lane.b32.xlu1 %v5400_v53, %s10919_s23  ;;  %v6936_v63 = vld [vmem:[#allocation5 + $0x150] sm:$0xff]  ;;  %v5578_v53 = vld [vmem:[#allocation3 + $0x199] sm:$0xff] }
 0x447   : > { %8174 = vmatprep.mubr.bf16.mxu0 %v6936_v63  ;;  %v5595_v46 = vpack.c.bf16 %v5579_v25, %v5578_v53  ;;  %v6127_v53 = vld [vmem:[#allocation3 + $0x62] sm:$0xff] }
 0x448   : > { %5999 = vrot.lane.b32.xlu0 %v14940_v57, %s10919_s23 }
 0x449   : > { %v4874_v22 = vpop.permute.xlu0 %4873  ;;  %v6935_v62 = vld [vmem:[#allocation5 + $0x148] sm:$0xff] }
 0x44a   : > { %5806 = vrot.lane.b32.xlu1 %v14941_v59, %s10919_s23  ;;  %v4681_v39 = vpop.permute.xlu1 %4680  ;;  %4906 = vst.msk [vmem:[#allocation5 + $0x620] sm:$0xff] %vm4698_vm9, %v4874_v22  ;;  %8175 = vmatmul.mubr.bf16.gmra.mrb[136].mxu0 %v6935_v62  ;;  %v6125_v62 = vld [vmem:[#allocation3 + $0x4a] sm:$0xff] }
 0x44b   : > { %4714 = vst.msk [vmem:[#allocation5 + $0x618] sm:$0xff] %vm4698_vm9, %v4681_v39  ;;  %v6157_v52 = vpack.c.bf16 %v6126_v20, %v6125_v62 }
 0x44c   : > { %5638 = vrot.lane.b32.xlu0 %v5593_v4, %s10919_s23  ;;  %v6318_v4 = vld [vmem:[#allocation3 + $0x54] sm:$0xff] }
 0x44d   : > { %v5237_v47 = vpop.permute.xlu0 %5236  ;;  %v6349_v63 = vpack.c.bf16 %v6318_v4, %v6317_v7  ;;  %v14944_v7 = vld [vmem:[#allocation41_spill] sm:$0xff]  ;;  %v10878_v4 = vld [vmem:[%s14804_s4 + $0x228] sm:$0xff]  }
 0x44e   : > { %5446 = vrot.lane.b32.xlu1 %v5401_v32, %s10919_s23  ;;  %5280 = vst.msk [vmem:[#allocation5 + $0x1b8] sm:$0xff] %vm4698_vm9, %v5237_v47  ;;  %v5045_v44 = vpop.permute.xlu1 %5044  ;;  %v10866_v32 = vld [vmem:[%s14804_s4 + $0x208] sm:$0xff]   ;;  %v10873_v47 = vld [vmem:[%s14804_s4 + $0x258] sm:$0xff]  }
 0x44f   : > { %5088 = vst.msk [vmem:[#allocation5 + $0x1b0] sm:$0xff] %vm4698_vm9, %v5045_v44 }
 0x450   : > { %6001 = vrot.lane.b32.xlu0 %v12933_v55, %s10919_s23 }
 0x451   : > { %v5613_v55 = vpop.permute.xlu0 %5612  ;;  %v7090_v9 = vld [vmem:[#allocation5 + $0x620] sm:$0xff] }
 0x452   : > { %5808 = vrot.lane.b32.xlu1 %v14942_v43, %s10919_s23  ;;  %v7089_v11 = vld [vmem:[#allocation5 + $0x618] sm:$0xff]  ;;  %5660 = vst.msk [vmem:[#allocation5 + $0x28] sm:$0xff] %vm4698_vm9, %v5613_v55  ;;  %v5421_v3 = vpop.permute.xlu1 %5420  ;;  %8109 = vmatprep.mubr.bf16.mxu1 %v7090_v9  ;;  %v6320_v55 = vld [vmem:[#allocation3 + $0x6c] sm:$0xff] }
 0x453   : > { %5468 = vst.msk [vmem:[#allocation5 + $0x20] sm:$0xff] %vm4698_vm9, %v5421_v3  ;;  %8110 = vmatmul.mubr.bf16.gmra.mrb[160].mxu1 %v7089_v11  ;;  %v6128_v9 = vld [vmem:[#allocation3 + $0x6a] sm:$0xff]  ;;  %v10874_v3 = vld [vmem:[%s14804_s4 + $0x218] sm:$0xff]  }
 0x454   : > { %5640 = vrot.lane.b32.xlu0 %v5594_v26, %s10919_s23  ;;  %v14943_v11 = vld [vmem:[#allocation36_spill] sm:$0xff] }
 0x455   : > { %v5239_v45 = vpop.permute.xlu0 %5238  ;;  %v6949_v18 = vld [vmem:[#allocation5 + $0x1b8] sm:$0xff] }
 0x456   : > { %5448 = vrot.lane.b32.xlu1 %v5402_v37, %s10919_s23  ;;  %5281 = vst.msk [vmem:[#allocation5 + $0x220] sm:$0xff] %vm4698_vm9, %v5239_v45  ;;  %v5047_v34 = vpop.permute.xlu1 %5046  ;;  %8182 = vmatprep.mubr.bf16.mxu0 %v6949_v18  ;;  %v6948_v57 = vld [vmem:[#allocation5 + $0x1b0] sm:$0xff]  ;;  %v6319_v37 = vld [vmem:[#allocation3 + $0x64] sm:$0xff]  ;;  %v6158_v18 = vpack.c.bf16 %v6128_v9, %v6127_v53 }
 0x457   : > { %5089 = vst.msk [vmem:[#allocation5 + $0x218] sm:$0xff] %vm4698_vm9, %v5047_v34  ;;  %8183 = vmatmul.mubr.bf16.gmra.mrb[140].mxu0 %v6948_v57  ;;  %v6350_v23 = vpack.c.bf16 %v6320_v55, %v6319_v37  ;;  %v10875_v45 = vld [vmem:[%s14804_s4 + $0x260] sm:$0xff]   ;;  %v6131_v55 = vld [vmem:[#allocation3 + $0x92] sm:$0xff] }
 0x458   : > { %6003 = vrot.lane.b32.xlu0 %v12977_v15, %s10919_s23  ;;  %v10876_v34 = vld [vmem:[%s14804_s4 + $0x220] sm:$0xff]  }
 0x459   : > { %v6899_v61 = vld [vmem:[#allocation5 + $0x28] sm:$0xff] }
 0x45a   : > { %5810 = vrot.lane.b32.xlu1 %v12941_v41, %s10919_s23  ;;  %v10858_v41 = vld [vmem:[%s14804_s4 + $0x200] sm:$0xff]   ;;  %8311 = vmatprep.mubr.bf16.mxu1 %v6899_v61 }
 0x45b   : > { %v5615_v15 = vpop.permute.xlu0 %5614  ;;  %v6898_v51 = vld [vmem:[#allocation5 + $0x20] sm:$0xff] }
 0x45c   : > { %5642 = vrot.lane.b32.xlu0 %v5595_v46, %s10919_s23  ;;  %5661 = vst.msk [vmem:[#allocation5 + $0x90] sm:$0xff] %vm4698_vm9, %v5615_v15  ;;  %8312 = vmatmul.mubr.bf16.vlgmr.msra.gmra.mrb[164].mxu1 %v6898_v51  ;;  %v6130_v51 = vld [vmem:[#allocation3 + $0x82] sm:$0xff] }
 0x45d   : > { %v5423_v59 = vpop.permute.xlu1 %5422  ;;  %10375 = vmatpush3.bf16.msra.mxu1 %v10858_v41  ;;  %v6962_v39 = vld [vmem:[#allocation5 + $0x220] sm:$0xff]  ;;  %v10877_v41 = vld [vmem:[%s14804_s4 + $0x268] sm:$0xff]  }
 0x45e   : > { %5450 = vrot.lane.b32.xlu1 %v5403_v35, %s10919_s23  ;;  %5469 = vst.msk [vmem:[#allocation5 + $0x88] sm:$0xff] %vm4698_vm9, %v5423_v59  ;;  %10376 = vmatprep.subr.bf16.mxu1 %v10864_v40  ;;  %v6321_v40 = vld [vmem:[#allocation3 + $0x7c] sm:$0xff]  ;;  %v6322_v59 = vld [vmem:[#allocation3 + $0x84] sm:$0xff] }
 0x45f   : > { %v5241_v22 = vpop.permute.xlu0 %5240  ;;  %8190 = vmatprep.mubr.bf16.mxu0 %v6962_v39  ;;  %v6129_v39 = vld [vmem:[#allocation3 + $0x7a] sm:$0xff] }
 0x460   : > { %6005 = vrot.lane.b32.xlu0 %v13019_v50, %s10919_s23  ;;  %5282 = vst.msk [vmem:[#allocation5 + $0x288] sm:$0xff] %vm4698_vm9, %v5241_v22  ;;  %v6351_v22 = vpack.c.bf16 %v6322_v59, %v6321_v40  ;;  %v6159_v62 = vpack.c.bf16 %v6130_v51, %v6129_v39  ;;  %v6136_v40 = vld [vmem:[#allocation3 + $0xca] sm:$0xff] }
 0x461   : > { %v5049_v50 = vpop.permute.xlu1 %5048  ;;  %10377 = vmatpush3.bf16.msra.mxu1 %v10866_v32 }
 0x462   : > { %5812 = vrot.lane.b32.xlu1 %v12984_v28, %s10919_s23  ;;  %v6961_v28 = vld [vmem:[#allocation5 + $0x218] sm:$0xff]  ;;  %5090 = vst.msk [vmem:[#allocation5 + $0x280] sm:$0xff] %vm4698_vm9, %v5049_v50  ;;  %10378 = vmatprep.subr.bf16.mxu1 %v10871_v48  ;;  %v10880_v50 = vld [vmem:[%s14804_s4 + $0x230] sm:$0xff]  }
 0x463   : > { %8191 = vmatmul.mubr.bf16.gmra.mrb[144].mxu0 %v6961_v28  ;;  %v6912_v60 = vld [vmem:[#allocation5 + $0x90] sm:$0xff] }
 0x464   : > { %6381 = vrot.lane.b32.xlu0 %v6349_v63, %s10919_s23  ;;  %8319 = vmatprep.mubr.bf16.mxu1 %v6912_v60  ;;  %v10879_v63 = vld [vmem:[%s14804_s4 + $0x270] sm:$0xff]  }
 0x465   : > { %v5617_v43 = vpop.permute.xlu0 %5616  ;;  %v6911_v44 = vld [vmem:[#allocation5 + $0x88] sm:$0xff]  ;;  %10379 = vmatpush3.bf16.msra.mxu1 %v10872_v31  ;;  %v10881_v31 = vld [vmem:[%s14804_s4 + $0x278] sm:$0xff]  }
 0x466   : > { %6189 = vrot.lane.b32.xlu1 %v6157_v52, %s10919_s23  ;;  %5662 = vst.msk [vmem:[#allocation5 + $0xf8] sm:$0xff] %vm4698_vm9, %v5617_v43  ;;  %8320 = vmatmul.mubr.bf16.gmra.mrb[168].mxu1 %v6911_v44 }
 0x467   : > { %v5425_v26 = vpop.permute.xlu1 %5424  ;;  %v6975_v24 = vld [vmem:[#allocation5 + $0x288] sm:$0xff]  ;;  %10380 = vmatprep.subr.bf16.mxu1 %v10873_v47  ;;  %v6132_v47 = vld [vmem:[#allocation3 + $0x9a] sm:$0xff] }
 0x468   : > { %5470 = vst.msk [vmem:[#allocation5 + $0xf0] sm:$0xff] %vm4698_vm9, %v5425_v26  ;;  %6007 = vrot.lane.b32.xlu0 %v13072_v14, %s10919_s23  ;;  %8198 = vmatprep.mubr.bf16.mxu0 %v6975_v24  ;;  %v10882_v26 = vld [vmem:[%s14804_s4 + $0x238] sm:$0xff]  }
 0x469   : > { %v5243_v25 = vpop.permute.xlu0 %5242  ;;  %v6974_v46 = vld [vmem:[#allocation5 + $0x280] sm:$0xff]  ;;  %10381 = vmatpush3.bf16.msra.mxu1 %v10874_v3  ;;  %v14945_v3 = vld [vmem:[#allocation32_spill] sm:$0xff] }
 0x46a   : > { %5814 = vrot.lane.b32.xlu1 %v14943_v11, %s10919_s23  ;;  %5283 = vst.msk [vmem:[#allocation5 + $0x2f0] sm:$0xff] %vm4698_vm9, %v5243_v25  ;;  %10382 = vmatprep.subr.bf16.mxu1 %v10875_v45  ;;  %v6160_v11 = vpack.c.bf16 %v6132_v47, %v6131_v55  ;;  %v6134_v45 = vld [vmem:[#allocation3 + $0xb2] sm:$0xff] }
 0x46b   : > { %v5051_v14 = vpop.permute.xlu1 %5050  ;;  %8199 = vmatmul.mubr.bf16.gmra.mrb[148].mxu0 %v6974_v46  ;;  %v6133_v46 = vld [vmem:[#allocation3 + $0xaa] sm:$0xff] }
 0x46c   : > { %5091 = vst.msk [vmem:[#allocation5 + $0x2e8] sm:$0xff] %vm4698_vm9, %v5051_v14  ;;  %6383 = vrot.lane.b32.xlu0 %v6350_v23, %s10919_s23 }
 0x46d   : > { %v5619_v35 = vpop.permute.xlu0 %5618  ;;  %v6925_v57 = vld [vmem:[#allocation5 + $0xf8] sm:$0xff]  ;;  %10383 = vmatpush3.bf16.msra.mxu1 %v10876_v34 }
 0x46e   : > { %6191 = vrot.lane.b32.xlu1 %v6158_v18, %s10919_s23  ;;  %5663 = vst.msk [vmem:[#allocation5 + $0x160] sm:$0xff] %vm4698_vm9, %v5619_v35  ;;  %8327 = vmatprep.mubr.bf16.mxu1 %v6925_v57  ;;  %v6161_v35 = vpack.c.bf16 %v6134_v45, %v6133_v46 }
 0x46f   : > { %v6924_v61 = vld [vmem:[#allocation5 + $0xf0] sm:$0xff]  ;;  %10384 = vmatprep.subr.bf16.mxu1 %v10877_v41  ;;  %v14946_v41 = vld [vmem:[#allocation37_spill] sm:$0xff] }
 0x470   : > { %v5427_v15 = vpop.permute.xlu1 %5426  ;;  %6009 = vrot.lane.b32.xlu0 %v13131_v30, %s10919_s23  ;;  %8328 = vmatmul.mubr.bf16.gmra.mrb[172].mxu1 %v6924_v61 }
 0x471   : > { %5471 = vst.msk [vmem:[#allocation5 + $0x158] sm:$0xff] %vm4698_vm9, %v5427_v15  ;;  %v5245_v20 = vpop.permute.xlu0 %5244  ;;  %v6988_v32 = vld [vmem:[#allocation5 + $0x2f0] sm:$0xff]  ;;  %10385 = vmatpush3.bf16.msra.mxu1 %v10878_v4 }
 0x472   : > { %5816 = vrot.lane.b32.xlu1 %v14944_v7, %s10919_s23  ;;  %5284 = vst.msk [vmem:[#allocation5 + $0x358] sm:$0xff] %vm4698_vm9, %v5245_v20  ;;  %8206 = vmatprep.mubr.bf16.mxu0 %v6988_v32  ;;  %v6135_v7 = vld [vmem:[#allocation3 + $0xc2] sm:$0xff] }
 0x473   : > { %v6987_v48 = vld [vmem:[#allocation5 + $0x2e8] sm:$0xff]  ;;  %10386 = vmatprep.subr.bf16.mxu1 %v10879_v63  ;;  %v6162_v20 = vpack.c.bf16 %v6136_v40, %v6135_v7 }
 0x474   : > { %v5053_v30 = vpop.permute.xlu1 %5052  ;;  %6385 = vrot.lane.b32.xlu0 %v6351_v22, %s10919_s23  ;;  %8207 = vmatmul.mubr.bf16.gmra.mrb[152].mxu0 %v6987_v48  ;;  %v14947_v22 = vld [vmem:[#allocation42_spill] sm:$0xff] }
 0x475   : > { %5092 = vst.msk [vmem:[#allocation5 + $0x350] sm:$0xff] %vm4698_vm9, %v5053_v30  ;;  %v5621_v52 = vpop.permute.xlu0 %5620  ;;  %v6938_v28 = vld [vmem:[#allocation5 + $0x160] sm:$0xff]  ;;  %10387 = vmatpush3.bf16.msra.mxu1 %v10880_v50 }
 0x476   : > { %6193 = vrot.lane.b32.xlu1 %v6159_v62, %s10919_s23  ;;  %5664 = vst.msk [vmem:[#allocation5 + $0x1c8] sm:$0xff] %vm4698_vm9, %v5621_v52  ;;  %8335 = vmatprep.mubr.bf16.mxu1 %v6938_v28  ;;  %v6138_v48 = vld [vmem:[#allocation3 + $0xe2] sm:$0xff] }
 0x477   : > { %10388 = vmatprep.subr.bf16.mxu1 %v10881_v31 }
 0x478   : > { %v5429_v43 = vpop.permute.xlu1 %5428  ;;  %v6937_v60 = vld [vmem:[#allocation5 + $0x158] sm:$0xff]  ;;  %6011 = vrot.lane.b32.xlu0 %v13191_v27, %s10919_s23 }
 0x479   : > { %5472 = vst.msk [vmem:[#allocation5 + $0x1c0] sm:$0xff] %vm4698_vm9, %v5429_v43  ;;  %8336 = vmatmul.mubr.bf16.gmra.mrb[176].mxu1 %v6937_v60  ;;  %v5247_v44 = vpop.permute.xlu0 %5246  ;;  %v7001_v37 = vld [vmem:[#allocation5 + $0x358] sm:$0xff] }
 0x47a   : > { %5818 = vrot.lane.b32.xlu1 %v13134_v2, %s10919_s23  ;;  %5285 = vst.msk [vmem:[#allocation5 + $0x3c0] sm:$0xff] %vm4698_vm9, %v5247_v44  ;;  %8214 = vmatprep.mubr.bf16.mxu0 %v7001_v37  ;;  %v10883_v2 = vld [vmem:[%s14804_s4 + $0x2c0] sm:$0xff]  }
 0x47b   : > { %10389 = vmatpush3.bf16.msra.mxu1 %v10882_v26  ;;  %10486 = vmatprep.subr.bf16.mxu0 %v10883_v2  ;;  %v6137_v60 = vld [vmem:[#allocation3 + $0xda] sm:$0xff] }
 0x47c   : > { %v5055_v9 = vpop.permute.xlu1 %5054  ;;  %v7000_v27 = vld [vmem:[#allocation5 + $0x350] sm:$0xff]  ;;  %6387 = vrot.lane.b32.xlu0 %v14945_v3, %s10919_s23  ;;  %v6163_v44 = vpack.c.bf16 %v6138_v48, %v6137_v60  ;;  %v14948_v37 = vld [vmem:[#allocation46_spill] sm:$0xff] }
 0x47d   : > { %5093 = vst.msk [vmem:[#allocation5 + $0x3b8] sm:$0xff] %vm4698_vm9, %v5055_v9  ;;  %8215 = vmatmul.mubr.bf16.gmra.mrb[156].mxu0 %v7000_v27  ;;  %v6951_v24 = vld [vmem:[#allocation5 + $0x1c8] sm:$0xff]  ;;  %v6140_v3 = vld [vmem:[#allocation3 + $0xfa] sm:$0xff] }
 0x47e   : > { %6195 = vrot.lane.b32.xlu1 %v6160_v11, %s10919_s23  ;;  %v5623_v25 = vpop.permute.xlu0 %5622  ;;  %8343 = vmatprep.mubr.bf16.mxu1 %v6951_v24  ;;  %v14949_v27 = vld [vmem:[#allocation7_spill] sm:$0xff]  ;;  %v14950_v2 = vld [vmem:[#allocation6_spill] sm:$0xff] }
 0x47f   : > { %5665 = vst.msk [vmem:[#allocation5 + $0x230] sm:$0xff] %vm4698_vm9, %v5623_v25 }
 0x480   : > { %v5431_v23 = vpop.permute.xlu1 %5430  ;;  %v6950_v53 = vld [vmem:[#allocation5 + $0x1c0] sm:$0xff]  ;;  %6013 = vrot.lane.b32.xlu0 %v13238_v5, %s10919_s23 }
 0x481   : > { %5473 = vst.msk [vmem:[#allocation5 + $0x228] sm:$0xff] %vm4698_vm9, %v5431_v23  ;;  %8344 = vmatmul.mubr.bf16.gmra.mrb[180].mxu1 %v6950_v53  ;;  %v7014_v18 = vld [vmem:[#allocation5 + $0x3c0] sm:$0xff]  ;;  %v6139_v23 = vld [vmem:[#allocation3 + $0xf2] sm:$0xff] }
 0x482   : > { %5820 = vrot.lane.b32.xlu1 %v13204_v12, %s10919_s23  ;;  %v5249_v14 = vpop.permute.xlu0 %5248  ;;  %8222 = vmatprep.mubr.bf16.mxu0 %v7014_v18  ;;  %v9954_v63 = vpop.f32.mrb[108].mxu1 }
 0x483   : > { %5286 = vst.msk [vmem:[#allocation5 + $0x428] sm:$0xff] %vm4698_vm9, %v5249_v14  ;;  %v9955_v62 = vpop.f32.mrb[109].mxu1  ;;  %v6164_v14 = vpack.c.bf16 %v6140_v3, %v6139_v23  ;;  %v5964_v23 = vld [vmem:[#allocation3 + $0x1b8] sm:$0xff] }
 0x484   : > { %v5057_v34 = vpop.permute.xlu1 %5056  ;;  %v7013_v57 = vld [vmem:[#allocation5 + $0x3b8] sm:$0xff]  ;;  %6389 = vrot.lane.b32.xlu0 %v14946_v41, %s10919_s23  ;;  %v13859_v50 = vadd.f32 %v9955_v62, %v9954_v63  ;;  %v9957_v52 = vpop.f32.mrb[110].mxu1 }
 0x485   : > { %5094 = vst.msk [vmem:[#allocation5 + $0x420] sm:$0xff] %vm4698_vm9, %v5057_v34  ;;  %8223 = vmatmul.mubr.bf16.gmra.mrb[160].mxu0 %v7013_v57  ;;  %v9958_v28 = vpop.f32.mrb[111].mxu1  ;;  %v14951_v34 = vld [vmem:[#allocation49_spill] sm:$0xff] }
 0x486   : > { %6197 = vrot.lane.b32.xlu1 %v6161_v35, %s10919_s23  ;;  %v5625_v5 = vpop.permute.xlu0 %5624  ;;  %v6964_v15 = vld [vmem:[#allocation5 + $0x230] sm:$0xff]  ;;  %v13863_v47 = vadd.f32 %v9958_v28, %v9957_v52 }
 0x487   : > { %5666 = vst.msk [vmem:[#allocation5 + $0x298] sm:$0xff] %vm4698_vm9, %v5625_v5  ;;  %8351 = vmatprep.mubr.bf16.mxu1 %v6964_v15  ;;  %v6144_v52 = vld [vmem:[#allocation3 + $0x12a] sm:$0xff] }
 0x488   : > { %v5433_v12 = vpop.permute.xlu1 %5432  ;;  %v6963_v61 = vld [vmem:[#allocation5 + $0x228] sm:$0xff]  ;;  %6015 = vrot.lane.b32.xlu0 %v13289_v1, %s10919_s23 }
 0x489   : > { %5474 = vst.msk [vmem:[#allocation5 + $0x290] sm:$0xff] %vm4698_vm9, %v5433_v12  ;;  %8352 = vmatmul.mubr.bf16.gmra.mrb[184].mxu1 %v6963_v61 }
 0x48a   : > { %5822 = vrot.lane.b32.xlu1 %v13241_v29, %s10919_s23  ;;  %v5251_v59 = vpop.permute.xlu0 %5250  ;;  %v7027_v51 = vld [vmem:[#allocation5 + $0x428] sm:$0xff] }
 0x48b   : > { %5287 = vst.msk [vmem:[#allocation5 + $0x490] sm:$0xff] %vm4698_vm9, %v5251_v59  ;;  %8230 = vmatprep.mubr.bf16.mxu0 %v7027_v51  ;;  %v6142_v59 = vld [vmem:[#allocation3 + $0x112] sm:$0xff] }
 0x48c   : > { %v5059_v4 = vpop.permute.xlu1 %5058  ;;  %v7026_v32 = vld [vmem:[#allocation5 + $0x420] sm:$0xff]  ;;  %6391 = vrot.lane.b32.xlu0 %v14947_v22, %s10919_s23  ;;  %v14952_v51 = vld [vmem:[#allocation8_spill] sm:$0xff] }
 0x48d   : > { %5095 = vst.msk [vmem:[#allocation5 + $0x488] sm:$0xff] %vm4698_vm9, %v5059_v4  ;;  %8231 = vmatmul.mubr.bf16.gmra.mrb[164].mxu0 %v7026_v32 }
 0x48e   : > { %6199 = vrot.lane.b32.xlu1 %v6162_v20, %s10919_s23  ;;  %v5627_v1 = vpop.permute.xlu0 %5626  ;;  %v6977_v39 = vld [vmem:[#allocation5 + $0x298] sm:$0xff]  ;;  %v6141_v20 = vld [vmem:[#allocation3 + $0x10a] sm:$0xff] }
 0x48f   : > { %5667 = vst.msk [vmem:[#allocation5 + $0x300] sm:$0xff] %vm4698_vm9, %v5627_v1  ;;  %8359 = vmatprep.mubr.bf16.mxu1 %v6977_v39  ;;  %v6165_v22 = vpack.c.bf16 %v6142_v59, %v6141_v20  ;;  %v13895_v39 = vld [vmem:[%s14804_s4 + $0x300] sm:$0xff]  }
 0x490   : > { %v5435_v29 = vpop.permute.xlu1 %5434  ;;  %v6976_v30 = vld [vmem:[#allocation5 + $0x290] sm:$0xff]  ;;  %6017 = vrot.lane.b32.xlu0 %v13346_v38, %s10919_s23  ;;  %10674 = vmatprep.subr.bf16.mxu1 %v13895_v39  ;;  %v5771_v59 = vld [vmem:[#allocation3 + $0x1a3] sm:$0xff] }
 0x491   : > { %5475 = vst.msk [vmem:[#allocation5 + $0x2f8] sm:$0xff] %vm4698_vm9, %v5435_v29  ;;  %8360 = vmatmul.mubr.bf16.gmra.mrb[188].mxu1 %v6976_v30  ;;  %v9960_v45 = vpop.f32.mrb[112].mxu1 }
 0x492   : > { %5824 = vrot.lane.b32.xlu1 %v13295_v13, %s10919_s23  ;;  %v5253_v31 = vpop.permute.xlu0 %5252  ;;  %v7040_v43 = vld [vmem:[#allocation5 + $0x490] sm:$0xff]  ;;  %v9961_v46 = vpop.f32.mrb[113].mxu1 }
 0x493   : > { %5288 = vst.msk [vmem:[#allocation5 + $0x4f8] sm:$0xff] %vm4698_vm9, %v5253_v31  ;;  %8238 = vmatprep.mubr.bf16.mxu0 %v7040_v43  ;;  %v13880_v35 = vadd.f32 %v9961_v46, %v9960_v45  ;;  %v9963_v57 = vpop.f32.mrb[114].mxu1  ;;  %v6731_v45 = vld [vmem:[#allocation3 + $0x1bb] sm:$0xff] }
 0x494   : > { %v5061_v26 = vpop.permute.xlu1 %5060  ;;  %v7039_v38 = vld [vmem:[#allocation5 + $0x488] sm:$0xff]  ;;  %6393 = vrot.lane.b32.xlu0 %v14948_v37, %s10919_s23  ;;  %v9964_v41 = vpop.f32.mrb[115].mxu1  ;;  %v6145_v46 = vld [vmem:[#allocation3 + $0x13a] sm:$0xff] }
 0x495   : > { %5096 = vst.msk [vmem:[#allocation5 + $0x4f0] sm:$0xff] %vm4698_vm9, %v5061_v26  ;;  %8239 = vmatmul.mubr.bf16.gmra.mrb[168].mxu0 %v7039_v38  ;;  %v13883_v12 = vadd.f32 %v9964_v41, %v9963_v57 }
 0x496   : > { %6201 = vrot.lane.b32.xlu1 %v6163_v44, %s10919_s23  ;;  %v5629_v13 = vpop.permute.xlu0 %5628  ;;  %v6990_v55 = vld [vmem:[#allocation5 + $0x300] sm:$0xff] }
 0x497   : > { %5668 = vst.msk [vmem:[#allocation5 + $0x368] sm:$0xff] %vm4698_vm9, %v5629_v13  ;;  %8367 = vmatprep.mubr.bf16.mxu1 %v6990_v55  ;;  %v6143_v44 = vld [vmem:[#allocation3 + $0x122] sm:$0xff] }
 0x498   : > { %v5437_v9 = vpop.permute.xlu1 %5436  ;;  %v6989_v11 = vld [vmem:[#allocation5 + $0x2f8] sm:$0xff]  ;;  %6019 = vrot.lane.b32.xlu0 %v14949_v27, %s10919_s23  ;;  %v6166_v13 = vpack.c.bf16 %v6144_v52, %v6143_v44  ;;  %v10885_v44 = vld [vmem:[%s14804_s4 + $0x2c8] sm:$0xff]  }
 0x499   : > { %5476 = vst.msk [vmem:[#allocation5 + $0x360] sm:$0xff] %vm4698_vm9, %v5437_v9  ;;  %8368 = vmatmul.mubr.bf16.gmra.mrb[192].mxu1 %v6989_v11  ;;  %v6148_v52 = vld [vmem:[#allocation3 + $0x15a] sm:$0xff] }
 0x49a   : > { %5826 = vrot.lane.b32.xlu1 %v14950_v2, %s10919_s23  ;;  %v5255_v25 = vpop.permute.xlu0 %5254  ;;  %v7053_v24 = vld [vmem:[#allocation5 + $0x4f8] sm:$0xff] }
 0x49b   : > { %5289 = vst.msk [vmem:[#allocation5 + $0x560] sm:$0xff] %vm4698_vm9, %v5255_v25  ;;  %8246 = vmatprep.mubr.bf16.mxu0 %v7053_v24  ;;  %v14955_v2 = vld [vmem:[#allocation33_spill] sm:$0xff]  ;;  %v6146_v25 = vld [vmem:[#allocation3 + $0x142] sm:$0xff]  ;;  %v5963_v24 = vld [vmem:[#allocation3 + $0x1b0] sm:$0xff] }
 0x49c   : > { %v5063_v53 = vpop.permute.xlu1 %5062  ;;  %v7052_v18 = vld [vmem:[#allocation5 + $0x4f0] sm:$0xff]  ;;  %6395 = vrot.lane.b32.xlu0 %v14951_v34, %s10919_s23  ;;  %v6167_v41 = vpack.c.bf16 %v6146_v25, %v6145_v46 }
 0x49d   : > { %5097 = vst.msk [vmem:[#allocation5 + $0x558] sm:$0xff] %vm4698_vm9, %v5063_v53  ;;  %8247 = vmatmul.mubr.bf16.gmra.mrb[172].mxu0 %v7052_v18  ;;  %v6730_v53 = vld [vmem:[#allocation3 + $0x1b3] sm:$0xff] }
 0x49e   : > { %6203 = vrot.lane.b32.xlu1 %v6164_v14, %s10919_s23  ;;  %v5631_v5 = vpop.permute.xlu0 %5630  ;;  %v7003_v15 = vld [vmem:[#allocation5 + $0x368] sm:$0xff]  ;;  %v9966_v48 = vpop.f32.mrb[116].mxu1  ;;  %v13923_v34 = vpack.c.bf16 %v6731_v45, %v6730_v53  ;;  %v6150_v25 = vld [vmem:[#allocation3 + $0x172] sm:$0xff] }
 0x49f   : > { %5669 = vst.msk [vmem:[#allocation5 + $0x3d0] sm:$0xff] %vm4698_vm9, %v5631_v5  ;;  %8375 = vmatprep.mubr.bf16.mxu1 %v7003_v15  ;;  %v9967_v28 = vpop.f32.mrb[117].mxu1  ;;  %v5770_v15 = vld [vmem:[#allocation3 + $0x19b] sm:$0xff]  ;;  %v10888_v53 = vld [vmem:[%s14804_s4 + $0x290] sm:$0xff]  }
 0x4a0   : > { %v5439_v61 = vpop.permute.xlu1 %5438  ;;  %v7002_v40 = vld [vmem:[#allocation5 + $0x360] sm:$0xff]  ;;  %6021 = vrot.lane.b32.xlu0 %v13468_v0, %s10919_s23  ;;  %v14953_v0 = vld [vmem:[#allocation51_spill] sm:$0xff]  ;;  %v13908_v31 = vadd.f32 %v9967_v28, %v9966_v48  ;;  %v9969_v43 = vpop.f32.mrb[118].mxu1  ;;  %6316 = vst.msk [vmem:[#allocation5 + $0x660] sm:$0xff] %vm376_vm6, %v13923_v34 }
 0x4a1   : > { %5477 = vst.msk [vmem:[#allocation5 + $0x3c8] sm:$0xff] %vm4698_vm9, %v5439_v61  ;;  %8376 = vmatmul.mubr.bf16.gmra.mrb[196].mxu1 %v7002_v40  ;;  %v9970_v37 = vpop.f32.mrb[119].mxu1  ;;  %v5980_v40 = vpack.c.bf16 %v5964_v23, %v5963_v24  ;;  %v10884_v28 = vld [vmem:[%s14804_s4 + $0x280] sm:$0xff]   ;;  %v14958_v24 = vld [vmem:[#allocation28_spill] sm:$0xff] }
 0x4a2   : > { %5828 = vrot.lane.b32.xlu1 %v14952_v51, %s10919_s23  ;;  %v5257_v7 = vpop.permute.xlu0 %5256  ;;  %v7066_v4 = vld [vmem:[#allocation5 + $0x560] sm:$0xff]  ;;  %v6538_v51 = vld [vmem:[#allocation3 + $0x1b1] sm:$0xff] }
 0x4a3   : > { %5290 = vst.msk [vmem:[#allocation5 + $0x5c8] sm:$0xff] %vm4698_vm9, %v5257_v7  ;;  %8254 = vmatprep.mubr.bf16.mxu0 %v7066_v4  ;;  %v6539_v7 = vld [vmem:[#allocation3 + $0x1b9] sm:$0xff] }
 0x4a4   : > { %v5065_v32 = vpop.permute.xlu1 %5064  ;;  %v7065_v1 = vld [vmem:[#allocation5 + $0x558] sm:$0xff]  ;;  %6397 = vrot.lane.b32.xlu0 %v14953_v0, %s10919_s23  ;;  %v13932_v20 = vpack.c.bf16 %v6539_v7, %v6538_v51 }
 0x4a5   : > { %5098 = vst.msk [vmem:[#allocation5 + $0x5c0] sm:$0xff] %vm4698_vm9, %v5065_v32  ;;  %8255 = vmatmul.mubr.bf16.gmra.mrb[176].mxu0 %v7065_v1 }
 0x4a6   : > { %6205 = vrot.lane.b32.xlu1 %v6165_v22, %s10919_s23  ;;  %v5633_v29 = vpop.permute.xlu0 %5632  ;;  %v7016_v63 = vld [vmem:[#allocation5 + $0x3d0] sm:$0xff]  ;;  %6124 = vst.msk [vmem:[#allocation5 + $0x658] sm:$0xff] %vm376_vm6, %v13932_v20 }
 0x4a7   : > { %5670 = vst.msk [vmem:[#allocation5 + $0x438] sm:$0xff] %vm4698_vm9, %v5633_v29  ;;  %8383 = vmatprep.mubr.bf16.mxu1 %v7016_v63 }
 0x4a8   : > { %v5441_v30 = vpop.permute.xlu1 %5440  ;;  %v7015_v62 = vld [vmem:[#allocation5 + $0x3c8] sm:$0xff]  ;;  %6023 = vrot.lane.b32.xlu0 %v13503_v19, %s10919_s23  ;;  %v13912_v19 = vadd.f32 %v9970_v37, %v9969_v43 }
 0x4a9   : > { %5478 = vst.msk [vmem:[#allocation5 + $0x430] sm:$0xff] %vm4698_vm9, %v5441_v30  ;;  %8384 = vmatmul.mubr.bf16.gmra.mrb[200].mxu1 %v7015_v62  ;;  %v5787_v30 = vpack.c.bf16 %v5771_v59, %v5770_v15  ;;  %v10891_v59 = vld [vmem:[%s14804_s4 + $0x298] sm:$0xff]  }
 0x4aa   : > { %5830 = vrot.lane.b32.xlu1 %v13470_v33, %s10919_s23  ;;  %v5259_v60 = vpop.permute.xlu0 %5258  ;;  %v7079_v26 = vld [vmem:[#allocation5 + $0x5c8] sm:$0xff] }
 0x4ab   : > { %5291 = vst.msk [vmem:[#allocation5 + $0x630] sm:$0xff] %vm4698_vm9, %v5259_v60  ;;  %8262 = vmatprep.mubr.bf16.mxu0 %v7079_v26  ;;  %v14954_v33 = vld [vmem:[#allocation55_spill] sm:$0xff]  ;;  %v6147_v26 = vld [vmem:[#allocation3 + $0x152] sm:$0xff] }
 0x4ac   : > { %v5067_v38 = vpop.permute.xlu1 %5066  ;;  %v7078_v55 = vld [vmem:[#allocation5 + $0x5c0] sm:$0xff]  ;;  %6399 = vrot.lane.b32.xlu0 %v14954_v33, %s10919_s23  ;;  %v6168_v37 = vpack.c.bf16 %v6148_v52, %v6147_v26  ;;  %v10894_v26 = vld [vmem:[%s14804_s4 + $0x2e8] sm:$0xff]  }
 0x4ad   : > { %5099 = vst.msk [vmem:[#allocation5 + $0x628] sm:$0xff] %vm4698_vm9, %v5067_v38  ;;  %8263 = vmatmul.mubr.bf16.gmra.mrb[180].mxu0 %v7078_v55  ;;  %v10886_v55 = vld [vmem:[%s14804_s4 + $0x288] sm:$0xff]  }
 0x4ae   : > { %6207 = vrot.lane.b32.xlu1 %v6166_v13, %s10919_s23  ;;  %v5635_v9 = vpop.permute.xlu0 %5634  ;;  %v7029_v11 = vld [vmem:[#allocation5 + $0x438] sm:$0xff] }
 0x4af   : > { %5671 = vst.msk [vmem:[#allocation5 + $0x4a0] sm:$0xff] %vm4698_vm9, %v5635_v9  ;;  %8391 = vmatprep.mubr.bf16.mxu1 %v7029_v11  ;;  %v10887_v11 = vld [vmem:[%s14804_s4 + $0x2d0] sm:$0xff]  }
 0x4b0   : > { %v5443_v27 = vpop.permute.xlu1 %5442  ;;  %v7028_v3 = vld [vmem:[#allocation5 + $0x430] sm:$0xff]  ;;  %6025 = vrot.lane.b32.xlu0 %v14955_v2, %s10919_s23  ;;  %v14957_v2 = vld [vmem:[#allocation27_spill] sm:$0xff] }
 0x4b1   : > { %5479 = vst.msk [vmem:[#allocation5 + $0x498] sm:$0xff] %vm4698_vm9, %v5443_v27  ;;  %8392 = vmatmul.mubr.bf16.gmra.mrb[204].mxu1 %v7028_v3  ;;  %v9972_v61 = vpop.f32.mrb[120].mxu1 }
 0x4b2   : > { %5832 = vrot.lane.b32.xlu1 %v13507_v8, %s10919_s23  ;;  %v5998_v14 = vpop.permute.xlu0 %5997  ;;  %v7092_v18 = vld [vmem:[#allocation5 + $0x630] sm:$0xff]  ;;  %v14956_v8 = vld [vmem:[#allocation58_spill] sm:$0xff]  ;;  %v9973_v4 = vpop.f32.mrb[121].mxu1 }
 0x4b3   : > { %6045 = vst.msk [vmem:[#allocation5 + $0x38] sm:$0xff] %vm4698_vm9, %v5998_v14  ;;  %8270 = vmatprep.mubr.bf16.mxu0 %v7092_v18  ;;  %v13934_v32 = vadd.f32 %v9973_v4, %v9972_v61  ;;  %v9975_v22 = vpop.f32.mrb[122].mxu1  ;;  %v10892_v4 = vld [vmem:[%s14804_s4 + $0x2e0] sm:$0xff]  }
 0x4b4   : > { %v5805_v57 = vpop.permute.xlu1 %5804  ;;  %v7091_v5 = vld [vmem:[#allocation5 + $0x628] sm:$0xff]  ;;  %6401 = vrot.lane.b32.xlu0 %v14956_v8, %s10919_s23  ;;  %v9976_v63 = vpop.f32.mrb[123].mxu1 }
 0x4b5   : > { %5852 = vst.msk [vmem:[#allocation5 + $0x30] sm:$0xff] %vm4698_vm9, %v5805_v57  ;;  %8271 = vmatmul.mubr.bf16.gmra.mrb[184].mxu0 %v7091_v5  ;;  %v13940_v48 = vadd.f32 %v9976_v63, %v9975_v22  ;;  %v6149_v57 = vld [vmem:[#allocation3 + $0x16a] sm:$0xff] }
 0x4b6   : > { %6209 = vrot.lane.b32.xlu1 %v6167_v41, %s10919_s23  ;;  %v5637_v1 = vpop.permute.xlu0 %5636  ;;  %v7042_v0 = vld [vmem:[#allocation5 + $0x4a0] sm:$0xff]  ;;  %v10890_v41 = vld [vmem:[%s14804_s4 + $0x2d8] sm:$0xff]   ;;  %v6169_v61 = vpack.c.bf16 %v6150_v25, %v6149_v57  ;;  %v6152_v63 = vld [vmem:[#allocation3 + $0x18a] sm:$0xff] }
 0x4b7   : > { %5672 = vst.msk [vmem:[#allocation5 + $0x508] sm:$0xff] %vm4698_vm9, %v5637_v1  ;;  %8399 = vmatprep.mubr.bf16.mxu1 %v7042_v0  ;;  %v6343_v1 = vld [vmem:[#allocation3 + $0x184] sm:$0xff]  ;;  %v6344_v0 = vld [vmem:[#allocation3 + $0x18c] sm:$0xff] }
 0x4b8   : > { %v5445_v29 = vpop.permute.xlu1 %5444  ;;  %v7041_v62 = vld [vmem:[#allocation5 + $0x498] sm:$0xff]  ;;  %6027 = vrot.lane.b32.xlu0 %v5980_v40, %s10919_s23  ;;  %v14962_v57 = vld [vmem:[#allocation35_spill] sm:$0xff] }
 0x4b9   : > { %5480 = vst.msk [vmem:[#allocation5 + $0x500] sm:$0xff] %vm4698_vm9, %v5445_v29  ;;  %8400 = vmatmul.mubr.bf16.gmra.mrb[208].mxu1 %v7041_v62  ;;  %v14959_v29 = vld [vmem:[#allocation30_spill] sm:$0xff] }
 0x4ba   : > { %5834 = vrot.lane.b32.xlu1 %v5787_v30, %s10919_s23  ;;  %v6000_v43 = vpop.permute.xlu0 %5999  ;;  %v6901_v60 = vld [vmem:[#allocation5 + $0x38] sm:$0xff]  ;;  %v9978_v3 = vpop.f32.mrb[124].mxu1  ;;  %v14960_v30 = vld [vmem:[#allocation31_spill] sm:$0xff]  ;;  %v10893_v62 = vld [vmem:[%s14804_s4 + $0x2a0] sm:$0xff]  }
 0x4bb   : > { %6046 = vst.msk [vmem:[#allocation5 + $0xa0] sm:$0xff] %vm4698_vm9, %v6000_v43  ;;  %8472 = vmatprep.mubr.bf16.mxu0 %v6901_v60  ;;  %v9979_v23 = vpop.f32.mrb[125].mxu1  ;;  %v6362_v43 = vpack.c.bf16 %v6344_v0, %v6343_v1  ;;  %v6151_v60 = vld [vmem:[#allocation3 + $0x182] sm:$0xff]  ;;  %v10899_v1 = vld [vmem:[%s14804_s4 + $0x2b8] sm:$0xff]  }
 0x4bc   : > { %v5807_v38 = vpop.permute.xlu1 %5806  ;;  %v6900_v13 = vld [vmem:[#allocation5 + $0x30] sm:$0xff]  ;;  %6403 = vrot.lane.b32.xlu0 %v13419_v21, %s10919_s23  ;;  %v13970_v45 = vadd.f32 %v9979_v23, %v9978_v3  ;;  %v9981_v14 = vpop.f32.mrb[126].mxu1 }
 0x4bd   : > { %5853 = vst.msk [vmem:[#allocation5 + $0x98] sm:$0xff] %vm4698_vm9, %v5807_v38  ;;  %8473 = vmatmul.mubr.bf16.vlgmr.msra.gmra.mrb[188].mxu0 %v6900_v13  ;;  %v9982_v15 = vpop.f32.mrb[127].mxu1 }
 0x4be   : > { %6211 = vrot.lane.b32.xlu1 %v6168_v37, %s10919_s23  ;;  %10487 = vmatpush3.bf16.msra.mxu0 %v10884_v28  ;;  %v5639_v33 = vpop.permute.xlu0 %5638  ;;  %v7055_v9 = vld [vmem:[#allocation5 + $0x508] sm:$0xff]  ;;  %v13977_v40 = vadd.f32 %v9982_v15, %v9981_v14  ;;  %v6170_v37 = vpack.c.bf16 %v6152_v63, %v6151_v60  ;;  %v6155_v63 = vld [vmem:[#allocation3 + $0x1b2] sm:$0xff] }
 0x4bf   : > { %10488 = vmatprep.subr.bf16.mxu0 %v10885_v44  ;;  %5673 = vst.msk [vmem:[#allocation5 + $0x570] sm:$0xff] %vm4698_vm9, %v5639_v33  ;;  %8407 = vmatprep.mubr.bf16.mxu1 %v7055_v9  ;;  %v6346_v14 = vld [vmem:[#allocation3 + $0x1a4] sm:$0xff] }
 0x4c0   : > { %v5447_v27 = vpop.permute.xlu1 %5446  ;;  %v7054_v21 = vld [vmem:[#allocation5 + $0x500] sm:$0xff]  ;;  %6766 = vrot.lane.b32.xlu0 %v14957_v2, %s10919_s23  ;;  %v10896_v2 = vld [vmem:[%s14804_s4 + $0x2f0] sm:$0xff]  }
 0x4c1   : > { %5481 = vst.msk [vmem:[#allocation5 + $0x568] sm:$0xff] %vm4698_vm9, %v5447_v27  ;;  %8408 = vmatmul.mubr.bf16.gmra.mrb[212].mxu1 %v7054_v21 }
 0x4c2   : > { %6574 = vrot.lane.b32.xlu1 %v14958_v24, %s10919_s23  ;;  %10489 = vmatpush3.bf16.msra.mxu0 %v10886_v55  ;;  %v6002_v18 = vpop.permute.xlu0 %6001  ;;  %v6914_v46 = vld [vmem:[#allocation5 + $0xa0] sm:$0xff] }
 0x4c3   : > { %10490 = vmatprep.subr.bf16.mxu0 %v10887_v11  ;;  %6047 = vst.msk [vmem:[#allocation5 + $0x108] sm:$0xff] %vm4698_vm9, %v6002_v18  ;;  %8480 = vmatprep.mubr.bf16.mxu0 %v6914_v46  ;;  %v10895_v11 = vld [vmem:[%s14804_s4 + $0x2a8] sm:$0xff]   ;;  %v14961_v18 = vld [vmem:[#allocation34_spill] sm:$0xff] }
 0x4c4   : > { %v5809_v5 = vpop.permute.xlu1 %5808  ;;  %v6913_v8 = vld [vmem:[#allocation5 + $0x98] sm:$0xff]  ;;  %6405 = vrot.lane.b32.xlu0 %v13479_v54, %s10919_s23  ;;  %v6154_v46 = vld [vmem:[#allocation3 + $0x1a2] sm:$0xff] }
 0x4c5   : > { %5854 = vst.msk [vmem:[#allocation5 + $0x100] sm:$0xff] %vm4698_vm9, %v5809_v5  ;;  %8481 = vmatmul.mubr.bf16.gmra.mrb[192].mxu0 %v6913_v8  ;;  %v6153_v8 = vld [vmem:[#allocation3 + $0x19a] sm:$0xff] }
 0x4c6   : > { %6213 = vrot.lane.b32.xlu1 %v6169_v61, %s10919_s23  ;;  %10491 = vmatpush3.bf16.msra.mxu0 %v10888_v53  ;;  %v5641_v51 = vpop.permute.xlu0 %5640  ;;  %v7068_v7 = vld [vmem:[#allocation5 + $0x570] sm:$0xff]  ;;  %v6345_v53 = vld [vmem:[#allocation3 + $0x19c] sm:$0xff] }
 0x4c7   : > { %10492 = vmatprep.subr.bf16.mxu0 %v10890_v41  ;;  %5674 = vst.msk [vmem:[#allocation5 + $0x5d8] sm:$0xff] %vm4698_vm9, %v5641_v51  ;;  %8415 = vmatprep.mubr.bf16.mxu1 %v7068_v7  ;;  %v10897_v41 = vld [vmem:[%s14804_s4 + $0x2b0] sm:$0xff]   ;;  %v6363_v61 = vpack.c.bf16 %v6346_v14, %v6345_v53  ;;  %v6171_v7 = vpack.c.bf16 %v6154_v46, %v6153_v8 }
 0x4c8   : > { %v5449_v22 = vpop.permute.xlu1 %5448  ;;  %v7067_v54 = vld [vmem:[#allocation5 + $0x568] sm:$0xff]  ;;  %6768 = vrot.lane.b32.xlu0 %v14959_v29, %s10919_s23  ;;  %v14966_v46 = vld [vmem:[#allocation44_spill] sm:$0xff] }
 0x4c9   : > { %5482 = vst.msk [vmem:[#allocation5 + $0x5d0] sm:$0xff] %vm4698_vm9, %v5449_v22  ;;  %8416 = vmatmul.mubr.bf16.gmra.mrb[216].mxu1 %v7067_v54  ;;  %v6347_v22 = vld [vmem:[#allocation3 + $0x1b4] sm:$0xff]  ;;  %v6348_v54 = vld [vmem:[#allocation3 + $0x1bc] sm:$0xff] }
 0x4ca   : > { %6576 = vrot.lane.b32.xlu1 %v14960_v30, %s10919_s23  ;;  %10493 = vmatpush3.bf16.msra.mxu0 %v10891_v59  ;;  %v6004_v52 = vpop.permute.xlu0 %6003  ;;  %v6927_v28 = vld [vmem:[#allocation5 + $0x108] sm:$0xff]  ;;  %v9984_v38 = vpop.f32.mrb[128].mxu1  ;;  %v10898_v59 = vld [vmem:[%s14804_s4 + $0x2f8] sm:$0xff]  }
 0x4cb   : > { %10494 = vmatprep.subr.bf16.mxu0 %v10892_v4  ;;  %6048 = vst.msk [vmem:[#allocation5 + $0x170] sm:$0xff] %vm4698_vm9, %v6004_v52  ;;  %8488 = vmatprep.mubr.bf16.mxu0 %v6927_v28  ;;  %v9985_v55 = vpop.f32.mrb[129].mxu1  ;;  %v6156_v30 = vld [vmem:[#allocation3 + $0x1ba] sm:$0xff] }
 0x4cc   : > { %v5811_v44 = vpop.permute.xlu1 %5810  ;;  %v6926_v13 = vld [vmem:[#allocation5 + $0x100] sm:$0xff]  ;;  %6407 = vrot.lane.b32.xlu0 %v6362_v43, %s10919_s23  ;;  %v14004_v33 = vadd.f32 %v9985_v55, %v9984_v38  ;;  %v9987_v9 = vpop.f32.mrb[130].mxu1 }
 0x4cd   : > { %5855 = vst.msk [vmem:[#allocation5 + $0x168] sm:$0xff] %vm4698_vm9, %v5811_v44  ;;  %8489 = vmatmul.mubr.bf16.gmra.mrb[196].mxu0 %v6926_v13  ;;  %v9988_v21 = vpop.f32.mrb[131].mxu1  ;;  %v14963_v43 = vld [vmem:[#allocation38_spill] sm:$0xff]  ;;  %v14964_v44 = vld [vmem:[#allocation39_spill] sm:$0xff]  ;;  %v6172_v13 = vpack.c.bf16 %v6156_v30, %v6155_v63 }
 0x4ce   : > { %6215 = vrot.lane.b32.xlu1 %v6170_v37, %s10919_s23  ;;  %10495 = vmatpush3.bf16.msra.mxu0 %v10893_v62  ;;  %v5643_v27 = vpop.permute.xlu0 %5642  ;;  %v7081_v3 = vld [vmem:[#allocation5 + $0x5d8] sm:$0xff]  ;;  %v14013_v24 = vadd.f32 %v9988_v21, %v9987_v9 }
 0x4cf   : > { %10496 = vmatprep.subr.bf16.mxu0 %v10894_v26  ;;  %5675 = vst.msk [vmem:[#allocation5 + $0x640] sm:$0xff] %vm4698_vm9, %v5643_v27  ;;  %8423 = vmatprep.mubr.bf16.mxu1 %v7081_v3  ;;  %v6364_v26 = vpack.c.bf16 %v6348_v54, %v6347_v22 }
 0x4d0   : > { %v5451_v25 = vpop.permute.xlu1 %5450  ;;  %v7080_v23 = vld [vmem:[#allocation5 + $0x5d0] sm:$0xff]  ;;  %6770 = vrot.lane.b32.xlu0 %v14961_v18, %s10919_s23  ;;  %v14965_v18 = vld [vmem:[#allocation43_spill] sm:$0xff] }
 0x4d1   : > { %5483 = vst.msk [vmem:[#allocation5 + $0x638] sm:$0xff] %vm4698_vm9, %v5451_v25  ;;  %8424 = vmatmul.mubr.bf16.gmra.mrb[220].mxu1 %v7080_v23  ;;  %v10900_v23 = vld [vmem:[%s14804_s4 + $0x308] sm:$0xff]  }
 0x4d2   : > { %6578 = vrot.lane.b32.xlu1 %v14962_v57, %s10919_s23  ;;  %10497 = vmatpush3.bf16.msra.mxu0 %v10895_v11  ;;  %v6006_v5 = vpop.permute.xlu0 %6005  ;;  %v6940_v15 = vld [vmem:[#allocation5 + $0x170] sm:$0xff] }
 0x4d3   : > { %10498 = vmatprep.subr.bf16.mxu0 %v10896_v2  ;;  %6049 = vst.msk [vmem:[#allocation5 + $0x1d8] sm:$0xff] %vm4698_vm9, %v6006_v5  ;;  %8496 = vmatprep.mubr.bf16.mxu0 %v6940_v15  ;;  %v10901_v5 = vld [vmem:[%s14804_s4 + $0x310] sm:$0xff]  }
 0x4d4   : > { %v5813_v51 = vpop.permute.xlu1 %5812  ;;  %v6939_v4 = vld [vmem:[#allocation5 + $0x168] sm:$0xff]  ;;  %6409 = vrot.lane.b32.xlu0 %v6363_v61, %s10919_s23 }
 0x4d5   : > { %5856 = vst.msk [vmem:[#allocation5 + $0x1d0] sm:$0xff] %vm4698_vm9, %v5813_v51  ;;  %8497 = vmatmul.mubr.bf16.gmra.mrb[200].mxu0 %v6939_v4 }
 0x4d6   : > { %6217 = vrot.lane.b32.xlu1 %v6171_v7, %s10919_s23  ;;  %10499 = vmatpush3.bf16.msra.mxu0 %v10897_v41  ;;  %v6382_v0 = vpop.permute.xlu0 %6381  ;;  %v7094_v29 = vld [vmem:[#allocation5 + $0x640] sm:$0xff] }
 0x4d7   : > { %10500 = vmatprep.subr.bf16.mxu0 %v10898_v59  ;;  %6429 = vst.msk [vmem:[#allocation5 + $0x48] sm:$0xff] %vm4698_vm9, %v6382_v0  ;;  %v9990_v52 = vpop.f32.mrb[132].mxu1  ;;  %8431 = vmatprep.mubr.bf16.mxu1 %v7094_v29  ;;  %v14967_v59 = vld [vmem:[#allocation47_spill] sm:$0xff]  ;;  %v10902_v0 = vld [vmem:[%s14804_s4 + $0x318] sm:$0xff]  }
 0x4d8   : > { %v6190_v62 = vpop.permute.xlu1 %6189  ;;  %v7093_v28 = vld [vmem:[#allocation5 + $0x638] sm:$0xff]  ;;  %6772 = vrot.lane.b32.xlu0 %v14963_v43, %s10919_s23  ;;  %v9991_v60 = vpop.f32.mrb[133].mxu1 }
 0x4d9   : > { %6237 = vst.msk [vmem:[#allocation5 + $0x40] sm:$0xff] %vm4698_vm9, %v6190_v62  ;;  %8432 = vmatmul.mubr.bf16.gmra.mrb[224].mxu1 %v7093_v28  ;;  %v14039_v38 = vadd.f32 %v9991_v60, %v9990_v52  ;;  %v9993_v37 = vpop.f32.mrb[134].mxu1  ;;  %v14969_v62 = vld [vmem:[#allocation50_spill] sm:$0xff]  ;;  %v14970_v52 = vld [vmem:[#allocation52_spill] sm:$0xff] }
 0x4da   : > { %6580 = vrot.lane.b32.xlu1 %v14964_v44, %s10919_s23  ;;  %10501 = vmatpush3.bf16.msra.mxu0 %v10899_v1  ;;  %v6008_v55 = vpop.permute.xlu0 %6007  ;;  %v9994_v9 = vpop.f32.mrb[135].mxu1  ;;  %v6953_v11 = vld [vmem:[#allocation5 + $0x1d8] sm:$0xff] }
 0x4db   : > { %6050 = vst.msk [vmem:[#allocation5 + $0x240] sm:$0xff] %vm4698_vm9, %v6008_v55  ;;  %v14042_v21 = vadd.f32 %v9994_v9, %v9993_v37  ;;  %8504 = vmatprep.mubr.bf16.mxu0 %v6953_v11  ;;  %v14971_v44 = vld [vmem:[#allocation53_spill] sm:$0xff]  ;;  %v14972_v37 = vld [vmem:[#allocation54_spill] sm:$0xff] }
 0x4dc   : > { %v5815_v27 = vpop.permute.xlu1 %5814  ;;  %v6952_v3 = vld [vmem:[#allocation5 + $0x1d0] sm:$0xff]  ;;  %6411 = vrot.lane.b32.xlu0 %v6364_v26, %s10919_s23 }
 0x4dd   : > { %5857 = vst.msk [vmem:[#allocation5 + $0x238] sm:$0xff] %vm4698_vm9, %v5815_v27  ;;  %8505 = vmatmul.mubr.bf16.gmra.mrb[204].mxu0 %v6952_v3  ;;  %v14973_v3 = vld [vmem:[#allocation56_spill] sm:$0xff] }
 0x4de   : > { %6219 = vrot.lane.b32.xlu1 %v6172_v13, %s10919_s23  ;;  %v6384_v2 = vpop.permute.xlu0 %6383  ;;  %v6903_v25 = vld [vmem:[#allocation5 + $0x48] sm:$0xff] }
 0x4df   : > { %6430 = vst.msk [vmem:[#allocation5 + $0xb0] sm:$0xff] %vm4698_vm9, %v6384_v2  ;;  %8633 = vmatprep.mubr.bf16.mxu1 %v6903_v25  ;;  %v14974_v25 = vld [vmem:[#allocation57_spill] sm:$0xff] }
 0x4e0   : > { %v6192_v53 = vpop.permute.xlu1 %6191  ;;  %v6902_v14 = vld [vmem:[#allocation5 + $0x40] sm:$0xff]  ;;  %6774 = vrot.lane.b32.xlu0 %v14965_v18, %s10919_s23 }
 0x4e1   : > { %6238 = vst.msk [vmem:[#allocation5 + $0xa8] sm:$0xff] %vm4698_vm9, %v6192_v53  ;;  %8634 = vmatmul.mubr.bf16.vlgmr.msra.gmra.mrb[228].mxu1 %v6902_v14  ;;  %v9996_v61 = vpop.f32.mrb[136].mxu1 }
 0x4e2   : > { %6582 = vrot.lane.b32.xlu1 %v14966_v46, %s10919_s23  ;;  %10675 = vmatpush3.bf16.msra.mxu1 %v13895_v39  ;;  %v6010_v57 = vpop.permute.xlu0 %6009  ;;  %v6966_v41 = vld [vmem:[#allocation5 + $0x240] sm:$0xff]  ;;  %v9997_v51 = vpop.f32.mrb[137].mxu1  ;;  %v14968_v39 = vld [vmem:[#allocation48_spill] sm:$0xff] }
 0x4e3   : > { %10676 = vmatprep.subr.bf16.mxu1 %v10900_v23  ;;  %6051 = vst.msk [vmem:[#allocation5 + $0x2a8] sm:$0xff] %vm4698_vm9, %v6010_v57  ;;  %8512 = vmatprep.mubr.bf16.mxu0 %v6966_v41  ;;  %v14066_v7 = vadd.f32 %v9997_v51, %v9996_v61  ;;  %v9999_v4 = vpop.f32.mrb[138].mxu1  ;;  %v14976_v61 = vld [vmem:[#allocation15_spill] sm:$0xff] }
 0x4e4   : > { %v5817_v15 = vpop.permute.xlu1 %5816  ;;  %v6965_v8 = vld [vmem:[#allocation5 + $0x238] sm:$0xff]  ;;  %6776 = vrot.lane.b32.xlu0 %v14967_v59, %s10919_s23  ;;  %v10000_v54 = vpop.f32.mrb[139].mxu1 }
 0x4e5   : > { %5858 = vst.msk [vmem:[#allocation5 + $0x2a0] sm:$0xff] %vm4698_vm9, %v5817_v15  ;;  %8513 = vmatmul.mubr.bf16.gmra.mrb[208].mxu0 %v6965_v8  ;;  %v14072_v63 = vadd.f32 %v10000_v54, %v9999_v4  ;;  %v14975_v15 = vld [vmem:[#allocation14_spill] sm:$0xff] }
 0x4e6   : > { %6584 = vrot.lane.b32.xlu1 %v14968_v39, %s10919_s23  ;;  %10677 = vmatpush3.bf16.msra.mxu1 %v10900_v23  ;;  %v6386_v22 = vpop.permute.xlu0 %6385  ;;  %v6916_v1 = vld [vmem:[#allocation5 + $0xb0] sm:$0xff] }
 0x4e7   : > { %10678 = vmatprep.subr.bf16.mxu1 %v10901_v5  ;;  %6431 = vst.msk [vmem:[#allocation5 + $0x118] sm:$0xff] %vm4698_vm9, %v6386_v22  ;;  %8641 = vmatprep.mubr.bf16.mxu1 %v6916_v1 }
 0x4e8   : > { %v6194_v29 = vpop.permute.xlu1 %6193  ;;  %v6915_v30 = vld [vmem:[#allocation5 + $0xa8] sm:$0xff]  ;;  %6778 = vrot.lane.b32.xlu0 %v14969_v62, %s10919_s23 }
 0x4e9   : > { %6239 = vst.msk [vmem:[#allocation5 + $0x110] sm:$0xff] %vm4698_vm9, %v6194_v29  ;;  %8642 = vmatmul.mubr.bf16.gmra.mrb[232].mxu1 %v6915_v30  ;;  %v10002_v11 = vpop.f32.mrb[140].mxu1 }
 0x4ea   : > { %6586 = vrot.lane.b32.xlu1 %v14970_v52, %s10919_s23  ;;  %10679 = vmatpush3.bf16.msra.mxu1 %v10901_v5  ;;  %v6012_v28 = vpop.permute.xlu0 %6011  ;;  %v6979_v43 = vld [vmem:[#allocation5 + $0x2a8] sm:$0xff]  ;;  %v10003_v2 = vpop.f32.mrb[141].mxu1 }
 0x4eb   : > { %10680 = vmatprep.subr.bf16.mxu1 %v10902_v0  ;;  %6052 = vst.msk [vmem:[#allocation5 + $0x310] sm:$0xff] %vm4698_vm9, %v6012_v28  ;;  %8520 = vmatprep.mubr.bf16.mxu0 %v6979_v43  ;;  %v14091_v23 = vadd.f32 %v10003_v2, %v10002_v11  ;;  %v10005_v53 = vpop.f32.mrb[142].mxu1 }
 0x4ec   : > { %v5819_v60 = vpop.permute.xlu1 %5818  ;;  %v6978_v26 = vld [vmem:[#allocation5 + $0x2a0] sm:$0xff]  ;;  %6780 = vrot.lane.b32.xlu0 %v14971_v44, %s10919_s23  ;;  %v10006_v18 = vpop.f32.mrb[143].mxu1 }
 0x4ed   : > { %5859 = vst.msk [vmem:[#allocation5 + $0x308] sm:$0xff] %vm4698_vm9, %v5819_v60  ;;  %8521 = vmatmul.mubr.bf16.gmra.mrb[212].mxu0 %v6978_v26  ;;  %v14094_v41 = vadd.f32 %v10006_v18, %v10005_v53  ;;  %v14979_v18 = vld [vmem:[#allocation45_spill] sm:$0xff] }
 0x4ee   : > { %6588 = vrot.lane.b32.xlu1 %v14972_v37, %s10919_s23  ;;  %10681 = vmatpush3.bf16.msra.mxu1 %v10902_v0  ;;  %v6388_v13 = vpop.permute.xlu0 %6387  ;;  %v6929_v55 = vld [vmem:[#allocation5 + $0x118] sm:$0xff] }
 0x4ef   : > { %6432 = vst.msk [vmem:[#allocation5 + $0x180] sm:$0xff] %vm4698_vm9, %v6388_v13  ;;  %8649 = vmatprep.mubr.bf16.mxu1 %v6929_v55 }
 0x4f0   : > { %v6196_v9 = vpop.permute.xlu1 %6195  ;;  %v6928_v27 = vld [vmem:[#allocation5 + $0x110] sm:$0xff]  ;;  %6782 = vrot.lane.b32.xlu0 %v14973_v3, %s10919_s23  ;;  %v10054_v26 = vpop.f32.mrb[124].mxu0 }
 0x4f1   : > { %6240 = vst.msk [vmem:[#allocation5 + $0x178] sm:$0xff] %vm4698_vm9, %v6196_v9  ;;  %8650 = vmatmul.mubr.bf16.gmra.mrb[236].mxu1 %v6928_v27  ;;  %v10055_v37 = vpop.f32.mrb[125].mxu0 }
 0x4f2   : > { %6590 = vrot.lane.b32.xlu1 %v14974_v25, %s10919_s23  ;;  %v6014_v14 = vpop.permute.xlu0 %6013  ;;  %v6992_v46 = vld [vmem:[#allocation5 + $0x310] sm:$0xff]  ;;  %v10056_v55 = vadd.f32 %v10055_v37, %v10054_v26  ;;  %v10057_v9 = vpop.f32.mrb[126].mxu0 }
 0x4f3   : > { %6053 = vst.msk [vmem:[#allocation5 + $0x378] sm:$0xff] %vm4698_vm9, %v6014_v14  ;;  %8528 = vmatprep.mubr.bf16.mxu0 %v6992_v46  ;;  %v10058_v27 = vpop.f32.mrb[127].mxu0  ;;  %v6733_v46 = vld [vmem:[#allocation3 + $0x1d3] sm:$0xff] }
 0x4f4   : > { %v5821_v57 = vpop.permute.xlu1 %5820  ;;  %v6991_v5 = vld [vmem:[#allocation5 + $0x308] sm:$0xff]  ;;  %6784 = vrot.lane.b32.xlu0 %v14975_v15, %s10919_s23 }
 0x4f5   : > { %5860 = vst.msk [vmem:[#allocation5 + $0x370] sm:$0xff] %vm4698_vm9, %v5821_v57  ;;  %8529 = vmatmul.mubr.bf16.gmra.mrb[216].mxu0 %v6991_v5  ;;  %v6540_v15 = vld [vmem:[#allocation3 + $0x1c9] sm:$0xff] }
 0x4f6   : > { %6592 = vrot.lane.b32.xlu1 %v14976_v61, %s10919_s23  ;;  %v6390_v8 = vpop.permute.xlu0 %6389  ;;  %v6942_v59 = vld [vmem:[#allocation5 + $0x180] sm:$0xff]  ;;  %v10008_v1 = vpop.f32.mrb[144].mxu1  ;;  %v6541_v61 = vld [vmem:[#allocation3 + $0x1d1] sm:$0xff] }
 0x4f7   : > { %6433 = vst.msk [vmem:[#allocation5 + $0x1e8] sm:$0xff] %vm4698_vm9, %v6390_v8  ;;  %8657 = vmatprep.mubr.bf16.mxu1 %v6942_v59  ;;  %v10009_v29 = vpop.f32.mrb[145].mxu1 }
 0x4f8   : > { %v6198_v51 = vpop.permute.xlu1 %6197  ;;  %v6941_v39 = vld [vmem:[#allocation5 + $0x178] sm:$0xff]  ;;  %6786 = vrot.lane.b32.xlu0 %v13429_v6, %s10919_s23  ;;  %v14113_v30 = vadd.f32 %v10009_v29, %v10008_v1  ;;  %v6557_v1 = vpack.c.bf16 %v6541_v61, %v6540_v15 }
 0x4f9   : > { %6241 = vst.msk [vmem:[#allocation5 + $0x1e0] sm:$0xff] %vm4698_vm9, %v6198_v51  ;;  %8658 = vmatmul.mubr.bf16.gmra.mrb[240].mxu1 %v6941_v39  ;;  %v14977_v6 = vld [vmem:[#allocation25_spill] sm:$0xff] }
 0x4fa   : > { %6594 = vrot.lane.b32.xlu1 %v13431_v17, %s10919_s23  ;;  %v6016_v4 = vpop.permute.xlu0 %6015  ;;  %v7005_v22 = vld [vmem:[#allocation5 + $0x378] sm:$0xff]  ;;  %v10011_v17 = vpop.f32.mrb[146].mxu1 }
 0x4fb   : > { %6054 = vst.msk [vmem:[#allocation5 + $0x3e0] sm:$0xff] %vm4698_vm9, %v6016_v4  ;;  %8536 = vmatprep.mubr.bf16.mxu0 %v7005_v22  ;;  %v10012_v52 = vpop.f32.mrb[147].mxu1 }
 0x4fc   : > { %v5823_v54 = vpop.permute.xlu1 %5822  ;;  %v7004_v0 = vld [vmem:[#allocation5 + $0x370] sm:$0xff]  ;;  %6788 = vrot.lane.b32.xlu0 %v13483_v56, %s10919_s23  ;;  %v14116_v60 = vadd.f32 %v10012_v52, %v10011_v17  ;;  %v14121_v56 = vld [vmem:[%s14805_s5] ss:$0 sm:$0xff]  ;;  %v10060_v52 = vpop.f32.mrb[128].mxu0 }
 0x4fd   : > { %5861 = vst.msk [vmem:[#allocation5 + $0x3d8] sm:$0xff] %vm4698_vm9, %v5823_v54  ;;  %8537 = vmatmul.mubr.bf16.gmra.mrb[220].mxu0 %v7004_v0  ;;  %v7992_v13 = vadd.f32 %v13599_v58, %v14121_v56  ;;  %v7995_v2 = vadd.f32 %v13605_v16, %v14121_v56  ;;  %v14978_v58 = vld [vmem:[#allocation40_spill] sm:$0xff] }
 0x4fe   : > { %6596 = vrot.lane.b32.xlu1 %v14977_v6, %s10919_s23  ;;  %v6392_v62 = vpop.permute.xlu0 %6391  ;;  %v6955_v28 = vld [vmem:[#allocation5 + $0x1e8] sm:$0xff]  ;;  %v10014_v59 = vpop.f32.mrb[148].mxu1 }
 0x4ff   : > { %6434 = vst.msk [vmem:[#allocation5 + $0x250] sm:$0xff] %vm4698_vm9, %v6392_v62  ;;  %8665 = vmatprep.mubr.bf16.mxu1 %v6955_v28  ;;  %v14132_v25 = vadd.f32 %v10056_v55, %v7992_v13  ;;  %v6732_v16 = vld [vmem:[#allocation3 + $0x1cb] sm:$0xff]  ;;  %v10015_v39 = vpop.f32.mrb[149].mxu1  ;;  %v8003_v55 = vadd.f32 %v13612_v10, %v14121_v56 }
 0x500   : > { %v6200_v43 = vpop.permute.xlu1 %6199  ;;  %v6954_v44 = vld [vmem:[#allocation5 + $0x1e0] sm:$0xff]  ;;  %6790 = vrot.lane.b32.xlu0 %v13514_v49, %s10919_s23  ;;  %v10059_v49 = vadd.f32 %v10058_v27, %v10057_v9  ;;  %v6749_v4 = vpack.c.bf16 %v6733_v46, %v6732_v16  ;;  %v14146_v22 = vadd.f32 %v10015_v39, %v10014_v59  ;;  %v10017_v54 = vpop.f32.mrb[150].mxu1  ;;  %v8008_v39 = vadd.f32 %v13859_v50, %v14121_v56 }
 0x501   : > { %6242 = vst.msk [vmem:[#allocation5 + $0x248] sm:$0xff] %vm4698_vm9, %v6200_v43  ;;  %8666 = vmatmul.mubr.bf16.gmra.mrb[244].mxu1 %v6954_v44  ;;  %v10018_v29 = vpop.f32.mrb[151].mxu1 }
 0x502   : > { %6598 = vrot.lane.b32.xlu1 %v13516_v36, %s10919_s23  ;;  %v6018_v11 = vpop.permute.xlu0 %6017  ;;  %v7018_v3 = vld [vmem:[#allocation5 + $0x3e0] sm:$0xff]  ;;  %v14138_v36 = vadd.f32 %v10059_v49, %v7995_v2  ;;  %v14151_v62 = vadd.f32 %v10018_v29, %v10017_v54 }
 0x503   : > { %6055 = vst.msk [vmem:[#allocation5 + $0x448] sm:$0xff] %vm4698_vm9, %v6018_v11  ;;  %8544 = vmatprep.mubr.bf16.mxu0 %v7018_v3 }
 0x504   : > { %v5825_v53 = vpop.permute.xlu1 %5824  ;;  %v7017_v14 = vld [vmem:[#allocation5 + $0x3d8] sm:$0xff]  ;;  %6792 = vrot.lane.b32.xlu0 %v14978_v58, %s10919_s23 }
 0x505   : > { %5862 = vst.msk [vmem:[#allocation5 + $0x440] sm:$0xff] %vm4698_vm9, %v5825_v53  ;;  %8545 = vmatmul.mubr.bf16.gmra.mrb[224].mxu0 %v7017_v14 }
 0x506   : > { %6600 = vrot.lane.b32.xlu1 %v14979_v18, %s10919_s23  ;;  %v6394_v57 = vpop.permute.xlu0 %6393  ;;  %v6968_v5 = vld [vmem:[#allocation5 + $0x250] sm:$0xff] }
 0x507   : > { %6435 = vst.msk [vmem:[#allocation5 + $0x2b8] sm:$0xff] %vm4698_vm9, %v6394_v57  ;;  %8673 = vmatprep.mubr.bf16.mxu1 %v6968_v5  ;;  %v10020_v14 = vpop.f32.mrb[152].mxu1 }
 0x508   : > { %v6202_v8 = vpop.permute.xlu1 %6201  ;;  %v6967_v51 = vld [vmem:[#allocation5 + $0x248] sm:$0xff]  ;;  %6794 = vrot.lane.b32.xlu0 %v13923_v34, %s10919_s23  ;;  %v10061_v34 = vpop.f32.mrb[129].mxu0 }
 0x509   : > { %6243 = vst.msk [vmem:[#allocation5 + $0x2b0] sm:$0xff] %vm4698_vm9, %v6202_v8  ;;  %8674 = vmatmul.mubr.bf16.gmra.mrb[248].mxu1 %v6967_v51  ;;  %v10062_v43 = vadd.f32 %v10061_v34, %v10060_v52  ;;  %v10063_v26 = vpop.f32.mrb[130].mxu0  ;;  %v10021_v58 = vpop.f32.mrb[153].mxu1 }
 0x50a   : > { %6602 = vrot.lane.b32.xlu1 %v13932_v20, %s10919_s23  ;;  %v6020_v0 = vpop.permute.xlu0 %6019  ;;  %v7031_v6 = vld [vmem:[#allocation5 + $0x448] sm:$0xff]  ;;  %v8000_v20 = vadd.f32 %v13608_v42, %v14121_v56  ;;  %v10064_v37 = vpop.f32.mrb[131].mxu0  ;;  %v14168_v18 = vadd.f32 %v10021_v58, %v10020_v14  ;;  %v6667_v58 = vld [vmem:[#allocation3 + $0x1ba] sm:$0xff] }
 0x50b   : > { %6056 = vst.msk [vmem:[#allocation5 + $0x4b0] sm:$0xff] %vm4698_vm9, %v6020_v0  ;;  %8552 = vmatprep.mubr.bf16.mxu0 %v7031_v6  ;;  %v10065_v11 = vadd.f32 %v10064_v37, %v10063_v26  ;;  %v10023_v16 = vpop.f32.mrb[154].mxu1  ;;  %v8011_v6 = vadd.f32 %v13863_v47, %v14121_v56 }
 0x50c   : > { %v5827_v17 = vpop.permute.xlu1 %5826  ;;  %v7030_v28 = vld [vmem:[#allocation5 + $0x440] sm:$0xff]  ;;  %6796 = vrot.lane.b32.xlu0 %v6749_v4, %s10919_s23  ;;  %v14160_v9 = vadd.f32 %v10062_v43, %v8000_v20  ;;  %v10024_v57 = vpop.f32.mrb[155].mxu1 }
 0x50d   : > { %5863 = vst.msk [vmem:[#allocation5 + $0x4a8] sm:$0xff] %vm4698_vm9, %v5827_v17  ;;  %8553 = vmatmul.mubr.bf16.gmra.mrb[228].mxu0 %v7030_v28  ;;  %v14164_v42 = vadd.f32 %v10065_v11, %v8003_v55  ;;  %v14171_v61 = vadd.f32 %v10024_v57, %v10023_v16  ;;  %v8016_v57 = vadd.f32 %v13880_v35, %v14121_v56 }
 0x50e   : > { %6604 = vrot.lane.b32.xlu1 %v6557_v1, %s10919_s23  ;;  %v6396_v44 = vpop.permute.xlu0 %6395  ;;  %v6981_v13 = vld [vmem:[#allocation5 + $0x2b8] sm:$0xff] }
 0x50f   : > { %6436 = vst.msk [vmem:[#allocation5 + $0x320] sm:$0xff] %vm4698_vm9, %v6396_v44  ;;  %8681 = vmatprep.mubr.bf16.mxu1 %v6981_v13  ;;  %v10066_v8 = vpop.f32.mrb[132].mxu0 }
 0x510   : > { %v6204_v27 = vpop.permute.xlu1 %6203  ;;  %v6980_v3 = vld [vmem:[#allocation5 + $0x2b0] sm:$0xff]  ;;  %v10067_v51 = vpop.f32.mrb[133].mxu0 }
 0x511   : > { %6244 = vst.msk [vmem:[#allocation5 + $0x318] sm:$0xff] %vm4698_vm9, %v6204_v27  ;;  %8682 = vmatmul.mubr.bf16.gmra.mrb[252].mxu1 %v6980_v3  ;;  %v10068_v4 = vadd.f32 %v10067_v51, %v10066_v8  ;;  %v10069_v54 = vpop.f32.mrb[134].mxu0  ;;  %v6474_v8 = vld [vmem:[#allocation3 + $0x1b0] sm:$0xff] }
 0x512   : > { %v6022_v2 = vpop.permute.xlu0 %6021  ;;  %v7044_v49 = vld [vmem:[#allocation5 + $0x4b0] sm:$0xff]  ;;  %v10070_v0 = vpop.f32.mrb[135].mxu0 }
 0x513   : > { %6057 = vst.msk [vmem:[#allocation5 + $0x518] sm:$0xff] %vm4698_vm9, %v6022_v2  ;;  %8560 = vmatprep.mubr.bf16.mxu0 %v7044_v49  ;;  %v14178_v17 = vadd.f32 %v10068_v4, %v8008_v39  ;;  %v10071_v52 = vadd.f32 %v10070_v0, %v10069_v54 }
 0x514   : > { %v5829_v53 = vpop.permute.xlu1 %5828  ;;  %v7043_v10 = vld [vmem:[#allocation5 + $0x4a8] sm:$0xff] }
 0x515   : > { %5864 = vst.msk [vmem:[#allocation5 + $0x510] sm:$0xff] %vm4698_vm9, %v5829_v53  ;;  %8561 = vmatmul.mubr.bf16.gmra.mrb[232].mxu0 %v7043_v10  ;;  %v14182_v50 = vadd.f32 %v10071_v52, %v8011_v6  ;;  %v6666_v10 = vld [vmem:[#allocation3 + $0x1b2] sm:$0xff] }
 0x516   : > { %v6398_v46 = vpop.permute.xlu0 %6397  ;;  %v6994_v5 = vld [vmem:[#allocation5 + $0x320] sm:$0xff] }
 0x517   : > { %6437 = vst.msk [vmem:[#allocation5 + $0x388] sm:$0xff] %vm4698_vm9, %v6398_v46  ;;  %8689 = vmatprep.mubr.bf16.mxu1 %v6994_v5  ;;  %v10026_v44 = vpop.f32.mrb[156].mxu1  ;;  %v6684_v46 = vpack.c.bf16 %v6667_v58, %v6666_v10 }
 0x518   : > { %v6206_v15 = vpop.permute.xlu1 %6205  ;;  %v6993_v59 = vld [vmem:[#allocation5 + $0x318] sm:$0xff]  ;;  %v10027_v37 = vpop.f32.mrb[157].mxu1 }
 0x519   : > { %6245 = vst.msk [vmem:[#allocation5 + $0x380] sm:$0xff] %vm4698_vm9, %v6206_v15  ;;  %8690 = vmatmul.mubr.bf16.gmra.mrb[0].mxu1 %v6993_v59  ;;  %v14186_v13 = vadd.f32 %v10027_v37, %v10026_v44  ;;  %v10029_v55 = vpop.f32.mrb[158].mxu1  ;;  %v6475_v59 = vld [vmem:[#allocation3 + $0x1b8] sm:$0xff] }
 0x51a   : > { %v6024_v1 = vpop.permute.xlu0 %6023  ;;  %v7057_v29 = vld [vmem:[#allocation5 + $0x518] sm:$0xff]  ;;  %v10030_v27 = vpop.f32.mrb[159].mxu1  ;;  %6700 = vst.msk [vmem:[#allocation5 + $0x608] sm:$0xff] %vm376_vm6, %v6684_v46  ;;  %v6492_v54 = vpack.c.bf16 %v6475_v59, %v6474_v8 }
 0x51b   : > { %6058 = vst.msk [vmem:[#allocation5 + $0x580] sm:$0xff] %vm4698_vm9, %v6024_v1  ;;  %8568 = vmatprep.mubr.bf16.mxu0 %v7057_v29  ;;  %v14189_v49 = vadd.f32 %v10030_v27, %v10029_v55  ;;  %v8019_v1 = vadd.f32 %v13883_v12, %v14121_v56  ;;  %v6669_v44 = vld [vmem:[#allocation3 + $0x1d2] sm:$0xff]  ;;  %v6476_v27 = vld [vmem:[#allocation3 + $0x1c8] sm:$0xff] }
 0x51c   : > { %v5831_v28 = vpop.permute.xlu1 %5830  ;;  %v7056_v34 = vld [vmem:[#allocation5 + $0x510] sm:$0xff]  ;;  %6508 = vst.msk [vmem:[#allocation5 + $0x600] sm:$0xff] %vm376_vm6, %v6492_v54 }
 0x51d   : > { %5865 = vst.msk [vmem:[#allocation5 + $0x578] sm:$0xff] %vm4698_vm9, %v5831_v28  ;;  %8569 = vmatmul.mubr.bf16.gmra.mrb[236].mxu0 %v7056_v34  ;;  %v10072_v53 = vpop.f32.mrb[136].mxu0 }
 0x51e   : > { %v6400_v20 = vpop.permute.xlu0 %6399  ;;  %v7007_v43 = vld [vmem:[#allocation5 + $0x388] sm:$0xff]  ;;  %v10073_v16 = vpop.f32.mrb[137].mxu0 }
 0x51f   : > { %6438 = vst.msk [vmem:[#allocation5 + $0x3f0] sm:$0xff] %vm4698_vm9, %v6400_v20  ;;  %8697 = vmatprep.mubr.bf16.mxu1 %v7007_v43  ;;  %v10074_v5 = vadd.f32 %v10073_v16, %v10072_v53  ;;  %v10075_v15 = vpop.f32.mrb[138].mxu0 }
 0x520   : > { %v6208_v26 = vpop.permute.xlu1 %6207  ;;  %v7006_v47 = vld [vmem:[#allocation5 + $0x380] sm:$0xff]  ;;  %v10076_v39 = vpop.f32.mrb[139].mxu0 }
 0x521   : > { %6246 = vst.msk [vmem:[#allocation5 + $0x3e8] sm:$0xff] %vm4698_vm9, %v6208_v26  ;;  %8698 = vmatmul.mubr.bf16.gmra.mrb[4].mxu1 %v7006_v47  ;;  %v14197_v0 = vadd.f32 %v10074_v5, %v8016_v57  ;;  %v10077_v29 = vadd.f32 %v10076_v39, %v10075_v15  ;;  %v6668_v26 = vld [vmem:[#allocation3 + $0x1ca] sm:$0xff]  ;;  %v8024_v15 = vadd.f32 %v13908_v31, %v14121_v56  ;;  %v6859_v39 = vld [vmem:[#allocation3 + $0x1bc] sm:$0xff] }
 0x522   : > { %v6026_v11 = vpop.permute.xlu0 %6025  ;;  %v7070_v3 = vld [vmem:[#allocation5 + $0x580] sm:$0xff]  ;;  %v6685_v37 = vpack.c.bf16 %v6669_v44, %v6668_v26 }
 0x523   : > { %6059 = vst.msk [vmem:[#allocation5 + $0x5e8] sm:$0xff] %vm4698_vm9, %v6026_v11  ;;  %8576 = vmatprep.mubr.bf16.mxu0 %v7070_v3  ;;  %v14202_v52 = vadd.f32 %v10077_v29, %v8019_v1  ;;  %v6477_v3 = vld [vmem:[#allocation3 + $0x1d0] sm:$0xff] }
 0x524   : > { %v5833_v2 = vpop.permute.xlu1 %5832  ;;  %v7069_v14 = vld [vmem:[#allocation5 + $0x578] sm:$0xff]  ;;  %6701 = vst.msk [vmem:[#allocation5 + $0x670] sm:$0xff] %vm376_vm6, %v6685_v37  ;;  %v6493_v10 = vpack.c.bf16 %v6477_v3, %v6476_v27 }
 0x525   : > { %5866 = vst.msk [vmem:[#allocation5 + $0x5e0] sm:$0xff] %vm4698_vm9, %v5833_v2  ;;  %8577 = vmatmul.mubr.bf16.gmra.mrb[240].mxu0 %v7069_v14 }
 0x526   : > { %v6402_v51 = vpop.permute.xlu0 %6401  ;;  %v7020_v4 = vld [vmem:[#allocation5 + $0x3f0] sm:$0xff]  ;;  %v10032_v20 = vpop.f32.mrb[160].mxu1  ;;  %6509 = vst.msk [vmem:[#allocation5 + $0x668] sm:$0xff] %vm376_vm6, %v6493_v10 }
 0x527   : > { %6439 = vst.msk [vmem:[#allocation5 + $0x458] sm:$0xff] %vm4698_vm9, %v6402_v51  ;;  %8705 = vmatprep.mubr.bf16.mxu1 %v7020_v4  ;;  %v10033_v47 = vpop.f32.mrb[161].mxu1  ;;  %v6858_v51 = vld [vmem:[#allocation3 + $0x1b4] sm:$0xff] }
 0x528   : > { %v6210_v6 = vpop.permute.xlu1 %6209  ;;  %v7019_v35 = vld [vmem:[#allocation5 + $0x3e8] sm:$0xff]  ;;  %v14206_v55 = vadd.f32 %v10033_v47, %v10032_v20  ;;  %v10035_v11 = vpop.f32.mrb[162].mxu1  ;;  %v6876_v29 = vpack.c.bf16 %v6859_v39, %v6858_v51  ;;  %v8035_v39 = vadd.f32 %v13940_v48, %v14121_v56 }
 0x529   : > { %6247 = vst.msk [vmem:[#allocation5 + $0x450] sm:$0xff] %vm4698_vm9, %v6210_v6  ;;  %8706 = vmatmul.mubr.bf16.gmra.mrb[8].mxu1 %v7019_v35  ;;  %v10036_v53 = vpop.f32.mrb[163].mxu1  ;;  %v8027_v6 = vadd.f32 %v13912_v19, %v14121_v56  ;;  %v6860_v20 = vld [vmem:[#allocation3 + $0x1cc] sm:$0xff] }
 0x52a   : > { %v6028_v28 = vpop.permute.xlu0 %6027  ;;  %v7083_v34 = vld [vmem:[#allocation5 + $0x5e8] sm:$0xff]  ;;  %v14210_v16 = vadd.f32 %v10036_v53, %v10035_v11  ;;  %v10078_v46 = vpop.f32.mrb[140].mxu0  ;;  %6892 = vst.msk [vmem:[#allocation5 + $0x610] sm:$0xff] %vm376_vm6, %v6876_v29 }
 0x52b   : > { %6060 = vst.msk [vmem:[#allocation5 + $0x650] sm:$0xff] %vm4698_vm9, %v6028_v28  ;;  %8584 = vmatprep.mubr.bf16.mxu0 %v7083_v34  ;;  %v10079_v5 = vpop.f32.mrb[141].mxu0 }
 0x52c   : > { %v5835_v12 = vpop.permute.xlu1 %5834  ;;  %v7082_v43 = vld [vmem:[#allocation5 + $0x5e0] sm:$0xff]  ;;  %v10080_v8 = vadd.f32 %v10079_v5, %v10078_v46  ;;  %v10081_v59 = vpop.f32.mrb[142].mxu0 }
 0x52d   : > { %5867 = vst.msk [vmem:[#allocation5 + $0x648] sm:$0xff] %vm4698_vm9, %v5835_v12  ;;  %8585 = vmatmul.mubr.bf16.gmra.mrb[244].mxu0 %v7082_v43  ;;  %v10082_v54 = vpop.f32.mrb[143].mxu0  ;;  %v6861_v43 = vld [vmem:[#allocation3 + $0x1d4] sm:$0xff] }
 0x52e   : > { %v6404_v2 = vpop.permute.xlu0 %6403  ;;  %v7033_v14 = vld [vmem:[#allocation5 + $0x458] sm:$0xff]  ;;  %v14218_v35 = vadd.f32 %v10080_v8, %v8024_v15  ;;  %v10083_v28 = vadd.f32 %v10082_v54, %v10081_v59  ;;  %v6877_v44 = vpack.c.bf16 %v6861_v43, %v6860_v20 }
 0x52f   : > { %6440 = vst.msk [vmem:[#allocation5 + $0x4c0] sm:$0xff] %vm4698_vm9, %v6404_v2  ;;  %8713 = vmatprep.mubr.bf16.mxu1 %v7033_v14  ;;  %v10166_v12 = vpop.f32.mrb[164].mxu1 }
 0x530   : > { %v6212_v58 = vpop.permute.xlu1 %6211  ;;  %v7032_v57 = vld [vmem:[#allocation5 + $0x450] sm:$0xff]  ;;  %v10167_v26 = vpop.f32.mrb[165].mxu1  ;;  %v14223_v47 = vadd.f32 %v10083_v28, %v8027_v6  ;;  %6893 = vst.msk [vmem:[#allocation5 + $0x678] sm:$0xff] %vm376_vm6, %v6877_v44 }
 0x531   : > { %6248 = vst.msk [vmem:[#allocation5 + $0x4b8] sm:$0xff] %vm4698_vm9, %v6212_v58  ;;  %8714 = vmatmul.mubr.bf16.gmra.mrb[12].mxu1 %v7032_v57  ;;  %v10168_v19 = vadd.f32 %v10167_v26, %v10166_v12  ;;  %v10169_v37 = vpop.f32.mrb[166].mxu1  ;;  %v8032_v57 = vadd.f32 %v13934_v32, %v14121_v56 }
 0x532   : > { %v6767_v4 = vpop.permute.xlu0 %6766  ;;  %v7096_v1 = vld [vmem:[#allocation5 + $0x650] sm:$0xff]  ;;  %v10170_v27 = vpop.f32.mrb[167].mxu1 }
 0x533   : > { %6814 = vst.msk [vmem:[#allocation5 + $0x58] sm:$0xff] %vm4698_vm9, %v6767_v4  ;;  %8592 = vmatprep.mubr.bf16.mxu0 %v7096_v1  ;;  %v14227_v2 = vadd.f32 %v10168_v19, %v14132_v25  ;;  %v10171_v14 = vadd.f32 %v10170_v27, %v10169_v37 }
 0x534   : > { %v6575_v34 = vpop.permute.xlu1 %6574  ;;  %v7095_v31 = vld [vmem:[#allocation5 + $0x648] sm:$0xff] }
 0x535   : > { %6622 = vst.msk [vmem:[#allocation5 + $0x50] sm:$0xff] %vm4698_vm9, %v6575_v34  ;;  %8593 = vmatmul.mubr.bf16.gmra.mrb[248].mxu0 %v7095_v31  ;;  %v14234_v5 = vadd.f32 %v10171_v14, %v14138_v36 }
 0x536   : > { %v6406_v11 = vpop.permute.xlu0 %6405  ;;  %v7046_v3 = vld [vmem:[#allocation5 + $0x4c0] sm:$0xff]  ;;  %v10084_v10 = vpop.f32.mrb[144].mxu0 }
 0x537   : > { %6441 = vst.msk [vmem:[#allocation5 + $0x528] sm:$0xff] %vm4698_vm9, %v6406_v11  ;;  %8721 = vmatprep.mubr.bf16.mxu1 %v7046_v3  ;;  %v10085_v46 = vpop.f32.mrb[145].mxu0  ;;  %v8040_v11 = vadd.f32 %v13970_v45, %v14121_v56 }
 0x538   : > { %v6214_v53 = vpop.permute.xlu1 %6213  ;;  %v7045_v58 = vld [vmem:[#allocation5 + $0x4b8] sm:$0xff]  ;;  %v10086_v15 = vadd.f32 %v10085_v46, %v10084_v10  ;;  %v10087_v25 = vpop.f32.mrb[146].mxu0 }
 0x539   : > { %6249 = vst.msk [vmem:[#allocation5 + $0x520] sm:$0xff] %vm4698_vm9, %v6214_v53  ;;  %8722 = vmatmul.mubr.bf16.gmra.mrb[16].mxu1 %v7045_v58  ;;  %v10088_v59 = vpop.f32.mrb[147].mxu0  ;;  %v10172_v29 = vpop.f32.mrb[168].mxu1  ;;  %v8043_v58 = vadd.f32 %v13977_v40, %v14121_v56 }
 0x53a   : > { %v6769_v8 = vpop.permute.xlu0 %6768  ;;  %v6905_v51 = vld [vmem:[#allocation5 + $0x58] sm:$0xff]  ;;  %v14238_v4 = vadd.f32 %v10086_v15, %v8032_v57  ;;  %v10089_v54 = vadd.f32 %v10088_v59, %v10087_v25  ;;  %v10173_v36 = vpop.f32.mrb[169].mxu1 }
 0x53b   : > { %6815 = vst.msk [vmem:[#allocation5 + $0xc0] sm:$0xff] %vm4698_vm9, %v6769_v8  ;;  %8794 = vmatprep.mubr.bf16.mxu0 %v6905_v51  ;;  %v10174_v28 = vadd.f32 %v10173_v36, %v10172_v29  ;;  %v10175_v34 = vpop.f32.mrb[170].mxu1 }
 0x53c   : > { %v6577_v1 = vpop.permute.xlu1 %6576  ;;  %v6904_v32 = vld [vmem:[#allocation5 + $0x50] sm:$0xff]  ;;  %v14242_v6 = vadd.f32 %v10089_v54, %v8035_v39  ;;  %v10176_v31 = vpop.f32.mrb[171].mxu1 }
 0x53d   : > { %6623 = vst.msk [vmem:[#allocation5 + $0xb8] sm:$0xff] %vm4698_vm9, %v6577_v1  ;;  %8795 = vmatmul.mubr.bf16.vlgmr.msra.gmra.mrb[252].mxu0 %v6904_v32  ;;  %v14245_v20 = vadd.f32 %v10174_v28, %v14160_v9  ;;  %v10177_v26 = vadd.f32 %v10176_v31, %v10175_v34 }
 0x53e   : > { %v6408_v12 = vpop.permute.xlu0 %6407  ;;  %v7059_v48 = vld [vmem:[#allocation5 + $0x528] sm:$0xff]  ;;  %v10090_v44 = vpop.f32.mrb[148].mxu0 }
 0x53f   : > { %6442 = vst.msk [vmem:[#allocation5 + $0x590] sm:$0xff] %vm4698_vm9, %v6408_v12  ;;  %8729 = vmatprep.mubr.bf16.mxu1 %v7059_v48  ;;  %v10091_v37 = vpop.f32.mrb[149].mxu0  ;;  %v14252_v27 = vadd.f32 %v10177_v26, %v14164_v42  ;;  %v8048_v12 = vadd.f32 %v14004_v33, %v14121_v56 }
 0x540   : > { %v6216_v43 = vpop.permute.xlu1 %6215  ;;  %v7058_v19 = vld [vmem:[#allocation5 + $0x520] sm:$0xff]  ;;  %v10092_v3 = vadd.f32 %v10091_v37, %v10090_v44  ;;  %v10093_v9 = vpop.f32.mrb[150].mxu0 }
 0x541   : > { %6250 = vst.msk [vmem:[#allocation5 + $0x588] sm:$0xff] %vm4698_vm9, %v6216_v43  ;;  %8730 = vmatmul.mubr.bf16.gmra.mrb[20].mxu1 %v7058_v19  ;;  %v10094_v14 = vpop.f32.mrb[151].mxu0  ;;  %v8051_v19 = vadd.f32 %v14013_v24, %v14121_v56 }
 0x542   : > { %v6771_v53 = vpop.permute.xlu0 %6770  ;;  %v6918_v10 = vld [vmem:[#allocation5 + $0xc0] sm:$0xff]  ;;  %v14256_v46 = vadd.f32 %v10092_v3, %v8040_v11  ;;  %v10095_v57 = vadd.f32 %v10094_v14, %v10093_v9 }
 0x543   : > { %6816 = vst.msk [vmem:[#allocation5 + $0x128] sm:$0xff] %vm4698_vm9, %v6771_v53  ;;  %v10178_v25 = vpop.f32.mrb[172].mxu1  ;;  %8802 = vmatprep.mubr.bf16.mxu0 %v6918_v10 }
 0x544   : > { %v6579_v15 = vpop.permute.xlu1 %6578  ;;  %v6917_v45 = vld [vmem:[#allocation5 + $0xb8] sm:$0xff]  ;;  %v10179_v42 = vpop.f32.mrb[173].mxu1  ;;  %v14260_v8 = vadd.f32 %v10095_v57, %v8043_v58 }
 0x545   : > { %6624 = vst.msk [vmem:[#allocation5 + $0x120] sm:$0xff] %vm4698_vm9, %v6579_v15  ;;  %8803 = vmatmul.mubr.bf16.gmra.mrb[0].mxu0 %v6917_v45  ;;  %v10180_v59 = vadd.f32 %v10179_v42, %v10178_v25  ;;  %v10181_v51 = vpop.f32.mrb[174].mxu1 }
 0x546   : > { %v6410_v39 = vpop.permute.xlu0 %6409  ;;  %v10182_v54 = vpop.f32.mrb[175].mxu1  ;;  %v7072_v40 = vld [vmem:[#allocation5 + $0x590] sm:$0xff] }
 0x547   : > { %v14263_v1 = vadd.f32 %v10180_v59, %v14178_v17  ;;  %6443 = vst.msk [vmem:[#allocation5 + $0x5f8] sm:$0xff] %vm4698_vm9, %v6410_v39  ;;  %v10183_v32 = vadd.f32 %v10182_v54, %v10181_v51  ;;  %v10096_v36 = vpop.f32.mrb[152].mxu0  ;;  %8737 = vmatprep.mubr.bf16.mxu1 %v7072_v40  ;;  %v8056_v39 = vadd.f32 %v14039_v38, %v14121_v56 }
 0x548   : > { %v6218_v29 = vpop.permute.xlu1 %6217  ;;  %v7071_v28 = vld [vmem:[#allocation5 + $0x588] sm:$0xff]  ;;  %v10097_v34 = vpop.f32.mrb[153].mxu0 }
 0x549   : > { %6251 = vst.msk [vmem:[#allocation5 + $0x5f0] sm:$0xff] %vm4698_vm9, %v6218_v29  ;;  %8738 = vmatmul.mubr.bf16.gmra.mrb[24].mxu1 %v7071_v28  ;;  %v14270_v31 = vadd.f32 %v10183_v32, %v14182_v50  ;;  %v10098_v48 = vadd.f32 %v10097_v34, %v10096_v36  ;;  %v10099_v17 = vpop.f32.mrb[154].mxu0  ;;  %v8059_v28 = vadd.f32 %v14042_v21, %v14121_v56 }
 0x54a   : > { %v6773_v43 = vpop.permute.xlu0 %6772  ;;  %v10100_v26 = vpop.f32.mrb[155].mxu0  ;;  %v6931_v44 = vld [vmem:[#allocation5 + $0x128] sm:$0xff] }
 0x54b   : > { %v14274_v37 = vadd.f32 %v10098_v48, %v8048_v12  ;;  %6817 = vst.msk [vmem:[#allocation5 + $0x190] sm:$0xff] %vm4698_vm9, %v6773_v43  ;;  %v10101_v11 = vadd.f32 %v10100_v26, %v10099_v17  ;;  %8810 = vmatprep.mubr.bf16.mxu0 %v6931_v44 }
 0x54c   : > { %v6581_v3 = vpop.permute.xlu1 %6580  ;;  %v10184_v9 = vpop.f32.mrb[176].mxu1  ;;  %v6930_v33 = vld [vmem:[#allocation5 + $0x120] sm:$0xff] }
 0x54d   : > { %6625 = vst.msk [vmem:[#allocation5 + $0x188] sm:$0xff] %vm4698_vm9, %v6581_v3  ;;  %v10185_v50 = vpop.f32.mrb[177].mxu1  ;;  %8811 = vmatmul.mubr.bf16.gmra.mrb[4].mxu0 %v6930_v33  ;;  %v14278_v53 = vadd.f32 %v10101_v11, %v8051_v19 }
 0x54e   : > { %v10186_v14 = vadd.f32 %v10185_v50, %v10184_v9  ;;  %v10187_v10 = vpop.f32.mrb[178].mxu1  ;;  %v6412_v58 = vpop.permute.xlu0 %6411  ;;  %v7085_v24 = vld [vmem:[#allocation5 + $0x5f8] sm:$0xff] }
 0x54f   : > { %v10188_v57 = vpop.f32.mrb[179].mxu1  ;;  %6444 = vst.msk [vmem:[#allocation5 + $0x660] sm:$0xff] %vm4698_vm9, %v6412_v58  ;;  %8745 = vmatprep.mubr.bf16.mxu1 %v7085_v24  ;;  %v6906_v58 = vld [vmem:[#allocation5 + $0x60] sm:$0xff] }
 0x550   : > { %v14281_v15 = vadd.f32 %v10186_v14, %v14197_v0  ;;  %v6220_v25 = vpop.permute.xlu1 %6219  ;;  %v10189_v45 = vadd.f32 %v10188_v57, %v10187_v10  ;;  %v10102_v42 = vpop.f32.mrb[156].mxu0  ;;  %v7084_v59 = vld [vmem:[#allocation5 + $0x5f0] sm:$0xff]  ;;  %v8064_v57 = vadd.f32 %v14066_v7, %v14121_v56 }
 0x551   : > { %6252 = vst.msk [vmem:[#allocation5 + $0x658] sm:$0xff] %vm4698_vm9, %v6220_v25  ;;  %v10103_v51 = vpop.f32.mrb[157].mxu0  ;;  %8746 = vmatmul.mubr.bf16.gmra.mrb[28].mxu1 %v7084_v59 }
 0x552   : > { %v14288_v54 = vadd.f32 %v10189_v45, %v14202_v52  ;;  %v10104_v40 = vadd.f32 %v10103_v51, %v10102_v42  ;;  %v10105_v0 = vpop.f32.mrb[158].mxu0  ;;  %v6775_v29 = vpop.permute.xlu0 %6774  ;;  %v6944_v36 = vld [vmem:[#allocation5 + $0x190] sm:$0xff]  ;;  %v8067_v51 = vadd.f32 %v14072_v63, %v14121_v56 }
 0x553   : > { %v10106_v32 = vpop.f32.mrb[159].mxu0  ;;  %6818 = vst.msk [vmem:[#allocation5 + $0x1f8] sm:$0xff] %vm4698_vm9, %v6775_v29  ;;  %8818 = vmatprep.mubr.bf16.mxu0 %v6944_v36 }
 0x554   : > { %v14292_v34 = vadd.f32 %v10104_v40, %v8056_v39  ;;  %v10107_v12 = vadd.f32 %v10106_v32, %v10105_v0  ;;  %v6583_v48 = vpop.permute.xlu1 %6582  ;;  %v10190_v17 = vpop.f32.mrb[180].mxu1  ;;  %v6943_v38 = vld [vmem:[#allocation5 + $0x188] sm:$0xff] }
 0x555   : > { %6626 = vst.msk [vmem:[#allocation5 + $0x1f0] sm:$0xff] %vm4698_vm9, %v6583_v48  ;;  %v10191_v52 = vpop.f32.mrb[181].mxu1  ;;  %8819 = vmatmul.mubr.bf16.gmra.mrb[8].mxu0 %v6943_v38 }
 0x556   : > { %v14296_v43 = vadd.f32 %v10107_v12, %v8059_v28  ;;  %v10192_v26 = vadd.f32 %v10191_v52, %v10190_v17  ;;  %v10193_v44 = vpop.f32.mrb[182].mxu1  ;;  %v6777_v19 = vpop.permute.xlu0 %6776  ;;  %v7098_v21 = vld [vmem:[#allocation5 + $0x660] sm:$0xff] }
 0x557   : > { %v10194_v11 = vpop.f32.mrb[183].mxu1  ;;  %6819 = vst.msk [vmem:[#allocation5 + $0x260] sm:$0xff] %vm4698_vm9, %v6777_v19  ;;  %8753 = vmatprep.mubr.bf16.mxu1 %v7098_v21  ;;  %v8072_v21 = vadd.f32 %v14091_v23, %v14121_v56 }
 0x558   : > { %v14299_v3 = vadd.f32 %v10192_v26, %v14218_v35  ;;  %v6585_v9 = vpop.permute.xlu1 %6584  ;;  %v10195_v33 = vadd.f32 %v10194_v11, %v10193_v44  ;;  %v10108_v50 = vpop.f32.mrb[160].mxu0  ;;  %v7097_v14 = vld [vmem:[#allocation5 + $0x658] sm:$0xff]  ;;  %v6919_v44 = vld [vmem:[#allocation5 + $0xc8] sm:$0xff]  ;;  %v6932_v11 = vld [vmem:[#allocation5 + $0x130] sm:$0xff] }
 0x559   : > { %6627 = vst.msk [vmem:[#allocation5 + $0x258] sm:$0xff] %vm4698_vm9, %v6585_v9  ;;  %v10109_v10 = vpop.f32.mrb[161].mxu0  ;;  %8754 = vmatmul.mubr.bf16.gmra.mrb[32].mxu1 %v7097_v14 }
 0x55a   : > { %v14306_v24 = vadd.f32 %v10195_v33, %v14223_v47  ;;  %v10110_v35 = vadd.f32 %v10109_v10, %v10108_v50  ;;  %v10111_v25 = vpop.f32.mrb[162].mxu0  ;;  %10682 = vmatprep.mubr.msk.bf16.mxu1 %vm376_vm6, %v6906_v58  ;;  %v6779_v45 = vpop.permute.xlu0 %6778  ;;  %v6957_v59 = vld [vmem:[#allocation5 + $0x1f8] sm:$0xff]  ;;  %v8075_v10 = vadd.f32 %v14094_v41, %v14121_v56 }
 0x55b   : > { %v10112_v42 = vpop.f32.mrb[163].mxu0  ;;  %6820 = vst.msk [vmem:[#allocation5 + $0x2c8] sm:$0xff] %vm4698_vm9, %v6779_v45  ;;  %8826 = vmatprep.mubr.bf16.mxu0 %v6957_v59 }
 0x55c   : > { %v14311_v39 = vadd.f32 %v10110_v35, %v8064_v57  ;;  %v10113_v40 = vadd.f32 %v10112_v42, %v10111_v25  ;;  %v6587_v0 = vpop.permute.xlu1 %6586  ;;  %v10196_v7 = vpop.f32.mrb[184].mxu1  ;;  %v6956_v47 = vld [vmem:[#allocation5 + $0x1f0] sm:$0xff] }
 0x55d   : > { %6628 = vst.msk [vmem:[#allocation5 + $0x2c0] sm:$0xff] %vm4698_vm9, %v6587_v0  ;;  %v10197_v29 = vpop.f32.mrb[185].mxu1  ;;  %8827 = vmatmul.mubr.bf16.gmra.mrb[12].mxu0 %v6956_v47 }
 0x55e   : > { %v14315_v32 = vadd.f32 %v10113_v40, %v8067_v51  ;;  %v10198_v36 = vadd.f32 %v10197_v29, %v10196_v7  ;;  %v10199_v28 = vpop.f32.mrb[186].mxu1  ;;  %v6781_v12 = vpop.permute.xlu0 %6780  ;;  %v6970_v63 = vld [vmem:[#allocation5 + $0x260] sm:$0xff] }
 0x55f   : > { %v10200_v48 = vpop.f32.mrb[187].mxu1  ;;  %6821 = vst.msk [vmem:[#allocation5 + $0x330] sm:$0xff] %vm4698_vm9, %v6781_v12  ;;  %8834 = vmatprep.mubr.bf16.mxu0 %v6970_v63  ;;  %v6958_v12 = vld [vmem:[#allocation5 + $0x200] sm:$0xff] }
 0x560   : > { %v14318_v17 = vadd.f32 %v10198_v36, %v14238_v4  ;;  %v6589_v38 = vpop.permute.xlu1 %6588  ;;  %v10201_v52 = vadd.f32 %v10200_v48, %v10199_v28  ;;  %v10114_v26 = vpop.f32.mrb[164].mxu0  ;;  %v6969_v23 = vld [vmem:[#allocation5 + $0x258] sm:$0xff]  ;;  %v8080_v48 = vadd.f32 %v14113_v30, %v14121_v56 }
 0x561   : > { %6629 = vst.msk [vmem:[#allocation5 + $0x328] sm:$0xff] %vm4698_vm9, %v6589_v38  ;;  %v10115_v19 = vpop.f32.mrb[165].mxu0  ;;  %10683 = vmatmul.mubr.msk.bf16.vlgmr.msra.gmra.mrb[36].mxu1 %vm376_vm6, %v6919_v44  ;;  %v6945_v36 = vld [vmem:[#allocation5 + $0x198] sm:$0xff]  ;;  %v8083_v44 = vadd.f32 %v14116_v60, %v14121_v56 }
 0x562   : > { %v14326_v9 = vadd.f32 %v10201_v52, %v14242_v6  ;;  %v10116_v4 = vadd.f32 %v10115_v19, %v10114_v26  ;;  %v10117_v33 = vpop.f32.mrb[166].mxu0  ;;  %10686 = vmatprep.mubr.msk.bf16.mxu1 %vm376_vm6, %v6932_v11  ;;  %v6783_v50 = vpop.permute.xlu0 %6782  ;;  %v6983_v45 = vld [vmem:[#allocation5 + $0x2c8] sm:$0xff] }
 0x563   : > { %v10118_v14 = vpop.f32.mrb[167].mxu0  ;;  %6822 = vst.msk [vmem:[#allocation5 + $0x398] sm:$0xff] %vm4698_vm9, %v6783_v50 }
 0x564   : > { %v14331_v58 = vadd.f32 %v10116_v4, %v8072_v21  ;;  %v10119_v57 = vadd.f32 %v10118_v14, %v10117_v33  ;;  %v6591_v35 = vpop.permute.xlu1 %6590  ;;  %v10202_v25 = vpop.f32.mrb[188].mxu1  ;;  %v6982_v30 = vld [vmem:[#allocation5 + $0x2c0] sm:$0xff] }
 0x565   : > { %6630 = vst.msk [vmem:[#allocation5 + $0x390] sm:$0xff] %vm4698_vm9, %v6591_v35  ;;  %v10203_v6 = vpop.f32.mrb[189].mxu1  ;;  %8835 = vmatmul.mubr.bf16.gmra.mrb[16].mxu0 %v6969_v23 }
 0x566   : > { %v14335_v42 = vadd.f32 %v10119_v57, %v8075_v10  ;;  %v10204_v59 = vadd.f32 %v10203_v6, %v10202_v25  ;;  %v10205_v51 = vpop.f32.mrb[190].mxu1  ;;  %8842 = vmatprep.mubr.bf16.mxu0 %v6983_v45  ;;  %v6785_v40 = vpop.permute.xlu0 %6784  ;;  %v6996_v33 = vld [vmem:[#allocation5 + $0x330] sm:$0xff]  ;;  %v6971_v45 = vld [vmem:[#allocation5 + $0x268] sm:$0xff] }
 0x567   : > { %v10206_v41 = vpop.f32.mrb[191].mxu1  ;;  %6823 = vst.msk [vmem:[#allocation5 + $0x400] sm:$0xff] %vm4698_vm9, %v6785_v40  ;;  %v8088_v40 = vadd.f32 %v14146_v22, %v14121_v56 }
 0x568   : > { %v14338_v0 = vadd.f32 %v10204_v59, %v14256_v46  ;;  %v6593_v7 = vpop.permute.xlu1 %6592  ;;  %v10207_v47 = vadd.f32 %v10206_v41, %v10205_v51  ;;  %v10120_v29 = vpop.f32.mrb[168].mxu0  ;;  %v6984_v51 = vld [vmem:[#allocation5 + $0x2d0] sm:$0xff]  ;;  %v6995_v22 = vld [vmem:[#allocation5 + $0x328] sm:$0xff] }
 0x569   : > { %6631 = vst.msk [vmem:[#allocation5 + $0x3f8] sm:$0xff] %vm4698_vm9, %v6593_v7  ;;  %v10121_v28 = vpop.f32.mrb[169].mxu0  ;;  %10687 = vmatmul.mubr.msk.bf16.gmra.mrb[40].mxu1 %vm376_vm6, %v6945_v36  ;;  %v8091_v36 = vadd.f32 %v14151_v62, %v14121_v56 }
 0x56a   : > { %v14346_v63 = vadd.f32 %v10207_v47, %v14260_v8  ;;  %v10122_v46 = vadd.f32 %v10121_v28, %v10120_v29  ;;  %v10123_v38 = vpop.f32.mrb[170].mxu0  ;;  %10690 = vmatprep.mubr.msk.bf16.mxu1 %vm376_vm6, %v6958_v12  ;;  %v6787_v52 = vpop.permute.xlu0 %6786 }
 0x56b   : > { %v10124_v26 = vpop.f32.mrb[171].mxu0  ;;  %6824 = vst.msk [vmem:[#allocation5 + $0x468] sm:$0xff] %vm4698_vm9, %v6787_v52 }
 0x56c   : > { %v14351_v19 = vadd.f32 %v10122_v46, %v8080_v48  ;;  %v10125_v11 = vadd.f32 %v10124_v26, %v10123_v38  ;;  %v6595_v21 = vpop.permute.xlu1 %6594  ;;  %v10208_v4 = vpop.f32.mrb[192].mxu1  ;;  %v7009_v38 = vld [vmem:[#allocation5 + $0x398] sm:$0xff] }
 0x56d   : > { %6632 = vst.msk [vmem:[#allocation5 + $0x460] sm:$0xff] %vm4698_vm9, %v6595_v21  ;;  %v10209_v8 = vpop.f32.mrb[193].mxu1  ;;  %8843 = vmatmul.mubr.bf16.gmra.mrb[20].mxu0 %v6982_v30 }
 0x56e   : > { %v14355_v50 = vadd.f32 %v10125_v11, %v8083_v44  ;;  %v10210_v14 = vadd.f32 %v10209_v8, %v10208_v4  ;;  %v10211_v10 = vpop.f32.mrb[194].mxu1  ;;  %8850 = vmatprep.mubr.bf16.mxu0 %v6996_v33  ;;  %v6789_v57 = vpop.permute.xlu0 %6788  ;;  %v6997_v33 = vld [vmem:[#allocation5 + $0x338] sm:$0xff] }
 0x56f   : > { %v10212_v60 = vpop.f32.mrb[195].mxu1  ;;  %6825 = vst.msk [vmem:[#allocation5 + $0x4d0] sm:$0xff] %vm4698_vm9, %v6789_v57  ;;  %v8096_v57 = vadd.f32 %v14168_v18, %v14121_v56  ;;  %v7008_v56 = vld [vmem:[#allocation5 + $0x390] sm:$0xff] }
 0x570   : > { %v14358_v35 = vadd.f32 %v10210_v14, %v14274_v37  ;;  %v6597_v25 = vpop.permute.xlu1 %6596  ;;  %v10213_v23 = vadd.f32 %v10212_v60, %v10211_v10  ;;  %v10126_v6 = vpop.f32.mrb[172].mxu0  ;;  %v7010_v10 = vld [vmem:[#allocation5 + $0x3a0] sm:$0xff] }
 0x571   : > { %6633 = vst.msk [vmem:[#allocation5 + $0x4c8] sm:$0xff] %vm4698_vm9, %v6597_v25  ;;  %v10127_v59 = vpop.f32.mrb[173].mxu0  ;;  %10691 = vmatmul.mubr.msk.bf16.gmra.mrb[44].mxu1 %vm376_vm6, %v6971_v45  ;;  %v10908_v45 = vld [vmem:[%s14805_s5] ss:$0 sm:$0xff] }
 0x572   : > { %v14366_v41 = vadd.f32 %v10213_v23, %v14278_v53  ;;  %v10128_v37 = vadd.f32 %v10127_v59, %v10126_v6  ;;  %v10129_v7 = vpop.f32.mrb[174].mxu0  ;;  %10694 = vmatprep.mubr.msk.bf16.mxu1 %vm376_vm6, %v6984_v51  ;;  %v6791_v47 = vpop.permute.xlu0 %6790  ;;  %v8099_v59 = vadd.f32 %v10908_v45, %v14171_v61 }
 0x573   : > { %v10130_v29 = vpop.f32.mrb[175].mxu0  ;;  %6826 = vst.msk [vmem:[#allocation5 + $0x538] sm:$0xff] %vm4698_vm9, %v6791_v47 }
 0x574   : > { %v14371_v28 = vadd.f32 %v10128_v37, %v8088_v40  ;;  %v10131_v12 = vadd.f32 %v10130_v29, %v10129_v7  ;;  %v6599_v48 = vpop.permute.xlu1 %6598  ;;  %v10214_v46 = vpop.f32.mrb[196].mxu1  ;;  %v7022_v7 = vld [vmem:[#allocation5 + $0x400] sm:$0xff] }
 0x575   : > { %6634 = vst.msk [vmem:[#allocation5 + $0x530] sm:$0xff] %vm4698_vm9, %v6599_v48  ;;  %v10215_v53 = vpop.f32.mrb[197].mxu1  ;;  %8851 = vmatmul.mubr.bf16.gmra.mrb[24].mxu0 %v6995_v22 }
 0x576   : > { %v14375_v52 = vadd.f32 %v10131_v12, %v8091_v36  ;;  %v10216_v26 = vadd.f32 %v10215_v53, %v10214_v46  ;;  %v10217_v44 = vpop.f32.mrb[198].mxu1  ;;  %8858 = vmatprep.mubr.bf16.mxu0 %v7009_v38  ;;  %v6793_v11 = vpop.permute.xlu0 %6792  ;;  %v7023_v53 = vld [vmem:[#allocation5 + $0x408] sm:$0xff] }
 0x577   : > { %v10218_v62 = vpop.f32.mrb[199].mxu1  ;;  %6827 = vst.msk [vmem:[#allocation5 + $0x5a0] sm:$0xff] %vm4698_vm9, %v6793_v11  ;;  %v8104_v11 = vadd.f32 %v10908_v45, %v14186_v13 }
 0x578   : > { %v14378_v21 = vadd.f32 %v10216_v26, %v14292_v34  ;;  %v6601_v4 = vpop.permute.xlu1 %6600  ;;  %v10219_v30 = vadd.f32 %v10218_v62, %v10217_v44  ;;  %v10132_v8 = vpop.f32.mrb[176].mxu0  ;;  %v7036_v44 = vld [vmem:[#allocation5 + $0x470] sm:$0xff] }
 0x579   : > { %6635 = vst.msk [vmem:[#allocation5 + $0x598] sm:$0xff] %vm4698_vm9, %v6601_v4  ;;  %v10133_v14 = vpop.f32.mrb[177].mxu0  ;;  %10695 = vmatmul.mubr.msk.bf16.gmra.mrb[48].mxu1 %vm376_vm6, %v6997_v33 }
 0x57a   : > { %v14386_v60 = vadd.f32 %v10219_v30, %v14296_v43  ;;  %v10134_v34 = vadd.f32 %v10133_v14, %v10132_v8  ;;  %v10135_v25 = vpop.f32.mrb[178].mxu0  ;;  %10698 = vmatprep.mubr.msk.bf16.mxu1 %vm376_vm6, %v7010_v10  ;;  %v6795_v6 = vpop.permute.xlu0 %6794  ;;  %v8107_v8 = vadd.f32 %v10908_v45, %v14189_v49  ;;  %v7049_v49 = vld [vmem:[#allocation5 + $0x4d8] sm:$0xff] }
 0x57b   : > { %v10136_v23 = vpop.f32.mrb[179].mxu0  ;;  %6828 = vst.msk [vmem:[#allocation5 + $0x608] sm:$0xff] %vm4698_vm9, %v6795_v6 }
 0x57c   : > { %v14393_v51 = vadd.f32 %v10134_v34, %v8096_v57  ;;  %v10137_v40 = vadd.f32 %v10136_v23, %v10135_v25  ;;  %v10220_v37 = vpop.f32.mrb[200].mxu1  ;;  %v6603_v18 = vpop.permute.xlu1 %6602  ;;  %v7021_v57 = vld [vmem:[#allocation5 + $0x3f8] sm:$0xff]  ;;  %v7035_v25 = vld [vmem:[#allocation5 + $0x468] sm:$0xff] }
 0x57d   : > { %v10221_v43 = vpop.f32.mrb[201].mxu1  ;;  %8859 = vmatmul.mubr.bf16.gmra.mrb[28].mxu0 %v7008_v56  ;;  %6636 = vst.msk [vmem:[#allocation5 + $0x600] sm:$0xff] %vm4698_vm9, %v6603_v18  ;;  %v7062_v18 = vld [vmem:[#allocation5 + $0x540] sm:$0xff] }
 0x57e   : > { %v14397_v47 = vadd.f32 %v10137_v40, %v8099_v59  ;;  %v10222_v29 = vadd.f32 %v10221_v43, %v10220_v37  ;;  %v10223_v36 = vpop.f32.mrb[202].mxu1  ;;  %8866 = vmatprep.mubr.bf16.mxu0 %v7022_v7  ;;  %v6797_v61 = vpop.permute.xlu0 %6796  ;;  %v8112_v43 = vadd.f32 %v10908_v45, %v14206_v55 }
 0x57f   : > { %v10224_v12 = vpop.f32.mrb[203].mxu1  ;;  %6829 = vst.msk [vmem:[#allocation5 + $0x670] sm:$0xff] %vm4698_vm9, %v6797_v61 }
 0x580   : > { %v14400_v48 = vadd.f32 %v10222_v29, %v14311_v39  ;;  %v10225_v46 = vadd.f32 %v10224_v12, %v10223_v36  ;;  %v10138_v22 = vpop.f32.mrb[180].mxu0  ;;  %v6605_v38 = vpop.permute.xlu1 %6604 }
 0x581   : > { %v10139_v26 = vpop.f32.mrb[181].mxu0  ;;  %10699 = vmatmul.mubr.msk.bf16.gmra.mrb[52].mxu1 %vm376_vm6, %v7023_v53  ;;  %6637 = vst.msk [vmem:[#allocation5 + $0x668] sm:$0xff] %vm4698_vm9, %v6605_v38  ;;  %v7034_v53 = vld [vmem:[#allocation5 + $0x460] sm:$0xff] }
 0x582   : > { %v14407_v62 = vadd.f32 %v10225_v46, %v14315_v32  ;;  %v10140_v4 = vadd.f32 %v10139_v26, %v10138_v22  ;;  %v10141_v39 = vpop.f32.mrb[182].mxu0  ;;  %10702 = vmatprep.mubr.msk.bf16.mxu1 %vm376_vm6, %v7036_v44  ;;  %v7048_v26 = vld [vmem:[#allocation5 + $0x4d0] sm:$0xff] }
 0x583   : > { %v10142_v30 = vpop.f32.mrb[183].mxu0 }
 0x584   : > { %v14411_v33 = vadd.f32 %v10140_v4, %v8104_v11  ;;  %v10143_v14 = vadd.f32 %v10142_v30, %v10141_v39  ;;  %v10226_v10 = vpop.f32.mrb[204].mxu1  ;;  %v7088_v4 = vld [vmem:[#allocation5 + $0x610] sm:$0xff] }
 0x585   : > { %v10227_v34 = vpop.f32.mrb[205].mxu1  ;;  %8867 = vmatmul.mubr.bf16.gmra.mrb[32].mxu0 %v7021_v57 }
 0x586   : > { %v14413_v23 = vadd.f32 %v10143_v14, %v8107_v8  ;;  %v10228_v13 = vadd.f32 %v10227_v34, %v10226_v10  ;;  %v10229_v32 = vpop.f32.mrb[206].mxu1  ;;  %8874 = vmatprep.mubr.bf16.mxu0 %v7035_v25 }
 0x587   : > { %v10230_v6 = vpop.f32.mrb[207].mxu1 }
 0x588   : > { %v14416_v59 = vadd.f32 %v10228_v13, %v14331_v58  ;;  %v10231_v40 = vadd.f32 %v10230_v6, %v10229_v32  ;;  %v10144_v37 = vpop.f32.mrb[184].mxu0  ;;  %v8115_v58 = vadd.f32 %v10908_v45, %v14210_v16  ;;  %v7075_v45 = vld [vmem:[#allocation5 + $0x5a8] sm:$0xff] }
 0x589   : > { %v10145_v56 = vpop.f32.mrb[185].mxu0  ;;  %10703 = vmatmul.mubr.msk.bf16.gmra.mrb[56].mxu1 %vm376_vm6, %v7049_v49  ;;  %v7047_v32 = vld [vmem:[#allocation5 + $0x4c8] sm:$0xff] }
 0x58a   : > { %v14421_v7 = vadd.f32 %v10231_v40, %v14335_v42  ;;  %v10146_v29 = vadd.f32 %v10145_v56, %v10144_v37  ;;  %v10147_v36 = vpop.f32.mrb[186].mxu0  ;;  %10706 = vmatprep.mubr.msk.bf16.mxu1 %vm376_vm6, %v7062_v18  ;;  %v7061_v40 = vld [vmem:[#allocation5 + $0x538] sm:$0xff] }
 0x58b   : > { %v10148_v12 = vpop.f32.mrb[187].mxu0  ;;  %v7101_v56 = vld [vmem:[#allocation5 + $0x678] sm:$0xff] }
 0x58c   : > { %v14425_v61 = vadd.f32 %v10146_v29, %v8112_v43  ;;  %v10149_v46 = vadd.f32 %v10148_v12, %v10147_v36  ;;  %v10232_v22 = vpop.f32.mrb[208].mxu1 }
 0x58d   : > { %v10233_v38 = vpop.f32.mrb[209].mxu1  ;;  %8875 = vmatmul.mubr.bf16.gmra.mrb[36].mxu0 %v7034_v53 }
 0x58e   : > { %v14427_v44 = vadd.f32 %v10149_v46, %v8115_v58  ;;  %v10234_v55 = vadd.f32 %v10233_v38, %v10232_v22  ;;  %v10235_v42 = vpop.f32.mrb[210].mxu1  ;;  %8882 = vmatprep.mubr.bf16.mxu0 %v7048_v26  ;;  %v7060_v26 = vld [vmem:[#allocation5 + $0x530] sm:$0xff] }
 0x58f   : > { %v10236_v11 = vpop.f32.mrb[211].mxu1 }
 0x590   : > { %v14430_v39 = vadd.f32 %v10234_v55, %v14351_v19  ;;  %v10237_v30 = vadd.f32 %v10236_v11, %v10235_v42  ;;  %v10278_v16 = vpop.f32.mrb[188].mxu0 }
 0x591   : > { %v10279_v8 = vpop.f32.mrb[189].mxu0  ;;  %10707 = vmatmul.mubr.msk.bf16.gmra.mrb[60].mxu1 %vm376_vm6, %v7075_v45 }
 0x592   : > { %v14434_v14 = vadd.f32 %v10237_v30, %v14355_v50  ;;  %v10280_v10 = vadd.f32 %v10279_v8, %v10278_v16  ;;  %v10281_v57 = vpop.f32.mrb[190].mxu0  ;;  %10710 = vmatprep.mubr.msk.bf16.mxu1 %vm376_vm6, %v7088_v4 }
 0x593   : > { %v10282_v34 = vpop.f32.mrb[191].mxu0 }
 0x594   : > { %v14438_v25 = vadd.f32 %v10280_v10, %v14227_v2  ;;  %v10283_v13 = vadd.f32 %v10282_v34, %v10281_v57  ;;  %v10238_v19 = vpop.f32.mrb[212].mxu1 }
 0x595   : > { %v10239_v6 = vpop.f32.mrb[213].mxu1  ;;  %8883 = vmatmul.mubr.bf16.gmra.mrb[40].mxu0 %v7047_v32 }
 0x596   : > { %v14441_v37 = vadd.f32 %v10283_v13, %v14234_v5  ;;  %v10240_v49 = vadd.f32 %v10239_v6, %v10238_v19  ;;  %v10241_v50 = vpop.f32.mrb[214].mxu1  ;;  %8890 = vmatprep.mubr.bf16.mxu0 %v7061_v40  ;;  %v7087_v13 = vld [vmem:[#allocation5 + $0x608] sm:$0xff]  ;;  %v7073_v6 = vld [vmem:[#allocation5 + $0x598] sm:$0xff] }
 0x597   : > { %v10242_v18 = vpop.f32.mrb[215].mxu1 }
 0x598   : > { %v14444_v43 = vadd.f32 %v10240_v49, %v14371_v28  ;;  %v10243_v29 = vadd.f32 %v10242_v18, %v10241_v50  ;;  %v10284_v2 = vpop.f32.mrb[192].mxu0  ;;  %v7074_v28 = vld [vmem:[#allocation5 + $0x5a0] sm:$0xff] }
 0x599   : > { %v10285_v36 = vpop.f32.mrb[193].mxu0  ;;  %10711 = vmatmul.mubr.msk.bf16.gmra.mrb[64].mxu1 %vm376_vm6, %v7101_v56 }
 0x59a   : > { %v14448_v12 = vadd.f32 %v10243_v29, %v14375_v52  ;;  %v10286_v58 = vadd.f32 %v10285_v36, %v10284_v2  ;;  %v10287_v46 = vpop.f32.mrb[194].mxu0 }
 0x59b   : > { %v10288_v5 = vpop.f32.mrb[195].mxu0 }
 0x59c   : > { %v14451_v22 = vadd.f32 %v10286_v58, %v14245_v20  ;;  %v10289_v53 = vadd.f32 %v10288_v5, %v10287_v46  ;;  %v10244_v38 = vpop.f32.mrb[216].mxu1  ;;  %v7086_v46 = vld [vmem:[#allocation5 + $0x600] sm:$0xff] }
 0x59d   : > { %v10245_v55 = vpop.f32.mrb[217].mxu1  ;;  %8891 = vmatmul.mubr.bf16.gmra.mrb[44].mxu0 %v7060_v26 }
 0x59e   : > { %v14454_v42 = vadd.f32 %v10289_v53, %v14252_v27  ;;  %v10246_v11 = vadd.f32 %v10245_v55, %v10244_v38  ;;  %v10247_v4 = vpop.f32.mrb[218].mxu1  ;;  %8898 = vmatprep.mubr.bf16.mxu0 %v7074_v28  ;;  %v7100_v53 = vld [vmem:[#allocation5 + $0x670] sm:$0xff] }
 0x59f   : > { %v10248_v52 = vpop.f32.mrb[219].mxu1 }
 0x5a0   : > { %v14457_v30 = vadd.f32 %v10246_v11, %v14393_v51  ;;  %v10249_v16 = vadd.f32 %v10248_v52, %v10247_v4  ;;  %v10290_v45 = vpop.f32.mrb[196].mxu0 }
 0x5a1   : > { %v10291_v20 = vpop.f32.mrb[197].mxu0 }
 0x5a2   : > { %v14460_v8 = vadd.f32 %v10249_v16, %v14397_v47  ;;  %v10292_v10 = vadd.f32 %v10291_v20, %v10290_v45  ;;  %v10293_v57 = vpop.f32.mrb[198].mxu0 }
 0x5a3   : > { %v10294_v34 = vpop.f32.mrb[199].mxu0 }
 0x5a4   : > { %v14463_v27 = vadd.f32 %v10292_v10, %v14263_v1  ;;  %v10295_v19 = vadd.f32 %v10294_v34, %v10293_v57  ;;  %v10250_v32 = vpop.f32.mrb[220].mxu1  ;;  %v7099_v57 = vld [vmem:[#allocation5 + $0x668] sm:$0xff] }
 0x5a5   : > { %v10251_v40 = vpop.f32.mrb[221].mxu1  ;;  %8899 = vmatmul.mubr.bf16.gmra.mrb[48].mxu0 %v7073_v6 }
 0x5a6   : > { %v14466_v51 = vadd.f32 %v10295_v19, %v14270_v31  ;;  %v10252_v49 = vadd.f32 %v10251_v40, %v10250_v32  ;;  %v10253_v50 = vpop.f32.mrb[222].mxu1  ;;  %8906 = vmatprep.mubr.bf16.mxu0 %v7087_v13 }
 0x5a7   : > { %v10254_v47 = vpop.f32.mrb[223].mxu1 }
 0x5a8   : > { %v14469_v56 = vadd.f32 %v10252_v49, %v14411_v33  ;;  %v10255_v18 = vadd.f32 %v10254_v47, %v10253_v50  ;;  %v10296_v29 = vpop.f32.mrb[200].mxu0 }
 0x5a9   : > { %v10297_v2 = vpop.f32.mrb[201].mxu0 }
 0x5aa   : > { %v14472_v1 = vadd.f32 %v10255_v18, %v14413_v23  ;;  %v10298_v36 = vadd.f32 %v10297_v2, %v10296_v29  ;;  %v10299_v58 = vpop.f32.mrb[202].mxu0 }
 0x5ab   : > { %v10300_v5 = vpop.f32.mrb[203].mxu0 }
 0x5ac   : > { %v14475_v31 = vadd.f32 %v10298_v36, %v14281_v15  ;;  %v10301_v38 = vadd.f32 %v10300_v5, %v10299_v58  ;;  %v10256_v26 = vpop.f32.mrb[224].mxu1 }
 0x5ad   : > { %v10257_v55 = vpop.f32.mrb[225].mxu1  ;;  %8907 = vmatmul.mubr.bf16.gmra.mrb[52].mxu0 %v7086_v46 }
 0x5ae   : > { %v14478_v33 = vadd.f32 %v10301_v38, %v14288_v54  ;;  %v10258_v28 = vadd.f32 %v10257_v55, %v10256_v26  ;;  %v10259_v11 = vpop.f32.mrb[226].mxu1  ;;  %8914 = vmatprep.mubr.bf16.mxu0 %v7100_v53 }
 0x5af   : > { %v10260_v23 = vpop.f32.mrb[227].mxu1 }
 0x5b0   : > { %v14481_v4 = vadd.f32 %v10258_v28, %v14425_v61  ;;  %v10261_v52 = vadd.f32 %v10260_v23, %v10259_v11  ;;  %v10302_v16 = vpop.f32.mrb[204].mxu0 }
 0x5b1   : > { %v10303_v45 = vpop.f32.mrb[205].mxu0 }
 0x5b2   : > { %v14484_v15 = vadd.f32 %v10261_v52, %v14427_v44  ;;  %v10304_v20 = vadd.f32 %v10303_v45, %v10302_v16  ;;  %v10305_v10 = vpop.f32.mrb[206].mxu0 }
 0x5b3   : > { %v10306_v34 = vpop.f32.mrb[207].mxu0 }
 0x5b4   : > { %v14487_v54 = vadd.f32 %v10304_v20, %v14299_v3  ;;  %v10307_v13 = vadd.f32 %v10306_v34, %v10305_v10  ;;  %v10390_v19 = vpop.f32.mrb[228].mxu1 }
 0x5b5   : > { %v10391_v32 = vpop.f32.mrb[229].mxu1  ;;  %8915 = vmatmul.mubr.bf16.gmra.mrb[56].mxu0 %v7099_v57 }
 0x5b6   : > { %v14490_v61 = vadd.f32 %v10307_v13, %v14306_v24  ;;  %v10392_v6 = vadd.f32 %v10391_v32, %v10390_v19  ;;  %v10393_v40 = vpop.f32.mrb[230].mxu1 }
 0x5b7   : > { %v10394_v49 = vpop.f32.mrb[231].mxu1 }
 0x5b8   : > { %v14493_v44 = vadd.f32 %v10392_v6, %v14438_v25  ;;  %v10395_v50 = vadd.f32 %v10394_v49, %v10393_v40  ;;  %v10308_v47 = vpop.f32.mrb[208].mxu0 }
 0x5b9   : > { %v10309_v18 = vpop.f32.mrb[209].mxu0 }
 0x5ba   : > { %v14496_v29 = vadd.f32 %v10395_v50, %v14441_v37  ;;  %v10310_v3 = vadd.f32 %v10309_v18, %v10308_v47  ;;  %v10311_v2 = vpop.f32.mrb[210].mxu0 }
 0x5bb   : > { %v10312_v36 = vpop.f32.mrb[211].mxu0 }
 0x5bc   : > { %v14499_v58 = vadd.f32 %v10310_v3, %v14318_v17  ;;  %v10313_v24 = vadd.f32 %v10312_v36, %v10311_v2  ;;  %v10396_v46 = vpop.f32.mrb[232].mxu1 }
 0x5bd   : > { %v10397_v5 = vpop.f32.mrb[233].mxu1 }
 0x5be   : > { %v14502_v53 = vadd.f32 %v10313_v24, %v14326_v9  ;;  %v10398_v25 = vadd.f32 %v10397_v5, %v10396_v46  ;;  %v10399_v38 = vpop.f32.mrb[234].mxu1 }
 0x5bf   : > { %v10400_v26 = vpop.f32.mrb[235].mxu1 }
 0x5c0   : > { %v14505_v55 = vadd.f32 %v10398_v25, %v14451_v22  ;;  %v10401_v37 = vadd.f32 %v10400_v26, %v10399_v38  ;;  %v10314_v28 = vpop.f32.mrb[212].mxu0 }
 0x5c1   : > { %v10315_v11 = vpop.f32.mrb[213].mxu0 }
 0x5c2   : > { %v14508_v23 = vadd.f32 %v10401_v37, %v14454_v42  ;;  %v10316_v17 = vadd.f32 %v10315_v11, %v10314_v28  ;;  %v10317_v52 = vpop.f32.mrb[214].mxu0 }
 0x5c3   : > { %v10318_v16 = vpop.f32.mrb[215].mxu0 }
 0x5c4   : > { %v14511_v45 = vadd.f32 %v10316_v17, %v14338_v0  ;;  %v10319_v9 = vadd.f32 %v10318_v16, %v10317_v52  ;;  %v10402_v20 = vpop.f32.mrb[236].mxu1 }
 0x5c5   : > { %v10403_v10 = vpop.f32.mrb[237].mxu1 }
 0x5c6   : > { %v14514_v57 = vadd.f32 %v10319_v9, %v14346_v63  ;;  %v10404_v22 = vadd.f32 %v10403_v10, %v10402_v20  ;;  %v10405_v34 = vpop.f32.mrb[238].mxu1 }
 0x5c7   : > { %v10406_v13 = vpop.f32.mrb[239].mxu1 }
 0x5c8   : > { %v14517_v19 = vadd.f32 %v10404_v22, %v14463_v27  ;;  %v10407_v42 = vadd.f32 %v10406_v13, %v10405_v34  ;;  %v10320_v32 = vpop.f32.mrb[216].mxu0 }
 0x5c9   : > { %v10321_v6 = vpop.f32.mrb[217].mxu0 }
 0x5ca   : > { %v14520_v40 = vadd.f32 %v10407_v42, %v14466_v51  ;;  %v10322_v0 = vadd.f32 %v10321_v6, %v10320_v32  ;;  %v10323_v49 = vpop.f32.mrb[218].mxu0 }
 0x5cb   : > { %v10324_v50 = vpop.f32.mrb[219].mxu0 }
 0x5cc   : > { %v14523_v47 = vadd.f32 %v10322_v0, %v14358_v35  ;;  %v10325_v63 = vadd.f32 %v10324_v50, %v10323_v49  ;;  %v10408_v18 = vpop.f32.mrb[240].mxu1 }
 0x5cd   : > { %v10409_v3 = vpop.f32.mrb[241].mxu1 }
 0x5ce   : > { %v14526_v2 = vadd.f32 %v10325_v63, %v14366_v41  ;;  %v10410_v27 = vadd.f32 %v10409_v3, %v10408_v18  ;;  %v10411_v36 = vpop.f32.mrb[242].mxu1 }
 0x5cf   : > { %v10412_v24 = vpop.f32.mrb[243].mxu1 }
 0x5d0   : > { %v14529_v46 = vadd.f32 %v10410_v27, %v14475_v31  ;;  %v10413_v51 = vadd.f32 %v10412_v24, %v10411_v36  ;;  %v10326_v5 = vpop.f32.mrb[220].mxu0 }
 0x5d1   : > { %v10327_v25 = vpop.f32.mrb[221].mxu0 }
 0x5d2   : > { %v14532_v38 = vadd.f32 %v10413_v51, %v14478_v33  ;;  %v10328_v35 = vadd.f32 %v10327_v25, %v10326_v5  ;;  %v10329_v26 = vpop.f32.mrb[222].mxu0 }
 0x5d3   : > { %v10330_v37 = vpop.f32.mrb[223].mxu0 }
 0x5d4   : > { %v14535_v28 = vadd.f32 %v10328_v35, %v14378_v21  ;;  %v10331_v41 = vadd.f32 %v10330_v37, %v10329_v26  ;;  %v10414_v11 = vpop.f32.mrb[244].mxu1 }
 0x5d5   : > { %v10415_v17 = vpop.f32.mrb[245].mxu1 }
 0x5d6   : > { %v14538_v52 = vadd.f32 %v10331_v41, %v14386_v60  ;;  %v10416_v31 = vadd.f32 %v10415_v17, %v10414_v11  ;;  %v10417_v16 = vpop.f32.mrb[246].mxu1 }
 0x5d7   : > { %v10418_v9 = vpop.f32.mrb[247].mxu1 }
 0x5d8   : > { %v14541_v20 = vadd.f32 %v10416_v31, %v14487_v54  ;;  %v10419_v33 = vadd.f32 %v10418_v9, %v10417_v16  ;;  %v10332_v10 = vpop.f32.mrb[224].mxu0 }
 0x5d9   : > { %v10333_v22 = vpop.f32.mrb[225].mxu0 }
 0x5da   : > { %v14544_v34 = vadd.f32 %v10419_v33, %v14490_v61  ;;  %v10334_v21 = vadd.f32 %v10333_v22, %v10332_v10  ;;  %v10335_v13 = vpop.f32.mrb[226].mxu0 }
 0x5db   : > { %v10336_v42 = vpop.f32.mrb[227].mxu0 }
 0x5dc   : > { %v14547_v32 = vadd.f32 %v10334_v21, %v14400_v48  ;;  %v10337_v60 = vadd.f32 %v10336_v42, %v10335_v13  ;;  %v10420_v6 = vpop.f32.mrb[248].mxu1 }
 0x5dd   : > { %v10421_v0 = vpop.f32.mrb[249].mxu1 }
 0x5de   : > { %v14550_v49 = vadd.f32 %v10337_v60, %v14407_v62  ;;  %v10422_v54 = vadd.f32 %v10421_v0, %v10420_v6  ;;  %v10423_v50 = vpop.f32.mrb[250].mxu1 }
 0x5df   : > { %v10424_v63 = vpop.f32.mrb[251].mxu1 }
 0x5e0   : > { %v14553_v18 = vadd.f32 %v10422_v54, %v14499_v58  ;;  %v10425_v61 = vadd.f32 %v10424_v63, %v10423_v50  ;;  %v10338_v3 = vpop.f32.mrb[228].mxu0 }
 0x5e1   : > { %v10339_v27 = vpop.f32.mrb[229].mxu0 }
 0x5e2   : > { %v14556_v36 = vadd.f32 %v10425_v61, %v14502_v53  ;;  %v10340_v48 = vadd.f32 %v10339_v27, %v10338_v3  ;;  %v10341_v24 = vpop.f32.mrb[230].mxu0 }
 0x5e3   : > { %v10342_v51 = vpop.f32.mrb[231].mxu0 }
 0x5e4   : > { %v14559_v5 = vadd.f32 %v10340_v48, %v14416_v59  ;;  %v10343_v62 = vadd.f32 %v10342_v51, %v10341_v24  ;;  %v10426_v25 = vpop.f32.mrb[252].mxu1 }
 0x5e5   : > { %v10427_v35 = vpop.f32.mrb[253].mxu1 }
 0x5e6   : > { %v14562_v26 = vadd.f32 %v10343_v62, %v14421_v7  ;;  %v10428_v58 = vadd.f32 %v10427_v35, %v10426_v25  ;;  %v10429_v37 = vpop.f32.mrb[254].mxu1 }
 0x5e7   : > { %v10430_v41 = vpop.f32.mrb[255].mxu1 }
 0x5e8   : > { %v14565_v11 = vadd.f32 %v10428_v58, %v14511_v45  ;;  %v10431_v53 = vadd.f32 %v10430_v41, %v10429_v37  ;;  %v10344_v17 = vpop.f32.mrb[232].mxu0 }
 0x5e9   : > { %v10345_v31 = vpop.f32.mrb[233].mxu0 }
 0x5ea   : > { %v14568_v16 = vadd.f32 %v10431_v53, %v14514_v57  ;;  %v10346_v59 = vadd.f32 %v10345_v31, %v10344_v17  ;;  %v10347_v9 = vpop.f32.mrb[234].mxu0 }
 0x5eb   : > { %v10348_v33 = vpop.f32.mrb[235].mxu0 }
 0x5ec   : > { %v14571_v10 = vadd.f32 %v10346_v59, %v14430_v39  ;;  %v10349_v7 = vadd.f32 %v10348_v33, %v10347_v9  ;;  %v10432_v22 = vpop.f32.mrb[0].mxu1 }
 0x5ed   : > { %v10433_v21 = vpop.f32.mrb[1].mxu1 }
 0x5ee   : > { %v14574_v13 = vadd.f32 %v10349_v7, %v14434_v14  ;;  %v10434_v45 = vadd.f32 %v10433_v21, %v10432_v22  ;;  %v10435_v42 = vpop.f32.mrb[2].mxu1 }
 0x5ef   : > { %v10436_v60 = vpop.f32.mrb[3].mxu1 }
 0x5f0   : > { %v14577_v6 = vadd.f32 %v10434_v45, %v14523_v47  ;;  %v10437_v57 = vadd.f32 %v10436_v60, %v10435_v42  ;;  %v10350_v0 = vpop.f32.mrb[236].mxu0 }
 0x5f1   : > { %v10351_v54 = vpop.f32.mrb[237].mxu0 }
 0x5f2   : > { %v14580_v50 = vadd.f32 %v10437_v57, %v14526_v2  ;;  %v10352_v39 = vadd.f32 %v10351_v54, %v10350_v0  ;;  %v10353_v63 = vpop.f32.mrb[238].mxu0 }
 0x5f3   : > { %v10354_v61 = vpop.f32.mrb[239].mxu0 }
 0x5f4   : > { %v14583_v3 = vadd.f32 %v10352_v39, %v14444_v43  ;;  %v10355_v14 = vadd.f32 %v10354_v61, %v10353_v63  ;;  %v10438_v27 = vpop.f32.mrb[4].mxu1 }
 0x5f5   : > { %v10439_v48 = vpop.f32.mrb[5].mxu1 }
 0x5f6   : > { %v14586_v24 = vadd.f32 %v10355_v14, %v14448_v12  ;;  %v10440_v47 = vadd.f32 %v10439_v48, %v10438_v27  ;;  %v10441_v51 = vpop.f32.mrb[6].mxu1 }
 0x5f7   : > { %v10442_v62 = vpop.f32.mrb[7].mxu1 }
 0x5f8   : > { %v14589_v25 = vadd.f32 %v10440_v47, %v14535_v28  ;;  %v10443_v2 = vadd.f32 %v10442_v62, %v10441_v51  ;;  %v10356_v35 = vpop.f32.mrb[240].mxu0 }
 0x5f9   : > { %v10357_v58 = vpop.f32.mrb[241].mxu0 }
 0x5fa   : > { %v14592_v37 = vadd.f32 %v10443_v2, %v14538_v52  ;;  %v10358_v43 = vadd.f32 %v10357_v58, %v10356_v35  ;;  %v10359_v41 = vpop.f32.mrb[242].mxu0 }
 0x5fb   : > { %v10360_v53 = vpop.f32.mrb[243].mxu0 }
 0x5fc   : > { %v14595_v17 = vadd.f32 %v10358_v43, %v14457_v30  ;;  %v10361_v12 = vadd.f32 %v10360_v53, %v10359_v41  ;;  %v10444_v31 = vpop.f32.mrb[8].mxu1 }
 0x5fd   : > { %v10445_v59 = vpop.f32.mrb[9].mxu1 }
 0x5fe   : > { %v14598_v9 = vadd.f32 %v10361_v12, %v14460_v8  ;;  %v10446_v28 = vadd.f32 %v10445_v59, %v10444_v31  ;;  %v10447_v33 = vpop.f32.mrb[10].mxu1 }
 0x5ff   : > { %v10448_v7 = vpop.f32.mrb[11].mxu1 }
 0x600   : > { %v14601_v22 = vadd.f32 %v10446_v28, %v14547_v32  ;;  %v10449_v52 = vadd.f32 %v10448_v7, %v10447_v33  ;;  %v10362_v21 = vpop.f32.mrb[244].mxu0 }
 0x601   : > { %v10363_v45 = vpop.f32.mrb[245].mxu0 }
 0x602   : > { %v14604_v42 = vadd.f32 %v10449_v52, %v14550_v49  ;;  %v10364_v30 = vadd.f32 %v10363_v45, %v10362_v21  ;;  %v10365_v60 = vpop.f32.mrb[246].mxu0 }
 0x603   : > { %v10366_v57 = vpop.f32.mrb[247].mxu0 }
 0x604   : > { %v14607_v0 = vadd.f32 %v10364_v30, %v14469_v56  ;;  %v10367_v8 = vadd.f32 %v10366_v57, %v10365_v60  ;;  %v10450_v54 = vpop.f32.mrb[12].mxu1 }
 0x605   : > { %v10451_v39 = vpop.f32.mrb[13].mxu1 }
 0x606   : > { %v14610_v63 = vadd.f32 %v10367_v8, %v14472_v1  ;;  %v10452_v32 = vadd.f32 %v10451_v39, %v10450_v54  ;;  %v10453_v61 = vpop.f32.mrb[14].mxu1 }
 0x607   : > { %v10454_v14 = vpop.f32.mrb[15].mxu1 }
 0x608   : > { %v14613_v27 = vadd.f32 %v10452_v32, %v14559_v5  ;;  %v10455_v49 = vadd.f32 %v10454_v14, %v10453_v61  ;;  %v10368_v48 = vpop.f32.mrb[248].mxu0 }
 0x609   : > { %v10369_v47 = vpop.f32.mrb[249].mxu0 }
 0x60a   : > { %v14616_v51 = vadd.f32 %v10455_v49, %v14562_v26  ;;  %v10370_v56 = vadd.f32 %v10369_v47, %v10368_v48  ;;  %v10371_v62 = vpop.f32.mrb[250].mxu0 }
 0x60b   : > { %v10372_v2 = vpop.f32.mrb[251].mxu0 }
 0x60c   : > { %v14619_v35 = vadd.f32 %v10370_v56, %v14481_v4  ;;  %v10373_v1 = vadd.f32 %v10372_v2, %v10371_v62  ;;  %v10456_v58 = vpop.f32.mrb[16].mxu1 }
 0x60d   : > { %v10457_v43 = vpop.f32.mrb[17].mxu1 }
 0x60e   : > { %v14622_v41 = vadd.f32 %v10373_v1, %v14484_v15  ;;  %v10458_v5 = vadd.f32 %v10457_v43, %v10456_v58  ;;  %v10459_v53 = vpop.f32.mrb[18].mxu1 }
 0x60f   : > { %v10460_v12 = vpop.f32.mrb[19].mxu1 }
 0x610   : > { %v14625_v31 = vadd.f32 %v10458_v5, %v14571_v10  ;;  %v10461_v26 = vadd.f32 %v10460_v12, %v10459_v53  ;;  %v10502_v59 = vpop.f32.mrb[252].mxu0 }
 0x611   : > { %v10503_v28 = vpop.f32.mrb[253].mxu0 }
 0x612   : > { %v14628_v33 = vadd.f32 %v10461_v26, %v14574_v13  ;;  %v10504_v4 = vadd.f32 %v10503_v28, %v10502_v59  ;;  %v10505_v7 = vpop.f32.mrb[254].mxu0  ;;  %v14639_v13 = vld [vmem:[%s14806_s6] sm:$0xff]  }
 0x613   : > { %v10506_v52 = vpop.f32.mrb[255].mxu0  ;;  %10634 = vmatprep.mubr.msk.bf16.mxu0 %vm376_vm6, %v14639_v13 }
 0x614   : > { %v10507_v21 = vadd.f32 %v10506_v52, %v10505_v7  ;;  %v10462_v45 = vpop.f32.mrb[20].mxu1  ;;  %v14631_v15 = vadd.f32 %v10504_v4, %v14493_v44 }
 0x615   : > { %v10463_v30 = vpop.f32.mrb[21].mxu1 }
 0x616   : > { %v10464_v60 = vadd.f32 %v10463_v30, %v10462_v45  ;;  %v10465_v57 = vpop.f32.mrb[22].mxu1  ;;  %v14634_v10 = vadd.f32 %v10507_v21, %v14496_v29  ;;  %v9136_v45 = vld [vmem:[%s14807_s7] sm:$0xff] }
 0x617   : > { %v10466_v8 = vpop.f32.mrb[23].mxu1 }
 0x618   : > { %v14642_v54 = vadd.f32 %v10464_v60, %v14583_v3  ;;  %v10467_v39 = vadd.f32 %v10466_v8, %v10465_v57  ;;  %v10508_v32 = vpop.f32.mrb[0].mxu0  ;;  %v10921_v60 = vmov 0  }
 0x619   : > { %v10509_v61 = vpop.f32.mrb[1].mxu0  ;;  %10752 = vset.pattern.permute.xlu1 %v10921_v60  ;;  %10751 = vset.pattern.permute.xlu0 %v10921_v60 }
 0x61a   : > { %v14647_v44 = vadd.f32 %v10467_v39, %v14586_v24  ;;  %v10510_v29 = vadd.f32 %v10509_v61, %v10508_v32  ;;  %v10511_v14 = vpop.f32.mrb[2].mxu0  ;;  %9142 = vperm.xlu0 %10751, %v9136_v45   ;;  %v9139_v39 = vld [vmem:[%s14807_s7 + $0x18] sm:$0xff]  ;;  %v9138_v32 = vld [vmem:[%s14807_s7 + $0x10] sm:$0xff] }
 0x61b   : > { %v10512_v49 = vpop.f32.mrb[3].mxu0 }
 0x61c   : > { %v10513_v48 = vadd.f32 %v10512_v49, %v10511_v14  ;;  %v10468_v47 = vpop.f32.mrb[24].mxu1  ;;  %v8805_v56 = vadd.f32 %v10510_v29, %v14505_v55 }
 0x61d   : > { %v10469_v62 = vpop.f32.mrb[25].mxu1 }
 0x61e   : > { %v10470_v2 = vadd.f32 %v10469_v62, %v10468_v47  ;;  %v10471_v3 = vpop.f32.mrb[26].mxu1  ;;  %v8808_v1 = vadd.f32 %v10513_v48, %v14508_v23  ;;  %9157 = vperm.xlu0 %10751, %v9139_v39  }
 0x61f   : > { %v10472_v58 = vpop.f32.mrb[27].mxu1 }
 0x620   : > { %v14652_v43 = vadd.f32 %v10470_v2, %v14595_v17  ;;  %v10473_v5 = vadd.f32 %v10472_v58, %v10471_v3  ;;  %v10514_v53 = vpop.f32.mrb[4].mxu0 }
 0x621   : > { %v10515_v24 = vpop.f32.mrb[5].mxu0 }
 0x622   : > { %v14655_v12 = vadd.f32 %v10473_v5, %v14598_v9  ;;  %v10516_v26 = vadd.f32 %v10515_v24, %v10514_v53  ;;  %v10517_v59 = vpop.f32.mrb[6].mxu0  ;;  %v9137_v9 = vld [vmem:[%s14807_s7 + $0x8] sm:$0xff] }
 0x623   : > { %v10518_v28 = vpop.f32.mrb[7].mxu0  ;;  %9147 = vperm.xlu1 %10752, %v9137_v9  }
 0x624   : > { %v10519_v4 = vadd.f32 %v10518_v28, %v10517_v59  ;;  %v10474_v55 = vpop.f32.mrb[28].mxu1  ;;  %v14658_v7 = vadd.f32 %v10516_v26, %v14517_v19 }
 0x625   : > { %v10475_v52 = vpop.f32.mrb[29].mxu1 }
 0x626   : > { %v10476_v23 = vadd.f32 %v10475_v52, %v10474_v55  ;;  %v10477_v21 = vpop.f32.mrb[30].mxu1  ;;  %v14661_v17 = vadd.f32 %v10519_v4, %v14520_v40 }
 0x627   : > { %v10478_v30 = vpop.f32.mrb[31].mxu1  ;;  %9152 = vperm.xlu1 %10752, %v9138_v32  }
 0x628   : > { %v14670_v19 = vadd.f32 %v10476_v23, %v14607_v0  ;;  %v10479_v57 = vadd.f32 %v10478_v30, %v10477_v21  ;;  %v10520_v8 = vpop.f32.mrb[8].mxu0 }
 0x629   : > { %v10521_v40 = vpop.f32.mrb[9].mxu0 }
 0x62a   : > { %v14679_v61 = vadd.f32 %v10479_v57, %v14610_v63  ;;  %v10522_v29 = vadd.f32 %v10521_v40, %v10520_v8  ;;  %v10523_v14 = vpop.f32.mrb[10].mxu0 }
 0x62b   : > { %v10524_v0 = vpop.f32.mrb[11].mxu0 }
 0x62c   : > { %v10525_v49 = vadd.f32 %v10524_v0, %v10523_v14  ;;  %v10480_v48 = vpop.f32.mrb[32].mxu1  ;;  %v8821_v47 = vadd.f32 %v10522_v29, %v14529_v46 }
 0x62d   : > { %v10481_v62 = vpop.f32.mrb[33].mxu1 }
 0x62e   : > { %v10482_v2 = vadd.f32 %v10481_v62, %v10480_v48  ;;  %v10483_v3 = vpop.f32.mrb[34].mxu1  ;;  %v8824_v58 = vadd.f32 %v10525_v49, %v14532_v38 }
 0x62f   : > { %v10484_v5 = vpop.f32.mrb[35].mxu1 }
 0x630   : > { %v14684_v53 = vadd.f32 %v10482_v2, %v14619_v35  ;;  %v10485_v63 = vadd.f32 %v10484_v5, %v10483_v3  ;;  %v10526_v24 = vpop.f32.mrb[12].mxu0 }
 0x631   : > { %v10527_v26 = vpop.f32.mrb[13].mxu0 }
 0x632   : > { %v14687_v59 = vadd.f32 %v10485_v63, %v14622_v41  ;;  %v10528_v28 = vadd.f32 %v10527_v26, %v10526_v24  ;;  %v10529_v4 = vpop.f32.mrb[14].mxu0 }
 0x633   : > { %v10530_v46 = vpop.f32.mrb[15].mxu0 }
 0x634   : > { %v10531_v55 = vadd.f32 %v10530_v46, %v10529_v4  ;;  %v10684_v52 = vpop.f32.mrb[36].mxu1  ;;  %v8829_v23 = vadd.f32 %v10528_v28, %v14541_v20 }
 0x635   : > { %v8966_v21 = vadd.f32 %v10684_v52, %v8805_v56  ;;  %v8957_v45 = vpop.f32.mrb[37].mxu1 }
 0x636   : > { %v8958_v38 = vadd.f32 %v8957_v45, %v14631_v15  ;;  %v10685_v9 = vpop.f32.mrb[38].mxu1  ;;  %v8832_v35 = vadd.f32 %v10531_v55, %v14544_v34 }
 0x637   : > { %v8969_v30 = vadd.f32 %v10685_v9, %v8808_v1  ;;  %v8960_v60 = vpop.f32.mrb[39].mxu1  ;;  %v9086_v8 = vmax.f32 %v8966_v21, 0.0 }
 0x638   : > { %v8961_v57 = vadd.f32 %v8960_v60, %v14634_v10  ;;  %v10532_v41 = vpop.f32.mrb[16].mxu0  ;;  %v9084_v32 = vmax.f32 %v8958_v38, 0.0 }
 0x639   : > { %v9087_v40 = vmax.f32 %v8969_v30, 0.0  ;;  %v10533_v39 = vpop.f32.mrb[17].mxu0 }
 0x63a   : > { %v9085_v29 = vmax.f32 %v8961_v57, 0.0  ;;  %v10534_v14 = vadd.f32 %v10533_v39, %v10532_v41  ;;  %v10535_v0 = vpop.f32.mrb[18].mxu0 }
 0x63b   : > { %v14693_v20 = vpack.c.bf16 %v9087_v40, %v9086_v8  ;;  %v10536_v56 = vpop.f32.mrb[19].mxu0 }
 0x63c   : > { %v14695_v49 = vpack.c.bf16 %v9085_v29, %v9084_v32  ;;  %v10537_v15 = vadd.f32 %v10536_v56, %v10535_v0  ;;  %v10688_v48 = vpop.f32.mrb[40].mxu1  ;;  %v8837_v34 = vadd.f32 %v10534_v14, %v14553_v18 }
 0x63d   : > { %v8982_v1 = vadd.f32 %v10688_v48, %v8821_v47  ;;  %v8973_v62 = vpop.f32.mrb[41].mxu1 }
 0x63e   : > { %v8974_v10 = vadd.f32 %v8973_v62, %v14658_v7  ;;  %v10689_v2 = vpop.f32.mrb[42].mxu1  ;;  %v8840_v3 = vadd.f32 %v10537_v15, %v14556_v36 }
 0x63f   : > { %v8985_v5 = vadd.f32 %v10689_v2, %v8824_v58  ;;  %v8976_v63 = vpop.f32.mrb[43].mxu1  ;;  %v9090_v28 = vmax.f32 %v8982_v1, 0.0 }
 0x640   : > { %v8977_v24 = vadd.f32 %v8976_v63, %v14661_v17  ;;  %v10538_v26 = vpop.f32.mrb[20].mxu0  ;;  %v9088_v55 = vmax.f32 %v8974_v10, 0.0 }
 0x641   : > { %v9091_v4 = vmax.f32 %v8985_v5, 0.0  ;;  %v10539_v46 = vpop.f32.mrb[21].mxu0 }
 0x642   : > { %v9089_v52 = vmax.f32 %v8977_v24, 0.0  ;;  %v10540_v21 = vadd.f32 %v10539_v46, %v10538_v26  ;;  %v10541_v45 = vpop.f32.mrb[22].mxu0 }
 0x643   : > { %v14701_v18 = vpack.c.bf16 %v9091_v4, %v9090_v28  ;;  %v10542_v47 = vpop.f32.mrb[23].mxu0 }
 0x644   : > { %v14703_v38 = vpack.c.bf16 %v9089_v52, %v9088_v55  ;;  %v10543_v7 = vadd.f32 %v10542_v47, %v10541_v45  ;;  %v10692_v9 = vpop.f32.mrb[44].mxu1  ;;  %v8845_v36 = vadd.f32 %v10540_v21, %v14565_v11 }
 0x645   : > { %v8998_v58 = vadd.f32 %v10692_v9, %v8837_v34  ;;  %v8989_v30 = vpop.f32.mrb[45].mxu1 }
 0x646   : > { %v8990_v17 = vadd.f32 %v8989_v30, %v8829_v23  ;;  %v10693_v60 = vpop.f32.mrb[46].mxu1  ;;  %v8848_v57 = vadd.f32 %v10543_v7, %v14568_v16 }
 0x647   : > { %v9001_v41 = vadd.f32 %v10693_v60, %v8840_v3  ;;  %v8992_v8 = vpop.f32.mrb[47].mxu1  ;;  %v9094_v32 = vmax.f32 %v8998_v58, 0.0 }
 0x648   : > { %v8993_v40 = vadd.f32 %v8992_v8, %v8832_v35  ;;  %v10544_v39 = vpop.f32.mrb[24].mxu0  ;;  %v9092_v0 = vmax.f32 %v8990_v17, 0.0 }
 0x649   : > { %v9095_v29 = vmax.f32 %v9001_v41, 0.0  ;;  %v10545_v14 = vpop.f32.mrb[25].mxu0 }
 0x64a   : > { %v9093_v56 = vmax.f32 %v8993_v40, 0.0  ;;  %v10546_v15 = vadd.f32 %v10545_v14, %v10544_v39  ;;  %v10547_v48 = vpop.f32.mrb[26].mxu0 }
 0x64b   : > { %v14707_v1 = vpack.c.bf16 %v9095_v29, %v9094_v32  ;;  %v10548_v11 = vpop.f32.mrb[27].mxu0 }
 0x64c   : > { %v14709_v34 = vpack.c.bf16 %v9093_v56, %v9092_v0  ;;  %v10549_v23 = vadd.f32 %v10548_v11, %v10547_v48  ;;  %v8853_v62 = vadd.f32 %v10546_v15, %v14577_v6  ;;  %v10696_v16 = vpop.f32.mrb[48].mxu1 }
 0x64d   : > { %v9005_v10 = vpop.f32.mrb[49].mxu1 }
 0x64e   : > { %v9014_v2 = vadd.f32 %v10696_v16, %v8853_v62  ;;  %v9006_v35 = vadd.f32 %v9005_v10, %v8845_v36  ;;  %v8856_v3 = vadd.f32 %v10549_v23, %v14580_v50  ;;  %v10697_v5 = vpop.f32.mrb[50].mxu1 }
 0x64f   : > { %v9008_v63 = vpop.f32.mrb[51].mxu1 }
 0x650   : > { %v9017_v24 = vadd.f32 %v10697_v5, %v8856_v3  ;;  %v9009_v26 = vadd.f32 %v9008_v63, %v8848_v57  ;;  %v10550_v28 = vpop.f32.mrb[28].mxu0  ;;  %v9098_v4 = vmax.f32 %v9014_v2, 0.0  ;;  %v9096_v55 = vmax.f32 %v9006_v35, 0.0 }
 0x651   : > { %v10551_v46 = vpop.f32.mrb[29].mxu0 }
 0x652   : > { %v9099_v52 = vmax.f32 %v9017_v24, 0.0  ;;  %v9097_v21 = vmax.f32 %v9009_v26, 0.0  ;;  %v10552_v45 = vadd.f32 %v10551_v46, %v10550_v28  ;;  %v10553_v47 = vpop.f32.mrb[30].mxu0 }
 0x653   : > { %v10554_v7 = vpop.f32.mrb[31].mxu0 }
 0x654   : > { %v14713_v6 = vpack.c.bf16 %v9099_v52, %v9098_v4  ;;  %v14715_v9 = vpack.c.bf16 %v9097_v21, %v9096_v55  ;;  %v10555_v36 = vadd.f32 %v10554_v7, %v10553_v47  ;;  %v10700_v58 = vpop.f32.mrb[52].mxu1  ;;  %v8861_v50 = vadd.f32 %v10552_v45, %v14589_v25 }
 0x655   : > { %v9021_v30 = vpop.f32.mrb[53].mxu1  ;;  %v9180_v47 = vsel %vm376_vm6, %v14693_v20, 0 }
 0x656   : > { %v9022_v17 = vadd.f32 %v9021_v30, %v8861_v50  ;;  %v10701_v60 = vpop.f32.mrb[54].mxu1  ;;  %v8864_v57 = vadd.f32 %v10555_v36, %v14592_v37  ;;  %v9177_v37 = vsel %vm376_vm6, %v14695_v49, 0 }
 0x657   : > { %v9024_v41 = vpop.f32.mrb[55].mxu1 }
 0x658   : > { %v9025_v8 = vadd.f32 %v9024_v41, %v8864_v57  ;;  %v10556_v40 = vpop.f32.mrb[32].mxu0  ;;  %v9100_v32 = vmax.f32 %v9022_v17, 0.0 }
 0x659   : > { %v10557_v39 = vpop.f32.mrb[33].mxu0 }
 0x65a   : > { %v9101_v29 = vmax.f32 %v9025_v8, 0.0  ;;  %v10558_v14 = vadd.f32 %v10557_v39, %v10556_v40  ;;  %v10559_v0 = vpop.f32.mrb[34].mxu0 }
 0x65b   : > { %v10560_v56 = vpop.f32.mrb[35].mxu0 }
 0x65c   : > { %v9128_v15 = vpack.c.bf16 %v9101_v29, %v9100_v32  ;;  %v8869_v48 = vadd.f32 %v10558_v14, %v14601_v22  ;;  %v10561_v11 = vadd.f32 %v10560_v56, %v10559_v0  ;;  %v10704_v23 = vpop.f32.mrb[56].mxu1  ;;  %v9183_v29 = vsel %vm376_vm6, %v14703_v38, 0 }
 0x65d   : > { %v9037_v25 = vpop.f32.mrb[57].mxu1  ;;  %v9186_v38 = vsel %vm376_vm6, %v14701_v18, 0  ;;  %v9189_v18 = vsel %vm376_vm6, %v14709_v34, 0  ;;  %v9192_v34 = vsel %vm376_vm6, %v14707_v1, 0  ;;  %v9195_v1 = vsel %vm376_vm6, %v14715_v9, 0 }
 0x65e   : > { %v9030_v62 = vadd.f32 %v10700_v58, %v8869_v48  ;;  %v8872_v16 = vadd.f32 %v10561_v11, %v14604_v42  ;;  %v10705_v10 = vpop.f32.mrb[58].mxu1  ;;  %10730 = vmatprep.subr.msk.bf16.mxu0 %vm376_vm6, %v9128_v15 }
 0x65f   : > { %v9040_v2 = vpop.f32.mrb[59].mxu1  ;;  %10619 = vmatpush3.bf16.xpose.msra.mxu0 %v9177_v37 }
 0x660   : > { %v9033_v35 = vadd.f32 %v10701_v60, %v8872_v16  ;;  %v10562_v3 = vpop.f32.mrb[36].mxu0  ;;  %v9102_v63 = vmax.f32 %v9030_v62, 0.0 }
 0x661   : > { %v10563_v5 = vpop.f32.mrb[37].mxu0 }
 0x662   : > { %v9103_v24 = vmax.f32 %v9033_v35, 0.0  ;;  %v10564_v22 = vadd.f32 %v10563_v5, %v10562_v3  ;;  %v10565_v26 = vpop.f32.mrb[38].mxu0 }
 0x663   : > { %v10566_v28 = vpop.f32.mrb[39].mxu0 }
 0x664   : > { %v9129_v4 = vpack.c.bf16 %v9103_v24, %v9102_v63  ;;  %v8877_v46 = vadd.f32 %v10564_v22, %v14613_v27  ;;  %v10567_v42 = vadd.f32 %v10566_v28, %v10565_v26  ;;  %v10708_v55 = vpop.f32.mrb[60].mxu1 }
 0x665   : > { %v9053_v52 = vpop.f32.mrb[61].mxu1 }
 0x666   : > { %v9038_v21 = vadd.f32 %v9037_v25, %v8877_v46  ;;  %v8880_v45 = vadd.f32 %v10567_v42, %v14616_v51  ;;  %v10709_v49 = vpop.f32.mrb[62].mxu1  ;;  %10731 = vmatprep.subr.msk.bf16.mxu0 %vm376_vm6, %v9129_v4 }
 0x667   : > { %v9056_v7 = vpop.f32.mrb[63].mxu1  ;;  %10621 = vmatpush3.bf16.xpose.msra.mxu0 %v9180_v47 }
 0x668   : > { %v9041_v36 = vadd.f32 %v9040_v2, %v8880_v45  ;;  %v10568_v58 = vpop.f32.mrb[40].mxu0  ;;  %v9104_v30 = vmax.f32 %v9038_v21, 0.0 }
 0x669   : > { %v10569_v50 = vpop.f32.mrb[41].mxu0 }
 0x66a   : > { %v9105_v17 = vmax.f32 %v9041_v36, 0.0  ;;  %v10570_v27 = vadd.f32 %v10569_v50, %v10568_v58  ;;  %v10571_v60 = vpop.f32.mrb[42].mxu0 }
 0x66b   : > { %v10572_v57 = vpop.f32.mrb[43].mxu0 }
 0x66c   : > { %v9130_v41 = vpack.c.bf16 %v9105_v17, %v9104_v30  ;;  %v8885_v8 = vadd.f32 %v10570_v27, %v14625_v31  ;;  %v10573_v51 = vadd.f32 %v10572_v57, %v10571_v60  ;;  %v14730_v40 = vpop.f32.mrb[64].mxu1 }
 0x66d   : > { %v9069_v39 = vpop.f32.mrb[65].mxu1 }
 0x66e   : > { %v9046_v32 = vadd.f32 %v10704_v23, %v8885_v8  ;;  %v8888_v20 = vadd.f32 %v10573_v51, %v14628_v33  ;;  %10732 = vmatprep.subr.msk.bf16.mxu0 %vm376_vm6, %v9130_v41  ;;  %v14736_v14 = vpop.f32.mrb[66].mxu1 }
 0x66f   : > { %10623 = vmatpush3.bf16.xpose.msra.mxu0 %v9183_v29  ;;  %v9072_v0 = vpop.f32.mrb[67].mxu1 }
 0x670   : > { %v9049_v56 = vadd.f32 %v10705_v10, %v8888_v20  ;;  %v10574_v15 = vpop.f32.mrb[44].mxu0  ;;  %v9106_v31 = vmax.f32 %v9046_v32, 0.0 }
 0x671   : > { %v10575_v48 = vpop.f32.mrb[45].mxu0 }
 0x672   : > { %v9107_v11 = vmax.f32 %v9049_v56, 0.0  ;;  %v10576_v25 = vadd.f32 %v10575_v48, %v10574_v15  ;;  %v10577_v62 = vpop.f32.mrb[46].mxu0 }
 0x673   : > { %v10578_v16 = vpop.f32.mrb[47].mxu0 }
 0x674   : > { %v9131_v23 = vpack.c.bf16 %v9107_v11, %v9106_v31  ;;  %v8893_v33 = vadd.f32 %v10576_v25, %v14642_v54  ;;  %v10579_v37 = vadd.f32 %v10578_v16, %v10577_v62  ;;  %v9279_v16 = vld [vmem:[%s14774_s19 + $0x10] sm:$0xff] }
 0x676   : > { %v9054_v2 = vadd.f32 %v9053_v52, %v8893_v33  ;;  %v8896_v35 = vadd.f32 %v10579_v37, %v14647_v44  ;;  %10733 = vmatprep.subr.msk.bf16.mxu0 %vm376_vm6, %v9131_v23 }
 0x677   : > { %10625 = vmatpush3.bf16.xpose.msra.mxu0 %v9186_v38 }
 0x678   : > { %v9057_v10 = vadd.f32 %v9056_v7, %v8896_v35  ;;  %v10580_v3 = vpop.f32.mrb[48].mxu0  ;;  %v9108_v63 = vmax.f32 %v9054_v2, 0.0  ;;  %v9280_v2 = vld [vmem:[%s14774_s19 + $0x18] sm:$0xff] }
 0x679   : > { %v10581_v5 = vpop.f32.mrb[49].mxu0 }
 0x67a   : > { %v9109_v24 = vmax.f32 %v9057_v10, 0.0  ;;  %v10582_v22 = vadd.f32 %v10581_v5, %v10580_v3  ;;  %v10583_v26 = vpop.f32.mrb[50].mxu0 }
 0x67b   : > { %v10584_v28 = vpop.f32.mrb[51].mxu0 }
 0x67c   : > { %v9132_v4 = vpack.c.bf16 %v9109_v24, %v9108_v63  ;;  %v8901_v54 = vadd.f32 %v10582_v22, %v14652_v43  ;;  %v10585_v46 = vadd.f32 %v10584_v28, %v10583_v26  ;;  %v9281_v24 = vld [vmem:[%s14774_s19 + $0x20] sm:$0xff]  ;;  %v9282_v26 = vld [vmem:[%s14774_s19 + $0x28] sm:$0xff] }
 0x67e   : > { %v9062_v42 = vadd.f32 %v10708_v55, %v8901_v54  ;;  %v8904_v44 = vadd.f32 %v10585_v46, %v14655_v12  ;;  %10734 = vmatprep.subr.msk.bf16.mxu0 %vm376_vm6, %v9132_v4  ;;  %v9283_v54 = vld [vmem:[%s14774_s19 + $0x30] sm:$0xff] }
 0x67f   : > { %10627 = vmatpush3.bf16.xpose.msra.mxu0 %v9189_v18 }
 0x680   : > { %v9065_v52 = vadd.f32 %v10709_v49, %v8904_v44  ;;  %v10586_v21 = vpop.f32.mrb[52].mxu0  ;;  %v9110_v47 = vmax.f32 %v9062_v42, 0.0 }
 0x681   : > { %v10587_v45 = vpop.f32.mrb[53].mxu0 }
 0x682   : > { %v9111_v7 = vmax.f32 %v9065_v52, 0.0  ;;  %v10588_v36 = vadd.f32 %v10587_v45, %v10586_v21  ;;  %v10589_v58 = vpop.f32.mrb[54].mxu0  ;;  %v9284_v21 = vld [vmem:[%s14774_s19 + $0x38] sm:$0xff] }
 0x683   : > { %v10590_v50 = vpop.f32.mrb[55].mxu0 }
 0x684   : > { %v9133_v30 = vpack.c.bf16 %v9111_v7, %v9110_v47  ;;  %v10591_v43 = vadd.f32 %v10590_v50, %v10589_v58  ;;  %v8909_v55 = vadd.f32 %v10588_v36, %v14670_v19 }
 0x686   : > { %v9070_v17 = vadd.f32 %v9069_v39, %v8909_v55  ;;  %10735 = vmatprep.subr.msk.bf16.mxu0 %vm376_vm6, %v9133_v30  ;;  %v8912_v12 = vadd.f32 %v10591_v43, %v14679_v61 }
 0x687   : > { %10629 = vmatpush3.bf16.xpose.msra.mxu0 %v9192_v34 }
 0x688   : > { %v9073_v49 = vadd.f32 %v9072_v0, %v8912_v12  ;;  %v10592_v27 = vpop.f32.mrb[56].mxu0  ;;  %v9112_v57 = vmax.f32 %v9070_v17, 0.0 }
 0x689   : > { %v10593_v60 = vpop.f32.mrb[57].mxu0 }
 0x68a   : > { %v9113_v41 = vmax.f32 %v9073_v49, 0.0  ;;  %v10594_v8 = vadd.f32 %v10593_v60, %v10592_v27  ;;  %v10595_v51 = vpop.f32.mrb[58].mxu0 }
 0x68b   : > { %v10596_v32 = vpop.f32.mrb[59].mxu0 }
 0x68c   : > { %v9134_v20 = vpack.c.bf16 %v9113_v41, %v9112_v57  ;;  %v8917_v19 = vadd.f32 %v10594_v8, %v14684_v53  ;;  %v10597_v39 = vadd.f32 %v10596_v32, %v10595_v51  ;;  %v9198_v53 = vsel %vm376_vm6, %v14713_v6, 0 }
 0x68e   : > { %v9078_v29 = vadd.f32 %v14730_v40, %v8917_v19  ;;  %v8920_v61 = vadd.f32 %v10597_v39, %v14687_v59  ;;  %10736 = vmatprep.subr.msk.bf16.mxu0 %vm376_vm6, %v9134_v20  ;;  %v10904_v59 = vld [vmem:[%s14806_s6 + $0x8] sm:$0xff]   ;;  %v9277_v40 = vld [vmem:[%s14774_s19] sm:$0xff] }
 0x68f   : > { %10631 = vmatpush3.bf16.xpose.msra.mxu0 %v9195_v1 }
 0x690   : > { %v9081_v0 = vadd.f32 %v14736_v14, %v8920_v61  ;;  %v9114_v56 = vmax.f32 %v9078_v29, 0.0 }
 0x692   : > { %v9115_v15 = vmax.f32 %v9081_v0, 0.0 }
 0x694   : > { %v9135_v48 = vpack.c.bf16 %v9115_v15, %v9114_v56 }
 0x696   : > { %10737 = vmatprep.subr.msk.bf16.mxu0 %vm376_vm6, %v9135_v48 }
 0x697   : > { %10633 = vmatpush3.bf16.xpose.msra.mxu0 %v9198_v53 }
 0x699   : > { %v9143_v6 = vpop.permute.xlu0 %9142 }
 0x69d   : > { %v9158_v46 = vpop.permute.xlu0 %9157 }
 0x69e   : > { %10635 = vmatmul.mubr.msk.bf16.vlgmr.msra.gmra.mrb[60].mxu0 %vm376_vm6, %v14639_v13  ;;  %v9278_v13 = vld [vmem:[%s14774_s19 + $0x8] sm:$0xff] }
 0x69f   : > { %10636 = vmatprep.mubr.msk.bf16.mxu0 %vm376_vm6, %v10904_v59 }
 0x6a2   : > { %v9148_v14 = vpop.permute.xlu1 %9147 }
 0x6a6   : > { %10637 = vmatmul.mubr.msk.bf16.gmra.mrb[64].mxu0 %vm376_vm6, %v10904_v59  ;;  %v9153_v5 = vpop.permute.xlu1 %9152 }
 0x771   : > { %v9258_v9 = vpop.f32.mrb[60].mxu0 }
 0x772   : > { %v9260_v31 = vpop.f32.mrb[61].mxu0  ;;  %v9259_v11 = vadd.f32 %v9258_v9, %v9143_v6 }
 0x773   : > { %v9262_v25 = vpop.f32.mrb[62].mxu0  ;;  %v9261_v62 = vadd.f32 %v9260_v31, %v9143_v6 }
 0x774   : > { %v9285_v23 = vadd.f32 %v9277_v40, %v9259_v11  ;;  %v9263_v33 = vadd.f32 %v9262_v25, %v9148_v14  ;;  %v9264_v37 = vpop.f32.mrb[63].mxu0 }
 0x775   : > { %v9286_v35 = vadd.f32 %v9278_v13, %v9261_v62  ;;  %v9265_v38 = vadd.f32 %v9264_v37, %v9148_v14 }
 0x776   : > { %9293 = vst [vmem:[%s14781_s28] sm:$0xff] %v9285_v23  ;;  %v9287_v10 = vadd.f32 %v9279_v16, %v9263_v33 }
 0x777   : > { %9294 = vst [vmem:[%s14781_s28 + $0x8] sm:$0xff] %v9286_v35  ;;  %v9288_v3 = vadd.f32 %v9280_v2, %v9265_v38 }
 0x778   : > { %9295 = vst [vmem:[%s14781_s28 + $0x10] sm:$0xff] %v9287_v10 }
 0x779   : > { %9296 = vst [vmem:[%s14781_s28 + $0x18] sm:$0xff] %v9288_v3  ;;  %v9268_v63 = vpop.f32.mrb[64].mxu0 }
 0x77a   : > { %v9270_v22 = vpop.f32.mrb[65].mxu0  ;;  %v9269_v28 = vadd.f32 %v9268_v63, %v9153_v5 }
 0x77b   : > { %v9272_v4 = vpop.f32.mrb[66].mxu0  ;;  %v9271_v42 = vadd.f32 %v9270_v22, %v9153_v5 }
 0x77c   : > { %v9273_v44 = vadd.f32 %v9272_v4, %v9158_v46  ;;  %v9289_v18 = vadd.f32 %v9281_v24, %v9269_v28  ;;  %v9274_v52 = vpop.f32.mrb[67].mxu0 }
 0x77d   : > { %v9290_v45 = vadd.f32 %v9282_v26, %v9271_v42  ;;  %v9275_v47 = vadd.f32 %v9274_v52, %v9158_v46 }
 0x77e   : > { %v9291_v7 = vadd.f32 %v9283_v54, %v9273_v44  ;;  %9297 = vst [vmem:[%s14781_s28 + $0x20] sm:$0xff] %v9289_v18 }
 0x77f   : > { %9298 = vst [vmem:[%s14781_s28 + $0x28] sm:$0xff] %v9290_v45  ;;  %v9292_v36 = vadd.f32 %v9284_v21, %v9275_v47 }
 0x780   : > { %9299 = vst [vmem:[%s14781_s28 + $0x30] sm:$0xff] %v9291_v7 }
 0x781   : > { %9300 = vst [vmem:[%s14781_s28 + $0x38] sm:$0xff] %v9292_v36 }
 0x782 PF: > { %s18_s27 = sadd.s32 1, %s10915_s27  }
 0x783   : > { %p15_p4 = scmp.ge.s32.totalorder %s18_s27, 4  }
 0x785   :  { %17 = sbr.rel (!%p15_p4) target bundleno = 1 (0x1), region = 95 }

</bundles_post_ra>
